<compile_context>
chip_gen: v6e
topology: v6e:2x2x1
jax: 0.10.0
libtpu: 0.0.40
codegen_flags: <defaults>
</compile_context>

<pallas_src>
import functools

import jax
import jax.numpy as jnp
from jax.experimental import pallas as pl
from jax.experimental.pallas import tpu as pltpu

EPS = 1e-5
LANE = 128            # channel axis is padded to a multiple of the lane width
SUBLANE = 8           # padded W is rounded to a multiple of this (free reshapes)
MXU_DTYPE = jnp.float32   # set to jnp.bfloat16 on v6e/v7x for ~2x MXU throughput


def _round_up(x, m):
    return (x + m - 1) // m * m


# --------------------------------------------------------------------------- #
# shared 3x3 "same" conv over one assembled, zero-padded row band              #
# --------------------------------------------------------------------------- #
def _accumulate_conv(xs_ref, w_ref, acc_ref, *, th, wp, w):
    """xs_ref : VMEM (th+2, wp, Ci) - rows r..r+2 feed output row r; columns 0
                and w+1.. are zero, so the result's border columns stay zero.
       w_ref  : VMEM (9, Ci, Co)    - HWIO weights, taps flattened as dy*3+dx.
       acc_ref: VMEM (th, wp, Co)   - f32 accumulator (first tap assigns)."""
    ci = xs_ref.shape[-1]
    for dy in range(3):
        # Contiguous full-width slab -> a single 2-D MXU operand per tap
        # (K = Ci = 128 after channel padding); reshape is layout-free since
        # wp % 8 == 0.  No per-tap W-window slicing of the input.
        slab = xs_ref[pl.ds(dy, th)].reshape(th * wp, ci).astype(MXU_DTYPE)
        mid = jnp.dot(slab, w_ref[3 * dy + 1].astype(MXU_DTYPE),
                      preferred_element_type=jnp.float32).reshape(th, wp, -1)
        left = jnp.dot(slab, w_ref[3 * dy + 0].astype(MXU_DTYPE),
                       preferred_element_type=jnp.float32).reshape(th, wp, -1)
        right = jnp.dot(slab, w_ref[3 * dy + 2].astype(MXU_DTYPE),
                        preferred_element_type=jnp.float32).reshape(th, wp, -1)
        # dx = 1 is column-aligned; dx = 0 / 2 land one column right / left.
        if dy == 0:
            acc_ref[...] = mid
        else:
            acc_ref[...] += mid
        acc_ref[:, 1:w + 1, :] += left[:, 0:w, :] + right[:, 2:w + 2, :]


def _band_stats(res):
    """Per-band partial BN statistics: (2, C) = [sum, sum of squares]."""
    s = jnp.sum(jnp.sum(res, axis=0), axis=0, keepdims=True)
    ss = jnp.sum(jnp.sum(res * res, axis=0), axis=0, keepdims=True)
    return jnp.concatenate([s, ss], axis=0)


# --------------------------------------------------------------------------- #
# pass 1: conv1 + partial BN1 statistics                                       #
# --------------------------------------------------------------------------- #
def _conv1_kernel(xa_ref, xb_ref, xc_ref, w_ref, y_ref, st_ref, xs_ref, acc_ref,
                  *, th, wp, w):
    # Assemble the (th+2)-row halo window with full-width lane-dense stores.
    xs_ref[pl.ds(0, th)] = xa_ref[0]
    xs_ref[th] = xb_ref[0, 0]
    xs_ref[th + 1] = xc_ref[0, 0]

    _accumulate_conv(xs_ref, w_ref, acc_ref, th=th, wp=wp, w=w)

    res = acc_ref[...]
    y_ref[0] = res                   # pre-BN conv1 activations (W-padded)
    st_ref[0, 0] = _band_stats(res)  # partial BN1 statistics


# --------------------------------------------------------------------------- #
# pass 2: BN1 + ReLU applied on the fly, conv2, partial BN2 statistics         #
# --------------------------------------------------------------------------- #
def _conv2_kernel(yt_ref, ya_ref, yb_ref, w_ref, coef_ref,
                  y_ref, st_ref, xs_ref, acc_ref, *, th, wp, w, nb):
    b = pl.program_id(1)
    cm = xs_ref.shape[-1]
    scale = coef_ref[pl.ds(0, 1)]    # (1, Cm)
    shift = coef_ref[pl.ds(1, 1)]    # (1, Cm)
    col = jax.lax.broadcasted_iota(jnp.int32, (wp, 1), 0)
    col_mask = ((col >= 1) & (col <= w)).astype(jnp.float32)

    def bn_relu(v):
        # Folded BatchNorm (single FMA) + ReLU, then re-zero the W-halo
        # columns so conv2 sees true zero padding.
        return jnp.maximum(v * scale + shift, 0.0) * col_mask

    # Band rows, normalized on the fly.
    xs_ref[pl.ds(1, th)] = bn_relu(ya_ref[0])

    # Halo rows; out-of-image halos are zero padding.
    @pl.when(b > 0)
    def _():
        xs_ref[0] = bn_relu(yt_ref[0, 0])

    @pl.when(b == 0)
    def _():
        xs_ref[0] = jnp.zeros((wp, cm), jnp.float32)

    @pl.when(b < nb - 1)
    def _():
        xs_ref[th + 1] = bn_relu(yb_ref[0, 0])

    @pl.when(b == nb - 1)
    def _():
        xs_ref[th + 1] = jnp.zeros((wp, cm), jnp.float32)

    _accumulate_conv(xs_ref, w_ref, acc_ref, th=th, wp=wp, w=w)

    res = acc_ref[...]
    y_ref[0] = res
    st_ref[0, 0] = _band_stats(res)


# --------------------------------------------------------------------------- #
# pass 3: BN2 + ReLU (lane-dense elementwise)                                  #
# --------------------------------------------------------------------------- #
def _bn_relu_kernel(y_ref, coef_ref, o_ref):
    scale = coef_ref[pl.ds(0, 1)]
    shift = coef_ref[pl.ds(1, 1)]
    o_ref[0] = jnp.maximum(y_ref[0] * scale + shift, 0.0)


def _bn_coefficients(stats, gamma, beta, count):
    """Fold batch statistics + affine params into one (2, C) scale/shift."""
    s = jnp.sum(stats[:, :, 0, :], axis=(0, 1))
    ss = jnp.sum(stats[:, :, 1, :], axis=(0, 1))
    mean = s / count
    var = jnp.maximum(ss / count - mean * mean, 0.0)  # clamp: cancellation safety
    scale = gamma * jax.lax.rsqrt(var + EPS)
    shift = beta - mean * scale
    return jnp.stack([scale, shift], axis=0)


def vgg_block(x_nchw, w1, b1, g1, be1, w2, b2, g2, be2, *, band_rows=8):
    """VGGBlock forward.  x_nchw: [N, Cin, H, W] f32; w1/w2: HWIO [3,3,Ci,Co];
    b/g/be: per-channel [C] vectors.  Conv biases are accepted for API parity
    but unused: training-mode BatchNorm's mean subtraction cancels them."""
    del b1, b2
    N, Cin, H, W = x_nchw.shape
    Cmid, Cout = w1.shape[3], w2.shape[3]
    Cin_p, Cmid_p, Cout_p = (_round_up(c, LANE) for c in (Cin, Cmid, Cout))
    Wp = _round_up(W + 2, SUBLANE)
    th = next(t for t in range(min(band_rows, H), 0, -1) if H % t == 0)
    nb = H // th
    grid = (N, nb)
    parallel = pltpu.CompilerParams(
        dimension_semantics=("parallel", "parallel"))

    # Lane-dense, conv-padded layout (single pad after the layout transpose).
    x = jnp.transpose(x_nchw, (0, 2, 3, 1))
    xp = jnp.pad(x, ((0, 0), (1, 1), (1, Wp - W - 1), (0, Cin_p - Cin)))
    w1p = jnp.pad(w1, ((0, 0), (0, 0), (0, Cin_p - Cin), (0, Cmid_p - Cmid))
                  ).reshape(9, Cin_p, Cmid_p)
    w2p = jnp.pad(w2, ((0, 0), (0, 0), (0, Cmid_p - Cmid), (0, Cout_p - Cout))
                  ).reshape(9, Cmid_p, Cout_p)
    g1p, be1p = jnp.pad(g1, (0, Cmid_p - Cmid)), jnp.pad(be1, (0, Cmid_p - Cmid))
    g2p, be2p = jnp.pad(g2, (0, Cout_p - Cout)), jnp.pad(be2, (0, Cout_p - Cout))

    # ---- pass 1: conv1 + partial BN1 stats ---------------------------------
    y1, st1 = pl.pallas_call(
        functools.partial(_conv1_kernel, th=th, wp=Wp, w=W),
        grid=grid,
        in_specs=[
            pl.BlockSpec((1, th, Wp, Cin_p), lambda n, b: (n, b, 0, 0)),
            pl.BlockSpec((1, 1, Wp, Cin_p), lambda n, b: (n, b * th + th, 0, 0)),
            pl.BlockSpec((1, 1, Wp, Cin_p),
                         lambda n, b: (n, b * th + th + 1, 0, 0)),
            pl.BlockSpec((9, Cin_p, Cmid_p), lambda n, b: (0, 0, 0)),
        ],
        out_specs=[
            pl.BlockSpec((1, th, Wp, Cmid_p), lambda n, b: (n, b, 0, 0)),
            pl.BlockSpec((1, 1, 2, Cmid_p), lambda n, b: (n, b, 0, 0)),
        ],
        out_shape=[
            jax.ShapeDtypeStruct((N, H, Wp, Cmid_p), jnp.float32),
            jax.ShapeDtypeStruct((N, nb, 2, Cmid_p), jnp.float32),
        ],
        scratch_shapes=[
            pltpu.VMEM((th + 2, Wp, Cin_p), jnp.float32),
            pltpu.VMEM((th, Wp, Cmid_p), jnp.float32),
        ],
        compiler_params=parallel,
    )(xp, xp, xp, w1p)

    count = float(N * H * W)
    coef1 = _bn_coefficients(st1, g1p, be1p, count)

    # ---- pass 2: BN1+ReLU (on the fly) + conv2 + partial BN2 stats ----------
    y2, st2 = pl.pallas_call(
        functools.partial(_conv2_kernel, th=th, wp=Wp, w=W, nb=nb),
        grid=grid,
        in_specs=[
            pl.BlockSpec((1, 1, Wp, Cmid_p),
                         lambda n, b: (n, jnp.maximum(b * th - 1, 0), 0, 0)),
            pl.BlockSpec((1, th, Wp, Cmid_p), lambda n, b: (n, b, 0, 0)),
            pl.BlockSpec((1, 1, Wp, Cmid_p),
                         lambda n, b: (n, jnp.minimum(b * th + th, H - 1), 0, 0)),
            pl.BlockSpec((9, Cmid_p, Cout_p), lambda n, b: (0, 0, 0)),
            pl.BlockSpec((2, Cmid_p), lambda n, b: (0, 0)),
        ],
        out_specs=[
            pl.BlockSpec((1, th, Wp, Cout_p), lambda n, b: (n, b, 0, 0)),
            pl.BlockSpec((1, 1, 2, Cout_p), lambda n, b: (n, b, 0, 0)),
        ],
        out_shape=[
            jax.ShapeDtypeStruct((N, H, Wp, Cout_p), jnp.float32),
            jax.ShapeDtypeStruct((N, nb, 2, Cout_p), jnp.float32),
        ],
        scratch_shapes=[
            pltpu.VMEM((th + 2, Wp, Cmid_p), jnp.float32),
            pltpu.VMEM((th, Wp, Cout_p), jnp.float32),
        ],
        compiler_params=parallel,
    )(y1, y1, y1, w2p, coef1)

    coef2 = _bn_coefficients(st2, g2p, be2p, count)

    # ---- pass 3: BN2 + ReLU --------------------------------------------------
    out_p = pl.pallas_call(
        _bn_relu_kernel,
        grid=grid,
        in_specs=[
            pl.BlockSpec((1, th, Wp, Cout_p), lambda n, b: (n, b, 0, 0)),
            pl.BlockSpec((2, Cout_p), lambda n, b: (0, 0)),
        ],
        out_specs=pl.BlockSpec((1, th, Wp, Cout_p), lambda n, b: (n, b, 0, 0)),
        out_shape=jax.ShapeDtypeStruct((N, H, Wp, Cout_p), jnp.float32),
        compiler_params=parallel,
    )(y2, coef2)

    # Strip W / channel padding and return NCHW like the PyTorch module.
    return jnp.transpose(out_p[:, :, 1:W + 1, :Cout], (0, 3, 1, 2))


# --------------------------------------------------------------------------- #
# pure-JAX reference (exact PyTorch semantics: conv bias + training-mode BN)   #
# --------------------------------------------------------------------------- #
def _reference(x_nchw, w1, b1, g1, be1, w2, b2, g2, be2):
    dn = ("NHWC", "HWIO", "NHWC")

    def block(h, wgt, bias, gamma, beta):
        y = jax.lax.conv_general_dilated(h, wgt, (1, 1), "SAME",
                                         dimension_numbers=dn) + bias
        m = jnp.mean(y, axis=(0, 1, 2))
        v = jnp.var(y, axis=(0, 1, 2))
        return jnp.maximum((y - m) * jax.lax.rsqrt(v + EPS) * gamma + beta, 0.0)

    h = jnp.transpose(x_nchw, (0, 2, 3, 1))
    h = block(h, w1, b1, g1, be1)
    h = block(h, w2, b2, g2, be2)
    return jnp.transpose(h, (0, 3, 1, 2))


if __name__ == "__main__":
    # Small shapes: N=2, in_channels=4, middle_channels=8, out_channels=4, H=W=16
    N, Cin, Cmid, Cout, H, W = 2, 4, 8, 4, 16, 16

    key = jax.random.PRNGKey(0)
    kx, kw1, kb1, kw2, kb2, kg1, kbe1, kg2, kbe2 = jax.random.split(key, 9)

    x = jax.random.normal(kx, (N, Cin, H, W), dtype=jnp.float32)
    w1 = jax.random.normal(kw1, (3, 3, Cin, Cmid), dtype=jnp.float32) * 0.1
    b1 = jax.random.normal(kb1, (Cmid,), dtype=jnp.float32) * 0.1
    w2 = jax.random.normal(kw2, (3, 3, Cmid, Cout), dtype=jnp.float32) * 0.1
    b2 = jax.random.normal(kb2, (Cout,), dtype=jnp.float32) * 0.1
    g1 = 1.0 + 0.1 * jax.random.normal(kg1, (Cmid,), dtype=jnp.float32)
    be1 = 0.1 * jax.random.normal(kbe1, (Cmid,), dtype=jnp.float32)
    g2 = 1.0 + 0.1 * jax.random.normal(kg2, (Cout,), dtype=jnp.float32)
    be2 = 0.1 * jax.random.normal(kbe2, (Cout,), dtype=jnp.float32)

    out = jax.jit(vgg_block)(x, w1, b1, g1, be1, w2, b2, g2, be2)
    jax.block_until_ready(out)
    assert out.shape == (N, Cout, H, W)

    ref = _reference(x, w1, b1, g1, be1, w2, b2, g2, be2)
    err = float(jnp.max(jnp.abs(out - ref)))
    assert jnp.allclose(out, ref, atol=1e-3, rtol=1e-3), f"max abs err = {err}"
    print("KERNEL_OK")
</pallas_src>

<mosaic_0001>
module attributes {stable_mosaic.version = 11 : i64} {
  func.func @_conv1_kernel(%arg0: i32, %arg1: i32, %arg2: memref<1x8x24x128xf32, #tpu.memory_space<vmem>>, %arg3: memref<1x1x24x128xf32, #tpu.memory_space<vmem>>, %arg4: memref<1x1x24x128xf32, #tpu.memory_space<vmem>>, %arg5: memref<9x128x128xf32, #tpu.memory_space<vmem>>, %arg6: memref<1x8x24x128xf32, #tpu.memory_space<vmem>>, %arg7: memref<1x1x2x128xf32, #tpu.memory_space<vmem>>, %arg8: memref<10x24x128xf32, #tpu.memory_space<vmem>>, %arg9: memref<8x24x128xf32, #tpu.memory_space<vmem>>) attributes {dimension_semantics = [#tpu.dimension_semantics<parallel>, #tpu.dimension_semantics<parallel>], iteration_bounds = array<i64: 2, 2>, scalar_prefetch = 0 : i64, scratch_operands = 2 : i64, tpu.core_type = #tpu.core_type<tc>, window_params = [{transform_indices = @transform_0, window_bounds = array<i64: 1, 8, 24, 128>}, {transform_indices = @transform_1, window_bounds = array<i64: 1, 1, 24, 128>}, {transform_indices = @transform_2, window_bounds = array<i64: 1, 1, 24, 128>}, {pipeline_mode = #tpu.pipeline_mode<synchronous>, transform_indices = @transform_3, window_bounds = array<i64: 9, 128, 128>}, {transform_indices = @transform_4, window_bounds = array<i64: 1, 8, 24, 128>}, {transform_indices = @transform_5, window_bounds = array<i64: 1, 1, 2, 128>}]} {
    %c0 = arith.constant 0 : index
    %c0_0 = arith.constant 0 : index
    %c0_1 = arith.constant 0 : index
    %c0_2 = arith.constant 0 : index
    %0 = vector.load %arg2[%c0, %c0_0, %c0_1, %c0_2] : memref<1x8x24x128xf32, #tpu.memory_space<vmem>>, vector<1x8x24x128xf32>
    %1 = vector.shape_cast %0 : vector<1x8x24x128xf32> to vector<8x24x128xf32>
    %c0_3 = arith.constant 0 : index
    %c0_4 = arith.constant 0 : index
    %c0_5 = arith.constant 0 : index
    %2 = vector.load %arg8[%c0_3, %c0_4, %c0_5] : memref<10x24x128xf32, #tpu.memory_space<vmem>>, vector<8x24x128xf32>
    tpu.vector_store %arg8[%c0_3, %c0_4, %c0_5], %1 {strides = array<i32>} : memref<10x24x128xf32, #tpu.memory_space<vmem>>, vector<8x24x128xf32>,
    %c0_6 = arith.constant 0 : index
    %c0_7 = arith.constant 0 : index
    %c0_8 = arith.constant 0 : index
    %c0_9 = arith.constant 0 : index
    %3 = vector.load %arg3[%c0_6, %c0_7, %c0_8, %c0_9] : memref<1x1x24x128xf32, #tpu.memory_space<vmem>>, vector<1x1x24x128xf32>
    %4 = vector.shape_cast %3 : vector<1x1x24x128xf32> to vector<24x128xf32>
    %c8 = arith.constant 8 : index
    %c0_10 = arith.constant 0 : index
    %c0_11 = arith.constant 0 : index
    %5 = vector.load %arg8[%c8, %c0_10, %c0_11] : memref<10x24x128xf32, #tpu.memory_space<vmem>>, vector<1x24x128xf32>
    %6 = vector.shape_cast %5 : vector<1x24x128xf32> to vector<24x128xf32>
    %7 = vector.shape_cast %4 : vector<24x128xf32> to vector<1x24x128xf32>
    tpu.vector_store %arg8[%c8, %c0_10, %c0_11], %7 {strides = array<i32>} : memref<10x24x128xf32, #tpu.memory_space<vmem>>, vector<1x24x128xf32>,
    %c0_12 = arith.constant 0 : index
    %c0_13 = arith.constant 0 : index
    %c0_14 = arith.constant 0 : index
    %c0_15 = arith.constant 0 : index
    %8 = vector.load %arg4[%c0_12, %c0_13, %c0_14, %c0_15] : memref<1x1x24x128xf32, #tpu.memory_space<vmem>>, vector<1x1x24x128xf32>
    %9 = vector.shape_cast %8 : vector<1x1x24x128xf32> to vector<24x128xf32>
    %c9 = arith.constant 9 : index
    %c0_16 = arith.constant 0 : index
    %c0_17 = arith.constant 0 : index
    %10 = vector.load %arg8[%c9, %c0_16, %c0_17] : memref<10x24x128xf32, #tpu.memory_space<vmem>>, vector<1x24x128xf32>
    %11 = vector.shape_cast %10 : vector<1x24x128xf32> to vector<24x128xf32>
    %12 = vector.shape_cast %9 : vector<24x128xf32> to vector<1x24x128xf32>
    tpu.vector_store %arg8[%c9, %c0_16, %c0_17], %12 {strides = array<i32>} : memref<10x24x128xf32, #tpu.memory_space<vmem>>, vector<1x24x128xf32>,
    %c0_18 = arith.constant 0 : index
    %c0_19 = arith.constant 0 : index
    %c0_20 = arith.constant 0 : index
    %13 = vector.load %arg8[%c0_18, %c0_19, %c0_20] : memref<10x24x128xf32, #tpu.memory_space<vmem>>, vector<8x24x128xf32>
    %14 = vector.shape_cast %13 : vector<8x24x128xf32> to vector<192x128xf32>
    %c1 = arith.constant 1 : index
    %c0_21 = arith.constant 0 : index
    %c0_22 = arith.constant 0 : index
    %15 = vector.load %arg5[%c1, %c0_21, %c0_22] : memref<9x128x128xf32, #tpu.memory_space<vmem>>, vector<1x128x128xf32>
    %16 = vector.shape_cast %15 : vector<1x128x128xf32> to vector<128x128xf32>
    %cst = arith.constant dense<0.000000e+00> : vector<192x128xf32>
    %17 = tpu.matmul %14, %16, %cst {dimension_numbers = #tpu.dot_dimension_numbers<[1], [0], [0], [1], [0, 0, 1, 1], [], []>} : vector<192x128xf32>, vector<128x128xf32>, vector<192x128xf32> -> vector<192x128xf32>
    %18 = vector.shape_cast %17 : vector<192x128xf32> to vector<8x24x128xf32>
    %c0_23 = arith.constant 0 : index
    %c0_24 = arith.constant 0 : index
    %c0_25 = arith.constant 0 : index
    %19 = vector.load %arg5[%c0_23, %c0_24, %c0_25] : memref<9x128x128xf32, #tpu.memory_space<vmem>>, vector<1x128x128xf32>
    %20 = vector.shape_cast %19 : vector<1x128x128xf32> to vector<128x128xf32>
    %cst_26 = arith.constant dense<0.000000e+00> : vector<192x128xf32>
    %21 = tpu.matmul %14, %20, %cst_26 {dimension_numbers = #tpu.dot_dimension_numbers<[1], [0], [0], [1], [0, 0, 1, 1], [], []>} : vector<192x128xf32>, vector<128x128xf32>, vector<192x128xf32> -> vector<192x128xf32>
    %22 = vector.shape_cast %21 : vector<192x128xf32> to vector<8x24x128xf32>
    %c2 = arith.constant 2 : index
    %c0_27 = arith.constant 0 : index
    %c0_28 = arith.constant 0 : index
    %23 = vector.load %arg5[%c2, %c0_27, %c0_28] : memref<9x128x128xf32, #tpu.memory_space<vmem>>, vector<1x128x128xf32>
    %24 = vector.shape_cast %23 : vector<1x128x128xf32> to vector<128x128xf32>
    %cst_29 = arith.constant dense<0.000000e+00> : vector<192x128xf32>
    %25 = tpu.matmul %14, %24, %cst_29 {dimension_numbers = #tpu.dot_dimension_numbers<[1], [0], [0], [1], [0, 0, 1, 1], [], []>} : vector<192x128xf32>, vector<128x128xf32>, vector<192x128xf32> -> vector<192x128xf32>
    %26 = vector.shape_cast %25 : vector<192x128xf32> to vector<8x24x128xf32>
    %c0_30 = arith.constant 0 : index
    %c0_31 = arith.constant 0 : index
    %c0_32 = arith.constant 0 : index
    %27 = vector.load %arg9[%c0_30, %c0_31, %c0_32] : memref<8x24x128xf32, #tpu.memory_space<vmem>>, vector<8x24x128xf32>
    tpu.vector_store %arg9[%c0_30, %c0_31, %c0_32], %18 {strides = array<i32>} : memref<8x24x128xf32, #tpu.memory_space<vmem>>, vector<8x24x128xf32>,
    %c0_33 = arith.constant 0 : index
    %c1_34 = arith.constant 1 : index
    %c0_35 = arith.constant 0 : index
    %28 = vector.load %arg9[%c0_33, %c1_34, %c0_35] : memref<8x24x128xf32, #tpu.memory_space<vmem>>, vector<8x16x128xf32>
    %29 = vector.extract_strided_slice %22 {offsets = [0, 0, 0], sizes = [8, 16, 128], strides = [1, 1, 1]} : vector<8x24x128xf32> to vector<8x16x128xf32>
    %30 = vector.extract_strided_slice %26 {offsets = [0, 2, 0], sizes = [8, 16, 128], strides = [1, 1, 1]} : vector<8x24x128xf32> to vector<8x16x128xf32>
    %31 = arith.addf %29, %30 : vector<8x16x128xf32>
    %32 = arith.addf %28, %31 : vector<8x16x128xf32>
    %c0_36 = arith.constant 0 : index
    %c1_37 = arith.constant 1 : index
    %c0_38 = arith.constant 0 : index
    %33 = vector.load %arg9[%c0_36, %c1_37, %c0_38] : memref<8x24x128xf32, #tpu.memory_space<vmem>>, vector<8x16x128xf32>
    tpu.vector_store %arg9[%c0_36, %c1_37, %c0_38], %32 {strides = array<i32>} : memref<8x24x128xf32, #tpu.memory_space<vmem>>, vector<8x16x128xf32>,
    %c1_39 = arith.constant 1 : index
    %c0_40 = arith.constant 0 : index
    %c0_41 = arith.constant 0 : index
    %34 = vector.load %arg8[%c1_39, %c0_40, %c0_41] : memref<10x24x128xf32, #tpu.memory_space<vmem>>, vector<8x24x128xf32>
    %35 = vector.shape_cast %34 : vector<8x24x128xf32> to vector<192x128xf32>
    %c4 = arith.constant 4 : index
    %c0_42 = arith.constant 0 : index
    %c0_43 = arith.constant 0 : index
    %36 = vector.load %arg5[%c4, %c0_42, %c0_43] : memref<9x128x128xf32, #tpu.memory_space<vmem>>, vector<1x128x128xf32>
    %37 = vector.shape_cast %36 : vector<1x128x128xf32> to vector<128x128xf32>
    %cst_44 = arith.constant dense<0.000000e+00> : vector<192x128xf32>
    %38 = tpu.matmul %35, %37, %cst_44 {dimension_numbers = #tpu.dot_dimension_numbers<[1], [0], [0], [1], [0, 0, 1, 1], [], []>} : vector<192x128xf32>, vector<128x128xf32>, vector<192x128xf32> -> vector<192x128xf32>
    %39 = vector.shape_cast %38 : vector<192x128xf32> to vector<8x24x128xf32>
    %c3 = arith.constant 3 : index
    %c0_45 = arith.constant 0 : index
    %c0_46 = arith.constant 0 : index
    %40 = vector.load %arg5[%c3, %c0_45, %c0_46] : memref<9x128x128xf32, #tpu.memory_space<vmem>>, vector<1x128x128xf32>
    %41 = vector.shape_cast %40 : vector<1x128x128xf32> to vector<128x128xf32>
    %cst_47 = arith.constant dense<0.000000e+00> : vector<192x128xf32>
    %42 = tpu.matmul %35, %41, %cst_47 {dimension_numbers = #tpu.dot_dimension_numbers<[1], [0], [0], [1], [0, 0, 1, 1], [], []>} : vector<192x128xf32>, vector<128x128xf32>, vector<192x128xf32> -> vector<192x128xf32>
    %43 = vector.shape_cast %42 : vector<192x128xf32> to vector<8x24x128xf32>
    %c5 = arith.constant 5 : index
    %c0_48 = arith.constant 0 : index
    %c0_49 = arith.constant 0 : index
    %44 = vector.load %arg5[%c5, %c0_48, %c0_49] : memref<9x128x128xf32, #tpu.memory_space<vmem>>, vector<1x128x128xf32>
    %45 = vector.shape_cast %44 : vector<1x128x128xf32> to vector<128x128xf32>
    %cst_50 = arith.constant dense<0.000000e+00> : vector<192x128xf32>
    %46 = tpu.matmul %35, %45, %cst_50 {dimension_numbers = #tpu.dot_dimension_numbers<[1], [0], [0], [1], [0, 0, 1, 1], [], []>} : vector<192x128xf32>, vector<128x128xf32>, vector<192x128xf32> -> vector<192x128xf32>
    %47 = vector.shape_cast %46 : vector<192x128xf32> to vector<8x24x128xf32>
    %c0_51 = arith.constant 0 : index
    %c0_52 = arith.constant 0 : index
    %c0_53 = arith.constant 0 : index
    %48 = vector.load %arg9[%c0_51, %c0_52, %c0_53] : memref<8x24x128xf32, #tpu.memory_space<vmem>>, vector<8x24x128xf32>
    %49 = arith.addf %48, %39 : vector<8x24x128xf32>
    %c0_54 = arith.constant 0 : index
    %c0_55 = arith.constant 0 : index
    %c0_56 = arith.constant 0 : index
    %50 = vector.load %arg9[%c0_54, %c0_55, %c0_56] : memref<8x24x128xf32, #tpu.memory_space<vmem>>, vector<8x24x128xf32>
    tpu.vector_store %arg9[%c0_54, %c0_55, %c0_56], %49 {strides = array<i32>} : memref<8x24x128xf32, #tpu.memory_space<vmem>>, vector<8x24x128xf32>,
    %c0_57 = arith.constant 0 : index
    %c1_58 = arith.constant 1 : index
    %c0_59 = arith.constant 0 : index
    %51 = vector.load %arg9[%c0_57, %c1_58, %c0_59] : memref<8x24x128xf32, #tpu.memory_space<vmem>>, vector<8x16x128xf32>
    %52 = vector.extract_strided_slice %43 {offsets = [0, 0, 0], sizes = [8, 16, 128], strides = [1, 1, 1]} : vector<8x24x128xf32> to vector<8x16x128xf32>
    %53 = vector.extract_strided_slice %47 {offsets = [0, 2, 0], sizes = [8, 16, 128], strides = [1, 1, 1]} : vector<8x24x128xf32> to vector<8x16x128xf32>
    %54 = arith.addf %52, %53 : vector<8x16x128xf32>
    %55 = arith.addf %51, %54 : vector<8x16x128xf32>
    %c0_60 = arith.constant 0 : index
    %c1_61 = arith.constant 1 : index
    %c0_62 = arith.constant 0 : index
    %56 = vector.load %arg9[%c0_60, %c1_61, %c0_62] : memref<8x24x128xf32, #tpu.memory_space<vmem>>, vector<8x16x128xf32>
    tpu.vector_store %arg9[%c0_60, %c1_61, %c0_62], %55 {strides = array<i32>} : memref<8x24x128xf32, #tpu.memory_space<vmem>>, vector<8x16x128xf32>,
    %c2_63 = arith.constant 2 : index
    %c0_64 = arith.constant 0 : index
    %c0_65 = arith.constant 0 : index
    %57 = vector.load %arg8[%c2_63, %c0_64, %c0_65] : memref<10x24x128xf32, #tpu.memory_space<vmem>>, vector<8x24x128xf32>
    %58 = vector.shape_cast %57 : vector<8x24x128xf32> to vector<192x128xf32>
    %c7 = arith.constant 7 : index
    %c0_66 = arith.constant 0 : index
    %c0_67 = arith.constant 0 : index
    %59 = vector.load %arg5[%c7, %c0_66, %c0_67] : memref<9x128x128xf32, #tpu.memory_space<vmem>>, vector<1x128x128xf32>
    %60 = vector.shape_cast %59 : vector<1x128x128xf32> to vector<128x128xf32>
    %cst_68 = arith.constant dense<0.000000e+00> : vector<192x128xf32>
    %61 = tpu.matmul %58, %60, %cst_68 {dimension_numbers = #tpu.dot_dimension_numbers<[1], [0], [0], [1], [0, 0, 1, 1], [], []>} : vector<192x128xf32>, vector<128x128xf32>, vector<192x128xf32> -> vector<192x128xf32>
    %62 = vector.shape_cast %61 : vector<192x128xf32> to vector<8x24x128xf32>
    %c6 = arith.constant 6 : index
    %c0_69 = arith.constant 0 : index
    %c0_70 = arith.constant 0 : index
    %63 = vector.load %arg5[%c6, %c0_69, %c0_70] : memref<9x128x128xf32, #tpu.memory_space<vmem>>, vector<1x128x128xf32>
    %64 = vector.shape_cast %63 : vector<1x128x128xf32> to vector<128x128xf32>
    %cst_71 = arith.constant dense<0.000000e+00> : vector<192x128xf32>
    %65 = tpu.matmul %58, %64, %cst_71 {dimension_numbers = #tpu.dot_dimension_numbers<[1], [0], [0], [1], [0, 0, 1, 1], [], []>} : vector<192x128xf32>, vector<128x128xf32>, vector<192x128xf32> -> vector<192x128xf32>
    %66 = vector.shape_cast %65 : vector<192x128xf32> to vector<8x24x128xf32>
    %c8_72 = arith.constant 8 : index
    %c0_73 = arith.constant 0 : index
    %c0_74 = arith.constant 0 : index
    %67 = vector.load %arg5[%c8_72, %c0_73, %c0_74] : memref<9x128x128xf32, #tpu.memory_space<vmem>>, vector<1x128x128xf32>
    %68 = vector.shape_cast %67 : vector<1x128x128xf32> to vector<128x128xf32>
    %cst_75 = arith.constant dense<0.000000e+00> : vector<192x128xf32>
    %69 = tpu.matmul %58, %68, %cst_75 {dimension_numbers = #tpu.dot_dimension_numbers<[1], [0], [0], [1], [0, 0, 1, 1], [], []>} : vector<192x128xf32>, vector<128x128xf32>, vector<192x128xf32> -> vector<192x128xf32>
    %70 = vector.shape_cast %69 : vector<192x128xf32> to vector<8x24x128xf32>
    %c0_76 = arith.constant 0 : index
    %c0_77 = arith.constant 0 : index
    %c0_78 = arith.constant 0 : index
    %71 = vector.load %arg9[%c0_76, %c0_77, %c0_78] : memref<8x24x128xf32, #tpu.memory_space<vmem>>, vector<8x24x128xf32>
    %72 = arith.addf %71, %62 : vector<8x24x128xf32>
    %c0_79 = arith.constant 0 : index
    %c0_80 = arith.constant 0 : index
    %c0_81 = arith.constant 0 : index
    %73 = vector.load %arg9[%c0_79, %c0_80, %c0_81] : memref<8x24x128xf32, #tpu.memory_space<vmem>>, vector<8x24x128xf32>
    tpu.vector_store %arg9[%c0_79, %c0_80, %c0_81], %72 {strides = array<i32>} : memref<8x24x128xf32, #tpu.memory_space<vmem>>, vector<8x24x128xf32>,
    %c0_82 = arith.constant 0 : index
    %c1_83 = arith.constant 1 : index
    %c0_84 = arith.constant 0 : index
    %74 = vector.load %arg9[%c0_82, %c1_83, %c0_84] : memref<8x24x128xf32, #tpu.memory_space<vmem>>, vector<8x16x128xf32>
    %75 = vector.extract_strided_slice %66 {offsets = [0, 0, 0], sizes = [8, 16, 128], strides = [1, 1, 1]} : vector<8x24x128xf32> to vector<8x16x128xf32>
    %76 = vector.extract_strided_slice %70 {offsets = [0, 2, 0], sizes = [8, 16, 128], strides = [1, 1, 1]} : vector<8x24x128xf32> to vector<8x16x128xf32>
    %77 = arith.addf %75, %76 : vector<8x16x128xf32>
    %78 = arith.addf %74, %77 : vector<8x16x128xf32>
    %c0_85 = arith.constant 0 : index
    %c1_86 = arith.constant 1 : index
    %c0_87 = arith.constant 0 : index
    %79 = vector.load %arg9[%c0_85, %c1_86, %c0_87] : memref<8x24x128xf32, #tpu.memory_space<vmem>>, vector<8x16x128xf32>
    tpu.vector_store %arg9[%c0_85, %c1_86, %c0_87], %78 {strides = array<i32>} : memref<8x24x128xf32, #tpu.memory_space<vmem>>, vector<8x16x128xf32>,
    %c0_88 = arith.constant 0 : index
    %c0_89 = arith.constant 0 : index
    %c0_90 = arith.constant 0 : index
    %80 = vector.load %arg9[%c0_88, %c0_89, %c0_90] : memref<8x24x128xf32, #tpu.memory_space<vmem>>, vector<8x24x128xf32>
    %c0_91 = arith.constant 0 : index
    %c0_92 = arith.constant 0 : index
    %c0_93 = arith.constant 0 : index
    %c0_94 = arith.constant 0 : index
    %81 = vector.load %arg6[%c0_91, %c0_92, %c0_93, %c0_94] : memref<1x8x24x128xf32, #tpu.memory_space<vmem>>, vector<1x8x24x128xf32>
    %82 = vector.shape_cast %81 : vector<1x8x24x128xf32> to vector<8x24x128xf32>
    %83 = vector.shape_cast %80 : vector<8x24x128xf32> to vector<1x8x24x128xf32>
    tpu.vector_store %arg6[%c0_91, %c0_92, %c0_93, %c0_94], %83 {strides = array<i32>} : memref<1x8x24x128xf32, #tpu.memory_space<vmem>>, vector<1x8x24x128xf32>,
    %cst_95 = arith.constant dense<0.000000e+00> : vector<24x128xf32>
    %84 = vector.multi_reduction <add>, %80, %cst_95 [0] : vector<8x24x128xf32> to vector<24x128xf32>
    %cst_96 = arith.constant dense<0.000000e+00> : vector<128xf32>
    %85 = vector.multi_reduction <add>, %84, %cst_96 [0] : vector<24x128xf32> to vector<128xf32>
    %86 = vector.shape_cast %85 : vector<128xf32> to vector<1x128xf32>
    %87 = arith.mulf %80, %80 : vector<8x24x128xf32>
    %cst_97 = arith.constant dense<0.000000e+00> : vector<24x128xf32>
    %88 = vector.multi_reduction <add>, %87, %cst_97 [0] : vector<8x24x128xf32> to vector<24x128xf32>
    %cst_98 = arith.constant dense<0.000000e+00> : vector<128xf32>
    %89 = vector.multi_reduction <add>, %88, %cst_98 [0] : vector<24x128xf32> to vector<128xf32>
    %90 = vector.shape_cast %89 : vector<128xf32> to vector<1x128xf32>
    %91 = tpu.concatenate %86, %90 in 0 : vector<1x128xf32>, vector<1x128xf32> -> vector<2x128xf32>
    %c0_99 = arith.constant 0 : index
    %c0_100 = arith.constant 0 : index
    %c0_101 = arith.constant 0 : index
    %c0_102 = arith.constant 0 : index
    %92 = vector.load %arg7[%c0_99, %c0_100, %c0_101, %c0_102] : memref<1x1x2x128xf32, #tpu.memory_space<vmem>>, vector<1x1x2x128xf32>
    %93 = vector.shape_cast %92 : vector<1x1x2x128xf32> to vector<2x128xf32>
    %94 = vector.shape_cast %91 : vector<2x128xf32> to vector<1x1x2x128xf32>
    tpu.vector_store %arg7[%c0_99, %c0_100, %c0_101, %c0_102], %94 {strides = array<i32>} : memref<1x1x2x128xf32, #tpu.memory_space<vmem>>, vector<1x1x2x128xf32>,
    return
  }
  func.func @transform_0(%arg0: i32, %arg1: i32) -> (i32, i32, i32, i32) {
    %c0_i32 = arith.constant 0 : i32
    %c0_i32_0 = arith.constant 0 : i32
    %c0_i32_1 = arith.constant 0 : i32
    return %arg0, %arg1, %c0_i32, %c0_i32_0 : i32, i32, i32, i32
  }
  func.func @transform_1(%arg0: i32, %arg1: i32) -> (i32, i32, i32, i32) {
    %c8_i32 = arith.constant 8 : i32
    %0 = arith.muli %arg1, %c8_i32 : i32
    %c8_i32_0 = arith.constant 8 : i32
    %1 = arith.addi %0, %c8_i32_0 : i32
    %c0_i32 = arith.constant 0 : i32
    %c0_i32_1 = arith.constant 0 : i32
    %c0_i32_2 = arith.constant 0 : i32
    return %arg0, %1, %c0_i32, %c0_i32_1 : i32, i32, i32, i32
  }
  func.func @transform_2(%arg0: i32, %arg1: i32) -> (i32, i32, i32, i32) {
    %c8_i32 = arith.constant 8 : i32
    %0 = arith.muli %arg1, %c8_i32 : i32
    %c8_i32_0 = arith.constant 8 : i32
    %1 = arith.addi %0, %c8_i32_0 : i32
    %c1_i32 = arith.constant 1 : i32
    %2 = arith.addi %1, %c1_i32 : i32
    %c0_i32 = arith.constant 0 : i32
    %c0_i32_1 = arith.constant 0 : i32
    %c0_i32_2 = arith.constant 0 : i32
    return %arg0, %2, %c0_i32, %c0_i32_1 : i32, i32, i32, i32
  }
  func.func @transform_3(%arg0: i32, %arg1: i32) -> (i32, i32, i32) {
    %c0_i32 = arith.constant 0 : i32
    %c0_i32_0 = arith.constant 0 : i32
    %c0_i32_1 = arith.constant 0 : i32
    %c0_i32_2 = arith.constant 0 : i32
    return %c0_i32, %c0_i32_0, %c0_i32_1 : i32, i32, i32
  }
  func.func @transform_4(%arg0: i32, %arg1: i32) -> (i32, i32, i32, i32) {
    %c0_i32 = arith.constant 0 : i32
    %c0_i32_0 = arith.constant 0 : i32
    %c0_i32_1 = arith.constant 0 : i32
    return %arg0, %arg1, %c0_i32, %c0_i32_0 : i32, i32, i32, i32
  }
  func.func @transform_5(%arg0: i32, %arg1: i32) -> (i32, i32, i32, i32) {
    %c0_i32 = arith.constant 0 : i32
    %c0_i32_0 = arith.constant 0 : i32
    %c0_i32_1 = arith.constant 0 : i32
    return %arg0, %arg1, %c0_i32, %c0_i32_0 : i32, i32, i32, i32
  }
}

module attributes {stable_mosaic.version = 11 : i64} {
  func.func @_bn_relu_kernel(%arg0: i32, %arg1: i32, %arg2: memref<1x8x24x128xf32, #tpu.memory_space<vmem>>, %arg3: memref<2x128xf32, #tpu.memory_space<vmem>>, %arg4: memref<1x8x24x128xf32, #tpu.memory_space<vmem>>) attributes {dimension_semantics = [#tpu.dimension_semantics<parallel>, #tpu.dimension_semantics<parallel>], iteration_bounds = array<i64: 2, 2>, scalar_prefetch = 0 : i64, scratch_operands = 0 : i64, tpu.core_type = #tpu.core_type<tc>, window_params = [{transform_indices = @transform_0, window_bounds = array<i64: 1, 8, 24, 128>}, {pipeline_mode = #tpu.pipeline_mode<synchronous>, transform_indices = @transform_1, window_bounds = array<i64: 2, 128>}, {transform_indices = @transform_2, window_bounds = array<i64: 1, 8, 24, 128>}]} {
    %c0 = arith.constant 0 : index
    %c0_0 = arith.constant 0 : index
    %0 = vector.load %arg3[%c0, %c0_0] : memref<2x128xf32, #tpu.memory_space<vmem>>, vector<1x128xf32>
    %c1 = arith.constant 1 : index
    %c0_1 = arith.constant 0 : index
    %1 = vector.load %arg3[%c1, %c0_1] : memref<2x128xf32, #tpu.memory_space<vmem>>, vector<1x128xf32>
    %c0_2 = arith.constant 0 : index
    %c0_3 = arith.constant 0 : index
    %c0_4 = arith.constant 0 : index
    %c0_5 = arith.constant 0 : index
    %2 = vector.load %arg2[%c0_2, %c0_3, %c0_4, %c0_5] : memref<1x8x24x128xf32, #tpu.memory_space<vmem>>, vector<1x8x24x128xf32>
    %3 = vector.shape_cast %2 : vector<1x8x24x128xf32> to vector<8x24x128xf32>
    %4 = vector.shape_cast %0 : vector<1x128xf32> to vector<1x1x128xf32>
    %5 = vector.broadcast %4 : vector<1x1x128xf32> to vector<8x24x128xf32>
    %6 = arith.mulf %3, %5 : vector<8x24x128xf32>
    %7 = vector.shape_cast %1 : vector<1x128xf32> to vector<1x1x128xf32>
    %8 = vector.broadcast %7 : vector<1x1x128xf32> to vector<8x24x128xf32>
    %9 = arith.addf %6, %8 : vector<8x24x128xf32>
    %cst = arith.constant 0.000000e+00 : f32
    %10 = vector.broadcast %cst : f32 to vector<8x24x128xf32>
    %11 = arith.maximumf %9, %10 : vector<8x24x128xf32>
    %c0_6 = arith.constant 0 : index
    %c0_7 = arith.constant 0 : index
    %c0_8 = arith.constant 0 : index
    %c0_9 = arith.constant 0 : index
    %12 = vector.load %arg4[%c0_6, %c0_7, %c0_8, %c0_9] : memref<1x8x24x128xf32, #tpu.memory_space<vmem>>, vector<1x8x24x128xf32>
    %13 = vector.shape_cast %12 : vector<1x8x24x128xf32> to vector<8x24x128xf32>
    %14 = vector.shape_cast %11 : vector<8x24x128xf32> to vector<1x8x24x128xf32>
    tpu.vector_store %arg4[%c0_6, %c0_7, %c0_8, %c0_9], %14 {strides = array<i32>} : memref<1x8x24x128xf32, #tpu.memory_space<vmem>>, vector<1x8x24x128xf32>,
    return
  }
  func.func @transform_0(%arg0: i32, %arg1: i32) -> (i32, i32, i32, i32) {
    %c0_i32 = arith.constant 0 : i32
    %c0_i32_0 = arith.constant 0 : i32
    %c0_i32_1 = arith.constant 0 : i32
    return %arg0, %arg1, %c0_i32, %c0_i32_0 : i32, i32, i32, i32
  }
  func.func @transform_1(%arg0: i32, %arg1: i32) -> (i32, i32) {
    %c0_i32 = arith.constant 0 : i32
    %c0_i32_0 = arith.constant 0 : i32
    %c0_i32_1 = arith.constant 0 : i32
    return %c0_i32, %c0_i32_0 : i32, i32
  }
  func.func @transform_2(%arg0: i32, %arg1: i32) -> (i32, i32, i32, i32) {
    %c0_i32 = arith.constant 0 : i32
    %c0_i32_0 = arith.constant 0 : i32
    %c0_i32_1 = arith.constant 0 : i32
    return %arg0, %arg1, %c0_i32, %c0_i32_0 : i32, i32, i32, i32
  }
}

module attributes {stable_mosaic.version = 11 : i64} {
  func.func @_conv2_kernel(%arg0: i32, %arg1: i32, %arg2: memref<1x1x24x128xf32, #tpu.memory_space<vmem>>, %arg3: memref<1x8x24x128xf32, #tpu.memory_space<vmem>>, %arg4: memref<1x1x24x128xf32, #tpu.memory_space<vmem>>, %arg5: memref<9x128x128xf32, #tpu.memory_space<vmem>>, %arg6: memref<2x128xf32, #tpu.memory_space<vmem>>, %arg7: memref<1x8x24x128xf32, #tpu.memory_space<vmem>>, %arg8: memref<1x1x2x128xf32, #tpu.memory_space<vmem>>, %arg9: memref<10x24x128xf32, #tpu.memory_space<vmem>>, %arg10: memref<8x24x128xf32, #tpu.memory_space<vmem>>) attributes {dimension_semantics = [#tpu.dimension_semantics<parallel>, #tpu.dimension_semantics<parallel>], iteration_bounds = array<i64: 2, 2>, scalar_prefetch = 0 : i64, scratch_operands = 2 : i64, tpu.core_type = #tpu.core_type<tc>, window_params = [{transform_indices = @transform_0, window_bounds = array<i64: 1, 1, 24, 128>}, {transform_indices = @transform_1, window_bounds = array<i64: 1, 8, 24, 128>}, {transform_indices = @transform_2, window_bounds = array<i64: 1, 1, 24, 128>}, {pipeline_mode = #tpu.pipeline_mode<synchronous>, transform_indices = @transform_3, window_bounds = array<i64: 9, 128, 128>}, {pipeline_mode = #tpu.pipeline_mode<synchronous>, transform_indices = @transform_4, window_bounds = array<i64: 2, 128>}, {transform_indices = @transform_5, window_bounds = array<i64: 1, 8, 24, 128>}, {transform_indices = @transform_6, window_bounds = array<i64: 1, 1, 2, 128>}]} {
    %c0 = arith.constant 0 : index
    %c0_0 = arith.constant 0 : index
    %0 = vector.load %arg6[%c0, %c0_0] : memref<2x128xf32, #tpu.memory_space<vmem>>, vector<1x128xf32>
    %c1 = arith.constant 1 : index
    %c0_1 = arith.constant 0 : index
    %1 = vector.load %arg6[%c1, %c0_1] : memref<2x128xf32, #tpu.memory_space<vmem>>, vector<1x128xf32>
    %2 = tpu.iota {dimensions = array<i32: 0>} : vector<24x1xi32>
    %c1_i32 = arith.constant 1 : i32
    %3 = vector.broadcast %c1_i32 : i32 to vector<24x1xi32>
    %4 = arith.cmpi sge, %2, %3 : vector<24x1xi32>
    %c16_i32 = arith.constant 16 : i32
    %5 = vector.broadcast %c16_i32 : i32 to vector<24x1xi32>
    %6 = arith.cmpi sle, %2, %5 : vector<24x1xi32>
    %7 = arith.andi %4, %6 : vector<24x1xi1>
    %8 = arith.extui %7 : vector<24x1xi1> to vector<24x1xi32>
    %9 = arith.sitofp %8 : vector<24x1xi32> to vector<24x1xf32>
    %c0_2 = arith.constant 0 : index
    %c0_3 = arith.constant 0 : index
    %c0_4 = arith.constant 0 : index
    %c0_5 = arith.constant 0 : index
    %10 = vector.load %arg3[%c0_2, %c0_3, %c0_4, %c0_5] : memref<1x8x24x128xf32, #tpu.memory_space<vmem>>, vector<1x8x24x128xf32>
    %11 = vector.shape_cast %10 : vector<1x8x24x128xf32> to vector<8x24x128xf32>
    %12 = vector.shape_cast %0 : vector<1x128xf32> to vector<1x1x128xf32>
    %13 = vector.broadcast %12 : vector<1x1x128xf32> to vector<8x24x128xf32>
    %14 = arith.mulf %11, %13 : vector<8x24x128xf32>
    %15 = vector.shape_cast %1 : vector<1x128xf32> to vector<1x1x128xf32>
    %16 = vector.broadcast %15 : vector<1x1x128xf32> to vector<8x24x128xf32>
    %17 = arith.addf %14, %16 : vector<8x24x128xf32>
    %cst = arith.constant 0.000000e+00 : f32
    %18 = vector.broadcast %cst : f32 to vector<8x24x128xf32>
    %19 = arith.maximumf %17, %18 : vector<8x24x128xf32>
    %20 = vector.shape_cast %9 : vector<24x1xf32> to vector<1x24x1xf32>
    %21 = vector.broadcast %20 : vector<1x24x1xf32> to vector<8x24x128xf32>
    %22 = arith.mulf %19, %21 : vector<8x24x128xf32>
    %c1_6 = arith.constant 1 : index
    %c0_7 = arith.constant 0 : index
    %c0_8 = arith.constant 0 : index
    %23 = vector.load %arg9[%c1_6, %c0_7, %c0_8] : memref<10x24x128xf32, #tpu.memory_space<vmem>>, vector<8x24x128xf32>
    tpu.vector_store %arg9[%c1_6, %c0_7, %c0_8], %22 {strides = array<i32>} : memref<10x24x128xf32, #tpu.memory_space<vmem>>, vector<8x24x128xf32>,
    %c0_i32 = arith.constant 0 : i32
    %24 = arith.cmpi sgt, %arg1, %c0_i32 : i32
    %25 = arith.extui %24 : i1 to i32
    %c0_i32_9 = arith.constant 0 : i32
    %26 = arith.cmpi ne, %25, %c0_i32_9 : i32
    scf.if %26 {
      %c0_102 = arith.constant 0 : index
      %c0_103 = arith.constant 0 : index
      %c0_104 = arith.constant 0 : index
      %c0_105 = arith.constant 0 : index
      %118 = vector.load %arg2[%c0_102, %c0_103, %c0_104, %c0_105] : memref<1x1x24x128xf32, #tpu.memory_space<vmem>>, vector<1x1x24x128xf32>
      %119 = vector.shape_cast %118 : vector<1x1x24x128xf32> to vector<24x128xf32>
      %120 = vector.broadcast %0 : vector<1x128xf32> to vector<24x128xf32>
      %121 = arith.mulf %119, %120 : vector<24x128xf32>
      %122 = vector.broadcast %1 : vector<1x128xf32> to vector<24x128xf32>
      %123 = arith.addf %121, %122 : vector<24x128xf32>
      %cst_106 = arith.constant 0.000000e+00 : f32
      %124 = vector.broadcast %cst_106 : f32 to vector<24x128xf32>
      %125 = arith.maximumf %123, %124 : vector<24x128xf32>
      %126 = vector.broadcast %9 : vector<24x1xf32> to vector<24x128xf32>
      %127 = arith.mulf %125, %126 : vector<24x128xf32>
      %c0_107 = arith.constant 0 : index
      %c0_108 = arith.constant 0 : index
      %c0_109 = arith.constant 0 : index
      %128 = vector.load %arg9[%c0_107, %c0_108, %c0_109] : memref<10x24x128xf32, #tpu.memory_space<vmem>>, vector<1x24x128xf32>
      %129 = vector.shape_cast %128 : vector<1x24x128xf32> to vector<24x128xf32>
      %130 = vector.shape_cast %127 : vector<24x128xf32> to vector<1x24x128xf32>
      tpu.vector_store %arg9[%c0_107, %c0_108, %c0_109], %130 {strides = array<i32>} : memref<10x24x128xf32, #tpu.memory_space<vmem>>, vector<1x24x128xf32>,
    } else {
    }
    %c0_i32_10 = arith.constant 0 : i32
    %27 = arith.cmpi eq, %arg1, %c0_i32_10 : i32
    %28 = arith.extui %27 : i1 to i32
    %c0_i32_11 = arith.constant 0 : i32
    %29 = arith.cmpi ne, %28, %c0_i32_11 : i32
    scf.if %29 {
      %cst_102 = arith.constant 0.000000e+00 : f32
      %118 = vector.broadcast %cst_102 : f32 to vector<24x128xf32>
      %c0_103 = arith.constant 0 : index
      %c0_104 = arith.constant 0 : index
      %c0_105 = arith.constant 0 : index
      %119 = vector.load %arg9[%c0_103, %c0_104, %c0_105] : memref<10x24x128xf32, #tpu.memory_space<vmem>>, vector<1x24x128xf32>
      %120 = vector.shape_cast %119 : vector<1x24x128xf32> to vector<24x128xf32>
      %121 = vector.shape_cast %118 : vector<24x128xf32> to vector<1x24x128xf32>
      tpu.vector_store %arg9[%c0_103, %c0_104, %c0_105], %121 {strides = array<i32>} : memref<10x24x128xf32, #tpu.memory_space<vmem>>, vector<1x24x128xf32>,
    } else {
    }
    %c1_i32_12 = arith.constant 1 : i32
    %30 = arith.cmpi slt, %arg1, %c1_i32_12 : i32
    %31 = arith.extui %30 : i1 to i32
    %c0_i32_13 = arith.constant 0 : i32
    %32 = arith.cmpi ne, %31, %c0_i32_13 : i32
    scf.if %32 {
      %c0_102 = arith.constant 0 : index
      %c0_103 = arith.constant 0 : index
      %c0_104 = arith.constant 0 : index
      %c0_105 = arith.constant 0 : index
      %118 = vector.load %arg4[%c0_102, %c0_103, %c0_104, %c0_105] : memref<1x1x24x128xf32, #tpu.memory_space<vmem>>, vector<1x1x24x128xf32>
      %119 = vector.shape_cast %118 : vector<1x1x24x128xf32> to vector<24x128xf32>
      %120 = vector.broadcast %0 : vector<1x128xf32> to vector<24x128xf32>
      %121 = arith.mulf %119, %120 : vector<24x128xf32>
      %122 = vector.broadcast %1 : vector<1x128xf32> to vector<24x128xf32>
      %123 = arith.addf %121, %122 : vector<24x128xf32>
      %cst_106 = arith.constant 0.000000e+00 : f32
      %124 = vector.broadcast %cst_106 : f32 to vector<24x128xf32>
      %125 = arith.maximumf %123, %124 : vector<24x128xf32>
      %126 = vector.broadcast %9 : vector<24x1xf32> to vector<24x128xf32>
      %127 = arith.mulf %125, %126 : vector<24x128xf32>
      %c9 = arith.constant 9 : index
      %c0_107 = arith.constant 0 : index
      %c0_108 = arith.constant 0 : index
      %128 = vector.load %arg9[%c9, %c0_107, %c0_108] : memref<10x24x128xf32, #tpu.memory_space<vmem>>, vector<1x24x128xf32>
      %129 = vector.shape_cast %128 : vector<1x24x128xf32> to vector<24x128xf32>
      %130 = vector.shape_cast %127 : vector<24x128xf32> to vector<1x24x128xf32>
      tpu.vector_store %arg9[%c9, %c0_107, %c0_108], %130 {strides = array<i32>} : memref<10x24x128xf32, #tpu.memory_space<vmem>>, vector<1x24x128xf32>,
    } else {
    }
    %c1_i32_14 = arith.constant 1 : i32
    %33 = arith.cmpi eq, %arg1, %c1_i32_14 : i32
    %34 = arith.extui %33 : i1 to i32
    %c0_i32_15 = arith.constant 0 : i32
    %35 = arith.cmpi ne, %34, %c0_i32_15 : i32
    scf.if %35 {
      %cst_102 = arith.constant 0.000000e+00 : f32
      %118 = vector.broadcast %cst_102 : f32 to vector<24x128xf32>
      %c9 = arith.constant 9 : index
      %c0_103 = arith.constant 0 : index
      %c0_104 = arith.constant 0 : index
      %119 = vector.load %arg9[%c9, %c0_103, %c0_104] : memref<10x24x128xf32, #tpu.memory_space<vmem>>, vector<1x24x128xf32>
      %120 = vector.shape_cast %119 : vector<1x24x128xf32> to vector<24x128xf32>
      %121 = vector.shape_cast %118 : vector<24x128xf32> to vector<1x24x128xf32>
      tpu.vector_store %arg9[%c9, %c0_103, %c0_104], %121 {strides = array<i32>} : memref<10x24x128xf32, #tpu.memory_space<vmem>>, vector<1x24x128xf32>,
    } else {
    }
    %c0_16 = arith.constant 0 : index
    %c0_17 = arith.constant 0 : index
    %c0_18 = arith.constant 0 : index
    %36 = vector.load %arg9[%c0_16, %c0_17, %c0_18] : memref<10x24x128xf32, #tpu.memory_space<vmem>>, vector<8x24x128xf32>
    %37 = vector.shape_cast %36 : vector<8x24x128xf32> to vector<192x128xf32>
    %c1_19 = arith.constant 1 : index
    %c0_20 = arith.constant 0 : index
    %c0_21 = arith.constant 0 : index
    %38 = vector.load %arg5[%c1_19, %c0_20, %c0_21] : memref<9x128x128xf32, #tpu.memory_space<vmem>>, vector<1x128x128xf32>
    %39 = vector.shape_cast %38 : vector<1x128x128xf32> to vector<128x128xf32>
    %cst_22 = arith.constant dense<0.000000e+00> : vector<192x128xf32>
    %40 = tpu.matmul %37, %39, %cst_22 {dimension_numbers = #tpu.dot_dimension_numbers<[1], [0], [0], [1], [0, 0, 1, 1], [], []>} : vector<192x128xf32>, vector<128x128xf32>, vector<192x128xf32> -> vector<192x128xf32>
    %41 = vector.shape_cast %40 : vector<192x128xf32> to vector<8x24x128xf32>
    %c0_23 = arith.constant 0 : index
    %c0_24 = arith.constant 0 : index
    %c0_25 = arith.constant 0 : index
    %42 = vector.load %arg5[%c0_23, %c0_24, %c0_25] : memref<9x128x128xf32, #tpu.memory_space<vmem>>, vector<1x128x128xf32>
    %43 = vector.shape_cast %42 : vector<1x128x128xf32> to vector<128x128xf32>
    %cst_26 = arith.constant dense<0.000000e+00> : vector<192x128xf32>
    %44 = tpu.matmul %37, %43, %cst_26 {dimension_numbers = #tpu.dot_dimension_numbers<[1], [0], [0], [1], [0, 0, 1, 1], [], []>} : vector<192x128xf32>, vector<128x128xf32>, vector<192x128xf32> -> vector<192x128xf32>
    %45 = vector.shape_cast %44 : vector<192x128xf32> to vector<8x24x128xf32>
    %c2 = arith.constant 2 : index
    %c0_27 = arith.constant 0 : index
    %c0_28 = arith.constant 0 : index
    %46 = vector.load %arg5[%c2, %c0_27, %c0_28] : memref<9x128x128xf32, #tpu.memory_space<vmem>>, vector<1x128x128xf32>
    %47 = vector.shape_cast %46 : vector<1x128x128xf32> to vector<128x128xf32>
    %cst_29 = arith.constant dense<0.000000e+00> : vector<192x128xf32>
    %48 = tpu.matmul %37, %47, %cst_29 {dimension_numbers = #tpu.dot_dimension_numbers<[1], [0], [0], [1], [0, 0, 1, 1], [], []>} : vector<192x128xf32>, vector<128x128xf32>, vector<192x128xf32> -> vector<192x128xf32>
    %49 = vector.shape_cast %48 : vector<192x128xf32> to vector<8x24x128xf32>
    %c0_30 = arith.constant 0 : index
    %c0_31 = arith.constant 0 : index
    %c0_32 = arith.constant 0 : index
    %50 = vector.load %arg10[%c0_30, %c0_31, %c0_32] : memref<8x24x128xf32, #tpu.memory_space<vmem>>, vector<8x24x128xf32>
    tpu.vector_store %arg10[%c0_30, %c0_31, %c0_32], %41 {strides = array<i32>} : memref<8x24x128xf32, #tpu.memory_space<vmem>>, vector<8x24x128xf32>,
    %c0_33 = arith.constant 0 : index
    %c1_34 = arith.constant 1 : index
    %c0_35 = arith.constant 0 : index
    %51 = vector.load %arg10[%c0_33, %c1_34, %c0_35] : memref<8x24x128xf32, #tpu.memory_space<vmem>>, vector<8x16x128xf32>
    %52 = vector.extract_strided_slice %45 {offsets = [0, 0, 0], sizes = [8, 16, 128], strides = [1, 1, 1]} : vector<8x24x128xf32> to vector<8x16x128xf32>
    %53 = vector.extract_strided_slice %49 {offsets = [0, 2, 0], sizes = [8, 16, 128], strides = [1, 1, 1]} : vector<8x24x128xf32> to vector<8x16x128xf32>
    %54 = arith.addf %52, %53 : vector<8x16x128xf32>
    %55 = arith.addf %51, %54 : vector<8x16x128xf32>
    %c0_36 = arith.constant 0 : index
    %c1_37 = arith.constant 1 : index
    %c0_38 = arith.constant 0 : index
    %56 = vector.load %arg10[%c0_36, %c1_37, %c0_38] : memref<8x24x128xf32, #tpu.memory_space<vmem>>, vector<8x16x128xf32>
    tpu.vector_store %arg10[%c0_36, %c1_37, %c0_38], %55 {strides = array<i32>} : memref<8x24x128xf32, #tpu.memory_space<vmem>>, vector<8x16x128xf32>,
    %c1_39 = arith.constant 1 : index
    %c0_40 = arith.constant 0 : index
    %c0_41 = arith.constant 0 : index
    %57 = vector.load %arg9[%c1_39, %c0_40, %c0_41] : memref<10x24x128xf32, #tpu.memory_space<vmem>>, vector<8x24x128xf32>
    %58 = vector.shape_cast %57 : vector<8x24x128xf32> to vector<192x128xf32>
    %c4 = arith.constant 4 : index
    %c0_42 = arith.constant 0 : index
    %c0_43 = arith.constant 0 : index
    %59 = vector.load %arg5[%c4, %c0_42, %c0_43] : memref<9x128x128xf32, #tpu.memory_space<vmem>>, vector<1x128x128xf32>
    %60 = vector.shape_cast %59 : vector<1x128x128xf32> to vector<128x128xf32>
    %cst_44 = arith.constant dense<0.000000e+00> : vector<192x128xf32>
    %61 = tpu.matmul %58, %60, %cst_44 {dimension_numbers = #tpu.dot_dimension_numbers<[1], [0], [0], [1], [0, 0, 1, 1], [], []>} : vector<192x128xf32>, vector<128x128xf32>, vector<192x128xf32> -> vector<192x128xf32>
    %62 = vector.shape_cast %61 : vector<192x128xf32> to vector<8x24x128xf32>
    %c3 = arith.constant 3 : index
    %c0_45 = arith.constant 0 : index
    %c0_46 = arith.constant 0 : index
    %63 = vector.load %arg5[%c3, %c0_45, %c0_46] : memref<9x128x128xf32, #tpu.memory_space<vmem>>, vector<1x128x128xf32>
    %64 = vector.shape_cast %63 : vector<1x128x128xf32> to vector<128x128xf32>
    %cst_47 = arith.constant dense<0.000000e+00> : vector<192x128xf32>
    %65 = tpu.matmul %58, %64, %cst_47 {dimension_numbers = #tpu.dot_dimension_numbers<[1], [0], [0], [1], [0, 0, 1, 1], [], []>} : vector<192x128xf32>, vector<128x128xf32>, vector<192x128xf32> -> vector<192x128xf32>
    %66 = vector.shape_cast %65 : vector<192x128xf32> to vector<8x24x128xf32>
    %c5 = arith.constant 5 : index
    %c0_48 = arith.constant 0 : index
    %c0_49 = arith.constant 0 : index
    %67 = vector.load %arg5[%c5, %c0_48, %c0_49] : memref<9x128x128xf32, #tpu.memory_space<vmem>>, vector<1x128x128xf32>
    %68 = vector.shape_cast %67 : vector<1x128x128xf32> to vector<128x128xf32>
    %cst_50 = arith.constant dense<0.000000e+00> : vector<192x128xf32>
    %69 = tpu.matmul %58, %68, %cst_50 {dimension_numbers = #tpu.dot_dimension_numbers<[1], [0], [0], [1], [0, 0, 1, 1], [], []>} : vector<192x128xf32>, vector<128x128xf32>, vector<192x128xf32> -> vector<192x128xf32>
    %70 = vector.shape_cast %69 : vector<192x128xf32> to vector<8x24x128xf32>
    %c0_51 = arith.constant 0 : index
    %c0_52 = arith.constant 0 : index
    %c0_53 = arith.constant 0 : index
    %71 = vector.load %arg10[%c0_51, %c0_52, %c0_53] : memref<8x24x128xf32, #tpu.memory_space<vmem>>, vector<8x24x128xf32>
    %72 = arith.addf %71, %62 : vector<8x24x128xf32>
    %c0_54 = arith.constant 0 : index
    %c0_55 = arith.constant 0 : index
    %c0_56 = arith.constant 0 : index
    %73 = vector.load %arg10[%c0_54, %c0_55, %c0_56] : memref<8x24x128xf32, #tpu.memory_space<vmem>>, vector<8x24x128xf32>
    tpu.vector_store %arg10[%c0_54, %c0_55, %c0_56], %72 {strides = array<i32>} : memref<8x24x128xf32, #tpu.memory_space<vmem>>, vector<8x24x128xf32>,
    %c0_57 = arith.constant 0 : index
    %c1_58 = arith.constant 1 : index
    %c0_59 = arith.constant 0 : index
    %74 = vector.load %arg10[%c0_57, %c1_58, %c0_59] : memref<8x24x128xf32, #tpu.memory_space<vmem>>, vector<8x16x128xf32>
    %75 = vector.extract_strided_slice %66 {offsets = [0, 0, 0], sizes = [8, 16, 128], strides = [1, 1, 1]} : vector<8x24x128xf32> to vector<8x16x128xf32>
    %76 = vector.extract_strided_slice %70 {offsets = [0, 2, 0], sizes = [8, 16, 128], strides = [1, 1, 1]} : vector<8x24x128xf32> to vector<8x16x128xf32>
    %77 = arith.addf %75, %76 : vector<8x16x128xf32>
    %78 = arith.addf %74, %77 : vector<8x16x128xf32>
    %c0_60 = arith.constant 0 : index
    %c1_61 = arith.constant 1 : index
    %c0_62 = arith.constant 0 : index
    %79 = vector.load %arg10[%c0_60, %c1_61, %c0_62] : memref<8x24x128xf32, #tpu.memory_space<vmem>>, vector<8x16x128xf32>
    tpu.vector_store %arg10[%c0_60, %c1_61, %c0_62], %78 {strides = array<i32>} : memref<8x24x128xf32, #tpu.memory_space<vmem>>, vector<8x16x128xf32>,
    %c2_63 = arith.constant 2 : index
    %c0_64 = arith.constant 0 : index
    %c0_65 = arith.constant 0 : index
    %80 = vector.load %arg9[%c2_63, %c0_64, %c0_65] : memref<10x24x128xf32, #tpu.memory_space<vmem>>, vector<8x24x128xf32>
    %81 = vector.shape_cast %80 : vector<8x24x128xf32> to vector<192x128xf32>
    %c7 = arith.constant 7 : index
    %c0_66 = arith.constant 0 : index
    %c0_67 = arith.constant 0 : index
    %82 = vector.load %arg5[%c7, %c0_66, %c0_67] : memref<9x128x128xf32, #tpu.memory_space<vmem>>, vector<1x128x128xf32>
    %83 = vector.shape_cast %82 : vector<1x128x128xf32> to vector<128x128xf32>
    %cst_68 = arith.constant dense<0.000000e+00> : vector<192x128xf32>
    %84 = tpu.matmul %81, %83, %cst_68 {dimension_numbers = #tpu.dot_dimension_numbers<[1], [0], [0], [1], [0, 0, 1, 1], [], []>} : vector<192x128xf32>, vector<128x128xf32>, vector<192x128xf32> -> vector<192x128xf32>
    %85 = vector.shape_cast %84 : vector<192x128xf32> to vector<8x24x128xf32>
    %c6 = arith.constant 6 : index
    %c0_69 = arith.constant 0 : index
    %c0_70 = arith.constant 0 : index
    %86 = vector.load %arg5[%c6, %c0_69, %c0_70] : memref<9x128x128xf32, #tpu.memory_space<vmem>>, vector<1x128x128xf32>
    %87 = vector.shape_cast %86 : vector<1x128x128xf32> to vector<128x128xf32>
    %cst_71 = arith.constant dense<0.000000e+00> : vector<192x128xf32>
    %88 = tpu.matmul %81, %87, %cst_71 {dimension_numbers = #tpu.dot_dimension_numbers<[1], [0], [0], [1], [0, 0, 1, 1], [], []>} : vector<192x128xf32>, vector<128x128xf32>, vector<192x128xf32> -> vector<192x128xf32>
    %89 = vector.shape_cast %88 : vector<192x128xf32> to vector<8x24x128xf32>
    %c8 = arith.constant 8 : index
    %c0_72 = arith.constant 0 : index
    %c0_73 = arith.constant 0 : index
    %90 = vector.load %arg5[%c8, %c0_72, %c0_73] : memref<9x128x128xf32, #tpu.memory_space<vmem>>, vector<1x128x128xf32>
    %91 = vector.shape_cast %90 : vector<1x128x128xf32> to vector<128x128xf32>
    %cst_74 = arith.constant dense<0.000000e+00> : vector<192x128xf32>
    %92 = tpu.matmul %81, %91, %cst_74 {dimension_numbers = #tpu.dot_dimension_numbers<[1], [0], [0], [1], [0, 0, 1, 1], [], []>} : vector<192x128xf32>, vector<128x128xf32>, vector<192x128xf32> -> vector<192x128xf32>
    %93 = vector.shape_cast %92 : vector<192x128xf32> to vector<8x24x128xf32>
    %c0_75 = arith.constant 0 : index
    %c0_76 = arith.constant 0 : index
    %c0_77 = arith.constant 0 : index
    %94 = vector.load %arg10[%c0_75, %c0_76, %c0_77] : memref<8x24x128xf32, #tpu.memory_space<vmem>>, vector<8x24x128xf32>
    %95 = arith.addf %94, %85 : vector<8x24x128xf32>
    %c0_78 = arith.constant 0 : index
    %c0_79 = arith.constant 0 : index
    %c0_80 = arith.constant 0 : index
    %96 = vector.load %arg10[%c0_78, %c0_79, %c0_80] : memref<8x24x128xf32, #tpu.memory_space<vmem>>, vector<8x24x128xf32>
    tpu.vector_store %arg10[%c0_78, %c0_79, %c0_80], %95 {strides = array<i32>} : memref<8x24x128xf32, #tpu.memory_space<vmem>>, vector<8x24x128xf32>,
    %c0_81 = arith.constant 0 : index
    %c1_82 = arith.constant 1 : index
    %c0_83 = arith.constant 0 : index
    %97 = vector.load %arg10[%c0_81, %c1_82, %c0_83] : memref<8x24x128xf32, #tpu.memory_space<vmem>>, vector<8x16x128xf32>
    %98 = vector.extract_strided_slice %89 {offsets = [0, 0, 0], sizes = [8, 16, 128], strides = [1, 1, 1]} : vector<8x24x128xf32> to vector<8x16x128xf32>
    %99 = vector.extract_strided_slice %93 {offsets = [0, 2, 0], sizes = [8, 16, 128], strides = [1, 1, 1]} : vector<8x24x128xf32> to vector<8x16x128xf32>
    %100 = arith.addf %98, %99 : vector<8x16x128xf32>
    %101 = arith.addf %97, %100 : vector<8x16x128xf32>
    %c0_84 = arith.constant 0 : index
    %c1_85 = arith.constant 1 : index
    %c0_86 = arith.constant 0 : index
    %102 = vector.load %arg10[%c0_84, %c1_85, %c0_86] : memref<8x24x128xf32, #tpu.memory_space<vmem>>, vector<8x16x128xf32>
    tpu.vector_store %arg10[%c0_84, %c1_85, %c0_86], %101 {strides = array<i32>} : memref<8x24x128xf32, #tpu.memory_space<vmem>>, vector<8x16x128xf32>,
    %c0_87 = arith.constant 0 : index
    %c0_88 = arith.constant 0 : index
    %c0_89 = arith.constant 0 : index
    %103 = vector.load %arg10[%c0_87, %c0_88, %c0_89] : memref<8x24x128xf32, #tpu.memory_space<vmem>>, vector<8x24x128xf32>
    %c0_90 = arith.constant 0 : index
    %c0_91 = arith.constant 0 : index
    %c0_92 = arith.constant 0 : index
    %c0_93 = arith.constant 0 : index
    %104 = vector.load %arg7[%c0_90, %c0_91, %c0_92, %c0_93] : memref<1x8x24x128xf32, #tpu.memory_space<vmem>>, vector<1x8x24x128xf32>
    %105 = vector.shape_cast %104 : vector<1x8x24x128xf32> to vector<8x24x128xf32>
    %106 = vector.shape_cast %103 : vector<8x24x128xf32> to vector<1x8x24x128xf32>
    tpu.vector_store %arg7[%c0_90, %c0_91, %c0_92, %c0_93], %106 {strides = array<i32>} : memref<1x8x24x128xf32, #tpu.memory_space<vmem>>, vector<1x8x24x128xf32>,
    %cst_94 = arith.constant dense<0.000000e+00> : vector<24x128xf32>
    %107 = vector.multi_reduction <add>, %103, %cst_94 [0] : vector<8x24x128xf32> to vector<24x128xf32>
    %cst_95 = arith.constant dense<0.000000e+00> : vector<128xf32>
    %108 = vector.multi_reduction <add>, %107, %cst_95 [0] : vector<24x128xf32> to vector<128xf32>
    %109 = vector.shape_cast %108 : vector<128xf32> to vector<1x128xf32>
    %110 = arith.mulf %103, %103 : vector<8x24x128xf32>
    %cst_96 = arith.constant dense<0.000000e+00> : vector<24x128xf32>
    %111 = vector.multi_reduction <add>, %110, %cst_96 [0] : vector<8x24x128xf32> to vector<24x128xf32>
    %cst_97 = arith.constant dense<0.000000e+00> : vector<128xf32>
    %112 = vector.multi_reduction <add>, %111, %cst_97 [0] : vector<24x128xf32> to vector<128xf32>
    %113 = vector.shape_cast %112 : vector<128xf32> to vector<1x128xf32>
    %114 = tpu.concatenate %109, %113 in 0 : vector<1x128xf32>, vector<1x128xf32> -> vector<2x128xf32>
    %c0_98 = arith.constant 0 : index
    %c0_99 = arith.constant 0 : index
    %c0_100 = arith.constant 0 : index
    %c0_101 = arith.constant 0 : index
    %115 = vector.load %arg8[%c0_98, %c0_99, %c0_100, %c0_101] : memref<1x1x2x128xf32, #tpu.memory_space<vmem>>, vector<1x1x2x128xf32>
    %116 = vector.shape_cast %115 : vector<1x1x2x128xf32> to vector<2x128xf32>
    %117 = vector.shape_cast %114 : vector<2x128xf32> to vector<1x1x2x128xf32>
    tpu.vector_store %arg8[%c0_98, %c0_99, %c0_100, %c0_101], %117 {strides = array<i32>} : memref<1x1x2x128xf32, #tpu.memory_space<vmem>>, vector<1x1x2x128xf32>,
    return
  }
  func.func @transform_0(%arg0: i32, %arg1: i32) -> (i32, i32, i32, i32) {
    %c8_i32 = arith.constant 8 : i32
    %0 = arith.muli %arg1, %c8_i32 : i32
    %c1_i32 = arith.constant 1 : i32
    %1 = arith.subi %0, %c1_i32 : i32
    %c0_i32 = arith.constant 0 : i32
    %2 = arith.maxsi %1, %c0_i32 : i32
    %c0_i32_0 = arith.constant 0 : i32
    %c0_i32_1 = arith.constant 0 : i32
    %c0_i32_2 = arith.constant 0 : i32
    return %arg0, %2, %c0_i32_0, %c0_i32_1 : i32, i32, i32, i32
  }
  func.func @transform_1(%arg0: i32, %arg1: i32) -> (i32, i32, i32, i32) {
    %c0_i32 = arith.constant 0 : i32
    %c0_i32_0 = arith.constant 0 : i32
    %c0_i32_1 = arith.constant 0 : i32
    return %arg0, %arg1, %c0_i32, %c0_i32_0 : i32, i32, i32, i32
  }
  func.func @transform_2(%arg0: i32, %arg1: i32) -> (i32, i32, i32, i32) {
    %c8_i32 = arith.constant 8 : i32
    %0 = arith.muli %arg1, %c8_i32 : i32
    %c8_i32_0 = arith.constant 8 : i32
    %1 = arith.addi %0, %c8_i32_0 : i32
    %c15_i32 = arith.constant 15 : i32
    %2 = arith.minsi %1, %c15_i32 : i32
    %c0_i32 = arith.constant 0 : i32
    %c0_i32_1 = arith.constant 0 : i32
    %c0_i32_2 = arith.constant 0 : i32
    return %arg0, %2, %c0_i32, %c0_i32_1 : i32, i32, i32, i32
  }
  func.func @transform_3(%arg0: i32, %arg1: i32) -> (i32, i32, i32) {
    %c0_i32 = arith.constant 0 : i32
    %c0_i32_0 = arith.constant 0 : i32
    %c0_i32_1 = arith.constant 0 : i32
    %c0_i32_2 = arith.constant 0 : i32
    return %c0_i32, %c0_i32_0, %c0_i32_1 : i32, i32, i32
  }
  func.func @transform_4(%arg0: i32, %arg1: i32) -> (i32, i32) {
    %c0_i32 = arith.constant 0 : i32
    %c0_i32_0 = arith.constant 0 : i32
    %c0_i32_1 = arith.constant 0 : i32
    return %c0_i32, %c0_i32_0 : i32, i32
  }
  func.func @transform_5(%arg0: i32, %arg1: i32) -> (i32, i32, i32, i32) {
    %c0_i32 = arith.constant 0 : i32
    %c0_i32_0 = arith.constant 0 : i32
    %c0_i32_1 = arith.constant 0 : i32
    return %arg0, %arg1, %c0_i32, %c0_i32_0 : i32, i32, i32, i32
  }
  func.func @transform_6(%arg0: i32, %arg1: i32) -> (i32, i32, i32, i32) {
    %c0_i32 = arith.constant 0 : i32
    %c0_i32_0 = arith.constant 0 : i32
    %c0_i32_1 = arith.constant 0 : i32
    return %arg0, %arg1, %c0_i32, %c0_i32_0 : i32, i32, i32, i32
  }
}

</mosaic_0001>

<bundles_post_ra>
// kernel: vgg_block.5
= control target key start
LH: loop header
LB: loop body
LE: loop exit
PB: predicated region body
PF: predicated region fallthrough
CT: control target
= control target key end

     0   :  { %s527_s9 = smov 0   ;;  %s529_s10 = smov 0   ;;  %s688_s0 = inlined_call_operand.vmem [shape: f32[2,16,24,128], index: 0, kind: input, shape index: {}]   ;;  %s689_s1 = inlined_call_operand.vmem [shape: f32[2,128], index: 1, kind: input, shape index: {}]   ;;  %s690_s2 = inlined_call_operand.vmem [shape: f32[2,16,24,128], index: 2, kind: output, shape index: {}]  }
   0x1   :  { %s531_s11 = smov 0   ;;  %s533_s12 = smov 0  }
   0x2   :  { %s535_s13 = smov 0  }
   0x3 LB: > { %s21_s14 = sadd.s32 1, %s502_s11  ;;  %s24_s15 = sadd.s32 1, %s506_s12  ;;  %s510_s13 = sphi %s535_s13, %s12_s13   ;;  %s506_s12 = sphi %s533_s12, %s694_s12   ;;  %s502_s11 = sphi %s531_s11, %s693_s11   ;;  %s498_s10 = sphi %s529_s10, %s692_s10   ;;  %s494_s9 = sphi %s527_s9, %s691_s9  }
   0x4   : > { %p22_p0 = scmp.ge.s32.totalorder %s21_s14, 2  ;;  %p421_p1 = scmp.ge.s32.totalorder %s510_s13, 1 }
   0x5   : > { %p134_p2 = scmp.lt.s32.totalorder %s510_s13, 5 }
   0x6   : > { %s696_s14 = smov (%p22_p0, %s21_s14), 0  ;;  %s698_s15 = smov (!%p22_p0, %s24_s15), %s506_s12 }
   0x7   : > { %p135_p3 = pnand %p421_p1, %p134_p2  ;;  %p26_p4 = scmp.ge.s32.totalorder %s698_s15, 2 }
   0x8   : > { %s422_s16 = sshll.u32 (!%p135_p3), %s494_s9, 3  ;;  %p167_p5 = scmp.lt.s32.totalorder (!%p135_p3), %s498_s10, 1 }
   0x9   : > { %s700_s15 = smov (%p26_p4, %s698_s15), 0  ;;  %138 = sbr.rel (%p135_p3) target bundleno = 45 (0x2d), region = 28 }
   0xa   : > { %p169_p6 = scmp.lt.s32.totalorder (!%p135_p3), %s422_s16, 15 }
   0xe   : > { %s702_s10 = smov (!%p167_p5, %s498_s10), 1  ;;  %s704_s16 = smov (!%p169_p6, %s422_s16), 15  ;;  %v560_v0 = vld [vmem:[%s689_s1] ss:$0 sm:$0xff]  ;;  %v570_v1 = vld [vmem:[%s689_s1 + $0x1] ss:$0 sm:$0xff] }
   0xf   : > { %s431_s17 = smul.u32 48, %s702_s10 }
  0x10   : > { %s430_s18 = smul.u32 3, %s704_s16 }
  0x12   : > { %s173_s19 = sadd.s32 %s431_s17, %s430_s18 }
  0x13   : > { %s423_s20 = sshll.u32 %s173_s19, 3 }
  0x14   : > { %s565_s25 = scalar_lea.vmem %s688_s0, %s423_s20  ;;  %s593_s30 = scalar_lea.vmem %s690_s2, %s423_s20 }
  0x15   : > { %v190_v2 = vld [vmem:[%s565_s25] sm:$0xff]  ;;  %v191_v3 = vld [vmem:[%s565_s25 + $0x8] sm:$0xff]  ;;  %v192_v4 = vld [vmem:[%s565_s25 + $0x10] sm:$0xff] }
  0x16   : > { %v218_v5 = vmul.f32 %v560_v0, %v190_v2  ;;  %v219_v6 = vmul.f32 %v560_v0, %v191_v3  ;;  %v220_v7 = vmul.f32 %v560_v0, %v192_v4  ;;  %v193_v8 = vld [vmem:[%s565_s25 + $0x18] sm:$0xff]  ;;  %v194_v9 = vld [vmem:[%s565_s25 + $0x20] sm:$0xff]  ;;  %v195_v10 = vld [vmem:[%s565_s25 + $0x28] sm:$0xff] }
  0x17   : > { %v221_v11 = vmul.f32 %v560_v0, %v193_v8  ;;  %v222_v12 = vmul.f32 %v560_v0, %v194_v9  ;;  %v223_v13 = vmul.f32 %v560_v0, %v195_v10  ;;  %v196_v14 = vld [vmem:[%s565_s25 + $0x30] sm:$0xff]  ;;  %v197_v15 = vld [vmem:[%s565_s25 + $0x38] sm:$0xff]  ;;  %v198_v24 = vld [vmem:[%s565_s25 + $0x40] sm:$0xff] }
  0x18   : > { %v246_v16 = vadd.f32 %v570_v1, %v218_v5  ;;  %v247_v17 = vadd.f32 %v570_v1, %v219_v6  ;;  %v248_v18 = vadd.f32 %v570_v1, %v220_v7  ;;  %v224_v19 = vmul.f32 %v560_v0, %v196_v14  ;;  %v199_v25 = vld [vmem:[%s565_s25 + $0x48] sm:$0xff]  ;;  %v200_v26 = vld [vmem:[%s565_s25 + $0x50] sm:$0xff]  ;;  %v201_v31 = vld [vmem:[%s565_s25 + $0x58] sm:$0xff] }
  0x19   : > { %v249_v20 = vadd.f32 %v570_v1, %v221_v11  ;;  %v250_v21 = vadd.f32 %v570_v1, %v222_v12  ;;  %v251_v22 = vadd.f32 %v570_v1, %v223_v13  ;;  %v225_v23 = vmul.f32 %v560_v0, %v197_v15  ;;  %v202_v32 = vld [vmem:[%s565_s25 + $0x60] sm:$0xff]  ;;  %v203_v33 = vld [vmem:[%s565_s25 + $0x68] sm:$0xff]  ;;  %v204_v38 = vld [vmem:[%s565_s25 + $0x70] sm:$0xff] }
  0x1a   : > { %v270_v27 = vmax.f32 %v246_v16, 0.0  ;;  %v271_v28 = vmax.f32 %v247_v17, 0.0  ;;  %v272_v29 = vmax.f32 %v248_v18, 0.0  ;;  %v252_v30 = vadd.f32 %v570_v1, %v224_v19  ;;  %v205_v43 = vld [vmem:[%s565_s25 + $0x78] sm:$0xff]  ;;  %v206_v56 = vld [vmem:[%s565_s25 + $0x80] sm:$0xff]  ;;  %v207_v57 = vld [vmem:[%s565_s25 + $0x88] sm:$0xff] }
  0x1b   : > { %v273_v34 = vmax.f32 %v249_v20, 0.0  ;;  %v274_v35 = vmax.f32 %v250_v21, 0.0  ;;  %v275_v36 = vmax.f32 %v251_v22, 0.0  ;;  %v253_v37 = vadd.f32 %v570_v1, %v225_v23  ;;  %v208_v58 = vld [vmem:[%s565_s25 + $0x90] sm:$0xff]  ;;  %v209_v63 = vld [vmem:[%s565_s25 + $0x98] sm:$0xff]  ;;  %v210_v2 = vld [vmem:[%s565_s25 + $0xa0] sm:$0xff] }
  0x1c   : > { %294 = vst [vmem:[%s593_s30] sm:$0xff] %v270_v27  ;;  %295 = vst [vmem:[%s593_s30 + $0x8] sm:$0xff] %v271_v28  ;;  %v276_v39 = vmax.f32 %v252_v30, 0.0  ;;  %v226_v40 = vmul.f32 %v560_v0, %v198_v24  ;;  %v227_v41 = vmul.f32 %v560_v0, %v199_v25  ;;  %v228_v42 = vmul.f32 %v560_v0, %v200_v26  ;;  %v211_v3 = vld [vmem:[%s565_s25 + $0xa8] sm:$0xff]  ;;  %v212_v8 = vld [vmem:[%s565_s25 + $0xb0] sm:$0xff] }
  0x1d   : > { %296 = vst [vmem:[%s593_s30 + $0x10] sm:$0xff] %v272_v29  ;;  %297 = vst [vmem:[%s593_s30 + $0x18] sm:$0xff] %v273_v34  ;;  %v277_v44 = vmax.f32 %v253_v37, 0.0  ;;  %v229_v45 = vmul.f32 %v560_v0, %v201_v31  ;;  %v230_v46 = vmul.f32 %v560_v0, %v202_v32  ;;  %v231_v47 = vmul.f32 %v560_v0, %v203_v33  ;;  %v213_v13 = vld [vmem:[%s565_s25 + $0xb8] sm:$0xff] }
  0x1e   : > { %298 = vst [vmem:[%s593_s30 + $0x20] sm:$0xff] %v274_v35  ;;  %299 = vst [vmem:[%s593_s30 + $0x28] sm:$0xff] %v275_v36  ;;  %v254_v48 = vadd.f32 %v570_v1, %v226_v40  ;;  %v255_v49 = vadd.f32 %v570_v1, %v227_v41  ;;  %v256_v50 = vadd.f32 %v570_v1, %v228_v42 }
  0x1f   : > { %300 = vst [vmem:[%s593_s30 + $0x30] sm:$0xff] %v276_v39  ;;  %v232_v51 = vmul.f32 %v560_v0, %v204_v38  ;;  %301 = vst [vmem:[%s593_s30 + $0x38] sm:$0xff] %v277_v44  ;;  %v257_v52 = vadd.f32 %v570_v1, %v229_v45  ;;  %v258_v53 = vadd.f32 %v570_v1, %v230_v46 }
  0x20   : > { %v259_v54 = vadd.f32 %v570_v1, %v231_v47  ;;  %v233_v55 = vmul.f32 %v560_v0, %v205_v43  ;;  %v278_v59 = vmax.f32 %v254_v48, 0.0  ;;  %v279_v60 = vmax.f32 %v255_v49, 0.0 }
  0x21   : > { %v280_v61 = vmax.f32 %v256_v50, 0.0  ;;  %v260_v62 = vadd.f32 %v570_v1, %v232_v51  ;;  %v281_v4 = vmax.f32 %v257_v52, 0.0  ;;  %v282_v5 = vmax.f32 %v258_v53, 0.0 }
  0x22   : > { %v283_v6 = vmax.f32 %v259_v54, 0.0  ;;  %v261_v7 = vadd.f32 %v570_v1, %v233_v55  ;;  %302 = vst [vmem:[%s593_s30 + $0x40] sm:$0xff] %v278_v59  ;;  %303 = vst [vmem:[%s593_s30 + $0x48] sm:$0xff] %v279_v60  ;;  %v234_v10 = vmul.f32 %v560_v0, %v206_v56  ;;  %v235_v11 = vmul.f32 %v560_v0, %v207_v57 }
  0x23   : > { %304 = vst [vmem:[%s593_s30 + $0x50] sm:$0xff] %v280_v61  ;;  %v284_v9 = vmax.f32 %v260_v62, 0.0  ;;  %v236_v12 = vmul.f32 %v560_v0, %v208_v58  ;;  %305 = vst [vmem:[%s593_s30 + $0x58] sm:$0xff] %v281_v4  ;;  %v237_v15 = vmul.f32 %v560_v0, %v209_v63  ;;  %v238_v16 = vmul.f32 %v560_v0, %v210_v2 }
  0x24   : > { %306 = vst [vmem:[%s593_s30 + $0x60] sm:$0xff] %v282_v5  ;;  %307 = vst [vmem:[%s593_s30 + $0x68] sm:$0xff] %v283_v6  ;;  %v285_v14 = vmax.f32 %v261_v7, 0.0  ;;  %v239_v17 = vmul.f32 %v560_v0, %v211_v3  ;;  %v262_v18 = vadd.f32 %v570_v1, %v234_v10  ;;  %v263_v19 = vadd.f32 %v570_v1, %v235_v11 }
  0x25   : > { %308 = vst [vmem:[%s593_s30 + $0x70] sm:$0xff] %v284_v9  ;;  %v264_v20 = vadd.f32 %v570_v1, %v236_v12  ;;  %v240_v21 = vmul.f32 %v560_v0, %v212_v8  ;;  %v265_v22 = vadd.f32 %v570_v1, %v237_v15  ;;  %v266_v23 = vadd.f32 %v570_v1, %v238_v16 }
  0x26   : > { %309 = vst [vmem:[%s593_s30 + $0x78] sm:$0xff] %v285_v14  ;;  %v267_v24 = vadd.f32 %v570_v1, %v239_v17  ;;  %v241_v25 = vmul.f32 %v560_v0, %v213_v13  ;;  %v286_v26 = vmax.f32 %v262_v18, 0.0  ;;  %v287_v27 = vmax.f32 %v263_v19, 0.0 }
  0x27   : > { %v288_v28 = vmax.f32 %v264_v20, 0.0  ;;  %v268_v29 = vadd.f32 %v570_v1, %v240_v21  ;;  %v289_v30 = vmax.f32 %v265_v22, 0.0  ;;  %v290_v31 = vmax.f32 %v266_v23, 0.0 }
  0x28   : > { %v291_v32 = vmax.f32 %v267_v24, 0.0  ;;  %v269_v33 = vadd.f32 %v570_v1, %v241_v25  ;;  %310 = vst [vmem:[%s593_s30 + $0x80] sm:$0xff] %v286_v26  ;;  %311 = vst [vmem:[%s593_s30 + $0x88] sm:$0xff] %v287_v27 }
  0x29   : > { %312 = vst [vmem:[%s593_s30 + $0x90] sm:$0xff] %v288_v28  ;;  %v292_v34 = vmax.f32 %v268_v29, 0.0  ;;  %313 = vst [vmem:[%s593_s30 + $0x98] sm:$0xff] %v289_v30 }
  0x2a   : > { %314 = vst [vmem:[%s593_s30 + $0xa0] sm:$0xff] %v290_v31  ;;  %315 = vst [vmem:[%s593_s30 + $0xa8] sm:$0xff] %v291_v32  ;;  %v293_v0 = vmax.f32 %v269_v33, 0.0 }
  0x2b   : > { %316 = vst [vmem:[%s593_s30 + $0xb0] sm:$0xff] %v292_v34 }
  0x2c   : > { %317 = vst [vmem:[%s593_s30 + $0xb8] sm:$0xff] %v293_v0 }
  0x2d PF: > { %s12_s13 = sadd.s32 1, %s510_s13   ;;  %s691_s9 = smov %s502_s11 }
  0x2e   : > { %p9_p7 = scmp.ge.s32.totalorder %s12_s13, 6   ;;  %s692_s10 = smov %s506_s12 }
  0x2f   : > { %s693_s11 = smov %s696_s14  ;;  %s694_s12 = smov %s700_s15 }
  0x30   :  { %11 = sbr.rel (!%p9_p7) target bundleno = 3 (0x3), region = 58 }

// kernel: vgg_block.3
= control target key start
LH: loop header
LB: loop body
LE: loop exit
PB: predicated region body
PF: predicated region fallthrough
CT: control target
= control target key end

     0   :  { %s4549_s18 = smov 0   ;;  %s4551_s19 = smov 0   ;;  %s5669_s0 = inlined_call_operand.vmem [shape: f32[2,18,24,128], index: 0, kind: input, shape index: {}, may-alias: {0,1,2}]   ;;  %s5670_s1 = inlined_call_operand.vmem [shape: f32[2,18,24,128], index: 1, kind: input, shape index: {}, may-alias: {0,1,2}]   ;;  %s5671_s2 = inlined_call_operand.vmem [shape: f32[2,18,24,128], index: 2, kind: input, shape index: {}, may-alias: {0,1,2}]   ;;  %s5672_s3 = inlined_call_operand.vmem [shape: f32[9,128,128], index: 3, kind: input, shape index: {}]   ;;  %s5673_s4 = inlined_call_operand.vmem [shape: f32[2,16,24,128], index: 4, kind: output, shape index: {0}]   ;;  %s5674_s5 = inlined_call_operand.vmem [shape: f32[2,2,2,128], index: 5, kind: output, shape index: {1}]  }
   0x1   :  { %s4553_s20 = smov 0   ;;  %s4555_s21 = smov 0  }
   0x2   :  { %s4557_s22 = smov 0  }
   0x3 LB: > { %s25_s23 = sadd.s32 1, %s4509_s20  ;;  %s28_s24 = sadd.s32 1, %s4513_s21  ;;  %s4517_s22 = sphi %s4557_s22, %s16_s22   ;;  %s4513_s21 = sphi %s4555_s21, %s5678_s21   ;;  %s4509_s20 = sphi %s4553_s20, %s5677_s20   ;;  %s4505_s19 = sphi %s4551_s19, %s5676_s19   ;;  %s4501_s18 = sphi %s4549_s18, %s5675_s18  }
   0x4   : > { %p26_p0 = scmp.ge.s32.totalorder %s25_s23, 2  ;;  %p3270_p1 = scmp.ge.s32.totalorder %s4517_s22, 1 }
   0x5   : > { %p272_p2 = scmp.lt.s32.totalorder %s4517_s22, 5 }
   0x6   : > { %s5680_s23 = smov (%p26_p0, %s25_s23), 0  ;;  %s5682_s24 = smov (!%p26_p0, %s28_s24), %s4513_s21 }
   0x7   : > { %p273_p3 = pnand %p3270_p1, %p272_p2  ;;  %p30_p4 = scmp.ge.s32.totalorder %s5682_s24, 2 }
   0x8   : > { %s4608_s16 = sshll.u32 (!%p273_p3), %s4501_s18, 3  ;;  %p351_p5 = scmp.lt.s32.totalorder (!%p273_p3), %s4505_s19, 1 }
   0x9   : > { %s5684_s24 = smov (%p30_p4, %s5682_s24), 0  ;;  %276 = sbr.rel (%p273_p3) target bundleno = 533 (0x215), region = 36 }
   0xa   : > { %p353_p6 = scmp.lt.s32.totalorder (!%p273_p3), %s4608_s16, 17  ;;  %p395_p9 = scmp.lt.s32.totalorder (!%p273_p3), %s4608_s16, 15 }
   0xb   : > { %p405_p10 = scmp.lt.s32.totalorder (!%p273_p3), %s4501_s18, 1 }
   0xe   : > { %v3296_v0 = vld [vmem:[%s5672_s3 + $0xf8] sm:$0xff]  ;;  %v3295_v2 = vld [vmem:[%s5672_s3 + $0xf0] sm:$0xff]  ;;  %v3294_v4 = vld [vmem:[%s5672_s3 + $0xe8] sm:$0xff]  ;;  %s5686_s19 = smov (!%p351_p5, %s4505_s19), 1  ;;  %vm1158_vm0 = vcmask 1045504   ;;  %s5694_s18 = smov (!%p405_p10, %s4501_s18), 1 }
   0xf   : > { %v714_v1 = vld [vmem:[%s5672_s3 + $0x78] sm:$0xff]  ;;  %3771 = vmatprep.subr.mxu0 %v3296_v0  ;;  %v713_v3 = vld [vmem:[%s5672_s3 + $0x70] sm:$0xff]  ;;  %v712_v5 = vld [vmem:[%s5672_s3 + $0x68] sm:$0xff]  ;;  %s354_s15 = scalar_select %p353_p6, %s4608_s16, 17  ;;  %vm3071_vm1 = vcmask 1040384  }
  0x10   : > { %3839 = vmatprep.subr.mxu1 %v714_v1  ;;  %3772 = vmatpush3.msra.mxu0 %v3296_v0  ;;  %v3293_v6 = vld [vmem:[%s5672_s3 + $0xe0] sm:$0xff]  ;;  %v3292_v8 = vld [vmem:[%s5672_s3 + $0xd8] sm:$0xff]  ;;  %v3291_v10 = vld [vmem:[%s5672_s3 + $0xd0] sm:$0xff]  ;;  %s4651_s28 = smul.u32 54, %s5686_s19 }
  0x11   : > { %3840 = vmatpush3.msra.mxu1 %v714_v1  ;;  %3773 = vmatprep.subr.mxu0 %v3295_v2  ;;  %v711_v7 = vld [vmem:[%s5672_s3 + $0x60] sm:$0xff]  ;;  %v710_v9 = vld [vmem:[%s5672_s3 + $0x58] sm:$0xff]  ;;  %v709_v11 = vld [vmem:[%s5672_s3 + $0x50] sm:$0xff]  ;;  %s4415_s8 = smul.u32 3, %s354_s15 }
  0x12   : > { %3841 = vmatprep.subr.mxu1 %v713_v3  ;;  %3774 = vmatpush3.msra.mxu0 %v3295_v2  ;;  %v3290_v12 = vld [vmem:[%s5672_s3 + $0xc8] sm:$0xff]  ;;  %v3289_v14 = vld [vmem:[%s5672_s3 + $0xc0] sm:$0xff]  ;;  %v3288_v16 = vld [vmem:[%s5672_s3 + $0xb8] sm:$0xff] }
  0x13   : > { %3842 = vmatpush3.msra.mxu1 %v713_v3  ;;  %3775 = vmatprep.subr.mxu0 %v3294_v4  ;;  %v708_v13 = vld [vmem:[%s5672_s3 + $0x48] sm:$0xff]  ;;  %v707_v15 = vld [vmem:[%s5672_s3 + $0x40] sm:$0xff]  ;;  %v706_v17 = vld [vmem:[%s5672_s3 + $0x38] sm:$0xff]  ;;  %s357_s25 = sadd.s32 %s4651_s28, %s4415_s8 }
  0x14   : > { %3843 = vmatprep.subr.mxu1 %v712_v5  ;;  %3776 = vmatpush3.msra.mxu0 %v3294_v4  ;;  %v3287_v18 = vld [vmem:[%s5672_s3 + $0xb0] sm:$0xff]  ;;  %v3286_v20 = vld [vmem:[%s5672_s3 + $0xa8] sm:$0xff]  ;;  %v3285_v22 = vld [vmem:[%s5672_s3 + $0xa0] sm:$0xff]  ;;  %s3272_s6 = sshll.u32 %s357_s25, 3 }
  0x15   : > { %3844 = vmatpush3.msra.mxu1 %v712_v5  ;;  %3777 = vmatprep.subr.mxu0 %v3293_v6  ;;  %v705_v19 = vld [vmem:[%s5672_s3 + $0x30] sm:$0xff]  ;;  %v704_v21 = vld [vmem:[%s5672_s3 + $0x28] sm:$0xff]  ;;  %v703_v23 = vld [vmem:[%s5672_s3 + $0x20] sm:$0xff]  ;;  %s4693_s25 = scalar_lea.vmem %s5669_s0, %s3272_s6  ;;  %s367_s6 = sadd.s32 8, %s4608_s16 }
  0x16   : > { %3845 = vmatprep.subr.mxu1 %v711_v7  ;;  %3778 = vmatpush3.msra.mxu0 %v3293_v6  ;;  %v3284_v24 = vld [vmem:[%s5672_s3 + $0x98] sm:$0xff]  ;;  %v3283_v26 = vld [vmem:[%s5672_s3 + $0x90] sm:$0xff]  ;;  %v3282_v28 = vld [vmem:[%s5672_s3 + $0x88] sm:$0xff]  ;;  %p370_p7 = scmp.lt.s32.totalorder %s367_s6, 17 }
  0x17   : > { %3846 = vmatpush3.msra.mxu1 %v711_v7  ;;  %3779 = vmatprep.subr.mxu0 %v3292_v8  ;;  %v702_v25 = vld [vmem:[%s5672_s3 + $0x18] sm:$0xff]  ;;  %v701_v27 = vld [vmem:[%s5672_s3 + $0x10] sm:$0xff]  ;;  %v700_v29 = vld [vmem:[%s5672_s3 + $0x8] sm:$0xff] }
  0x18   : > { %3847 = vmatprep.subr.mxu1 %v710_v9  ;;  %3780 = vmatpush3.msra.mxu0 %v3292_v8  ;;  %v3281_v30 = vld [vmem:[%s5672_s3 + $0x80] sm:$0xff]  ;;  %v4705_v33 = vld [vmem:[%s4693_s25 + $0x8] sm:$0xff]  ;;  %v3312_v34 = vld [vmem:[%s5672_s3 + $0x178] sm:$0xff]  ;;  %s5688_s6 = smov (!%p370_p7, %s367_s6), 17 }
  0x19   : > { %3848 = vmatpush3.msra.mxu1 %v710_v9  ;;  %3781 = vmatprep.subr.mxu0 %v3291_v10  ;;  %v699_v31 = vld [vmem:[%s5672_s3] sm:$0xff]  ;;  %v4712_v35 = vld [vmem:[%s4693_s25 + $0x10] sm:$0xff]  ;;  %v3328_v37 = vld [vmem:[%s5672_s3 + $0x278] sm:$0xff]  ;;  %s4417_s29 = smul.u32 3, %s5688_s6 }
  0x1a   : > { %3849 = vmatprep.subr.mxu1 %v709_v11  ;;  %3782 = vmatpush3.msra.mxu0 %v3291_v10  ;;  %v4702_v32 = vld [vmem:[%s4693_s25] sm:$0xff]  ;;  %v3311_v36 = vld [vmem:[%s5672_s3 + $0x170] sm:$0xff]  ;;  %v4725_v38 = vld [vmem:[%s4693_s25 + $0x18] sm:$0xff] }
  0x1b   : > { %3850 = vmatpush3.msra.mxu1 %v709_v11  ;;  %3783 = vmatprep.subr.mxu0 %v3290_v12  ;;  %v4729_v39 = vld [vmem:[%s4693_s25 + $0x20] sm:$0xff]  ;;  %v3310_v40 = vld [vmem:[%s5672_s3 + $0x168] sm:$0xff]  ;;  %v4745_v43 = vld [vmem:[%s4693_s25 + $0x30] sm:$0xff]  ;;  %s374_s6 = sadd.s32 %s4417_s29, %s4651_s28 }
  0x1c   : > { %3851 = vmatprep.subr.mxu1 %v708_v13  ;;  %3784 = vmatpush3.msra.mxu0 %v3290_v12  ;;  %v4738_v41 = vld [vmem:[%s4693_s25 + $0x28] sm:$0xff]  ;;  %v3309_v42 = vld [vmem:[%s5672_s3 + $0x160] sm:$0xff]  ;;  %v3327_v44 = vld [vmem:[%s5672_s3 + $0x270] sm:$0xff]  ;;  %s3274_s12 = sshll.u32 %s374_s6, 3  ;;  %s380_s6 = sadd.s32 9, %s4608_s16 }
  0x1d   : > { %3852 = vmatpush3.msra.mxu1 %v708_v13  ;;  %3785 = vmatprep.subr.mxu0 %v3289_v14  ;;  %v3308_v45 = vld [vmem:[%s5672_s3 + $0x158] sm:$0xff]  ;;  %v3326_v47 = vld [vmem:[%s5672_s3 + $0x268] sm:$0xff]  ;;  %v4764_v48 = vld [vmem:[%s4693_s25 + $0x40] sm:$0xff]  ;;  %s376_s7 = scalar_lea.vmem %s5670_s1, %s3274_s12  ;;  %p383_p8 = scmp.lt.s32.totalorder %s380_s6, 17 }
  0x1e   : > { %3853 = vmatprep.subr.mxu1 %v707_v15  ;;  %3786 = vmatpush3.msra.mxu0 %v3289_v14  ;;  %v4757_v46 = vld [vmem:[%s4693_s25 + $0x38] sm:$0xff]  ;;  %v3307_v49 = vld [vmem:[%s5672_s3 + $0x150] sm:$0xff]  ;;  %v4772_v50 = vld [vmem:[%s4693_s25 + $0x48] sm:$0xff]  ;;  %s5692_s16 = smov (!%p395_p9, %s4608_s16), 15 }
  0x1f   : > { %3854 = vmatpush3.msra.mxu1 %v707_v15  ;;  %3787 = vmatprep.subr.mxu0 %v3288_v16  ;;  %v3325_v51 = vld [vmem:[%s5672_s3 + $0x260] sm:$0xff]  ;;  %v3306_v52 = vld [vmem:[%s5672_s3 + $0x148] sm:$0xff]  ;;  %v4784_v53 = vld [vmem:[%s4693_s25 + $0x50] sm:$0xff]  ;;  %s5690_s6 = smov (!%p383_p8, %s380_s6), 17 }
  0x20   : > { %3855 = vmatprep.subr.mxu1 %v706_v17  ;;  %3788 = vmatpush3.msra.mxu0 %v3288_v16  ;;  %v4788_v54 = vld [vmem:[%s4693_s25 + $0x58] sm:$0xff]  ;;  %v3305_v56 = vld [vmem:[%s5672_s3 + $0x140] sm:$0xff]  ;;  %v3323_v58 = vld [vmem:[%s5672_s3 + $0x250] sm:$0xff]  ;;  %s4418_s27 = smul.u32 3, %s5690_s6 }
  0x21   : > { %3856 = vmatpush3.msra.mxu1 %v706_v17  ;;  %3789 = vmatprep.subr.mxu0 %v3287_v18  ;;  %v3324_v55 = vld [vmem:[%s5672_s3 + $0x258] sm:$0xff]  ;;  %v4801_v57 = vld [vmem:[%s4693_s25 + $0x60] sm:$0xff]  ;;  %v4807_v59 = vld [vmem:[%s4693_s25 + $0x68] sm:$0xff] }
  0x22   : > { %3857 = vmatprep.subr.mxu1 %v705_v19  ;;  %3790 = vmatpush3.msra.mxu0 %v3287_v18  ;;  %v3304_v60 = vld [vmem:[%s5672_s3 + $0x138] sm:$0xff]  ;;  %v3322_v61 = vld [vmem:[%s5672_s3 + $0x248] sm:$0xff]  ;;  %v4819_v62 = vld [vmem:[%s4693_s25 + $0x70] sm:$0xff] }
  0x23   : > { %3858 = vmatpush3.msra.mxu1 %v705_v19  ;;  %3791 = vmatprep.subr.mxu0 %v3286_v20  ;;  %v3303_v63 = vld [vmem:[%s5672_s3 + $0x130] sm:$0xff]  ;;  %v4826_v0 = vld [vmem:[%s4693_s25 + $0x78] sm:$0xff]  ;;  %v3321_v1 = vld [vmem:[%s5672_s3 + $0x240] sm:$0xff] }
  0x24   : > { %3859 = vmatprep.subr.mxu1 %v704_v21  ;;  %3792 = vmatpush3.msra.mxu0 %v3286_v20  ;;  %v3302_v2 = vld [vmem:[%s5672_s3 + $0x128] sm:$0xff]  ;;  %v4838_v3 = vld [vmem:[%s4693_s25 + $0x80] sm:$0xff]  ;;  %v3320_v5 = vld [vmem:[%s5672_s3 + $0x238] sm:$0xff] }
  0x25   : > { %3860 = vmatpush3.msra.mxu1 %v704_v21  ;;  %3793 = vmatprep.subr.mxu0 %v3285_v22  ;;  %v4842_v4 = vld [vmem:[%s4693_s25 + $0x88] sm:$0xff]  ;;  %v3301_v6 = vld [vmem:[%s5672_s3 + $0x120] sm:$0xff]  ;;  %v3319_v7 = vld [vmem:[%s5672_s3 + $0x230] sm:$0xff] }
  0x26   : > { %3861 = vmatprep.subr.mxu1 %v703_v23  ;;  %3794 = vmatpush3.msra.mxu0 %v3285_v22  ;;  %v4858_v8 = vld [vmem:[%s4693_s25 + $0x90] sm:$0xff]  ;;  %v4861_v9 = vld [vmem:[%s4693_s25 + $0x98] sm:$0xff]  ;;  %v3318_v11 = vld [vmem:[%s5672_s3 + $0x228] sm:$0xff] }
  0x27   : > { %3862 = vmatpush3.msra.mxu1 %v703_v23  ;;  %3795 = vmatprep.subr.mxu0 %v3284_v24  ;;  %v3300_v10 = vld [vmem:[%s5672_s3 + $0x118] sm:$0xff]  ;;  %v3317_v12 = vld [vmem:[%s5672_s3 + $0x220] sm:$0xff]  ;;  %v3299_v14 = vld [vmem:[%s5672_s3 + $0x110] sm:$0xff] }
  0x28   : > { %3863 = vmatprep.subr.mxu1 %v702_v25  ;;  %3796 = vmatpush3.msra.mxu0 %v3284_v24  ;;  %v4877_v13 = vld [vmem:[%s4693_s25 + $0xa0] sm:$0xff]  ;;  %v4883_v15 = vld [vmem:[%s4693_s25 + $0xa8] sm:$0xff]  ;;  %v3316_v16 = vld [vmem:[%s5672_s3 + $0x218] sm:$0xff] }
  0x29   : > { %3864 = vmatpush3.msra.mxu1 %v702_v25  ;;  %3797 = vmatprep.subr.mxu0 %v3283_v26  ;;  %v3298_v17 = vld [vmem:[%s5672_s3 + $0x108] sm:$0xff]  ;;  %v4895_v18 = vld [vmem:[%s4693_s25 + $0xb0] sm:$0xff]  ;;  %v4903_v20 = vld [vmem:[%s4693_s25 + $0xb8] sm:$0xff] }
  0x2a   : > { %3865 = vmatprep.subr.mxu1 %v701_v27  ;;  %3798 = vmatpush3.msra.mxu0 %v3283_v26  ;;  %v3315_v19 = vld [vmem:[%s5672_s3 + $0x210] sm:$0xff]  ;;  %v3314_v21 = vld [vmem:[%s5672_s3 + $0x208] sm:$0xff]  ;;  %v3297_v22 = vld [vmem:[%s5672_s3 + $0x100] sm:$0xff] }
  0x2b   : > { %3866 = vmatpush3.msra.mxu1 %v701_v27  ;;  %3799 = vmatprep.subr.mxu0 %v3282_v28  ;;  %v3313_v23 = vld [vmem:[%s5672_s3 + $0x200] sm:$0xff]  ;;  %v3344_v24 = vld [vmem:[%s5672_s3 + $0x1f8] sm:$0xff]  ;;  %v3343_v25 = vld [vmem:[%s5672_s3 + $0x1f0] sm:$0xff] }
  0x2c   : > { %3867 = vmatprep.subr.mxu1 %v700_v29  ;;  %3800 = vmatpush3.msra.mxu0 %v3282_v28  ;;  %v3360_v26 = vld [vmem:[%s5672_s3 + $0x2f8] sm:$0xff]  ;;  %v3342_v27 = vld [vmem:[%s5672_s3 + $0x1e8] sm:$0xff]  ;;  %v3341_v28 = vld [vmem:[%s5672_s3 + $0x1e0] sm:$0xff] }
  0x2d   : > { %3868 = vmatpush3.msra.mxu1 %v700_v29  ;;  %3801 = vmatprep.subr.mxu0 %v3281_v30  ;;  %v3359_v29 = vld [vmem:[%s5672_s3 + $0x2f0] sm:$0xff] }
  0x2e   : > { %3869 = vmatprep.subr.mxu1 %v699_v31  ;;  %3802 = vmatpush3.msra.mxu0 %v3281_v30  ;;  %v3340_v30 = vld [vmem:[%s5672_s3 + $0x1d8] sm:$0xff] }
  0x2f   : > { %3803 = vmatprep.mubr.f32.mxu0 %v4702_v32  ;;  %3870 = vmatpush3.msra.mxu1 %v699_v31  ;;  %v3358_v31 = vld [vmem:[%s5672_s3 + $0x2e8] sm:$0xff] }
  0x30   : > { %3871 = vmatprep.mubr.f32.mxu1 %v4702_v32  ;;  %3804 = vmatmul.mubr.f32.vlgmr.msra.gmra.mxu0 %v4705_v33 }
  0x31   : > { %3872 = vmatmul.mubr.f32.vlgmr.msra.gmra.mxu1 %v4705_v33  ;;  %3907 = vmatprep.subr.mxu0 %v3312_v34 }
  0x32   : > { %3806 = vmatprep.mubr.f32.mxu0 %v4712_v35  ;;  %3908 = vmatpush3.msra.mxu0 %v3312_v34  ;;  %v3338_v34 = vld [vmem:[%s5672_s3 + $0x1c8] sm:$0xff] }
  0x33   : > { %3874 = vmatprep.mubr.f32.mxu1 %v4712_v35  ;;  %3909 = vmatprep.subr.mxu0 %v3311_v36 }
  0x34   : > { %3975 = vmatprep.subr.mxu1 %v3328_v37  ;;  %3807 = vmatmul.mubr.f32.gmra.mxu0 %v4725_v38 }
  0x35   : > { %3875 = vmatmul.mubr.f32.gmra.mxu1 %v4725_v38  ;;  %3910 = vmatpush3.msra.mxu0 %v3311_v36  ;;  %v3337_v36 = vld [vmem:[%s5672_s3 + $0x1c0] sm:$0xff] }
  0x36   : > { %3809 = vmatprep.mubr.f32.mxu0 %v4729_v39  ;;  %3911 = vmatprep.subr.mxu0 %v3310_v40 }
  0x37   : > { %3877 = vmatprep.mubr.f32.mxu1 %v4729_v39  ;;  %3912 = vmatpush3.msra.mxu0 %v3310_v40  ;;  %v3336_v40 = vld [vmem:[%s5672_s3 + $0x1b8] sm:$0xff] }
  0x38   : > { %3976 = vmatpush3.msra.mxu1 %v3328_v37  ;;  %3810 = vmatmul.mubr.f32.gmra.mxu0 %v4738_v41  ;;  %v3355_v37 = vld [vmem:[%s5672_s3 + $0x2d0] sm:$0xff] }
  0x39   : > { %3878 = vmatmul.mubr.f32.gmra.mxu1 %v4738_v41  ;;  %3913 = vmatprep.subr.mxu0 %v3309_v42 }
  0x3a   : > { %3812 = vmatprep.mubr.f32.mxu0 %v4745_v43  ;;  %3914 = vmatpush3.msra.mxu0 %v3309_v42  ;;  %v3354_v42 = vld [vmem:[%s5672_s3 + $0x2c8] sm:$0xff] }
  0x3b   : > { %3880 = vmatprep.mubr.f32.mxu1 %v4745_v43  ;;  %3977 = vmatprep.subr.mxu1 %v3327_v44 }
  0x3c   : > { %3915 = vmatprep.subr.mxu0 %v3308_v45  ;;  %3813 = vmatmul.mubr.f32.gmra.mxu0 %v4757_v46 }
  0x3d   : > { %3881 = vmatmul.mubr.f32.gmra.mxu1 %v4757_v46  ;;  %3916 = vmatpush3.msra.mxu0 %v3308_v45  ;;  %v3353_v45 = vld [vmem:[%s5672_s3 + $0x2c0] sm:$0xff] }
  0x3e   : > { %3978 = vmatpush3.msra.mxu1 %v3327_v44  ;;  %3815 = vmatprep.mubr.f32.mxu0 %v4764_v48  ;;  %v3335_v44 = vld [vmem:[%s5672_s3 + $0x1b0] sm:$0xff] }
  0x3f   : > { %3979 = vmatprep.subr.mxu1 %v3326_v47  ;;  %3883 = vmatprep.mubr.f32.mxu1 %v4764_v48 }
  0x40   : > { %3917 = vmatprep.subr.mxu0 %v3307_v49  ;;  %3980 = vmatpush3.msra.mxu1 %v3326_v47  ;;  %v3334_v47 = vld [vmem:[%s5672_s3 + $0x1a8] sm:$0xff] }
  0x41   : > { %3816 = vmatmul.mubr.f32.gmra.mxu0 %v4772_v50  ;;  %3884 = vmatmul.mubr.f32.gmra.mxu1 %v4772_v50 }
  0x42   : > { %3918 = vmatpush3.msra.mxu0 %v3307_v49  ;;  %3981 = vmatprep.subr.mxu1 %v3325_v51  ;;  %v3352_v49 = vld [vmem:[%s5672_s3 + $0x2b8] sm:$0xff] }
  0x43   : > { %3919 = vmatprep.subr.mxu0 %v3306_v52  ;;  %3982 = vmatpush3.msra.mxu1 %v3325_v51  ;;  %v3333_v51 = vld [vmem:[%s5672_s3 + $0x1a0] sm:$0xff] }
  0x44   : > { %3818 = vmatprep.mubr.f32.mxu0 %v4784_v53  ;;  %3886 = vmatprep.mubr.f32.mxu1 %v4784_v53 }
  0x45   : > { %3920 = vmatpush3.msra.mxu0 %v3306_v52  ;;  %3887 = vmatmul.mubr.f32.gmra.mxu1 %v4788_v54  ;;  %v3351_v52 = vld [vmem:[%s5672_s3 + $0x2b0] sm:$0xff] }
  0x46   : > { %3819 = vmatmul.mubr.f32.gmra.mxu0 %v4788_v54  ;;  %3983 = vmatprep.subr.mxu1 %v3324_v55 }
  0x47   : > { %3921 = vmatprep.subr.mxu0 %v3305_v56  ;;  %3984 = vmatpush3.msra.mxu1 %v3324_v55  ;;  %v3332_v55 = vld [vmem:[%s5672_s3 + $0x198] sm:$0xff] }
  0x48   : > { %3922 = vmatpush3.msra.mxu0 %v3305_v56  ;;  %3821 = vmatprep.mubr.f32.mxu0 %v4801_v57  ;;  %v3350_v56 = vld [vmem:[%s5672_s3 + $0x2a8] sm:$0xff] }
  0x49   : > { %3889 = vmatprep.mubr.f32.mxu1 %v4801_v57  ;;  %3985 = vmatprep.subr.mxu1 %v3323_v58 }
  0x4a   : > { %3822 = vmatmul.mubr.f32.gmra.mxu0 %v4807_v59  ;;  %3890 = vmatmul.mubr.f32.gmra.mxu1 %v4807_v59 }
  0x4b   : > { %3923 = vmatprep.subr.mxu0 %v3304_v60  ;;  %3986 = vmatpush3.msra.mxu1 %v3323_v58  ;;  %v3349_v58 = vld [vmem:[%s5672_s3 + $0x2a0] sm:$0xff] }
  0x4c   : > { %3924 = vmatpush3.msra.mxu0 %v3304_v60  ;;  %3987 = vmatprep.subr.mxu1 %v3322_v61  ;;  %v3331_v60 = vld [vmem:[%s5672_s3 + $0x190] sm:$0xff] }
  0x4d   : > { %3824 = vmatprep.mubr.f32.mxu0 %v4819_v62  ;;  %3892 = vmatprep.mubr.f32.mxu1 %v4819_v62 }
  0x4e   : > { %3925 = vmatprep.subr.mxu0 %v3303_v63  ;;  %3988 = vmatpush3.msra.mxu1 %v3322_v61  ;;  %v5041_v61 = vld [vmem:[%s376_s7] sm:$0xff] }
  0x4f   : > { %3825 = vmatmul.mubr.f32.gmra.mxu0 %v4826_v0  ;;  %3893 = vmatmul.mubr.f32.gmra.mxu1 %v4826_v0 }
  0x50   : > { %3926 = vmatpush3.msra.mxu0 %v3303_v63  ;;  %3989 = vmatprep.subr.mxu1 %v3321_v1  ;;  %v3348_v63 = vld [vmem:[%s5672_s3 + $0x298] sm:$0xff] }
  0x51   : > { %3927 = vmatprep.subr.mxu0 %v3302_v2  ;;  %3990 = vmatpush3.msra.mxu1 %v3321_v1  ;;  %v3330_v1 = vld [vmem:[%s5672_s3 + $0x188] sm:$0xff] }
  0x52   : > { %3827 = vmatprep.mubr.f32.mxu0 %v4838_v3  ;;  %3895 = vmatprep.mubr.f32.mxu1 %v4838_v3 }
  0x53   : > { %3928 = vmatpush3.msra.mxu0 %v3302_v2  ;;  %3896 = vmatmul.mubr.f32.gmra.mxu1 %v4842_v4  ;;  %v3347_v2 = vld [vmem:[%s5672_s3 + $0x290] sm:$0xff] }
  0x54   : > { %3828 = vmatmul.mubr.f32.gmra.mxu0 %v4842_v4  ;;  %3991 = vmatprep.subr.mxu1 %v3320_v5 }
  0x55   : > { %3929 = vmatprep.subr.mxu0 %v3301_v6  ;;  %3992 = vmatpush3.msra.mxu1 %v3320_v5  ;;  %v5055_v5 = vld [vmem:[%s376_s7 + $0x8] sm:$0xff] }
  0x56   : > { %3930 = vmatpush3.msra.mxu0 %v3301_v6  ;;  %3993 = vmatprep.subr.mxu1 %v3319_v7  ;;  %v5058_v6 = vld [vmem:[%s376_s7 + $0x10] sm:$0xff]  ;;  %s387_s7 = sadd.s32 %s4418_s27, %s4651_s28  ;;  %s4419_s27 = smul.u32 3, %s5692_s16 }
  0x57   : > { %3830 = vmatprep.mubr.f32.mxu0 %v4858_v8  ;;  %3898 = vmatprep.mubr.f32.mxu1 %v4858_v8  ;;  %s3276_s9 = sshll.u32 %s387_s7, 3  ;;  %s3279_s28 = sshll.u32 %s5686_s19, 1 }
  0x58   : > { %3994 = vmatpush3.msra.mxu1 %v3319_v7  ;;  %3831 = vmatmul.mubr.f32.gmra.mxu0 %v4861_v9  ;;  %v3346_v7 = vld [vmem:[%s5672_s3 + $0x288] sm:$0xff]  ;;  %s5313_s11 = scalar_lea.vmem %s5671_s2, %s3276_s9  ;;  %s408_s8 = sadd.s32 %s3279_s28, %s5694_s18 }
  0x59   : > { %3899 = vmatmul.mubr.f32.gmra.mxu1 %v4861_v9  ;;  %3931 = vmatprep.subr.mxu0 %v3300_v10  ;;  %s3280_s6 = sshll.u32 %s408_s8, 1 }
  0x5a   : > { %3995 = vmatprep.subr.mxu1 %v3318_v11  ;;  %3932 = vmatpush3.msra.mxu0 %v3300_v10  ;;  %v3329_v10 = vld [vmem:[%s5672_s3 + $0x180] sm:$0xff]  ;;  %s410_s12 = scalar_lea.vmem %s5674_s5, %s3280_s6 }
  0x5b   : > { %3996 = vmatpush3.msra.mxu1 %v3318_v11  ;;  %3833 = vmatprep.mubr.f32.mxu0 %v4877_v13  ;;  %v3345_v11 = vld [vmem:[%s5672_s3 + $0x280] sm:$0xff] }
  0x5c   : > { %3997 = vmatprep.subr.mxu1 %v3317_v12  ;;  %3901 = vmatprep.mubr.f32.mxu1 %v4877_v13 }
  0x5d   : > { %3933 = vmatprep.subr.mxu0 %v3299_v14  ;;  %3998 = vmatpush3.msra.mxu1 %v3317_v12  ;;  %v3376_v12 = vld [vmem:[%s5672_s3 + $0x3f8] sm:$0xff] }
  0x5e   : > { %3834 = vmatmul.mubr.f32.gmra.mxu0 %v4883_v15  ;;  %3902 = vmatmul.mubr.f32.gmra.mxu1 %v4883_v15 }
  0x5f   : > { %3934 = vmatpush3.msra.mxu0 %v3299_v14  ;;  %3999 = vmatprep.subr.mxu1 %v3316_v16  ;;  %v3375_v14 = vld [vmem:[%s5672_s3 + $0x3f0] sm:$0xff] }
  0x60   : > { %3935 = vmatprep.subr.mxu0 %v3298_v17  ;;  %4000 = vmatpush3.msra.mxu1 %v3316_v16  ;;  %v3392_v16 = vld [vmem:[%s5672_s3 + $0x378] sm:$0xff] }
  0x61   : > { %3836 = vmatprep.mubr.f32.mxu0 %v4895_v18  ;;  %4001 = vmatprep.subr.mxu1 %v3315_v19 }
  0x62   : > { %3904 = vmatprep.mubr.f32.mxu1 %v4895_v18  ;;  %3936 = vmatpush3.msra.mxu0 %v3298_v17  ;;  %v3372_v17 = vld [vmem:[%s5672_s3 + $0x3d8] sm:$0xff] }
  0x63   : > { %4002 = vmatpush3.msra.mxu1 %v3315_v19  ;;  %3837 = vmatmul.mubr.f32.gmra.mxu0 %v4903_v20  ;;  %v3390_v19 = vld [vmem:[%s5672_s3 + $0x368] sm:$0xff] }
  0x64   : > { %3905 = vmatmul.mubr.f32.gmra.mxu1 %v4903_v20  ;;  %4003 = vmatprep.subr.mxu1 %v3314_v21 }
  0x65   : > { %3937 = vmatprep.subr.mxu0 %v3297_v22  ;;  %4004 = vmatpush3.msra.mxu1 %v3314_v21  ;;  %v3371_v21 = vld [vmem:[%s5672_s3 + $0x3d0] sm:$0xff] }
  0x66   : > { %3938 = vmatpush3.msra.mxu0 %v3297_v22  ;;  %4005 = vmatprep.subr.mxu1 %v3313_v23  ;;  %v3389_v22 = vld [vmem:[%s5672_s3 + $0x360] sm:$0xff] }
  0x67   : > { %3939 = vmatprep.mubr.f32.mxu0 %v4702_v32  ;;  %4006 = vmatpush3.msra.mxu1 %v3313_v23  ;;  %v3339_v32 = vld [vmem:[%s5672_s3 + $0x1d0] sm:$0xff]  ;;  %v3370_v23 = vld [vmem:[%s5672_s3 + $0x3c8] sm:$0xff] }
  0x68   : > { %4007 = vmatprep.mubr.f32.mxu1 %v4725_v38  ;;  %3940 = vmatmul.mubr.f32.vlgmr.msra.gmra.mxu0 %v4705_v33  ;;  %v3357_v33 = vld [vmem:[%s5672_s3 + $0x2e0] sm:$0xff] }
  0x69   : > { %4008 = vmatmul.mubr.f32.vlgmr.msra.gmra.mxu1 %v4729_v39  ;;  %4043 = vmatprep.subr.mxu0 %v3344_v24 }
  0x6a   : > { %3942 = vmatprep.mubr.f32.mxu0 %v4712_v35  ;;  %4044 = vmatpush3.msra.mxu0 %v3344_v24  ;;  %v3356_v35 = vld [vmem:[%s5672_s3 + $0x2d8] sm:$0xff] }
  0x6b   : > { %4010 = vmatprep.mubr.f32.mxu1 %v4738_v41  ;;  %4045 = vmatprep.subr.mxu0 %v3343_v25  ;;  %v3388_v24 = vld [vmem:[%s5672_s3 + $0x358] sm:$0xff] }
  0x6c   : > { %4111 = vmatprep.subr.mxu1 %v3360_v26  ;;  %3943 = vmatmul.mubr.f32.gmra.mxu0 %v4725_v38 }
  0x6d   : > { %4011 = vmatmul.mubr.f32.gmra.mxu1 %v4745_v43  ;;  %4046 = vmatpush3.msra.mxu0 %v3343_v25  ;;  %v3369_v25 = vld [vmem:[%s5672_s3 + $0x3c0] sm:$0xff] }
  0x6e   : > { %3945 = vmatprep.mubr.f32.mxu0 %v4729_v39  ;;  %4047 = vmatprep.subr.mxu0 %v3342_v27 }
  0x6f   : > { %4013 = vmatprep.mubr.f32.mxu1 %v4757_v46  ;;  %4048 = vmatpush3.msra.mxu0 %v3342_v27  ;;  %v3368_v27 = vld [vmem:[%s5672_s3 + $0x3b8] sm:$0xff] }
  0x70   : > { %4112 = vmatpush3.msra.mxu1 %v3360_v26  ;;  %3946 = vmatmul.mubr.f32.gmra.mxu0 %v4738_v41  ;;  %v3387_v26 = vld [vmem:[%s5672_s3 + $0x350] sm:$0xff] }
  0x71   : > { %4014 = vmatmul.mubr.f32.gmra.mxu1 %v4764_v48  ;;  %4049 = vmatprep.subr.mxu0 %v3341_v28 }
  0x72   : > { %3948 = vmatprep.mubr.f32.mxu0 %v4745_v43  ;;  %4050 = vmatpush3.msra.mxu0 %v3341_v28  ;;  %v3386_v28 = vld [vmem:[%s5672_s3 + $0x348] sm:$0xff] }
  0x73   : > { %4016 = vmatprep.mubr.f32.mxu1 %v4772_v50  ;;  %4113 = vmatprep.subr.mxu1 %v3359_v29 }
  0x74   : > { %4051 = vmatprep.subr.mxu0 %v3340_v30  ;;  %3949 = vmatmul.mubr.f32.gmra.mxu0 %v4757_v46 }
  0x75   : > { %4017 = vmatmul.mubr.f32.gmra.mxu1 %v4784_v53  ;;  %4052 = vmatpush3.msra.mxu0 %v3340_v30  ;;  %v3385_v30 = vld [vmem:[%s5672_s3 + $0x340] sm:$0xff] }
  0x76   : > { %4114 = vmatpush3.msra.mxu1 %v3359_v29  ;;  %3951 = vmatprep.mubr.f32.mxu0 %v4764_v48  ;;  %v3367_v29 = vld [vmem:[%s5672_s3 + $0x3b0] sm:$0xff] }
  0x77   : > { %4115 = vmatprep.subr.mxu1 %v3358_v31  ;;  %4019 = vmatprep.mubr.f32.mxu1 %v4788_v54 }
  0x78   : > { %4053 = vmatprep.subr.mxu0 %v3339_v32  ;;  %4116 = vmatpush3.msra.mxu1 %v3358_v31  ;;  %v3366_v31 = vld [vmem:[%s5672_s3 + $0x3a8] sm:$0xff] }
  0x79   : > { %3952 = vmatmul.mubr.f32.gmra.mxu0 %v4772_v50  ;;  %4020 = vmatmul.mubr.f32.gmra.mxu1 %v4801_v57 }
  0x7a   : > { %4054 = vmatpush3.msra.mxu0 %v3339_v32  ;;  %4117 = vmatprep.subr.mxu1 %v3357_v33  ;;  %v3384_v32 = vld [vmem:[%s5672_s3 + $0x338] sm:$0xff] }
  0x7b   : > { %4055 = vmatprep.subr.mxu0 %v3338_v34  ;;  %4118 = vmatpush3.msra.mxu1 %v3357_v33  ;;  %v3365_v33 = vld [vmem:[%s5672_s3 + $0x3a0] sm:$0xff] }
  0x7c   : > { %3954 = vmatprep.mubr.f32.mxu0 %v4784_v53  ;;  %4022 = vmatprep.mubr.f32.mxu1 %v4807_v59 }
  0x7d   : > { %4056 = vmatpush3.msra.mxu0 %v3338_v34  ;;  %4023 = vmatmul.mubr.f32.gmra.mxu1 %v4819_v62  ;;  %v3383_v34 = vld [vmem:[%s5672_s3 + $0x330] sm:$0xff] }
  0x7e   : > { %3955 = vmatmul.mubr.f32.gmra.mxu0 %v4788_v54  ;;  %4119 = vmatprep.subr.mxu1 %v3356_v35 }
  0x7f   : > { %4057 = vmatprep.subr.mxu0 %v3337_v36  ;;  %4120 = vmatpush3.msra.mxu1 %v3356_v35  ;;  %v3364_v35 = vld [vmem:[%s5672_s3 + $0x398] sm:$0xff] }
  0x80   : > { %4058 = vmatpush3.msra.mxu0 %v3337_v36  ;;  %3957 = vmatprep.mubr.f32.mxu0 %v4801_v57  ;;  %v3382_v36 = vld [vmem:[%s5672_s3 + $0x328] sm:$0xff] }
  0x81   : > { %4025 = vmatprep.mubr.f32.mxu1 %v4826_v0  ;;  %4121 = vmatprep.subr.mxu1 %v3355_v37 }
  0x82   : > { %3958 = vmatmul.mubr.f32.gmra.mxu0 %v4807_v59  ;;  %4026 = vmatmul.mubr.f32.gmra.mxu1 %v4838_v3 }
  0x83   : > { %4059 = vmatprep.subr.mxu0 %v3336_v40  ;;  %4122 = vmatpush3.msra.mxu1 %v3355_v37  ;;  %v3381_v37 = vld [vmem:[%s5672_s3 + $0x320] sm:$0xff] }
  0x84   : > { %4060 = vmatpush3.msra.mxu0 %v3336_v40  ;;  %4123 = vmatprep.subr.mxu1 %v3354_v42  ;;  %v3363_v40 = vld [vmem:[%s5672_s3 + $0x390] sm:$0xff] }
  0x85   : > { %3960 = vmatprep.mubr.f32.mxu0 %v4819_v62  ;;  %4028 = vmatprep.mubr.f32.mxu1 %v4842_v4 }
  0x86   : > { %4061 = vmatprep.subr.mxu0 %v3335_v44  ;;  %4124 = vmatpush3.msra.mxu1 %v3354_v42  ;;  %v3380_v42 = vld [vmem:[%s5672_s3 + $0x318] sm:$0xff] }
  0x87   : > { %3961 = vmatmul.mubr.f32.gmra.mxu0 %v4826_v0  ;;  %4029 = vmatmul.mubr.f32.gmra.mxu1 %v4858_v8 }
  0x88   : > { %4062 = vmatpush3.msra.mxu0 %v3335_v44  ;;  %4125 = vmatprep.subr.mxu1 %v3353_v45  ;;  %v3362_v44 = vld [vmem:[%s5672_s3 + $0x388] sm:$0xff] }
  0x89   : > { %4063 = vmatprep.subr.mxu0 %v3334_v47  ;;  %4126 = vmatpush3.msra.mxu1 %v3353_v45  ;;  %v3379_v45 = vld [vmem:[%s5672_s3 + $0x310] sm:$0xff] }
  0x8a   : > { %3963 = vmatprep.mubr.f32.mxu0 %v4838_v3  ;;  %4031 = vmatprep.mubr.f32.mxu1 %v4861_v9 }
  0x8b   : > { %4064 = vmatpush3.msra.mxu0 %v3334_v47  ;;  %4032 = vmatmul.mubr.f32.gmra.mxu1 %v4877_v13  ;;  %v3378_v47 = vld [vmem:[%s5672_s3 + $0x308] sm:$0xff] }
  0x8c   : > { %3964 = vmatmul.mubr.f32.gmra.mxu0 %v4842_v4  ;;  %4127 = vmatprep.subr.mxu1 %v3352_v49 }
  0x8d   : > { %4065 = vmatprep.subr.mxu0 %v3333_v51  ;;  %4128 = vmatpush3.msra.mxu1 %v3352_v49  ;;  %v3361_v49 = vld [vmem:[%s5672_s3 + $0x380] sm:$0xff] }
  0x8e   : > { %4066 = vmatpush3.msra.mxu0 %v3333_v51  ;;  %4129 = vmatprep.subr.mxu1 %v3351_v52  ;;  %v3377_v51 = vld [vmem:[%s5672_s3 + $0x300] sm:$0xff] }
  0x8f   : > { %3966 = vmatprep.mubr.f32.mxu0 %v4858_v8  ;;  %4034 = vmatprep.mubr.f32.mxu1 %v4883_v15 }
  0x90   : > { %4130 = vmatpush3.msra.mxu1 %v3351_v52  ;;  %3967 = vmatmul.mubr.f32.gmra.mxu0 %v4861_v9  ;;  %v3408_v52 = vld [vmem:[%s5672_s3 + $0x478] sm:$0xff] }
  0x91   : > { %4035 = vmatmul.mubr.f32.gmra.mxu1 %v4895_v18  ;;  %4067 = vmatprep.subr.mxu0 %v3332_v55 }
  0x92   : > { %4131 = vmatprep.subr.mxu1 %v3350_v56  ;;  %4068 = vmatpush3.msra.mxu0 %v3332_v55  ;;  %v3407_v55 = vld [vmem:[%s5672_s3 + $0x470] sm:$0xff] }
  0x93   : > { %4132 = vmatpush3.msra.mxu1 %v3350_v56  ;;  %3969 = vmatprep.mubr.f32.mxu0 %v4877_v13  ;;  %v3406_v56 = vld [vmem:[%s5672_s3 + $0x468] sm:$0xff] }
  0x94   : > { %4133 = vmatprep.subr.mxu1 %v3349_v58  ;;  %4037 = vmatprep.mubr.f32.mxu1 %v4903_v20 }
  0x95   : > { %4069 = vmatprep.subr.mxu0 %v3331_v60  ;;  %4134 = vmatpush3.msra.mxu1 %v3349_v58 }
  0x96   : > { %3970 = vmatmul.mubr.f32.gmra.mxu0 %v4883_v15  ;;  %4038 = vmatmul.mubr.f32.gmra.mxu1 %v5041_v61 }
  0x97   : > { %4070 = vmatpush3.msra.mxu0 %v3331_v60  ;;  %4135 = vmatprep.subr.mxu1 %v3348_v63 }
  0x98   : > { %4071 = vmatprep.subr.mxu0 %v3330_v1  ;;  %4136 = vmatpush3.msra.mxu1 %v3348_v63 }
  0x99   : > { %3972 = vmatprep.mubr.f32.mxu0 %v4895_v18  ;;  %4137 = vmatprep.subr.mxu1 %v3347_v2 }
  0x9a   : > { %4040 = vmatprep.mubr.f32.mxu1 %v5055_v5  ;;  %4072 = vmatpush3.msra.mxu0 %v3330_v1  ;;  %v3397_v1 = vld [vmem:[%s5672_s3 + $0x420] sm:$0xff] }
  0x9b   : > { %4138 = vmatpush3.msra.mxu1 %v3347_v2  ;;  %3973 = vmatmul.mubr.f32.gmra.mxu0 %v4903_v20 }
  0x9c   : > { %4041 = vmatmul.mubr.f32.gmra.mxu1 %v5058_v6  ;;  %4139 = vmatprep.subr.mxu1 %v3346_v7 }
  0x9d   : > { %4073 = vmatprep.subr.mxu0 %v3329_v10  ;;  %4140 = vmatpush3.msra.mxu1 %v3346_v7 }
  0x9e   : > { %4074 = vmatpush3.msra.mxu0 %v3329_v10  ;;  %4141 = vmatprep.subr.mxu1 %v3345_v11 }
  0x9f   : > { %4075 = vmatprep.mubr.f32.mxu0 %v4725_v38  ;;  %4142 = vmatpush3.msra.mxu1 %v3345_v11 }
  0xa0   : > { %4143 = vmatprep.mubr.f32.mxu1 %v4725_v38  ;;  %4076 = vmatmul.mubr.f32.vlgmr.msra.gmra.mxu0 %v4729_v39  ;;  %v3374_v38 = vld [vmem:[%s5672_s3 + $0x3e8] sm:$0xff] }
  0xa1   : > { %4144 = vmatmul.mubr.f32.vlgmr.msra.gmra.mxu1 %v4729_v39  ;;  %4179 = vmatprep.subr.mxu0 %v3376_v12  ;;  %v3373_v39 = vld [vmem:[%s5672_s3 + $0x3e0] sm:$0xff] }
  0xa2   : > { %4078 = vmatprep.mubr.f32.mxu0 %v4738_v41  ;;  %4180 = vmatpush3.msra.mxu0 %v3376_v12 }
  0xa3   : > { %4146 = vmatprep.mubr.f32.mxu1 %v4738_v41  ;;  %4181 = vmatprep.subr.mxu0 %v3375_v14  ;;  %v3391_v41 = vld [vmem:[%s5672_s3 + $0x370] sm:$0xff] }
  0xa4   : > { %4247 = vmatprep.subr.mxu1 %v3392_v16  ;;  %4079 = vmatmul.mubr.f32.gmra.mxu0 %v4745_v43 }
  0xa5   : > { %4147 = vmatmul.mubr.f32.gmra.mxu1 %v4745_v43  ;;  %4182 = vmatpush3.msra.mxu0 %v3375_v14 }
  0xa6   : > { %4081 = vmatprep.mubr.f32.mxu0 %v4757_v46  ;;  %4183 = vmatprep.subr.mxu0 %v3374_v38 }
  0xa7   : > { %4149 = vmatprep.mubr.f32.mxu1 %v4757_v46  ;;  %4184 = vmatpush3.msra.mxu0 %v3374_v38  ;;  %v5323_v38 = vld [vmem:[%s5313_s11] sm:$0xff] }
  0xa8   : > { %4248 = vmatpush3.msra.mxu1 %v3392_v16  ;;  %4082 = vmatmul.mubr.f32.gmra.mxu0 %v4764_v48  ;;  %v3395_v16 = vld [vmem:[%s5672_s3 + $0x410] sm:$0xff] }
  0xa9   : > { %4150 = vmatmul.mubr.f32.gmra.mxu1 %v4764_v48  ;;  %4185 = vmatprep.subr.mxu0 %v3373_v39 }
  0xaa   : > { %4084 = vmatprep.mubr.f32.mxu0 %v4772_v50  ;;  %4186 = vmatpush3.msra.mxu0 %v3373_v39 }
  0xab   : > { %4152 = vmatprep.mubr.f32.mxu1 %v4772_v50  ;;  %4249 = vmatprep.subr.mxu1 %v3391_v41 }
  0xac   : > { %4187 = vmatprep.subr.mxu0 %v3372_v17  ;;  %4085 = vmatmul.mubr.f32.gmra.mxu0 %v4784_v53 }
  0xad   : > { %4153 = vmatmul.mubr.f32.gmra.mxu1 %v4784_v53  ;;  %4188 = vmatpush3.msra.mxu0 %v3372_v17  ;;  %v3394_v17 = vld [vmem:[%s5672_s3 + $0x408] sm:$0xff] }
  0xae   : > { %4250 = vmatpush3.msra.mxu1 %v3391_v41  ;;  %4087 = vmatprep.mubr.f32.mxu0 %v4788_v54 }
  0xaf   : > { %4251 = vmatprep.subr.mxu1 %v3390_v19  ;;  %4155 = vmatprep.mubr.f32.mxu1 %v4788_v54 }
  0xb0   : > { %4189 = vmatprep.subr.mxu0 %v3371_v21  ;;  %4252 = vmatpush3.msra.mxu1 %v3390_v19 }
  0xb1   : > { %4088 = vmatmul.mubr.f32.gmra.mxu0 %v4801_v57  ;;  %4156 = vmatmul.mubr.f32.gmra.mxu1 %v4801_v57 }
  0xb2   : > { %4190 = vmatpush3.msra.mxu0 %v3371_v21  ;;  %4253 = vmatprep.subr.mxu1 %v3389_v22 }
  0xb3   : > { %4191 = vmatprep.subr.mxu0 %v3370_v23  ;;  %4254 = vmatpush3.msra.mxu1 %v3389_v22  ;;  %v5333_v22 = vld [vmem:[%s5313_s11 + $0x8] sm:$0xff] }
  0xb4   : > { %4090 = vmatprep.mubr.f32.mxu0 %v4807_v59  ;;  %4158 = vmatprep.mubr.f32.mxu1 %v4807_v59 }
  0xb5   : > { %4192 = vmatpush3.msra.mxu0 %v3370_v23  ;;  %4159 = vmatmul.mubr.f32.gmra.mxu1 %v4819_v62 }
  0xb6   : > { %4091 = vmatmul.mubr.f32.gmra.mxu0 %v4819_v62  ;;  %4255 = vmatprep.subr.mxu1 %v3388_v24 }
  0xb7   : > { %4193 = vmatprep.subr.mxu0 %v3369_v25  ;;  %4256 = vmatpush3.msra.mxu1 %v3388_v24 }
  0xb8   : > { %4194 = vmatpush3.msra.mxu0 %v3369_v25  ;;  %4093 = vmatprep.mubr.f32.mxu0 %v4826_v0  ;;  %v5338_v25 = vld [vmem:[%s5313_s11 + $0x10] sm:$0xff] }
  0xb9   : > { %4161 = vmatprep.mubr.f32.mxu1 %v4826_v0  ;;  %4257 = vmatprep.subr.mxu1 %v3387_v26 }
  0xba   : > { %4094 = vmatmul.mubr.f32.gmra.mxu0 %v4838_v3  ;;  %4162 = vmatmul.mubr.f32.gmra.mxu1 %v4838_v3 }
  0xbb   : > { %4195 = vmatprep.subr.mxu0 %v3368_v27  ;;  %4258 = vmatpush3.msra.mxu1 %v3387_v26  ;;  %v3393_v26 = vld [vmem:[%s5672_s3 + $0x400] sm:$0xff] }
  0xbc   : > { %4196 = vmatpush3.msra.mxu0 %v3368_v27  ;;  %4259 = vmatprep.subr.mxu1 %v3386_v28 }
  0xbd   : > { %4096 = vmatprep.mubr.f32.mxu0 %v4842_v4  ;;  %4164 = vmatprep.mubr.f32.mxu1 %v4842_v4 }
  0xbe   : > { %4197 = vmatprep.subr.mxu0 %v3367_v29  ;;  %4260 = vmatpush3.msra.mxu1 %v3386_v28 }
  0xbf   : > { %4097 = vmatmul.mubr.f32.gmra.mxu0 %v4858_v8  ;;  %4165 = vmatmul.mubr.f32.gmra.mxu1 %v4858_v8 }
  0xc0   : > { %4198 = vmatpush3.msra.mxu0 %v3367_v29  ;;  %4261 = vmatprep.subr.mxu1 %v3385_v30 }
  0xc1   : > { %4199 = vmatprep.subr.mxu0 %v3366_v31  ;;  %4262 = vmatpush3.msra.mxu1 %v3385_v30 }
  0xc2   : > { %4099 = vmatprep.mubr.f32.mxu0 %v4861_v9  ;;  %4167 = vmatprep.mubr.f32.mxu1 %v4861_v9 }
  0xc3   : > { %4200 = vmatpush3.msra.mxu0 %v3366_v31  ;;  %4168 = vmatmul.mubr.f32.gmra.mxu1 %v4877_v13  ;;  %v4461_v31 = vld [vmem:[%s4693_s25 + $0x30] sm:$0xff] }
  0xc4   : > { %4100 = vmatmul.mubr.f32.gmra.mxu0 %v4877_v13  ;;  %4263 = vmatprep.subr.mxu1 %v3384_v32 }
  0xc5   : > { %4201 = vmatprep.subr.mxu0 %v3365_v33  ;;  %4264 = vmatpush3.msra.mxu1 %v3384_v32 }
  0xc6   : > { %4202 = vmatpush3.msra.mxu0 %v3365_v33  ;;  %4265 = vmatprep.subr.mxu1 %v3383_v34  ;;  %v4462_v33 = vld [vmem:[%s4693_s25 + $0x90] sm:$0xff] }
  0xc7   : > { %4102 = vmatprep.mubr.f32.mxu0 %v4883_v15  ;;  %4170 = vmatprep.mubr.f32.mxu1 %v4883_v15 }
  0xc8   : > { %4266 = vmatpush3.msra.mxu1 %v3383_v34  ;;  %4103 = vmatmul.mubr.f32.gmra.mxu0 %v4895_v18 }
  0xc9   : > { %4171 = vmatmul.mubr.f32.gmra.mxu1 %v4895_v18  ;;  %4203 = vmatprep.subr.mxu0 %v3364_v35 }
  0xca   : > { %4267 = vmatprep.subr.mxu1 %v3382_v36  ;;  %4204 = vmatpush3.msra.mxu0 %v3364_v35  ;;  %v4463_v35 = vld [vmem:[%s4693_s25 + $0x38] sm:$0xff] }
  0xcb   : > { %4268 = vmatpush3.msra.mxu1 %v3382_v36  ;;  %4105 = vmatprep.mubr.f32.mxu0 %v4903_v20  ;;  %v4464_v36 = vld [vmem:[%s4693_s25 + $0x98] sm:$0xff] }
  0xcc   : > { %4269 = vmatprep.subr.mxu1 %v3381_v37  ;;  %4173 = vmatprep.mubr.f32.mxu1 %v4903_v20 }
  0xcd   : > { %4205 = vmatprep.subr.mxu0 %v3363_v40  ;;  %4270 = vmatpush3.msra.mxu1 %v3381_v37 }
  0xce   : > { %4106 = vmatmul.mubr.f32.gmra.mxu0 %v5041_v61  ;;  %4174 = vmatmul.mubr.f32.gmra.mxu1 %v5041_v61 }
  0xcf   : > { %4206 = vmatpush3.msra.mxu0 %v3363_v40  ;;  %4271 = vmatprep.subr.mxu1 %v3380_v42  ;;  %v4465_v40 = vld [vmem:[%s4693_s25 + $0x40] sm:$0xff] }
  0xd0   : > { %4207 = vmatprep.subr.mxu0 %v3362_v44  ;;  %4272 = vmatpush3.msra.mxu1 %v3380_v42  ;;  %v4466_v42 = vld [vmem:[%s4693_s25 + $0xa0] sm:$0xff] }
  0xd1   : > { %4108 = vmatprep.mubr.f32.mxu0 %v5055_v5  ;;  %4273 = vmatprep.subr.mxu1 %v3379_v45 }
  0xd2   : > { %4176 = vmatprep.mubr.f32.mxu1 %v5055_v5  ;;  %4208 = vmatpush3.msra.mxu0 %v3362_v44 }
  0xd3   : > { %4274 = vmatpush3.msra.mxu1 %v3379_v45  ;;  %4109 = vmatmul.mubr.f32.gmra.mxu0 %v5058_v6 }
  0xd4   : > { %4177 = vmatmul.mubr.f32.gmra.mxu1 %v5058_v6  ;;  %4275 = vmatprep.subr.mxu1 %v3378_v47 }
  0xd5   : > { %4209 = vmatprep.subr.mxu0 %v3361_v49  ;;  %4276 = vmatpush3.msra.mxu1 %v3378_v47 }
  0xd6   : > { %4210 = vmatpush3.msra.mxu0 %v3361_v49  ;;  %4277 = vmatprep.subr.mxu1 %v3377_v51  ;;  %v4467_v49 = vld [vmem:[%s4693_s25 + $0x48] sm:$0xff] }
  0xd7   : > { %4211 = vmatprep.mubr.f32.mxu0 %v4745_v43  ;;  %4278 = vmatpush3.msra.mxu1 %v3377_v51  ;;  %v4468_v51 = vld [vmem:[%s4693_s25 + $0xa8] sm:$0xff] }
  0xd8   : > { %4279 = vmatprep.mubr.f32.mxu1 %v4745_v43  ;;  %4212 = vmatmul.mubr.f32.vlgmr.msra.gmra.mxu0 %v4757_v46  ;;  %v3405_v43 = vld [vmem:[%s5672_s3 + $0x460] sm:$0xff] }
  0xd9   : > { %4280 = vmatmul.mubr.f32.vlgmr.msra.gmra.mxu1 %v4757_v46  ;;  %4315 = vmatprep.subr.mxu0 %v3408_v52  ;;  %v3404_v46 = vld [vmem:[%s5672_s3 + $0x458] sm:$0xff] }
  0xda   : > { %4214 = vmatprep.mubr.f32.mxu0 %v4764_v48  ;;  %4316 = vmatpush3.msra.mxu0 %v3408_v52 }
  0xdb   : > { %4282 = vmatprep.mubr.f32.mxu1 %v4764_v48  ;;  %4317 = vmatprep.subr.mxu0 %v3407_v55  ;;  %v3403_v48 = vld [vmem:[%s5672_s3 + $0x450] sm:$0xff] }
  0xdc   : > { %4383 = vmatprep.subr.mxu1 %v3408_v52  ;;  %4215 = vmatmul.mubr.f32.gmra.mxu0 %v4772_v50 }
  0xdd   : > { %4283 = vmatmul.mubr.f32.gmra.mxu1 %v4772_v50  ;;  %4318 = vmatpush3.msra.mxu0 %v3407_v55  ;;  %v3402_v50 = vld [vmem:[%s5672_s3 + $0x448] sm:$0xff] }
  0xde   : > { %4217 = vmatprep.mubr.f32.mxu0 %v4784_v53  ;;  %4319 = vmatprep.subr.mxu0 %v3406_v56 }
  0xdf   : > { %4285 = vmatprep.mubr.f32.mxu1 %v4784_v53  ;;  %4320 = vmatpush3.msra.mxu0 %v3406_v56  ;;  %v3401_v53 = vld [vmem:[%s5672_s3 + $0x440] sm:$0xff] }
  0xe0   : > { %4399 = vmatpush3.msra.mxu1 %v3408_v52  ;;  %4218 = vmatmul.mubr.f32.gmra.mxu0 %v4788_v54  ;;  %v4469_v52 = vld [vmem:[%s4693_s25 + $0x50] sm:$0xff] }
  0xe1   : > { %4286 = vmatmul.mubr.f32.gmra.mxu1 %v4788_v54  ;;  %4321 = vmatprep.subr.mxu0 %v3405_v43  ;;  %v3400_v54 = vld [vmem:[%s5672_s3 + $0x438] sm:$0xff] }
  0xe2   : > { %4220 = vmatprep.mubr.f32.mxu0 %v4801_v57  ;;  %4322 = vmatpush3.msra.mxu0 %v3405_v43 }
  0xe3   : > { %4288 = vmatprep.mubr.f32.mxu1 %v4801_v57  ;;  %4384 = vmatprep.subr.mxu1 %v3407_v55 }
  0xe4   : > { %4323 = vmatprep.subr.mxu0 %v3404_v46  ;;  %4221 = vmatmul.mubr.f32.gmra.mxu0 %v4807_v59 }
  0xe5   : > { %4289 = vmatmul.mubr.f32.gmra.mxu1 %v4807_v59  ;;  %4324 = vmatpush3.msra.mxu0 %v3404_v46 }
  0xe6   : > { %4400 = vmatpush3.msra.mxu1 %v3407_v55  ;;  %4223 = vmatprep.mubr.f32.mxu0 %v4819_v62  ;;  %v4470_v55 = vld [vmem:[%s4693_s25 + $0xb0] sm:$0xff] }
  0xe7   : > { %4385 = vmatprep.subr.mxu1 %v3406_v56  ;;  %4291 = vmatprep.mubr.f32.mxu1 %v4819_v62 }
  0xe8   : > { %4401 = vmatpush3.msra.mxu1 %v3406_v56  ;;  %4325 = vmatprep.subr.mxu0 %v3403_v48 }
  0xe9   : > { %4224 = vmatmul.mubr.f32.gmra.mxu0 %v4826_v0  ;;  %4292 = vmatmul.mubr.f32.gmra.mxu1 %v4826_v0 }
  0xea   : > { %4326 = vmatpush3.msra.mxu0 %v3403_v48  ;;  %4386 = vmatprep.subr.mxu1 %v3405_v43 }
  0xeb   : > { %4327 = vmatprep.subr.mxu0 %v3402_v50  ;;  %4402 = vmatpush3.msra.mxu1 %v3405_v43 }
  0xec   : > { %4226 = vmatprep.mubr.f32.mxu0 %v4838_v3  ;;  %4294 = vmatprep.mubr.f32.mxu1 %v4838_v3  ;;  %v3399_v3 = vld [vmem:[%s5672_s3 + $0x430] sm:$0xff] }
  0xed   : > { %4328 = vmatpush3.msra.mxu0 %v3402_v50  ;;  %4295 = vmatmul.mubr.f32.gmra.mxu1 %v4842_v4 }
  0xee   : > { %4227 = vmatmul.mubr.f32.gmra.mxu0 %v4842_v4  ;;  %4387 = vmatprep.subr.mxu1 %v3404_v46 }
  0xef   : > { %4329 = vmatprep.subr.mxu0 %v3401_v53  ;;  %4403 = vmatpush3.msra.mxu1 %v3404_v46  ;;  %v4471_v46 = vld [vmem:[%s4693_s25 + $0x58] sm:$0xff] }
  0xf0   : > { %4330 = vmatpush3.msra.mxu0 %v3401_v53  ;;  %4229 = vmatprep.mubr.f32.mxu0 %v4858_v8  ;;  %v3805_v57 = vpop.f32.mrf.mxu0 }
  0xf1   : > { %4297 = vmatprep.mubr.f32.mxu1 %v4858_v8  ;;  %v5270_v59 = vpop.f32.mrf.mxu1  ;;  %4388 = vmatprep.subr.mxu1 %v3403_v48  ;;  %1095 = vst [vmem:[#allocation3 + $0x8] sm:$0xff] %v3805_v57 }
  0xf2   : > { %4230 = vmatmul.mubr.f32.gmra.mxu0 %v4861_v9  ;;  %4298 = vmatmul.mubr.f32.gmra.mxu1 %v4861_v9  ;;  %v580_v62 = vpop.f32.mrf.mxu0  ;;  %v3398_v9 = vld [vmem:[%s5672_s3 + $0x428] sm:$0xff] }
  0xf3   : > { %4331 = vmatprep.subr.mxu0 %v3400_v54  ;;  %v5276_v0 = vpop.f32.mrf.mxu1  ;;  %4404 = vmatpush3.msra.mxu1 %v3403_v48  ;;  %1094 = vst [vmem:[#allocation3] sm:$0xff] %v580_v62  ;;  %v4472_v48 = vld [vmem:[%s4693_s25 + $0xb8] sm:$0xff] }
  0xf4   : > { %4332 = vmatpush3.msra.mxu0 %v3400_v54  ;;  %4389 = vmatprep.subr.mxu1 %v3402_v50  ;;  %v3808_v4 = vpop.f32.mrf.mxu0 }
  0xf5   : > { %4232 = vmatprep.mubr.f32.mxu0 %v4877_v13  ;;  %v5282_v8 = vpop.f32.mrf.mxu1  ;;  %4300 = vmatprep.mubr.f32.mxu1 %v4877_v13  ;;  %1097 = vst [vmem:[#allocation3 + $0x18] sm:$0xff] %v3808_v4  ;;  %v4475_v4 = vld [vmem:[%s4693_s25 + $0x70] sm:$0xff] }
  0xf6   : > { %4405 = vmatpush3.msra.mxu1 %v3402_v50  ;;  %4333 = vmatprep.subr.mxu0 %v3399_v3  ;;  %v590_v58 = vpop.f32.mrf.mxu0 }
  0xf7   : > { %4233 = vmatmul.mubr.f32.gmra.mxu0 %v4883_v15  ;;  %v791_v60 = vpop.f32.mrf.mxu1  ;;  %4301 = vmatmul.mubr.f32.gmra.mxu1 %v4883_v15  ;;  %1096 = vst [vmem:[#allocation3 + $0x10] sm:$0xff] %v590_v58 }
  0xf8   : > { %4334 = vmatpush3.msra.mxu0 %v3399_v3  ;;  %4390 = vmatprep.subr.mxu1 %v3401_v53  ;;  %v3811_v13 = vpop.f32.mrf.mxu0  ;;  %v4476_v60 = vld [vmem:[%s4693_s25 + $0x78] sm:$0xff] }
  0xf9   : > { %4335 = vmatprep.subr.mxu0 %v3398_v9  ;;  %v3879_v63 = vpop.f32.mrf.mxu1  ;;  %4406 = vmatpush3.msra.mxu1 %v3401_v53  ;;  %1099 = vst [vmem:[#allocation3 + $0x28] sm:$0xff] %v3811_v13 }
  0xfa   : > { %4235 = vmatprep.mubr.f32.mxu0 %v4895_v18  ;;  %4303 = vmatprep.mubr.f32.mxu1 %v4895_v18  ;;  %v600_v2 = vpop.f32.mrf.mxu0  ;;  %v3396_v18 = vld [vmem:[%s5672_s3 + $0x418] sm:$0xff]  ;;  %v4477_v63 = vld [vmem:[%s4693_s25 + $0x80] sm:$0xff] }
  0xfb   : > { %4336 = vmatpush3.msra.mxu0 %v3398_v9  ;;  %v5297_v15 = vpop.f32.mrf.mxu1  ;;  %4304 = vmatmul.mubr.f32.gmra.mxu1 %v4903_v20  ;;  %1098 = vst [vmem:[#allocation3 + $0x20] sm:$0xff] %v600_v2  ;;  %v4478_v2 = vld [vmem:[%s4693_s25 + $0x88] sm:$0xff] }
  0xfc   : > { %4236 = vmatmul.mubr.f32.gmra.mxu0 %v4903_v20  ;;  %4391 = vmatprep.subr.mxu1 %v3400_v54  ;;  %v3814_v7 = vpop.f32.mrf.mxu0 }
  0xfd   : > { %4337 = vmatprep.subr.mxu0 %v3397_v1  ;;  %v5301_v10 = vpop.f32.mrf.mxu1  ;;  %4407 = vmatpush3.msra.mxu1 %v3400_v54  ;;  %1101 = vst [vmem:[#allocation3 + $0x38] sm:$0xff] %v3814_v7  ;;  %v4473_v54 = vld [vmem:[%s4693_s25 + $0x60] sm:$0xff] }
  0xfe   : > { %4338 = vmatpush3.msra.mxu0 %v3397_v1  ;;  %4392 = vmatprep.subr.mxu1 %v3399_v3  ;;  %v610_v11 = vpop.f32.mrf.mxu0 }
  0xff   : > { %4238 = vmatprep.mubr.f32.mxu0 %v5041_v61  ;;  %v5307_v12 = vpop.f32.mrf.mxu1  ;;  %4306 = vmatprep.mubr.f32.mxu1 %v5041_v61  ;;  %1100 = vst [vmem:[#allocation3 + $0x30] sm:$0xff] %v610_v11 }
 0x100   : > { %4408 = vmatpush3.msra.mxu1 %v3399_v3  ;;  %4239 = vmatmul.mubr.f32.gmra.mxu0 %v5055_v5  ;;  %v4474_v3 = vld [vmem:[%s4693_s25 + $0x68] sm:$0xff]  ;;  %s4420_s25 = smul.u32 48, %s5686_s19 }
 0x101   : > { %4307 = vmatmul.mubr.f32.gmra.mxu1 %v5055_v5  ;;  %v3817_v20 = vpop.f32.mrf.mxu0  ;;  %4393 = vmatprep.subr.mxu1 %v3398_v9  ;;  %v5317_v14 = vpop.f32.mrf.mxu1 }
 0x102   : > { %4339 = vmatprep.subr.mxu0 %v3396_v18  ;;  %1103 = vst [vmem:[#allocation3 + $0x48] sm:$0xff] %v3817_v20  ;;  %4409 = vmatpush3.msra.mxu1 %v3398_v9  ;;  %s5513_s29 = sadd.s32 %s4420_s25, %s4419_s27 }
 0x103   : > { %4340 = vmatpush3.msra.mxu0 %v3396_v18  ;;  %v620_v39 = vpop.f32.mrf.mxu0  ;;  %4394 = vmatprep.subr.mxu1 %v3397_v1  ;;  %v819_v41 = vpop.f32.mrf.mxu1  ;;  %s3278_s16 = sshll.u32 %s5513_s29, 3 }
 0x104   : > { %4241 = vmatprep.mubr.f32.mxu0 %v5058_v6  ;;  %1102 = vst [vmem:[#allocation3 + $0x40] sm:$0xff] %v620_v39  ;;  %4309 = vmatprep.mubr.f32.mxu1 %v5058_v6  ;;  %s5531_s9 = scalar_lea.vmem %s5673_s4, %s3278_s16 }
 0x105   : > { %4410 = vmatpush3.msra.mxu1 %v3397_v1  ;;  %4341 = vmatprep.subr.mxu0 %v3395_v16  ;;  %v3888_v21 = vpop.f32.mrf.mxu1 }
 0x106   : > { %4242 = vmatmul.mubr.f32.gmra.mxu0 %v5323_v38  ;;  %v3820_v19 = vpop.f32.mrf.mxu0  ;;  %4310 = vmatmul.mubr.f32.gmra.mxu1 %v5323_v38 }
 0x107   : > { %4395 = vmatprep.subr.mxu1 %v3396_v18  ;;  %1105 = vst [vmem:[#allocation3 + $0x58] sm:$0xff] %v3820_v19  ;;  %4342 = vmatpush3.msra.mxu0 %v3395_v16  ;;  %v5335_v24 = vpop.f32.mrf.mxu1 }
 0x108   : > { %4411 = vmatpush3.msra.mxu1 %v3396_v18  ;;  %v630_v23 = vpop.f32.mrf.mxu0  ;;  %4343 = vmatprep.subr.mxu0 %v3394_v17 }
 0x109   : > { %4396 = vmatprep.subr.mxu1 %v3395_v16  ;;  %1104 = vst [vmem:[#allocation3 + $0x50] sm:$0xff] %v630_v23  ;;  %4244 = vmatprep.mubr.f32.mxu0 %v5333_v22 }
 0x10a   : > { %4312 = vmatprep.mubr.f32.mxu1 %v5333_v22  ;;  %v3823_v27 = vpop.f32.mrf.mxu0  ;;  %4412 = vmatpush3.msra.mxu1 %v3395_v16  ;;  %v5345_v28 = vpop.f32.mrf.mxu1 }
 0x10b   : > { %4344 = vmatpush3.msra.mxu0 %v3394_v17  ;;  %1107 = vst [vmem:[#allocation3 + $0x68] sm:$0xff] %v3823_v27  ;;  %4313 = vmatmul.mubr.f32.gmra.mxu1 %v5338_v25 }
 0x10c   : > { %4245 = vmatmul.mubr.f32.gmra.mxu0 %v5338_v25  ;;  %v640_v29 = vpop.f32.mrf.mxu0  ;;  %4397 = vmatprep.subr.mxu1 %v3394_v17  ;;  %v5349_v30 = vpop.f32.mrf.mxu1 }
 0x10d   : > { %4345 = vmatprep.subr.mxu0 %v3393_v26  ;;  %1106 = vst [vmem:[#allocation3 + $0x60] sm:$0xff] %v640_v29  ;;  %4413 = vmatpush3.msra.mxu1 %v3394_v17 }
 0x10e   : > { %4346 = vmatpush3.msra.mxu0 %v3393_v26  ;;  %4398 = vmatprep.subr.mxu1 %v3393_v26 }
 0x10f   : > { %4347 = vmatprep.mubr.f32.mxu0 %v4461_v31  ;;  %v3826_v32 = vpop.f32.mrf.mxu0  ;;  %4414 = vmatpush3.msra.mxu1 %v3393_v26  ;;  %v5353_v34 = vpop.f32.mrf.mxu1 }
 0x110   : > { %4365 = vmatprep.mubr.f32.mxu1 %v4462_v33  ;;  %1109 = vst [vmem:[#allocation3 + $0x78] sm:$0xff] %v3826_v32  ;;  %4348 = vmatmul.mubr.f32.vlgmr.msra.gmra.mxu0 %v4463_v35 }
 0x111   : > { %4366 = vmatmul.mubr.f32.vlgmr.msra.gmra.mxu1 %v4464_v36  ;;  %v650_v37 = vpop.f32.mrf.mxu0  ;;  %4350 = vmatprep.mubr.f32.mxu0 %v4465_v40  ;;  %v847_v44 = vpop.f32.mrf.mxu1  ;;  %v1119_v40 = vld [vmem:[#allocation3 + $0x9] sm:$0xff] }
 0x112   : > { %4368 = vmatprep.mubr.f32.mxu1 %v4466_v42  ;;  %1108 = vst [vmem:[#allocation3 + $0x70] sm:$0xff] %v650_v37 }
 0x113   : > { %v3897_v47 = vpop.f32.mrf.mxu1 }
 0x114   : > { %v3829_v45 = vpop.f32.mrf.mxu0  ;;  %4351 = vmatmul.mubr.f32.gmra.mxu0 %v4467_v49 }
 0x115   : > { %4369 = vmatmul.mubr.f32.gmra.mxu1 %v4468_v51  ;;  %1111 = vst [vmem:[#allocation3 + $0x88] sm:$0xff] %v3829_v45  ;;  %4353 = vmatprep.mubr.f32.mxu0 %v4469_v52  ;;  %v5363_v43 = vpop.f32.mrf.mxu1 }
 0x116   : > { %4371 = vmatprep.mubr.f32.mxu1 %v4470_v55  ;;  %v660_v56 = vpop.f32.mrf.mxu0 }
 0x117   : > { %1110 = vst [vmem:[#allocation3 + $0x80] sm:$0xff] %v660_v56 }
 0x118   : > { %4354 = vmatmul.mubr.f32.gmra.mxu0 %v4471_v46  ;;  %v3832_v50 = vpop.f32.mrf.mxu0  ;;  %v1120_v46 = vld [vmem:[#allocation3 + $0x19] sm:$0xff] }
 0x119   : > { %4372 = vmatmul.mubr.f32.gmra.mxu1 %v4472_v48  ;;  %v5367_v53 = vpop.f32.mrf.mxu1  ;;  %4356 = vmatprep.mubr.f32.mxu0 %v4473_v54  ;;  %1113 = vst [vmem:[#allocation3 + $0x98] sm:$0xff] %v3832_v50  ;;  %v1121_v48 = vld [vmem:[#allocation3 + $0x21] sm:$0xff] }
 0x11a   : > { %4374 = vmatprep.mubr.f32.mxu1 %v5041_v61  ;;  %v670_v57 = vpop.f32.mrf.mxu0 }
 0x11b   : > { %v5371_v62 = vpop.f32.mrf.mxu1  ;;  %1112 = vst [vmem:[#allocation3 + $0x90] sm:$0xff] %v670_v57 }
 0x11c   : > { %4357 = vmatmul.mubr.f32.gmra.mxu0 %v4474_v3 }
 0x11d   : > { %4375 = vmatmul.mubr.f32.gmra.mxu1 %v5055_v5  ;;  %4359 = vmatprep.mubr.f32.mxu0 %v4475_v4 }
 0x11e   : > { %4377 = vmatprep.mubr.f32.mxu1 %v5058_v6  ;;  %v3835_v9 = vpop.f32.mrf.mxu0  ;;  %v5377_v58 = vpop.f32.mrf.mxu1 }
 0x11f   : > { %1115 = vst [vmem:[#allocation3 + $0xa8] sm:$0xff] %v3835_v9 }
 0x120   : > { %v680_v61 = vpop.f32.mrf.mxu0  ;;  %4360 = vmatmul.mubr.f32.gmra.mxu0 %v4476_v60  ;;  %v875_v13 = vpop.f32.mrf.mxu1 }
 0x121   : > { %4378 = vmatmul.mubr.f32.gmra.mxu1 %v5323_v38  ;;  %1114 = vst [vmem:[#allocation3 + $0xa0] sm:$0xff] %v680_v61  ;;  %4362 = vmatprep.mubr.f32.mxu0 %v4477_v63  ;;  %v1122_v63 = vld [vmem:[#allocation3 + $0x31] sm:$0xff] }
 0x122   : > { %4380 = vmatprep.mubr.f32.mxu1 %v5333_v22 }
 0x123   : > { %v3838_v5 = vpop.f32.mrf.mxu0 }
 0x124   : > { %v3906_v1 = vpop.f32.mrf.mxu1  ;;  %4363 = vmatmul.mubr.f32.gmra.mxu0 %v4478_v2  ;;  %1117 = vst [vmem:[#allocation3 + $0xb8] sm:$0xff] %v3838_v5 }
 0x125   : > { %4381 = vmatmul.mubr.f32.gmra.mxu1 %v5338_v25  ;;  %v690_v6 = vpop.f32.mrf.mxu0  ;;  %v1118_v25 = vld [vmem:[#allocation3 + $0x1] sm:$0xff] }
 0x126   : > { %v5385_v7 = vpop.f32.mrf.mxu1  ;;  %1116 = vst [vmem:[#allocation3 + $0xb0] sm:$0xff] %v690_v6 }
 0x128   : > { %v3941_v18 = vpop.f32.mrf.mxu0 }
 0x129   : > { %v4009_v11 = vpop.f32.mrf.mxu1  ;;  %v1160_v38 = vrot.slane %v3941_v18, 2 }
 0x12a   : > { %v975_v20 = vpop.f32.mrf.mxu0 }
 0x12b   : > { %v1371_v16 = vpop.f32.mrf.mxu1  ;;  %v1159_v39 = vrot.slane %v975_v20, 2 }
 0x12c   : > { %v3944_v41 = vpop.f32.mrf.mxu0 }
 0x12d   : > { %v5387_v17 = vpop.f32.mrf.mxu1  ;;  %v1161_v19 = vsel %vm1158_vm0, %v1159_v39, %v1160_v38  ;;  %v1164_v37 = vrot.slane %v3944_v41, 2 }
 0x12e   : > { %v1215_v21 = vadd.f32 %v1161_v19, %v5276_v0  ;;  %v985_v22 = vpop.f32.mrf.mxu0 }
 0x12f   : > { %v1381_v23 = vpop.f32.mrf.mxu1  ;;  %v1162_v26 = vrot.slane %v985_v22, 2 }
 0x130   : > { %v1231_v27 = vadd.f32 %v1215_v21, %v1118_v25  ;;  %v3947_v29 = vpop.f32.mrf.mxu0  ;;  %v1123_v21 = vld [vmem:[#allocation3 + $0x39] sm:$0xff] }
 0x131   : > { %v5391_v31 = vpop.f32.mrf.mxu1  ;;  %v1163_v32 = vsel %vm1158_vm0, %v1160_v38, %v1162_v26  ;;  %v1167_v42 = vrot.slane %v3947_v29, 2 }
 0x132   : > { %1247 = vst [vmem:[#allocation3 + $0x1] sm:$0xff] %v1231_v27  ;;  %v1216_v33 = vadd.f32 %v5270_v59, %v1163_v32  ;;  %v995_v35 = vpop.f32.mrf.mxu0 }
 0x133   : > { %v1391_v36 = vpop.f32.mrf.mxu1  ;;  %v1165_v44 = vrot.slane %v995_v35, 2 }
 0x134   : > { %v1232_v0 = vadd.f32 %v1216_v33, %v1119_v40  ;;  %v3950_v45 = vpop.f32.mrf.mxu0 }
 0x135   : > { %v5395_v47 = vpop.f32.mrf.mxu1  ;;  %v1166_v49 = vsel %vm1158_vm0, %v1164_v37, %v1165_v44  ;;  %v1168_v51 = vsel %vm1158_vm0, %v1165_v44, %v1167_v42  ;;  %v1170_v50 = vrot.slane %v3950_v45, 2 }
 0x136   : > { %1248 = vst [vmem:[#allocation3 + $0x9] sm:$0xff] %v1232_v0  ;;  %v1217_v52 = vadd.f32 %v5282_v8, %v1166_v49  ;;  %v1218_v55 = vadd.f32 %v1168_v51, %v5297_v15  ;;  %v1005_v59 = vpop.f32.mrf.mxu0  ;;  %v1124_v49 = vld [vmem:[#allocation3 + $0x49] sm:$0xff] }
 0x137   : > { %v5401_v56 = vpop.f32.mrf.mxu1  ;;  %v1169_v54 = vrot.slane %v1005_v59, 2 }
 0x138   : > { %v1233_v57 = vadd.f32 %v1217_v52, %v1120_v46  ;;  %v1234_v3 = vadd.f32 %v1218_v55, %v1121_v48  ;;  %v1125_v55 = vld [vmem:[#allocation3 + $0x51] sm:$0xff] }
 0x139   : > { %v3953_v4 = vpop.f32.mrf.mxu0  ;;  %v1886_v9 = vld [vmem:[#allocation3] sm:$0xff]  ;;  %v1171_v61 = vsel %vm1158_vm0, %v1169_v54, %v1170_v50  ;;  %v5404_v60 = vpop.f32.mrf.mxu1 }
 0x13a   : > { %v1910_v13 = vadd.f32 %v1886_v9, %v1371_v16  ;;  %1249 = vst [vmem:[#allocation3 + $0x19] sm:$0xff] %v1233_v57  ;;  %1250 = vst [vmem:[#allocation3 + $0x21] sm:$0xff] %v1234_v3  ;;  %v1219_v8 = vadd.f32 %v1171_v61, %v5307_v12  ;;  %v1174_v25 = vrot.slane %v3953_v4, 2 }
 0x13b   : > { %v1015_v15 = vpop.f32.mrf.mxu0  ;;  %v1411_v1 = vpop.f32.mrf.mxu1 }
 0x13c   : > { %v1172_v5 = vrot.slane %v1015_v15, 2  ;;  %1934 = vst [vmem:[#allocation3] sm:$0xff] %v1910_v13  ;;  %v1235_v2 = vadd.f32 %v1219_v8, %v1122_v63 }
 0x13d   : > { %v1887_v6 = vld [vmem:[#allocation3 + $0x8] sm:$0xff]  ;;  %v1888_v18 = vld [vmem:[#allocation3 + $0x10] sm:$0xff]  ;;  %v5408_v39 = vpop.f32.mrf.mxu1 }
 0x13e   : > { %v1173_v20 = vsel %vm1158_vm0, %v1170_v50, %v1172_v5  ;;  %v3956_v38 = vpop.f32.mrf.mxu0  ;;  %v1911_v41 = vadd.f32 %v4009_v11, %v1887_v6  ;;  %v1912_v19 = vadd.f32 %v1888_v18, %v1381_v23  ;;  %1251 = vst [vmem:[#allocation3 + $0x31] sm:$0xff] %v1235_v2  ;;  %v1127_v6 = vld [vmem:[#allocation3 + $0x69] sm:$0xff] }
 0x13f   : > { %v1220_v16 = vadd.f32 %v5301_v10, %v1173_v20  ;;  %v5411_v22 = vpop.f32.mrf.mxu1  ;;  %v1177_v35 = vrot.slane %v3956_v38, 2 }
 0x140   : > { %v1025_v12 = vpop.f32.mrf.mxu0  ;;  %1935 = vst [vmem:[#allocation3 + $0x8] sm:$0xff] %v1911_v41  ;;  %1936 = vst [vmem:[#allocation3 + $0x10] sm:$0xff] %v1912_v19 }
 0x141   : > { %v1236_v26 = vadd.f32 %v1220_v16, %v1123_v21  ;;  %v1175_v27 = vrot.slane %v1025_v12, 2  ;;  %v1889_v29 = vld [vmem:[#allocation3 + $0x18] sm:$0xff]  ;;  %v1891_v32 = vld [vmem:[#allocation3 + $0x28] sm:$0xff]  ;;  %v1890_v33 = vld [vmem:[#allocation3 + $0x20] sm:$0xff] }
 0x142   : > { %v3959_v37 = vpop.f32.mrf.mxu0  ;;  %v1913_v11 = vadd.f32 %v5387_v17, %v1889_v29  ;;  %v1915_v23 = vadd.f32 %v5391_v31, %v1891_v32  ;;  %v1914_v40 = vadd.f32 %v1890_v33, %v1391_v36  ;;  %v5416_v42 = vpop.f32.mrf.mxu1 }
 0x143   : > { %1252 = vst [vmem:[#allocation3 + $0x39] sm:$0xff] %v1236_v26  ;;  %v1176_v10 = vsel %vm1158_vm0, %v1174_v25, %v1175_v27  ;;  %v1178_v44 = vsel %vm1158_vm0, %v1175_v27, %v1177_v35  ;;  %v1180_v17 = vrot.slane %v3959_v37, 2  ;;  %v1128_v37 = vld [vmem:[#allocation3 + $0x79] sm:$0xff] }
 0x144   : > { %v1221_v0 = vadd.f32 %v5317_v14, %v1176_v10  ;;  %v1035_v45 = vpop.f32.mrf.mxu0  ;;  %1937 = vst [vmem:[#allocation3 + $0x18] sm:$0xff] %v1913_v11  ;;  %1939 = vst [vmem:[#allocation3 + $0x28] sm:$0xff] %v1915_v23  ;;  %v1222_v51 = vadd.f32 %v1178_v44, %v5335_v24  ;;  %v1431_v31 = vpop.f32.mrf.mxu1  ;;  %v1126_v24 = vld [vmem:[#allocation3 + $0x61] sm:$0xff] }
 0x145   : > { %1938 = vst [vmem:[#allocation3 + $0x20] sm:$0xff] %v1914_v40  ;;  %v1179_v52 = vrot.slane %v1035_v45, 2  ;;  %v1892_v36 = vld [vmem:[#allocation3 + $0x30] sm:$0xff] }
 0x146   : > { %v1237_v59 = vadd.f32 %v1221_v0, %v1124_v49  ;;  %v1916_v46 = vadd.f32 %v1892_v36, %v5401_v56  ;;  %v1238_v48 = vadd.f32 %v1222_v51, %v1125_v55 }
 0x147   : > { %v1181_v50 = vsel %vm1158_vm0, %v1179_v52, %v1180_v17  ;;  %v3962_v54 = vpop.f32.mrf.mxu0  ;;  %v5424_v57 = vpop.f32.mrf.mxu1  ;;  %v1130_v52 = vld [vmem:[#allocation3 + $0x91] sm:$0xff] }
 0x148   : > { %1253 = vst [vmem:[#allocation3 + $0x49] sm:$0xff] %v1237_v59  ;;  %v1223_v14 = vadd.f32 %v1181_v50, %v5349_v30  ;;  %1940 = vst [vmem:[#allocation3 + $0x30] sm:$0xff] %v1916_v46  ;;  %v1184_v41 = vrot.slane %v3962_v54, 2  ;;  %v1131_v54 = vld [vmem:[#allocation3 + $0x99] sm:$0xff] }
 0x149   : > { %1254 = vst [vmem:[#allocation3 + $0x51] sm:$0xff] %v1238_v48  ;;  %v1045_v3 = vpop.f32.mrf.mxu0  ;;  %v1441_v8 = vpop.f32.mrf.mxu1 }
 0x14a   : > { %v1893_v4 = vld [vmem:[#allocation3 + $0x38] sm:$0xff]  ;;  %v1894_v9 = vld [vmem:[#allocation3 + $0x40] sm:$0xff]  ;;  %v1239_v61 = vadd.f32 %v1223_v14, %v1126_v24  ;;  %v1182_v13 = vrot.slane %v1045_v3, 2 }
 0x14b   : > { %v1917_v56 = vadd.f32 %v5395_v47, %v1893_v4  ;;  %v1918_v15 = vadd.f32 %v1894_v9, %v1411_v1  ;;  %v5428_v2 = vpop.f32.mrf.mxu1 }
 0x14c   : > { %1255 = vst [vmem:[#allocation3 + $0x61] sm:$0xff] %v1239_v61  ;;  %v1183_v63 = vsel %vm1158_vm0, %v1180_v17, %v1182_v13  ;;  %v3965_v5 = vpop.f32.mrf.mxu0 }
 0x14d   : > { %1941 = vst [vmem:[#allocation3 + $0x38] sm:$0xff] %v1917_v56  ;;  %1942 = vst [vmem:[#allocation3 + $0x40] sm:$0xff] %v1918_v15  ;;  %v1224_v30 = vadd.f32 %v5345_v28, %v1183_v63  ;;  %v1451_v20 = vpop.f32.mrf.mxu1  ;;  %v1187_v16 = vrot.slane %v3965_v5, 2 }
 0x14e   : > { %v1055_v18 = vpop.f32.mrf.mxu0 }
 0x14f   : > { %v1895_v38 = vld [vmem:[#allocation3 + $0x48] sm:$0xff]  ;;  %v1240_v19 = vadd.f32 %v1224_v30, %v1127_v6  ;;  %v1185_v21 = vrot.slane %v1055_v18, 2 }
 0x150   : > { %v1897_v47 = vld [vmem:[#allocation3 + $0x58] sm:$0xff]  ;;  %v1919_v1 = vadd.f32 %v5404_v60, %v1895_v38  ;;  %v1896_v12 = vld [vmem:[#allocation3 + $0x50] sm:$0xff]  ;;  %v3968_v29 = vpop.f32.mrf.mxu0 }
 0x151   : > { %v1921_v25 = vadd.f32 %v5408_v39, %v1897_v47  ;;  %v1920_v26 = vadd.f32 %v1896_v12, %v5411_v22  ;;  %1256 = vst [vmem:[#allocation3 + $0x69] sm:$0xff] %v1240_v19  ;;  %v1186_v27 = vsel %vm1158_vm0, %v1184_v41, %v1185_v21  ;;  %v1188_v28 = vsel %vm1158_vm0, %v1185_v21, %v1187_v16  ;;  %v5436_v32 = vpop.f32.mrf.mxu1  ;;  %v1129_v39 = vld [vmem:[#allocation3 + $0x81] sm:$0xff]  ;;  %v1132_v16 = vld [vmem:[#allocation3 + $0xa9] sm:$0xff]  ;;  %v1133_v21 = vld [vmem:[#allocation3 + $0xb1] sm:$0xff] }
 0x152   : > { %1943 = vst [vmem:[#allocation3 + $0x48] sm:$0xff] %v1919_v1  ;;  %v1225_v33 = vadd.f32 %v5353_v34, %v1186_v27  ;;  %v1226_v35 = vadd.f32 %v1188_v28, %v5363_v43  ;;  %v1190_v11 = vrot.slane %v3968_v29, 2  ;;  %v1065_v22 = vpop.f32.mrf.mxu0 }
 0x153   : > { %1945 = vst [vmem:[#allocation3 + $0x58] sm:$0xff] %v1921_v25  ;;  %1944 = vst [vmem:[#allocation3 + $0x50] sm:$0xff] %v1920_v26  ;;  %v1898_v60 = vld [vmem:[#allocation3 + $0x60] sm:$0xff]  ;;  %v1461_v23 = vpop.f32.mrf.mxu1  ;;  %v1189_v0 = vrot.slane %v1065_v22, 2 }
 0x154   : > { %v1922_v40 = vadd.f32 %v1898_v60, %v1431_v31  ;;  %v1241_v10 = vadd.f32 %v1225_v33, %v1128_v37  ;;  %v1242_v44 = vadd.f32 %v1226_v35, %v1129_v39 }
 0x155   : > { %v1191_v45 = vsel %vm1158_vm0, %v1189_v0, %v1190_v11 }
 0x156   : > { %1946 = vst [vmem:[#allocation3 + $0x60] sm:$0xff] %v1922_v40  ;;  %1257 = vst [vmem:[#allocation3 + $0x79] sm:$0xff] %v1241_v10  ;;  %v3971_v34 = vpop.f32.mrf.mxu0  ;;  %v1227_v43 = vadd.f32 %v1191_v45, %v5371_v62  ;;  %v5442_v49 = vpop.f32.mrf.mxu1 }
 0x157   : > { %1258 = vst [vmem:[#allocation3 + $0x81] sm:$0xff] %v1242_v44  ;;  %v1194_v63 = vrot.slane %v3971_v34, 2 }
 0x158   : > { %v1899_v51 = vld [vmem:[#allocation3 + $0x68] sm:$0xff]  ;;  %v1900_v17 = vld [vmem:[#allocation3 + $0x70] sm:$0xff]  ;;  %v1075_v36 = vpop.f32.mrf.mxu0  ;;  %v1243_v59 = vadd.f32 %v1227_v43, %v1130_v52  ;;  %v1471_v48 = vpop.f32.mrf.mxu1 }
 0x159   : > { %v1923_v55 = vadd.f32 %v5416_v42, %v1899_v51  ;;  %v1924_v31 = vadd.f32 %v1900_v17, %v1441_v8  ;;  %v1192_v46 = vrot.slane %v1075_v36, 2  ;;  %v1959_v17 = vld [vmem:[#allocation3 + $0x9] sm:$0xff] }
 0x15a   : > { %1259 = vst [vmem:[#allocation3 + $0x91] sm:$0xff] %v1243_v59 }
 0x15b   : > { %1947 = vst [vmem:[#allocation3 + $0x68] sm:$0xff] %v1923_v55  ;;  %1948 = vst [vmem:[#allocation3 + $0x70] sm:$0xff] %v1924_v31  ;;  %v1193_v50 = vsel %vm1158_vm0, %v1190_v11, %v1192_v46  ;;  %v3974_v14 = vpop.f32.mrf.mxu0  ;;  %v1958_v11 = vld [vmem:[#allocation3 + $0x1] sm:$0xff] }
 0x15c   : > { %v1228_v62 = vadd.f32 %v5367_v53, %v1193_v50  ;;  %v5447_v24 = vpop.f32.mrf.mxu1  ;;  %v1197_v5 = vrot.slane %v3974_v14, 2 }
 0x15d   : > { %v1901_v3 = vld [vmem:[#allocation3 + $0x78] sm:$0xff]  ;;  %v1085_v56 = vpop.f32.mrf.mxu0 }
 0x15e   : > { %v1903_v4 = vld [vmem:[#allocation3 + $0x88] sm:$0xff]  ;;  %v1902_v9 = vld [vmem:[#allocation3 + $0x80] sm:$0xff]  ;;  %v1925_v42 = vadd.f32 %v5424_v57, %v1901_v3  ;;  %v1244_v8 = vadd.f32 %v1228_v62, %v1131_v54  ;;  %v1481_v15 = vpop.f32.mrf.mxu1  ;;  %v1195_v30 = vrot.slane %v1085_v56, 2 }
 0x15f   : > { %v1927_v61 = vadd.f32 %v5428_v2, %v1903_v4  ;;  %v1926_v13 = vadd.f32 %v1902_v9, %v1451_v20  ;;  %v1961_v56 = vld [vmem:[#allocation3 + $0x21] sm:$0xff] }
 0x160   : > { %1949 = vst [vmem:[#allocation3 + $0x78] sm:$0xff] %v1925_v42  ;;  %1260 = vst [vmem:[#allocation3 + $0x99] sm:$0xff] %v1244_v8  ;;  %v1196_v53 = vsel %vm1158_vm0, %v1194_v63, %v1195_v30  ;;  %v1198_v6 = vsel %vm1158_vm0, %v1195_v30, %v1197_v5  ;;  %v4077_v18 = vpop.f32.mrf.mxu0 }
 0x161   : > { %1951 = vst [vmem:[#allocation3 + $0x88] sm:$0xff] %v1927_v61  ;;  %1950 = vst [vmem:[#allocation3 + $0x80] sm:$0xff] %v1926_v13  ;;  %v4145_v38 = vpop.f32.mrf.mxu1  ;;  %v1904_v57 = vld [vmem:[#allocation3 + $0x90] sm:$0xff]  ;;  %v1229_v2 = vadd.f32 %v5377_v58, %v1196_v53  ;;  %v1230_v20 = vadd.f32 %v1198_v6, %v5385_v7  ;;  %v1960_v61 = vld [vmem:[#allocation3 + $0x19] sm:$0xff] }
 0x162   : > { %v1999_v41 = vrot.slane %v4145_v38, 2  ;;  %v1928_v19 = vadd.f32 %v1904_v57, %v1461_v23  ;;  %v1573_v47 = vpop.f32.mrf.mxu0  ;;  %v1962_v6 = vld [vmem:[#allocation3 + $0x31] sm:$0xff] }
 0x163   : > { %v1767_v1 = vpop.f32.mrf.mxu1  ;;  %v1245_v12 = vadd.f32 %v1229_v2, %v1132_v16  ;;  %v1246_v25 = vadd.f32 %v1230_v20, %v1133_v21 }
 0x164   : > { %v1998_v26 = vrot.slane %v1767_v1, 2  ;;  %1952 = vst [vmem:[#allocation3 + $0x90] sm:$0xff] %v1928_v19  ;;  %v4080_v27 = vpop.f32.mrf.mxu0 }
 0x165   : > { %v4148_v28 = vpop.f32.mrf.mxu1  ;;  %1261 = vst [vmem:[#allocation3 + $0xa9] sm:$0xff] %v1245_v12  ;;  %1262 = vst [vmem:[#allocation3 + $0xb1] sm:$0xff] %v1246_v25  ;;  %v1963_v12 = vld [vmem:[#allocation3 + $0x39] sm:$0xff] }
 0x166   : > { %v2000_v29 = vsel %vm1158_vm0, %v1998_v26, %v1999_v41  ;;  %v1583_v7 = vpop.f32.mrf.mxu0  ;;  %v2003_v44 = vrot.slane %v4148_v28, 2 }
 0x167   : > { %v1905_v33 = vld [vmem:[#allocation3 + $0x98] sm:$0xff]  ;;  %v1906_v58 = vld [vmem:[#allocation3 + $0xa0] sm:$0xff]  ;;  %v2054_v35 = vadd.f32 %v2000_v29, %v1573_v47  ;;  %v1777_v60 = vpop.f32.mrf.mxu1 }
 0x168   : > { %v1929_v37 = vadd.f32 %v5436_v32, %v1905_v33  ;;  %v1930_v39 = vadd.f32 %v1906_v58, %v1471_v48  ;;  %v2001_v22 = vrot.slane %v1777_v60, 2  ;;  %v4083_v40 = vpop.f32.mrf.mxu0 }
 0x169   : > { %v2070_v23 = vadd.f32 %v2054_v35, %v1958_v11  ;;  %v4151_v10 = vpop.f32.mrf.mxu1 }
 0x16a   : > { %1953 = vst [vmem:[#allocation3 + $0x98] sm:$0xff] %v1929_v37  ;;  %1954 = vst [vmem:[#allocation3 + $0xa0] sm:$0xff] %v1930_v39  ;;  %v2002_v0 = vsel %vm1158_vm0, %v1999_v41, %v2001_v22  ;;  %v2006_v34 = vrot.slane %v4151_v10, 2  ;;  %v1592_v43 = vpop.f32.mrf.mxu0  ;;  %v1964_v37 = vld [vmem:[#allocation3 + $0x49] sm:$0xff]  ;;  %v1965_v39 = vld [vmem:[#allocation3 + $0x51] sm:$0xff] }
 0x16b   : > { %2086 = vst [vmem:[#allocation3 + $0x1] sm:$0xff] %v2070_v23  ;;  %v2055_v45 = vadd.f32 %v4077_v18, %v2002_v0  ;;  %v1787_v51 = vpop.f32.mrf.mxu1 }
 0x16c   : > { %v2004_v52 = vrot.slane %v1787_v51, 2  ;;  %v1907_v36 = vld [vmem:[#allocation3 + $0xa8] sm:$0xff]  ;;  %v1909_v32 = vld [vmem:[#allocation3 + $0xb8] sm:$0xff]  ;;  %v1908_v55 = vld [vmem:[#allocation3 + $0xb0] sm:$0xff]  ;;  %v4086_v59 = vpop.f32.mrf.mxu0 }
 0x16d   : > { %v2071_v31 = vadd.f32 %v2055_v45, %v1959_v17  ;;  %v4154_v46 = vpop.f32.mrf.mxu1  ;;  %v1931_v48 = vadd.f32 %v5442_v49, %v1907_v36  ;;  %v1933_v50 = vadd.f32 %v5447_v24, %v1909_v32  ;;  %v1932_v54 = vadd.f32 %v1908_v55, %v1481_v15 }
 0x16e   : > { %v2005_v62 = vsel %vm1158_vm0, %v2003_v44, %v2004_v52  ;;  %v2007_v14 = vsel %vm1158_vm0, %v2004_v52, %v2006_v34  ;;  %v2009_v4 = vrot.slane %v4154_v46, 2  ;;  %v1601_v9 = vpop.f32.mrf.mxu0 }
 0x16f   : > { %2087 = vst [vmem:[#allocation3 + $0x9] sm:$0xff] %v2071_v31  ;;  %v2056_v3 = vadd.f32 %v4080_v27, %v2005_v62  ;;  %v1797_v42 = vpop.f32.mrf.mxu1  ;;  %1955 = vst [vmem:[#allocation3 + $0xa8] sm:$0xff] %v1931_v48  ;;  %v2057_v13 = vadd.f32 %v2007_v14, %v1592_v43  ;;  %v1966_v43 = vld [vmem:[#allocation3 + $0x61] sm:$0xff] }
 0x170   : > { %1957 = vst [vmem:[#allocation3 + $0xb8] sm:$0xff] %v1933_v50  ;;  %1956 = vst [vmem:[#allocation3 + $0xb0] sm:$0xff] %v1932_v54  ;;  %v2008_v8 = vrot.slane %v1797_v42, 2  ;;  %v1967_v54 = vld [vmem:[#allocation3 + $0x69] sm:$0xff] }
 0x171   : > { %v2072_v49 = vadd.f32 %v2056_v3, %v1960_v61  ;;  %v4089_v63 = vpop.f32.mrf.mxu0  ;;  %v2073_v24 = vadd.f32 %v2057_v13, %v1961_v56  ;;  %v4157_v5 = vpop.f32.mrf.mxu1  ;;  %v1968_v56 = vld [vmem:[#allocation3 + $0x79] sm:$0xff] }
 0x172   : > { %v2010_v15 = vsel %vm1158_vm0, %v2008_v8, %v2009_v4  ;;  %v2013_v41 = vrot.slane %v4157_v5, 2 }
 0x173   : > { %2088 = vst [vmem:[#allocation3 + $0x19] sm:$0xff] %v2072_v49  ;;  %v2058_v30 = vadd.f32 %v2010_v15, %v1601_v9  ;;  %v1611_v53 = vpop.f32.mrf.mxu0  ;;  %2089 = vst [vmem:[#allocation3 + $0x21] sm:$0xff] %v2073_v24  ;;  %v1807_v18 = vpop.f32.mrf.mxu1  ;;  %v1969_v49 = vld [vmem:[#allocation3 + $0x81] sm:$0xff] }
 0x174   : > { %v2011_v57 = vrot.slane %v1807_v18, 2 }
 0x175   : > { %v2074_v38 = vadd.f32 %v2058_v30, %v1962_v6  ;;  %v4160_v20 = vpop.f32.mrf.mxu1 }
 0x176   : > { %v4092_v2 = vpop.f32.mrf.mxu0  ;;  %v2012_v19 = vsel %vm1158_vm0, %v2009_v4, %v2011_v57  ;;  %v2016_v16 = vrot.slane %v4160_v20, 2  ;;  %v1970_v57 = vld [vmem:[#allocation3 + $0x91] sm:$0xff] }
 0x177   : > { %2090 = vst [vmem:[#allocation3 + $0x31] sm:$0xff] %v2074_v38  ;;  %v2059_v21 = vadd.f32 %v4086_v59, %v2012_v19  ;;  %v1817_v1 = vpop.f32.mrf.mxu1 }
 0x178   : > { %v1620_v47 = vpop.f32.mrf.mxu0  ;;  %v2014_v25 = vrot.slane %v1817_v1, 2 }
 0x179   : > { %v2075_v26 = vadd.f32 %v2059_v21, %v1963_v12 }
 0x17a   : > { %v4095_v27 = vpop.f32.mrf.mxu0  ;;  %v2015_v28 = vsel %vm1158_vm0, %v2013_v41, %v2014_v25  ;;  %v2017_v29 = vsel %vm1158_vm0, %v2014_v25, %v2016_v16  ;;  %v4163_v33 = vpop.f32.mrf.mxu1 }
 0x17b   : > { %2091 = vst [vmem:[#allocation3 + $0x39] sm:$0xff] %v2075_v26  ;;  %v2060_v58 = vadd.f32 %v4089_v63, %v2015_v28  ;;  %v2061_v35 = vadd.f32 %v2017_v29, %v1620_v47  ;;  %v2019_v7 = vrot.slane %v4163_v33, 2  ;;  %v1971_v26 = vld [vmem:[#allocation3 + $0x99] sm:$0xff] }
 0x17c   : > { %v1629_v60 = vpop.f32.mrf.mxu0  ;;  %v1827_v11 = vpop.f32.mrf.mxu1 }
 0x17d   : > { %v2076_v22 = vadd.f32 %v2060_v58, %v1964_v37  ;;  %v2077_v23 = vadd.f32 %v2061_v35, %v1965_v39  ;;  %v2018_v40 = vrot.slane %v1827_v11, 2 }
 0x17f   : > { %v4098_v10 = vpop.f32.mrf.mxu0  ;;  %2092 = vst [vmem:[#allocation3 + $0x49] sm:$0xff] %v2076_v22  ;;  %2093 = vst [vmem:[#allocation3 + $0x51] sm:$0xff] %v2077_v23  ;;  %v2020_v44 = vsel %vm1158_vm0, %v2018_v40, %v2019_v7  ;;  %v4166_v0 = vpop.f32.mrf.mxu1  ;;  %v1972_v23 = vld [vmem:[#allocation3 + $0xa9] sm:$0xff]  ;;  %v1973_v40 = vld [vmem:[#allocation3 + $0xb1] sm:$0xff] }
 0x180   : > { %v2062_v45 = vadd.f32 %v2020_v44, %v1629_v60  ;;  %v2023_v55 = vrot.slane %v4166_v0, 2  ;;  %v2726_v60 = vld [vmem:[#allocation3 + $0x8] sm:$0xff]  ;;  %v2725_v44 = vld [vmem:[#allocation3] sm:$0xff] }
 0x181   : > { %v1639_v34 = vpop.f32.mrf.mxu0  ;;  %v1837_v51 = vpop.f32.mrf.mxu1 }
 0x182   : > { %v2078_v17 = vadd.f32 %v2062_v45, %v1966_v43  ;;  %v2021_v52 = vrot.slane %v1837_v51, 2 }
 0x183   : > { %v4169_v32 = vpop.f32.mrf.mxu1 }
 0x184   : > { %v4101_v36 = vpop.f32.mrf.mxu0  ;;  %2094 = vst [vmem:[#allocation3 + $0x61] sm:$0xff] %v2078_v17  ;;  %v2022_v31 = vsel %vm1158_vm0, %v2019_v7, %v2021_v52  ;;  %v2026_v59 = vrot.slane %v4169_v32, 2  ;;  %v2728_v17 = vld [vmem:[#allocation3 + $0x18] sm:$0xff] }
 0x185   : > { %v2063_v46 = vadd.f32 %v4095_v27, %v2022_v31  ;;  %v1847_v50 = vpop.f32.mrf.mxu1 }
 0x186   : > { %v1648_v48 = vpop.f32.mrf.mxu0  ;;  %v2024_v62 = vrot.slane %v1847_v50, 2 }
 0x187   : > { %v2079_v14 = vadd.f32 %v2063_v46, %v1967_v54 }
 0x188   : > { %v2025_v3 = vsel %vm1158_vm0, %v2023_v55, %v2024_v62  ;;  %v2027_v4 = vsel %vm1158_vm0, %v2024_v62, %v2026_v59  ;;  %v4104_v9 = vpop.f32.mrf.mxu0  ;;  %v2727_v55 = vld [vmem:[#allocation3 + $0x10] sm:$0xff] }
 0x189   : > { %v4172_v42 = vpop.f32.mrf.mxu1  ;;  %2095 = vst [vmem:[#allocation3 + $0x69] sm:$0xff] %v2079_v14  ;;  %v2064_v61 = vadd.f32 %v4098_v10, %v2025_v3  ;;  %v2065_v13 = vadd.f32 %v2027_v4, %v1648_v48  ;;  %v2730_v48 = vld [vmem:[#allocation3 + $0x28] sm:$0xff]  ;;  %v2729_v14 = vld [vmem:[#allocation3 + $0x20] sm:$0xff] }
 0x18a   : > { %v2029_v8 = vrot.slane %v4172_v42, 2  ;;  %v1657_v63 = vpop.f32.mrf.mxu0  ;;  %v2732_v42 = vld [vmem:[#allocation3 + $0x38] sm:$0xff] }
 0x18b   : > { %v1857_v24 = vpop.f32.mrf.mxu1  ;;  %v2080_v15 = vadd.f32 %v2064_v61, %v1968_v56  ;;  %v2081_v5 = vadd.f32 %v2065_v13, %v1969_v49  ;;  %v2731_v56 = vld [vmem:[#allocation3 + $0x30] sm:$0xff] }
 0x18c   : > { %v2028_v30 = vrot.slane %v1857_v24, 2 }
 0x18d   : > { %2096 = vst [vmem:[#allocation3 + $0x79] sm:$0xff] %v2080_v15  ;;  %2097 = vst [vmem:[#allocation3 + $0x81] sm:$0xff] %v2081_v5  ;;  %v2734_v15 = vld [vmem:[#allocation3 + $0x48] sm:$0xff] }
 0x18e   : > { %v2030_v53 = vsel %vm1158_vm0, %v2028_v30, %v2029_v8  ;;  %v4107_v6 = vpop.f32.mrf.mxu0  ;;  %v4175_v38 = vpop.f32.mrf.mxu1 }
 0x18f   : > { %v2066_v18 = vadd.f32 %v2030_v53, %v1657_v63  ;;  %v2033_v1 = vrot.slane %v4175_v38, 2 }
 0x190   : > { %v1667_v2 = vpop.f32.mrf.mxu0  ;;  %v1867_v41 = vpop.f32.mrf.mxu1 }
 0x191   : > { %v2082_v20 = vadd.f32 %v2066_v18, %v1970_v57  ;;  %v2031_v19 = vrot.slane %v1867_v41, 2  ;;  %v2736_v2 = vld [vmem:[#allocation3 + $0x58] sm:$0xff] }
 0x193   : > { %2098 = vst [vmem:[#allocation3 + $0x91] sm:$0xff] %v2082_v20  ;;  %v2032_v16 = vsel %vm1158_vm0, %v2029_v8, %v2031_v19  ;;  %v4110_v21 = vpop.f32.mrf.mxu0 }
 0x194   : > { %v4178_v47 = vpop.f32.mrf.mxu1  ;;  %v2067_v12 = vadd.f32 %v4104_v9, %v2032_v16  ;;  %v2735_v16 = vld [vmem:[#allocation3 + $0x50] sm:$0xff] }
 0x195   : > { %v2036_v25 = vrot.slane %v4178_v47, 2  ;;  %v1676_v27 = vpop.f32.mrf.mxu0 }
 0x196   : > { %v1877_v28 = vpop.f32.mrf.mxu1  ;;  %v2083_v29 = vadd.f32 %v2067_v12, %v1971_v26  ;;  %v2738_v12 = vld [vmem:[#allocation3 + $0x68] sm:$0xff] }
 0x197   : > { %v2034_v33 = vrot.slane %v1877_v28, 2  ;;  %v2737_v28 = vld [vmem:[#allocation3 + $0x60] sm:$0xff] }
 0x198   : > { %2099 = vst [vmem:[#allocation3 + $0x99] sm:$0xff] %v2083_v29  ;;  %v4213_v7 = vpop.f32.mrf.mxu0 }
 0x199   : > { %v2035_v58 = vsel %vm1158_vm0, %v2033_v1, %v2034_v33  ;;  %v2037_v35 = vsel %vm1158_vm0, %v2034_v33, %v2036_v25  ;;  %v5474_v37 = vpop.f32.mrf.mxu1  ;;  %v2750_v22 = vadd.f32 %v4213_v7, %v2726_v60 }
 0x19a   : > { %v2068_v39 = vadd.f32 %v4107_v6, %v2035_v58  ;;  %v2069_v11 = vadd.f32 %v2037_v35, %v1676_v27  ;;  %v2210_v10 = vpop.f32.mrf.mxu0  ;;  %v2733_v6 = vld [vmem:[#allocation3 + $0x40] sm:$0xff]  ;;  %v2740_v35 = vld [vmem:[#allocation3 + $0x78] sm:$0xff] }
 0x19b   : > { %v5476_v0 = vpop.f32.mrf.mxu1  ;;  %2774 = vst [vmem:[#allocation3 + $0x8] sm:$0xff] %v2750_v22  ;;  %v2749_v43 = vadd.f32 %v2725_v44, %v2210_v10  ;;  %v2742_v10 = vld [vmem:[#allocation3 + $0x88] sm:$0xff] }
 0x19c   : > { %v2084_v45 = vadd.f32 %v2068_v39, %v1972_v23  ;;  %v2085_v34 = vadd.f32 %v2069_v11, %v1973_v40  ;;  %v4216_v51 = vpop.f32.mrf.mxu0  ;;  %v2739_v11 = vld [vmem:[#allocation3 + $0x70] sm:$0xff] }
 0x19d   : > { %v5478_v52 = vpop.f32.mrf.mxu1  ;;  %2773 = vst [vmem:[#allocation3] sm:$0xff] %v2749_v43  ;;  %v2752_v36 = vadd.f32 %v4216_v51, %v2728_v17  ;;  %v2741_v43 = vld [vmem:[#allocation3 + $0x80] sm:$0xff] }
 0x19e   : > { %2100 = vst [vmem:[#allocation3 + $0xa9] sm:$0xff] %v2084_v45  ;;  %2101 = vst [vmem:[#allocation3 + $0xb1] sm:$0xff] %v2085_v34  ;;  %v2220_v32 = vpop.f32.mrf.mxu0 }
 0x19f   : > { %v2422_v31 = vpop.f32.mrf.mxu1  ;;  %2776 = vst [vmem:[#allocation3 + $0x18] sm:$0xff] %v2752_v36  ;;  %v2751_v59 = vadd.f32 %v2727_v55, %v2220_v32  ;;  %v2744_v32 = vld [vmem:[#allocation3 + $0x98] sm:$0xff] }
 0x1a0   : > { %v4219_v46 = vpop.f32.mrf.mxu0 }
 0x1a1   : > { %v4287_v50 = vpop.f32.mrf.mxu1  ;;  %2775 = vst [vmem:[#allocation3 + $0x10] sm:$0xff] %v2751_v59  ;;  %v2754_v54 = vadd.f32 %v4219_v46, %v2730_v48  ;;  %v2743_v46 = vld [vmem:[#allocation3 + $0x90] sm:$0xff] }
 0x1a2   : > { %v2230_v62 = vpop.f32.mrf.mxu0 }
 0x1a3   : > { %v5480_v3 = vpop.f32.mrf.mxu1  ;;  %2778 = vst [vmem:[#allocation3 + $0x28] sm:$0xff] %v2754_v54  ;;  %v2753_v4 = vadd.f32 %v2729_v14, %v2230_v62 }
 0x1a4   : > { %v4222_v9 = vpop.f32.mrf.mxu0 }
 0x1a5   : > { %v5482_v61 = vpop.f32.mrf.mxu1  ;;  %2777 = vst [vmem:[#allocation3 + $0x20] sm:$0xff] %v2753_v4  ;;  %v2756_v13 = vadd.f32 %v4222_v9, %v2732_v42  ;;  %v2746_v62 = vld [vmem:[#allocation3 + $0xa8] sm:$0xff]  ;;  %v2745_v42 = vld [vmem:[#allocation3 + $0xa0] sm:$0xff] }
 0x1a6   : > { %v2240_v8 = vpop.f32.mrf.mxu0 }
 0x1a7   : > { %v5484_v49 = vpop.f32.mrf.mxu1  ;;  %2780 = vst [vmem:[#allocation3 + $0x38] sm:$0xff] %v2756_v13  ;;  %v2755_v63 = vadd.f32 %v2731_v56, %v2240_v8 }
 0x1a9   : > { %v4225_v24 = vpop.f32.mrf.mxu0  ;;  %2779 = vst [vmem:[#allocation3 + $0x30] sm:$0xff] %v2755_v63  ;;  %v5486_v30 = vpop.f32.mrf.mxu1  ;;  %v2748_v63 = vld [vmem:[#allocation3 + $0xb8] sm:$0xff] }
 0x1aa   : > { %v2758_v5 = vadd.f32 %v4225_v24, %v2734_v15 }
 0x1ab   : > { %v2250_v53 = vpop.f32.mrf.mxu0  ;;  %v2450_v38 = vpop.f32.mrf.mxu1 }
 0x1ac   : > { %2782 = vst [vmem:[#allocation3 + $0x48] sm:$0xff] %v2758_v5  ;;  %v2757_v18 = vadd.f32 %v2733_v6, %v2250_v53  ;;  %v2747_v53 = vld [vmem:[#allocation3 + $0xb0] sm:$0xff] }
 0x1ad   : > { %v4296_v20 = vpop.f32.mrf.mxu1 }
 0x1ae   : > { %2781 = vst [vmem:[#allocation3 + $0x40] sm:$0xff] %v2757_v18  ;;  %v4228_v57 = vpop.f32.mrf.mxu0 }
 0x1af   : > { %v2760_v41 = vadd.f32 %v4228_v57, %v2736_v2  ;;  %v5488_v21 = vpop.f32.mrf.mxu1 }
 0x1b0   : > { %v2260_v19 = vpop.f32.mrf.mxu0 }
 0x1b1   : > { %2784 = vst [vmem:[#allocation3 + $0x58] sm:$0xff] %v2760_v41  ;;  %v2759_v47 = vadd.f32 %v2735_v16, %v2260_v19 }
 0x1b2   : > { %v4231_v1 = vpop.f32.mrf.mxu0  ;;  %v5490_v26 = vpop.f32.mrf.mxu1 }
 0x1b3   : > { %2783 = vst [vmem:[#allocation3 + $0x50] sm:$0xff] %v2759_v47  ;;  %v2762_v25 = vadd.f32 %v4231_v1, %v2738_v12 }
 0x1b4   : > { %v2270_v27 = vpop.f32.mrf.mxu0  ;;  %v5492_v33 = vpop.f32.mrf.mxu1 }
 0x1b5   : > { %2786 = vst [vmem:[#allocation3 + $0x68] sm:$0xff] %v2762_v25  ;;  %v2761_v29 = vadd.f32 %v2737_v28, %v2270_v27 }
 0x1b7   : > { %2785 = vst [vmem:[#allocation3 + $0x60] sm:$0xff] %v2761_v29  ;;  %v4234_v58 = vpop.f32.mrf.mxu0  ;;  %v5494_v60 = vpop.f32.mrf.mxu1 }
 0x1b8   : > { %v2764_v7 = vadd.f32 %v4234_v58, %v2740_v35 }
 0x1b9   : > { %v2280_v39 = vpop.f32.mrf.mxu0  ;;  %v2478_v23 = vpop.f32.mrf.mxu1 }
 0x1ba   : > { %2788 = vst [vmem:[#allocation3 + $0x78] sm:$0xff] %v2764_v7  ;;  %v2763_v22 = vadd.f32 %v2739_v11, %v2280_v39  ;;  %v2797_v7 = vld [vmem:[#allocation3 + $0x1] sm:$0xff] }
 0x1bb   : > { %v4305_v44 = vpop.f32.mrf.mxu1 }
 0x1bc   : > { %2787 = vst [vmem:[#allocation3 + $0x70] sm:$0xff] %v2763_v22  ;;  %v4237_v40 = vpop.f32.mrf.mxu0 }
 0x1bd   : > { %v2766_v45 = vadd.f32 %v4237_v40, %v2742_v10  ;;  %v5496_v51 = vpop.f32.mrf.mxu1 }
 0x1be   : > { %v2290_v34 = vpop.f32.mrf.mxu0  ;;  %v2805_v39 = vld [vmem:[#allocation3 + $0x61] sm:$0xff] }
 0x1bf   : > { %2790 = vst [vmem:[#allocation3 + $0x88] sm:$0xff] %v2766_v45  ;;  %v2765_v17 = vadd.f32 %v2741_v43, %v2290_v34 }
 0x1c0   : > { %v4240_v36 = vpop.f32.mrf.mxu0 }
 0x1c1   : > { %2789 = vst [vmem:[#allocation3 + $0x80] sm:$0xff] %v2765_v17  ;;  %v5498_v55 = vpop.f32.mrf.mxu1  ;;  %v2768_v31 = vadd.f32 %v4240_v36, %v2744_v32 }
 0x1c2   : > { %v2300_v59 = vpop.f32.mrf.mxu0 }
 0x1c3   : > { %v5500_v48 = vpop.f32.mrf.mxu1  ;;  %2792 = vst [vmem:[#allocation3 + $0x98] sm:$0xff] %v2768_v31  ;;  %v2767_v50 = vadd.f32 %v2743_v46, %v2300_v59  ;;  %v2798_v59 = vld [vmem:[#allocation3 + $0x9] sm:$0xff] }
 0x1c4   : > { %v2806_v46 = vld [vmem:[#allocation3 + $0x69] sm:$0xff] }
 0x1c5   : > { %2791 = vst [vmem:[#allocation3 + $0x90] sm:$0xff] %v2767_v50 }
 0x1c6   : > { %v4243_v54 = vpop.f32.mrf.mxu0  ;;  %v5502_v4 = vpop.f32.mrf.mxu1 }
 0x1c7   : > { %v2770_v14 = vadd.f32 %v4243_v54, %v2746_v62 }
 0x1c8   : > { %v2310_v9 = vpop.f32.mrf.mxu0  ;;  %v2506_v8 = vpop.f32.mrf.mxu1 }
 0x1c9   : > { %2794 = vst [vmem:[#allocation3 + $0xa8] sm:$0xff] %v2770_v14  ;;  %v2769_v13 = vadd.f32 %v2745_v42, %v2310_v9 }
 0x1cb   : > { %2793 = vst [vmem:[#allocation3 + $0xa0] sm:$0xff] %v2769_v13  ;;  %v4314_v24 = vpop.f32.mrf.mxu1 }
 0x1cc   : > { %v4246_v56 = vpop.f32.mrf.mxu0  ;;  %v2800_v24 = vld [vmem:[#allocation3 + $0x21] sm:$0xff] }
 0x1cd   : > { %v2772_v15 = vadd.f32 %v4246_v56, %v2748_v63  ;;  %v5505_v6 = vpop.f32.mrf.mxu1  ;;  %v2799_v63 = vld [vmem:[#allocation3 + $0x19] sm:$0xff] }
 0x1ce   : > { %v2320_v5 = vpop.f32.mrf.mxu0 }
 0x1cf   : > { %2796 = vst [vmem:[#allocation3 + $0xb8] sm:$0xff] %v2772_v15  ;;  %v2771_v18 = vadd.f32 %v2747_v53, %v2320_v5 }
 0x1d0   : > { %v4349_v38 = vpop.f32.mrf.mxu0 }
 0x1d1   : > { %2795 = vst [vmem:[#allocation3 + $0xb0] sm:$0xff] %v2771_v18  ;;  %v4367_v57 = vpop.f32.mrf.mxu1  ;;  %v2838_v19 = vrot.slane %v4349_v38, 2 }
 0x1d2   : > { %v2858_v2 = vrot.slane %v4367_v57, 2  ;;  %v2606_v20 = vpop.f32.mrf.mxu0 }
 0x1d3   : > { %v2666_v41 = vpop.f32.mrf.mxu1  ;;  %v2837_v16 = vrot.slane %v2606_v20, 2  ;;  %v2808_v20 = vld [vmem:[#allocation3 + $0x81] sm:$0xff] }
 0x1d4   : > { %v2857_v47 = vrot.slane %v2666_v41, 2  ;;  %v4352_v1 = vpop.f32.mrf.mxu0 }
 0x1d5   : > { %v4370_v12 = vpop.f32.mrf.mxu1  ;;  %v2839_v25 = vsel %vm1158_vm0, %v2837_v16, %v2838_v19  ;;  %v2842_v31 = vrot.slane %v4352_v1, 2 }
 0x1d6   : > { %v2859_v27 = vsel %vm1158_vm0, %v2857_v47, %v2858_v2  ;;  %v2893_v28 = vadd.f32 %v2839_v25, %v5476_v0  ;;  %v2616_v58 = vpop.f32.mrf.mxu0  ;;  %v2862_v45 = vrot.slane %v4370_v12, 2 }
 0x1d7   : > { %v2901_v29 = vadd.f32 %v2859_v27, %v5492_v33  ;;  %v2676_v35 = vpop.f32.mrf.mxu1  ;;  %v2840_v11 = vrot.slane %v2616_v58, 2 }
 0x1d8   : > { %v2860_v22 = vrot.slane %v2676_v35, 2  ;;  %v2909_v23 = vadd.f32 %v2893_v28, %v2797_v7  ;;  %v4355_v10 = vpop.f32.mrf.mxu0 }
 0x1d9   : > { %v2917_v40 = vadd.f32 %v2901_v29, %v2805_v39  ;;  %v4373_v44 = vpop.f32.mrf.mxu1  ;;  %v2841_v34 = vsel %vm1158_vm0, %v2838_v19, %v2840_v11  ;;  %v2845_v50 = vrot.slane %v4355_v10, 2  ;;  %v2801_v11 = vld [vmem:[#allocation3 + $0x31] sm:$0xff] }
 0x1da   : > { %v2861_v0 = vsel %vm1158_vm0, %v2858_v2, %v2860_v22  ;;  %v2865_v43 = vrot.slane %v4373_v44, 2  ;;  %2925 = vst [vmem:[#allocation3 + $0x1] sm:$0xff] %v2909_v23  ;;  %v2894_v33 = vadd.f32 %v5474_v37, %v2841_v34  ;;  %v2626_v36 = vpop.f32.mrf.mxu0  ;;  %v2807_v2 = vld [vmem:[#allocation3 + $0x79] sm:$0xff]  ;;  %v2809_v22 = vld [vmem:[#allocation3 + $0x91] sm:$0xff] }
 0x1db   : > { %2933 = vst [vmem:[#allocation3 + $0x61] sm:$0xff] %v2917_v40  ;;  %v2902_v17 = vadd.f32 %v5490_v26, %v2861_v0  ;;  %v2686_v32 = vpop.f32.mrf.mxu1  ;;  %v2843_v54 = vrot.slane %v2626_v36, 2 }
 0x1dc   : > { %v2863_v62 = vrot.slane %v2686_v32, 2  ;;  %v2910_v14 = vadd.f32 %v2894_v33, %v2798_v59  ;;  %v4358_v42 = vpop.f32.mrf.mxu0 }
 0x1dd   : > { %v2918_v9 = vadd.f32 %v2902_v17, %v2806_v46  ;;  %v4376_v13 = vpop.f32.mrf.mxu1  ;;  %v2844_v8 = vsel %vm1158_vm0, %v2842_v31, %v2843_v54  ;;  %v2846_v56 = vsel %vm1158_vm0, %v2843_v54, %v2845_v50  ;;  %v2848_v41 = vrot.slane %v4358_v42, 2  ;;  %v2802_v50 = vld [vmem:[#allocation3 + $0x39] sm:$0xff] }
 0x1de   : > { %v2864_v37 = vsel %vm1158_vm0, %v2862_v45, %v2863_v62  ;;  %v2866_v26 = vsel %vm1158_vm0, %v2863_v62, %v2865_v43  ;;  %2926 = vst [vmem:[#allocation3 + $0x9] sm:$0xff] %v2910_v14  ;;  %v2895_v15 = vadd.f32 %v5478_v52, %v2844_v8  ;;  %v2896_v5 = vadd.f32 %v2846_v56, %v5480_v3  ;;  %v2636_v38 = vpop.f32.mrf.mxu0 }
 0x1df   : > { %2934 = vst [vmem:[#allocation3 + $0x69] sm:$0xff] %v2918_v9  ;;  %v2903_v53 = vadd.f32 %v5494_v60, %v2864_v37  ;;  %v2904_v18 = vadd.f32 %v2866_v26, %v5496_v51  ;;  %v2696_v57 = vpop.f32.mrf.mxu1  ;;  %v2868_v19 = vrot.slane %v4376_v13, 2  ;;  %v2847_v52 = vrot.slane %v2636_v38, 2  ;;  %v2810_v13 = vld [vmem:[#allocation3 + $0x99] sm:$0xff] }
 0x1e0   : > { %v2867_v16 = vrot.slane %v2696_v57, 2  ;;  %v2911_v3 = vadd.f32 %v2895_v15, %v2799_v63  ;;  %v2912_v47 = vadd.f32 %v2896_v5, %v2800_v24  ;;  %v4361_v51 = vpop.f32.mrf.mxu0 }
 0x1e1   : > { %v2919_v60 = vadd.f32 %v2903_v53, %v2807_v2  ;;  %v2920_v1 = vadd.f32 %v2904_v18, %v2808_v20  ;;  %v5533_v12 = vpop.f32.mrf.mxu1  ;;  %v5535_v25 = vld [vmem:[#allocation3] sm:$0xff]  ;;  %v2849_v28 = vsel %vm1158_vm0, %v2847_v52, %v2848_v41  ;;  %v2852_v36 = vrot.slane %v4361_v51, 2  ;;  %v2803_v20 = vld [vmem:[#allocation3 + $0x49] sm:$0xff]  ;;  %v2804_v52 = vld [vmem:[#allocation3 + $0x51] sm:$0xff] }
 0x1e2   : > { %v5537_v27 = vld [vmem:[#allocation3 + $0x60] sm:$0xff]  ;;  %v2869_v29 = vsel %vm1158_vm0, %v2867_v16, %v2868_v19  ;;  %2965 = vst [vmem:[%s5531_s9] sm:$0xff] %v5535_v25  ;;  %2927 = vst [vmem:[#allocation3 + $0x19] sm:$0xff] %v2911_v3  ;;  %v2897_v58 = vadd.f32 %v2849_v28, %v5484_v49  ;;  %v2646_v7 = vpop.f32.mrf.mxu0  ;;  %v2872_v32 = vrot.slane %v5533_v12, 2  ;;  %v2811_v3 = vld [vmem:[#allocation3 + $0xa9] sm:$0xff] }
 0x1e3   : > { %2977 = vst [vmem:[%s5531_s9 + $0x60] sm:$0xff] %v5537_v27  ;;  %2928 = vst [vmem:[#allocation3 + $0x21] sm:$0xff] %v2912_v47  ;;  %v2905_v35 = vadd.f32 %v2869_v29, %v5500_v48  ;;  %v2706_v39 = vpop.f32.mrf.mxu1  ;;  %v2850_v23 = vrot.slane %v2646_v7, 2 }
 0x1e4   : > { %2935 = vst [vmem:[#allocation3 + $0x79] sm:$0xff] %v2919_v60  ;;  %2936 = vst [vmem:[#allocation3 + $0x81] sm:$0xff] %v2920_v1  ;;  %v2870_v40 = vrot.slane %v2706_v39, 2  ;;  %v2913_v10 = vadd.f32 %v2897_v58, %v2801_v11  ;;  %v4364_v45 = vpop.f32.mrf.mxu0  ;;  %v2812_v60 = vld [vmem:[#allocation3 + $0xb1] sm:$0xff] }
 0x1e5   : > { %v2921_v44 = vadd.f32 %v2905_v35, %v2809_v22  ;;  %v4382_v34 = vpop.f32.mrf.mxu1  ;;  %v5547_v0 = vld [vmem:[#allocation3 + $0x8] sm:$0xff]  ;;  %v5549_v43 = vld [vmem:[#allocation3 + $0x10] sm:$0xff]  ;;  %v2851_v48 = vsel %vm1158_vm0, %v2848_v41, %v2850_v23  ;;  %v2855_v62 = vrot.slane %v4364_v45, 2 }
 0x1e6   : > { %v5551_v49 = vld [vmem:[#allocation3 + $0x68] sm:$0xff]  ;;  %v2871_v33 = vsel %vm1158_vm0, %v2868_v19, %v2870_v40  ;;  %2966 = vst [vmem:[%s5531_s9 + $0x8] sm:$0xff] %v5547_v0  ;;  %2967 = vst [vmem:[%s5531_s9 + $0x10] sm:$0xff] %v5549_v43  ;;  %v5559_v17 = vld [vmem:[#allocation3 + $0x70] sm:$0xff]  ;;  %v2898_v31 = vadd.f32 %v5482_v61, %v2851_v48  ;;  %v2656_v59 = vpop.f32.mrf.mxu0  ;;  %v2875_v26 = vrot.slane %v4382_v34, 2  ;;  %v3019_v7 = vmul.f32 %v5547_v0, %v5547_v0 }
 0x1e7   : > { %2978 = vst [vmem:[%s5531_s9 + $0x68] sm:$0xff] %v5551_v49  ;;  %2929 = vst [vmem:[#allocation3 + $0x31] sm:$0xff] %v2913_v10  ;;  %v2716_v46 = vpop.f32.mrf.mxu1  ;;  %v2906_v54 = vadd.f32 %v5498_v55, %v2871_v33  ;;  %v2853_v14 = vrot.slane %v2656_v59, 2  ;;  %v3020_v11 = vmul.f32 %v5549_v43, %v5549_v43  ;;  %v3030_v10 = vmul.f32 %v5537_v27, %v5537_v27 }
 0x1e8   : > { %2937 = vst [vmem:[#allocation3 + $0x91] sm:$0xff] %v2921_v44  ;;  %2979 = vst [vmem:[%s5531_s9 + $0x70] sm:$0xff] %v5559_v17  ;;  %v2873_v9 = vrot.slane %v2716_v46, 2  ;;  %v2914_v42 = vadd.f32 %v2898_v31, %v2802_v50  ;;  %v3031_v48 = vmul.f32 %v5551_v49, %v5551_v49 }
 0x1e9   : > { %v2944_v8 = vld [vmem:[#allocation3 + $0x18] sm:$0xff]  ;;  %v2922_v37 = vadd.f32 %v2906_v54, %v2810_v13  ;;  %v2854_v63 = vsel %vm1158_vm0, %v2852_v36, %v2853_v14  ;;  %v2856_v24 = vsel %vm1158_vm0, %v2853_v14, %v2855_v62 }
 0x1ea   : > { %v2945_v56 = vld [vmem:[#allocation3 + $0x20] sm:$0xff]  ;;  %v2946_v61 = vld [vmem:[#allocation3 + $0x28] sm:$0xff]  ;;  %2968 = vst [vmem:[%s5531_s9 + $0x18] sm:$0xff] %v2944_v8  ;;  %2930 = vst [vmem:[#allocation3 + $0x39] sm:$0xff] %v2914_v42  ;;  %v2874_v53 = vsel %vm1158_vm0, %v2872_v32, %v2873_v9  ;;  %v2899_v18 = vadd.f32 %v5486_v30, %v2854_v63  ;;  %v2900_v38 = vadd.f32 %v2856_v24, %v5488_v21 }
 0x1eb   : > { %2969 = vst [vmem:[%s5531_s9 + $0x20] sm:$0xff] %v2945_v56  ;;  %2970 = vst [vmem:[%s5531_s9 + $0x28] sm:$0xff] %v2946_v61  ;;  %v5573_v55 = vld [vmem:[#allocation3 + $0x78] sm:$0xff]  ;;  %v5575_v15 = vld [vmem:[#allocation3 + $0x80] sm:$0xff]  ;;  %v2876_v41 = vsel %vm1158_vm0, %v2873_v9, %v2875_v26  ;;  %v2907_v19 = vadd.f32 %v5502_v4, %v2874_v53  ;;  %v3021_v1 = vmul.f32 %v2944_v8, %v2944_v8 }
 0x1ec   : > { %v5577_v5 = vld [vmem:[#allocation3 + $0x88] sm:$0xff]  ;;  %2980 = vst [vmem:[%s5531_s9 + $0x78] sm:$0xff] %v5573_v55  ;;  %2981 = vst [vmem:[%s5531_s9 + $0x80] sm:$0xff] %v5575_v15  ;;  %v2915_v16 = vadd.f32 %v2899_v18, %v2803_v20  ;;  %v2916_v47 = vadd.f32 %v2900_v38, %v2804_v52  ;;  %v2908_v30 = vadd.f32 %v2876_v41, %v5505_v6 }
 0x1ed   : > { %2982 = vst [vmem:[%s5531_s9 + $0x88] sm:$0xff] %v5577_v5  ;;  %2938 = vst [vmem:[#allocation3 + $0x99] sm:$0xff] %v2922_v37  ;;  %v2923_v21 = vadd.f32 %v2907_v19, %v2811_v3  ;;  %v3022_v28 = vmul.f32 %v2945_v56, %v2945_v56  ;;  %v3023_v29 = vmul.f32 %v2946_v61, %v2946_v61 }
 0x1ee   : > { %v2947_v57 = vld [vmem:[#allocation3 + $0x30] sm:$0xff]  ;;  %2931 = vst [vmem:[#allocation3 + $0x49] sm:$0xff] %v2915_v16  ;;  %2932 = vst [vmem:[#allocation3 + $0x51] sm:$0xff] %v2916_v47  ;;  %v2924_v4 = vadd.f32 %v2908_v30, %v2812_v60  ;;  %v3018_v6 = vmul.f32 %v5535_v25, %v5535_v25  ;;  %v2989_v22 = vadd.f32 %v2944_v8, %v5535_v25 }
 0x1ef   : > { %v5588_v2 = vld [vmem:[#allocation3 + $0x90] sm:$0xff]  ;;  %2971 = vst [vmem:[%s5531_s9 + $0x30] sm:$0xff] %v2947_v57  ;;  %2939 = vst [vmem:[#allocation3 + $0xa9] sm:$0xff] %v2923_v21  ;;  %v3024_v39 = vmul.f32 %v2947_v57, %v2947_v57  ;;  %v2996_v44 = vadd.f32 %v2945_v56, %v5547_v0  ;;  %v3003_v45 = vadd.f32 %v2946_v61, %v5549_v43 }
 0x1f0   : > { %2983 = vst [vmem:[%s5531_s9 + $0x90] sm:$0xff] %v5588_v2  ;;  %2940 = vst [vmem:[#allocation3 + $0xb1] sm:$0xff] %v2924_v4  ;;  %v3042_v34 = vadd.f32 %v3021_v1, %v3018_v6  ;;  %v3049_v33 = vadd.f32 %v3022_v28, %v3019_v7  ;;  %v3056_v36 = vadd.f32 %v3023_v29, %v3020_v11 }
 0x1f1   : > { %v2948_v51 = vld [vmem:[#allocation3 + $0x38] sm:$0xff]  ;;  %v2949_v12 = vld [vmem:[#allocation3 + $0x40] sm:$0xff]  ;;  %v2990_v32 = vadd.f32 %v2989_v22, %v2947_v57  ;;  %v3032_v25 = vmul.f32 %v5559_v17, %v5559_v17  ;;  %v3033_v37 = vmul.f32 %v5573_v55, %v5573_v55  ;;  %v3034_v26 = vmul.f32 %v5575_v15, %v5575_v15 }
 0x1f2   : > { %2972 = vst [vmem:[%s5531_s9 + $0x38] sm:$0xff] %v2948_v51  ;;  %2973 = vst [vmem:[%s5531_s9 + $0x40] sm:$0xff] %v2949_v12  ;;  %v3025_v23 = vmul.f32 %v2948_v51, %v2948_v51  ;;  %v3026_v40 = vmul.f32 %v2949_v12, %v2949_v12  ;;  %v3043_v31 = vadd.f32 %v3042_v34, %v3024_v39 }
 0x1f3   : > { %v2997_v59 = vadd.f32 %v2996_v44, %v2948_v51  ;;  %v3004_v46 = vadd.f32 %v3003_v45, %v2949_v12  ;;  %v3035_v19 = vmul.f32 %v5577_v5, %v5577_v5  ;;  %v3036_v52 = vmul.f32 %v5588_v2, %v5588_v2 }
 0x1f4   : > { %v5598_v58 = vld [vmem:[#allocation3 + $0x98] sm:$0xff]  ;;  %v5600_v35 = vld [vmem:[#allocation3 + $0xa0] sm:$0xff]  ;;  %v3050_v50 = vadd.f32 %v3049_v33, %v3025_v23  ;;  %v3057_v54 = vadd.f32 %v3056_v36, %v3026_v40 }
 0x1f5   : > { %2984 = vst [vmem:[%s5531_s9 + $0x98] sm:$0xff] %v5598_v58  ;;  %2985 = vst [vmem:[%s5531_s9 + $0xa0] sm:$0xff] %v5600_v35  ;;  %v2950_v0 = vld [vmem:[#allocation3 + $0x48] sm:$0xff]  ;;  %v2951_v43 = vld [vmem:[#allocation3 + $0x50] sm:$0xff]  ;;  %v3038_v21 = vmul.f32 %v5600_v35, %v5600_v35 }
 0x1f6   : > { %v2952_v62 = vld [vmem:[#allocation3 + $0x58] sm:$0xff]  ;;  %2974 = vst [vmem:[%s5531_s9 + $0x48] sm:$0xff] %v2950_v0  ;;  %v2991_v14 = vadd.f32 %v2990_v32, %v2950_v0  ;;  %v3027_v9 = vmul.f32 %v2950_v0, %v2950_v0  ;;  %v2962_v42 = vld [vmem:[#allocation3 + $0xa8] sm:$0xff]  ;;  %2975 = vst [vmem:[%s5531_s9 + $0x50] sm:$0xff] %v2951_v43  ;;  %v2998_v13 = vadd.f32 %v2997_v59, %v2951_v43 }
 0x1f7   : > { %2976 = vst [vmem:[%s5531_s9 + $0x58] sm:$0xff] %v2952_v62  ;;  %v3005_v8 = vadd.f32 %v3004_v46, %v2952_v62  ;;  %v3028_v56 = vmul.f32 %v2951_v43, %v2951_v43  ;;  %v3029_v61 = vmul.f32 %v2952_v62, %v2952_v62  ;;  %2986 = vst [vmem:[%s5531_s9 + $0xa8] sm:$0xff] %v2962_v42  ;;  %v2963_v53 = vld [vmem:[#allocation3 + $0xb0] sm:$0xff]  ;;  %v2964_v18 = vld [vmem:[#allocation3 + $0xb8] sm:$0xff] }
 0x1f8   : > { %v2992_v63 = vadd.f32 %v2991_v14, %v5537_v27  ;;  %v3044_v24 = vadd.f32 %v3043_v31, %v3027_v9  ;;  %v2999_v38 = vadd.f32 %v2998_v13, %v5551_v49  ;;  %2987 = vst [vmem:[%s5531_s9 + $0xb0] sm:$0xff] %v2963_v53  ;;  %2988 = vst [vmem:[%s5531_s9 + $0xb8] sm:$0xff] %v2964_v18 }
 0x1f9   : > { %v3006_v57 = vadd.f32 %v3005_v8, %v5559_v17  ;;  %v3051_v20 = vadd.f32 %v3050_v50, %v3028_v56  ;;  %v3058_v41 = vadd.f32 %v3057_v54, %v3029_v61  ;;  %v3037_v17 = vmul.f32 %v5598_v58, %v5598_v58 }
 0x1fa   : > { %v3045_v16 = vadd.f32 %v3044_v24, %v3030_v10  ;;  %v2993_v27 = vadd.f32 %v2992_v63, %v5573_v55  ;;  %v3000_v30 = vadd.f32 %v2999_v38, %v5575_v15  ;;  %v3039_v15 = vmul.f32 %v2962_v42, %v2962_v42 }
 0x1fb   : > { %v3052_v3 = vadd.f32 %v3051_v20, %v3031_v48  ;;  %v3059_v47 = vadd.f32 %v3058_v41, %v3032_v25  ;;  %v3007_v49 = vadd.f32 %v3006_v57, %v5577_v5  ;;  %v3040_v6 = vmul.f32 %v2963_v53, %v2963_v53 }
 0x1fc   : > { %v2994_v60 = vadd.f32 %v2993_v27, %v5588_v2  ;;  %v3046_v1 = vadd.f32 %v3045_v16, %v3033_v37  ;;  %v3001_v51 = vadd.f32 %v3000_v30, %v5598_v58  ;;  %v3041_v23 = vmul.f32 %v2964_v18, %v2964_v18 }
 0x1fd   : > { %v3008_v55 = vadd.f32 %v3007_v49, %v5600_v35  ;;  %v3053_v12 = vadd.f32 %v3052_v3, %v3034_v26  ;;  %v3060_v4 = vadd.f32 %v3059_v47, %v3035_v19 }
 0x1fe   : > { %v2995_v28 = vadd.f32 %v2994_v60, %v2962_v42  ;;  %v3047_v29 = vadd.f32 %v3046_v1, %v3036_v52  ;;  %v3002_v5 = vadd.f32 %v3001_v51, %v2963_v53 }
 0x1ff   : > { %v3054_v7 = vadd.f32 %v3053_v12, %v3037_v17  ;;  %v3061_v39 = vadd.f32 %v3060_v4, %v3038_v21  ;;  %v3009_v22 = vadd.f32 %v3008_v55, %v2964_v18 }
 0x200   : > { %v3048_v11 = vadd.f32 %v3047_v29, %v3039_v15  ;;  %v3010_v2 = vadd.f32 %v3002_v5, %v2995_v28 }
 0x201   : > { %v3055_v40 = vadd.f32 %v3054_v7, %v3040_v6  ;;  %v3062_v10 = vadd.f32 %v3061_v39, %v3041_v23 }
 0x202   : > { %v3011_v58 = vadd.f32 %v3010_v2, %v3009_v22 }
 0x203   : > { %v3063_v35 = vadd.f32 %v3055_v40, %v3048_v11 }
 0x204   : > { %v3012_v44 = vrot.slane %v3011_v58, 4 }
 0x205   : > { %v3064_v45 = vadd.f32 %v3063_v35, %v3062_v10 }
 0x206   : > { %v3013_v34 = vadd.f32 %v3012_v44, %v3011_v58 }
 0x207   : > { %v3065_v48 = vrot.slane %v3064_v45, 4 }
 0x208   : > { %v3014_v33 = vrot.slane %v3013_v34, 2 }
 0x209   : > { %v3066_v36 = vadd.f32 %v3065_v48, %v3064_v45 }
 0x20a   : > { %v3015_v32 = vadd.f32 %v3014_v33, %v3013_v34 }
 0x20b   : > { %v3067_v25 = vrot.slane %v3066_v36, 2 }
 0x20c   : > { %v3016_v31 = vrot.slane %v3015_v32, 1 }
 0x20d   : > { %v3068_v59 = vadd.f32 %v3067_v25, %v3066_v36 }
 0x20e   : > { %v3017_v0 = vadd.f32 %v3016_v31, %v3015_v32 }
 0x20f   : > { %v3069_v46 = vrot.slane %v3068_v59, 1 }
 0x211   : > { %v3070_v50 = vadd.f32 %v3069_v46, %v3068_v59 }
 0x213   : > { %v3072_v54 = vsel %vm3071_vm1, %v3017_v0, %v3070_v50 }
 0x214   : > { %3073 = vst [vmem:[%s410_s12] sm:$0x3] %v3072_v54 }
 0x215 PF: > { %s16_s22 = sadd.s32 1, %s4517_s22   ;;  %s5675_s18 = smov %s4509_s20 }
 0x216   : > { %p13_p11 = scmp.ge.s32.totalorder %s16_s22, 6   ;;  %s5676_s19 = smov %s4513_s21 }
 0x217   : > { %s5677_s20 = smov %s5680_s23  ;;  %s5678_s21 = smov %s5684_s24 }
 0x218   :  { %15 = sbr.rel (!%p13_p11) target bundleno = 3 (0x3), region = 96 }

// kernel: vgg_block.4
= control target key start
LH: loop header
LB: loop body
LE: loop exit
PB: predicated region body
PF: predicated region fallthrough
CT: control target
= control target key end

     0   :  { %s4778_s21 = smov 0   ;;  %s4780_s22 = smov 0   ;;  %s5983_s0 = inlined_call_operand.vmem [shape: f32[2,16,24,128], index: 0, kind: input, shape index: {}, may-alias: {0,1,2}]   ;;  %s5984_s1 = inlined_call_operand.vmem [shape: f32[2,16,24,128], index: 1, kind: input, shape index: {}, may-alias: {0,1,2}]   ;;  %s5985_s2 = inlined_call_operand.vmem [shape: f32[2,16,24,128], index: 2, kind: input, shape index: {}, may-alias: {0,1,2}]   ;;  %s5986_s3 = inlined_call_operand.vmem [shape: f32[9,128,128], index: 3, kind: input, shape index: {}]   ;;  %s5987_s4 = inlined_call_operand.vmem [shape: f32[2,128], index: 4, kind: input, shape index: {}]   ;;  %s5988_s5 = inlined_call_operand.vmem [shape: f32[2,16,24,128], index: 5, kind: output, shape index: {0}]   ;;  %s5989_s6 = inlined_call_operand.vmem [shape: f32[2,2,2,128], index: 6, kind: output, shape index: {1}]  }
   0x1   :  { %s4782_s23 = smov 0   ;;  %s4784_s24 = smov 0  }
   0x2   :  { %s4786_s25 = smov 0  }
   0x3 LB: > { %s26_s26 = sadd.s32 1, %s4730_s23  ;;  %s29_s27 = sadd.s32 1, %s4734_s24  ;;  %s4738_s25 = sphi %s4786_s25, %s17_s25   ;;  %s4734_s24 = sphi %s4784_s24, %s5995_s24   ;;  %s4730_s23 = sphi %s4782_s23, %s5994_s23   ;;  %s4726_s22 = sphi %s4780_s22, %s5993_s22   ;;  %s4722_s21 = sphi %s4778_s21, %s5992_s21  }
   0x4   : > { %p27_p0 = scmp.ge.s32.totalorder %s26_s26, 2  ;;  %p3473_p1 = scmp.ge.s32.totalorder %s4738_s25, 1 }
   0x5   : > { %p303_p2 = scmp.lt.s32.totalorder %s4738_s25, 5 }
   0x6   : > { %s5997_s26 = smov (%p27_p0, %s26_s26), 0  ;;  %s5999_s27 = smov (!%p27_p0, %s29_s27), %s4734_s24 }
   0x7   : > { %p304_p3 = pnand %p3473_p1, %p303_p2  ;;  %p31_p4 = scmp.ge.s32.totalorder %s5999_s27, 2 }
   0x8   : > { %s4811_s28 = sshll.u32 (!%p304_p3), %s4722_s21, 3  ;;  %p381_p5 = scmp.lt.s32.totalorder (!%p304_p3), %s4726_s22, 1 }
   0x9   : > { %s6001_s27 = smov (%p31_p4, %s5999_s27), 0  ;;  %307 = sbr.rel (%p304_p3) target bundleno = 617 (0x269), region = 40 }
   0xa   : > { %s3475_s29 = sadd.s32 (!%p304_p3), 4294967295, %s4811_s28  ;;  %p397_p6 = scmp.lt.s32.totalorder (!%p304_p3), %s4811_s28, 15 }
   0xb   : > { %p379_p7 = scmp.gt.s32.totalorder (!%p304_p3), %s3475_s29, 0  ;;  %p3476_p8 = scmp.lt.s32.totalorder (!%p304_p3), %s3475_s29, 15 }
   0xc   : > { %s406_s7 = sadd.s32 (!%p304_p3), 8, %s4811_s28  ;;  %p435_p10 = scmp.lt.s32.totalorder (!%p304_p3), %s4722_s21, 1 }
   0xd   : > { %p4822_p9 = scmp.lt.s32.totalorder (!%p304_p3), %s406_s7, 15  ;;  %p3497_p11 = scmp.le.s32.totalorder (!%p304_p3), %s4722_s21, 0 }
   0xe   : > { %v443_v0 = vlaneseq  ;;  %s6003_s22 = smov (!%p381_p5, %s4726_s22), 1  ;;  %s6005_s29 = smov (!%p379_p7, %s3475_s29), 0  ;;  %v4838_v3 = vld [vmem:[%s5987_s4] ss:$0 sm:$0xff]  ;;  %v4853_v4 = vld [vmem:[%s5987_s4 + $0x1] ss:$0 sm:$0xff] }
   0xf   : > { %s4818_s30 = smul.u32 48, %s6003_s22  ;;  %s6007_s29 = smov (!%p3476_p8, %s6005_s29), 15  ;;  %v4740_v8 = vmov 0.0  }
  0x10   : > { %v444_v1 = vshrl.u32 %v443_v0, 7  ;;  %s6009_s28 = smov (!%p397_p6, %s4811_s28), 15  ;;  %s4637_s8 = smul.u32 3, %s6007_s29 }
  0x11   : > { %s4639_s10 = smul.u32 3, %s6009_s28  ;;  %s6011_s7 = smov (!%p4822_p9, %s406_s7), 15 }
  0x12   : > { %v446_v2 = vadd.s32 16, %v444_v1  ;;  %s387_s11 = sadd.s32 %s4818_s30, %s4637_s8  ;;  %vm447_vm0 = vcmp.ge.s32.totalorder %v444_v1, 1  ;;  %s6013_s7 = smov (!%p4822_p9, %s6011_s7), 15 }
  0x13   : > { %s3481_s13 = sshll.u32 %s387_s11, 3  ;;  %s401_s14 = sadd.s32 %s4639_s10, %s4818_s30  ;;  %v4863_v9 = vsel %vm447_vm0, 1.0, %v4740_v8 }
  0x14   : > { %s4833_s17 = scalar_lea.vmem %s5983_s0, %s3481_s13  ;;  %s3483_s18 = sshll.u32 %s401_s14, 3  ;;  %vm452_vm1 = vcmp.le.s32.totalorder %v446_v2, 16 }
  0x15   : > { %s4843_s8 = scalar_lea.vmem %s5984_s1, %s3483_s18  ;;  %s4848_s10 = scalar_lea.vmem %s5988_s5, %s3483_s18  ;;  %v4873_v16 = vsel %vm452_vm1, 1.0, %v4740_v8 }
  0x16   : > { %v462_v5 = vld [vmem:[%s4843_s8] sm:$0xff]  ;;  %v463_v6 = vld [vmem:[%s4843_s8 + $0x8] sm:$0xff]  ;;  %v464_v7 = vld [vmem:[%s4843_s8 + $0x10] sm:$0xff]  ;;  %s436_s12 = scalar_select %p435_p10, %s4722_s21, 1 }
  0x17   : > { %v490_v10 = vmul.f32 %v4838_v3, %v462_v5  ;;  %v491_v11 = vmul.f32 %v4838_v3, %v463_v6  ;;  %v492_v12 = vmul.f32 %v4838_v3, %v464_v7  ;;  %v465_v13 = vld [vmem:[%s4843_s8 + $0x18] sm:$0xff]  ;;  %v466_v14 = vld [vmem:[%s4843_s8 + $0x20] sm:$0xff]  ;;  %v467_v15 = vld [vmem:[%s4843_s8 + $0x28] sm:$0xff]  ;;  %s5991_s15 = sshll.u32 %s6003_s22, 1  ;;  %s4640_s9 = smul.u32 3, %s6013_s7 }
  0x18   : > { %v493_v17 = vmul.f32 %v4838_v3, %v465_v13  ;;  %v494_v18 = vmul.f32 %v4838_v3, %v466_v14  ;;  %v495_v19 = vmul.f32 %v4838_v3, %v467_v15  ;;  %v468_v20 = vld [vmem:[%s4843_s8 + $0x30] sm:$0xff]  ;;  %v469_v21 = vld [vmem:[%s4843_s8 + $0x38] sm:$0xff]  ;;  %s438_s16 = sadd.s32 %s5991_s15, %s436_s12  ;;  %v470_v30 = vld [vmem:[%s4843_s8 + $0x40] sm:$0xff] }
  0x19   : > { %v518_v22 = vadd.f32 %v4853_v4, %v490_v10  ;;  %v519_v23 = vadd.f32 %v4853_v4, %v491_v11  ;;  %v520_v24 = vadd.f32 %v4853_v4, %v492_v12  ;;  %v496_v25 = vmul.f32 %v4838_v3, %v468_v20  ;;  %s3492_s18 = sshll.u32 %s438_s16, 1  ;;  %v471_v35 = vld [vmem:[%s4843_s8 + $0x48] sm:$0xff]  ;;  %s415_s7 = sadd.s32 %s4640_s9, %s4818_s30  ;;  %v472_v40 = vld [vmem:[%s4843_s8 + $0x50] sm:$0xff]  ;;  %v473_v41 = vld [vmem:[%s4843_s8 + $0x58] sm:$0xff] }
  0x1a   : > { %v521_v26 = vadd.f32 %v4853_v4, %v493_v17  ;;  %v522_v27 = vadd.f32 %v4853_v4, %v494_v18  ;;  %v523_v28 = vadd.f32 %v4853_v4, %v495_v19  ;;  %v497_v29 = vmul.f32 %v4838_v3, %v469_v21  ;;  %s4894_s20 = scalar_lea.vmem %s5989_s6, %s3492_s18  ;;  %s3488_s28 = sshll.u32 %s415_s7, 3  ;;  %v474_v46 = vld [vmem:[%s4843_s8 + $0x60] sm:$0xff]  ;;  %v475_v47 = vld [vmem:[%s4843_s8 + $0x68] sm:$0xff]  ;;  %v476_v48 = vld [vmem:[%s4843_s8 + $0x70] sm:$0xff] }
  0x1b   : > { %v542_v31 = vmax.f32 %v518_v22, 0.0  ;;  %v543_v32 = vmax.f32 %v519_v23, 0.0  ;;  %v544_v33 = vmax.f32 %v520_v24, 0.0  ;;  %v524_v34 = vadd.f32 %v4853_v4, %v496_v25  ;;  %s4911_s11 = scalar_lea.vmem %s5985_s2, %s3488_s28  ;;  %v477_v53 = vld [vmem:[%s4843_s8 + $0x78] sm:$0xff]  ;;  %v478_v8 = vld [vmem:[%s4843_s8 + $0x80] sm:$0xff]  ;;  %v479_v10 = vld [vmem:[%s4843_s8 + $0x88] sm:$0xff] }
  0x1c   : > { %v545_v36 = vmax.f32 %v521_v26, 0.0  ;;  %v546_v37 = vmax.f32 %v522_v27, 0.0  ;;  %v547_v38 = vmax.f32 %v523_v28, 0.0  ;;  %v525_v39 = vadd.f32 %v4853_v4, %v497_v29  ;;  %v480_v15 = vld [vmem:[%s4843_s8 + $0x90] sm:$0xff]  ;;  %v481_v17 = vld [vmem:[%s4843_s8 + $0x98] sm:$0xff]  ;;  %v482_v22 = vld [vmem:[%s4843_s8 + $0xa0] sm:$0xff] }
  0x1d   : > { %v566_v42 = vmul.f32 %v4863_v9, %v542_v31  ;;  %592 = vst [vmem:[#allocation2 + $0x18] sm:$0xff] %v543_v32  ;;  %v568_v43 = vmul.f32 %v4873_v16, %v544_v33  ;;  %v548_v44 = vmax.f32 %v524_v34, 0.0  ;;  %v498_v45 = vmul.f32 %v4838_v3, %v470_v30  ;;  %v483_v27 = vld [vmem:[%s4843_s8 + $0xa8] sm:$0xff]  ;;  %v484_v28 = vld [vmem:[%s4843_s8 + $0xb0] sm:$0xff]  ;;  %v485_v33 = vld [vmem:[%s4843_s8 + $0xb8] sm:$0xff] }
  0x1e   : > { %v569_v49 = vmul.f32 %v4863_v9, %v545_v36  ;;  %595 = vst [vmem:[#allocation2 + $0x68] sm:$0xff] %v546_v37  ;;  %v571_v50 = vmul.f32 %v4873_v16, %v547_v38  ;;  %v549_v51 = vmax.f32 %v525_v39, 0.0  ;;  %v499_v52 = vmul.f32 %v4838_v3, %v471_v35 }
  0x1f   : > { %591 = vst [vmem:[#allocation2 + $0xc8] sm:$0xff] %v566_v42  ;;  %593 = vst [vmem:[#allocation2 + $0xd8] sm:$0xff] %v568_v43  ;;  %v572_v54 = vmul.f32 %v4863_v9, %v548_v44  ;;  %v526_v55 = vadd.f32 %v4853_v4, %v498_v45  ;;  %v500_v56 = vmul.f32 %v4838_v3, %v472_v40 }
  0x20   : > { %v501_v57 = vmul.f32 %v4838_v3, %v473_v41  ;;  %594 = vst [vmem:[#allocation2 + $0x30] sm:$0xff] %v569_v49  ;;  %596 = vst [vmem:[#allocation2 + $0x80] sm:$0xff] %v571_v50  ;;  %v527_v58 = vadd.f32 %v4853_v4, %v499_v52  ;;  %v502_v59 = vmul.f32 %v4838_v3, %v474_v46 }
  0x21   : > { %598 = vst [vmem:[#allocation2 + $0x60] sm:$0xff] %v549_v51  ;;  %v503_v60 = vmul.f32 %v4838_v3, %v475_v47  ;;  %v504_v61 = vmul.f32 %v4838_v3, %v476_v48  ;;  %597 = vst [vmem:[#allocation2 + $0x48] sm:$0xff] %v572_v54  ;;  %v550_v62 = vmax.f32 %v526_v55, 0.0  ;;  %v528_v63 = vadd.f32 %v4853_v4, %v500_v56 }
  0x22   : > { %v529_v0 = vadd.f32 %v4853_v4, %v501_v57  ;;  %v505_v1 = vmul.f32 %v4838_v3, %v477_v53  ;;  %v551_v2 = vmax.f32 %v527_v58, 0.0  ;;  %v530_v5 = vadd.f32 %v4853_v4, %v502_v59 }
  0x23   : > { %v531_v6 = vadd.f32 %v4853_v4, %v503_v60  ;;  %v532_v7 = vadd.f32 %v4853_v4, %v504_v61  ;;  %v574_v11 = vmul.f32 %v4873_v16, %v550_v62  ;;  %v552_v12 = vmax.f32 %v528_v63, 0.0 }
  0x24   : > { %v553_v13 = vmax.f32 %v529_v0, 0.0  ;;  %v533_v14 = vadd.f32 %v4853_v4, %v505_v1  ;;  %v575_v18 = vmul.f32 %v4863_v9, %v551_v2  ;;  %v554_v19 = vmax.f32 %v530_v5, 0.0 }
  0x25   : > { %v555_v20 = vmax.f32 %v531_v6, 0.0  ;;  %v556_v21 = vmax.f32 %v532_v7, 0.0  ;;  %599 = vst [vmem:[#allocation2 + $0x98] sm:$0xff] %v574_v11  ;;  %601 = vst [vmem:[#allocation2 + $0xe8] sm:$0xff] %v552_v12  ;;  %v506_v25 = vmul.f32 %v4838_v3, %v478_v8  ;;  %v507_v26 = vmul.f32 %v4838_v3, %v479_v10 }
  0x26   : > { %v577_v23 = vmul.f32 %v4873_v16, %v553_v13  ;;  %v557_v24 = vmax.f32 %v533_v14, 0.0  ;;  %600 = vst [vmem:[#allocation2 + $0xa0] sm:$0xff] %v575_v18  ;;  %v578_v29 = vmul.f32 %v4863_v9, %v554_v19  ;;  %v508_v31 = vmul.f32 %v4838_v3, %v480_v15 }
  0x27   : > { %604 = vst [vmem:[#allocation2 + $0xc0] sm:$0xff] %v555_v20  ;;  %v580_v30 = vmul.f32 %v4873_v16, %v556_v21  ;;  %v509_v32 = vmul.f32 %v4838_v3, %v481_v17  ;;  %v534_v35 = vadd.f32 %v4853_v4, %v506_v25  ;;  %v535_v36 = vadd.f32 %v4853_v4, %v507_v26 }
  0x28   : > { %602 = vst [vmem:[#allocation2 + $0xd0] sm:$0xff] %v577_v23  ;;  %v581_v34 = vmul.f32 %v4863_v9, %v557_v24  ;;  %v510_v37 = vmul.f32 %v4838_v3, %v482_v22  ;;  %603 = vst [vmem:[#allocation2 + $0x78] sm:$0xff] %v578_v29  ;;  %v536_v38 = vadd.f32 %v4853_v4, %v508_v31 }
  0x29   : > { %605 = vst [vmem:[#allocation2 + $0x88] sm:$0xff] %v580_v30  ;;  %v537_v39 = vadd.f32 %v4853_v4, %v509_v32  ;;  %v511_v40 = vmul.f32 %v4838_v3, %v483_v27  ;;  %v512_v41 = vmul.f32 %v4838_v3, %v484_v28  ;;  %v558_v42 = vmax.f32 %v534_v35, 0.0 }
  0x2a   : > { %606 = vst [vmem:[#allocation2 + $0x58] sm:$0xff] %v581_v34  ;;  %v559_v43 = vmax.f32 %v535_v36, 0.0  ;;  %v538_v44 = vadd.f32 %v4853_v4, %v510_v37  ;;  %v513_v45 = vmul.f32 %v4838_v3, %v485_v33  ;;  %v560_v46 = vmax.f32 %v536_v38, 0.0 }
  0x2b   : > { %v561_v47 = vmax.f32 %v537_v39, 0.0  ;;  %v539_v48 = vadd.f32 %v4853_v4, %v511_v40  ;;  %v540_v49 = vadd.f32 %v4853_v4, %v512_v41  ;;  %607 = vst [vmem:[#allocation2 + $0x20] sm:$0xff] %v558_v42 }
  0x2c   : > { %v583_v50 = vmul.f32 %v4873_v16, %v559_v43  ;;  %v562_v51 = vmax.f32 %v538_v44, 0.0  ;;  %v541_v52 = vadd.f32 %v4853_v4, %v513_v45  ;;  %v584_v53 = vmul.f32 %v4863_v9, %v560_v46 }
  0x2d   : > { %610 = vst [vmem:[#allocation2 + $0x28] sm:$0xff] %v561_v47  ;;  %v563_v54 = vmax.f32 %v539_v48, 0.0  ;;  %v564_v55 = vmax.f32 %v540_v49, 0.0 }
  0x2e   : > { %608 = vst [vmem:[#allocation2 + $0x90] sm:$0xff] %v583_v50  ;;  %v586_v56 = vmul.f32 %v4873_v16, %v562_v51  ;;  %v565_v57 = vmax.f32 %v541_v52, 0.0  ;;  %609 = vst [vmem:[#allocation2] sm:$0xff] %v584_v53  ;;  %618 = sbr.rel (%p3497_p11) target bundleno = 61 (0x3d), region = 44 }
  0x2f   : > { %v587_v58 = vmul.f32 %v4863_v9, %v563_v54  ;;  %613 = vst [vmem:[#allocation2 + $0xa8] sm:$0xff] %v564_v55 }
  0x30   : > { %611 = vst [vmem:[#allocation2 + $0x50] sm:$0xff] %v586_v56  ;;  %v589_v59 = vmul.f32 %v4873_v16, %v565_v57 }
  0x31   : > { %612 = vst [vmem:[#allocation2 + $0x40] sm:$0xff] %v587_v58 }
  0x32   : > { %614 = vst [vmem:[#allocation2 + $0xb8] sm:$0xff] %v589_v59 }
  0x33   : > { %v619_v60 = vld [vmem:[%s4833_s17] sm:$0xff]  ;;  %v620_v61 = vld [vmem:[%s4833_s17 + $0x8] sm:$0xff]  ;;  %v621_v62 = vld [vmem:[%s4833_s17 + $0x10] sm:$0xff] }
  0x34   : > { %v622_v63 = vmul.f32 %v4838_v3, %v619_v60  ;;  %v623_v0 = vmul.f32 %v4838_v3, %v620_v61  ;;  %v624_v1 = vmul.f32 %v4838_v3, %v621_v62 }
  0x36   : > { %v625_v2 = vadd.f32 %v4853_v4, %v622_v63  ;;  %v626_v5 = vadd.f32 %v4853_v4, %v623_v0  ;;  %v627_v6 = vadd.f32 %v4853_v4, %v624_v1 }
  0x38   : > { %v628_v7 = vmax.f32 %v625_v2, 0.0  ;;  %v629_v8 = vmax.f32 %v626_v5, 0.0  ;;  %v630_v10 = vmax.f32 %v627_v6, 0.0 }
  0x3a   : > { %v631_v11 = vmul.f32 %v4863_v9, %v628_v7  ;;  %635 = vst [vmem:[#allocation2 + $0x10] sm:$0xff] %v629_v8  ;;  %v633_v12 = vmul.f32 %v4873_v16, %v630_v10 }
  0x3c   : > { %634 = vst [vmem:[#allocation2 + $0x70] sm:$0xff] %v631_v11  ;;  %636 = vst [vmem:[#allocation2 + $0xb0] sm:$0xff] %v633_v12 }
  0x3d PF: > { %p3498_p12 = scmp.ne.s32.totalorder %s4722_s21, 0 }
  0x3f   : > { %640 = sbr.rel (%p3498_p12) target bundleno = 71 (0x47), region = 48 }
  0x44   : > { %v4741_v13 = vmov 0.0  }
  0x45   : > { %641 = vst [vmem:[#allocation2 + $0x70] sm:$0xff] %v4741_v13  ;;  %642 = vst [vmem:[#allocation2 + $0x10] sm:$0xff] %v4741_v13 }
  0x46   : > { %643 = vst [vmem:[#allocation2 + $0xb0] sm:$0xff] %v4741_v13 }
  0x47 PF: > { %p3499_p13 = scmp.ge.s32.totalorder %s4722_s21, 1 }
  0x49   : > { %647 = sbr.rel (%p3499_p13) target bundleno = 88 (0x58), region = 52 }
  0x4e   : > { %v648_v14 = vld [vmem:[%s4911_s11] sm:$0xff]  ;;  %v649_v15 = vld [vmem:[%s4911_s11 + $0x8] sm:$0xff]  ;;  %v650_v17 = vld [vmem:[%s4911_s11 + $0x10] sm:$0xff] }
  0x4f   : > { %v651_v18 = vmul.f32 %v4838_v3, %v648_v14  ;;  %v652_v19 = vmul.f32 %v4838_v3, %v649_v15  ;;  %v653_v20 = vmul.f32 %v4838_v3, %v650_v17 }
  0x51   : > { %v654_v21 = vadd.f32 %v4853_v4, %v651_v18  ;;  %v655_v22 = vadd.f32 %v4853_v4, %v652_v19  ;;  %v656_v23 = vadd.f32 %v4853_v4, %v653_v20 }
  0x53   : > { %v657_v24 = vmax.f32 %v654_v21, 0.0  ;;  %v658_v25 = vmax.f32 %v655_v22, 0.0  ;;  %v659_v26 = vmax.f32 %v656_v23, 0.0 }
  0x55   : > { %v660_v27 = vmul.f32 %v4863_v9, %v657_v24  ;;  %665 = vst [vmem:[#allocation2 + $0xe0] sm:$0xff] %v658_v25  ;;  %v662_v28 = vmul.f32 %v4873_v16, %v659_v26 }
  0x57   : > { %664 = vst [vmem:[#allocation2 + $0x8] sm:$0xff] %v660_v27  ;;  %666 = vst [vmem:[#allocation2 + $0x38] sm:$0xff] %v662_v28 }
  0x58 PF: > { %p3500_p0 = scmp.ne.s32.totalorder %s4722_s21, 1 }
  0x5a   : > { %670 = sbr.rel (%p3500_p0) target bundleno = 98 (0x62), region = 56 }
  0x5f   : > { %v4742_v3 = vmov 0.0  }
  0x60   : > { %672 = vst [vmem:[#allocation2 + $0x8] sm:$0xff] %v4742_v3  ;;  %673 = vst [vmem:[#allocation2 + $0xe0] sm:$0xff] %v4742_v3 }
  0x61   : > { %674 = vst [vmem:[#allocation2 + $0x38] sm:$0xff] %v4742_v3 }
  0x62 PF: > { %v3516_v4 = vld [vmem:[%s5986_s3 + $0xf8] sm:$0xff]  ;;  %v3515_v16 = vld [vmem:[%s5986_s3 + $0xf0] sm:$0xff]  ;;  %v3514_v30 = vld [vmem:[%s5986_s3 + $0xe8] sm:$0xff]  ;;  %vm1360_vm2 = vcmask 1045504   ;;  %vm3272_vm3 = vcmask 1040384  }
  0x63   : > { %v916_v9 = vld [vmem:[%s5986_s3 + $0x78] sm:$0xff]  ;;  %3993 = vmatprep.subr.mxu0 %v3516_v4  ;;  %v915_v29 = vld [vmem:[%s5986_s3 + $0x70] sm:$0xff]  ;;  %v914_v31 = vld [vmem:[%s5986_s3 + $0x68] sm:$0xff] }
  0x64   : > { %4061 = vmatprep.subr.mxu1 %v916_v9  ;;  %3994 = vmatpush3.msra.mxu0 %v3516_v4  ;;  %v3513_v32 = vld [vmem:[%s5986_s3 + $0xe0] sm:$0xff]  ;;  %v3512_v34 = vld [vmem:[%s5986_s3 + $0xd8] sm:$0xff]  ;;  %v3511_v36 = vld [vmem:[%s5986_s3 + $0xd0] sm:$0xff] }
  0x65   : > { %4062 = vmatpush3.msra.mxu1 %v916_v9  ;;  %3995 = vmatprep.subr.mxu0 %v3515_v16  ;;  %v913_v33 = vld [vmem:[%s5986_s3 + $0x60] sm:$0xff]  ;;  %v912_v35 = vld [vmem:[%s5986_s3 + $0x58] sm:$0xff]  ;;  %v911_v37 = vld [vmem:[%s5986_s3 + $0x50] sm:$0xff] }
  0x66   : > { %4063 = vmatprep.subr.mxu1 %v915_v29  ;;  %3996 = vmatpush3.msra.mxu0 %v3515_v16  ;;  %v3510_v38 = vld [vmem:[%s5986_s3 + $0xc8] sm:$0xff]  ;;  %v3509_v40 = vld [vmem:[%s5986_s3 + $0xc0] sm:$0xff]  ;;  %v3508_v42 = vld [vmem:[%s5986_s3 + $0xb8] sm:$0xff] }
  0x67   : > { %4064 = vmatpush3.msra.mxu1 %v915_v29  ;;  %3997 = vmatprep.subr.mxu0 %v3514_v30  ;;  %v910_v39 = vld [vmem:[%s5986_s3 + $0x48] sm:$0xff]  ;;  %v909_v41 = vld [vmem:[%s5986_s3 + $0x40] sm:$0xff]  ;;  %v908_v43 = vld [vmem:[%s5986_s3 + $0x38] sm:$0xff] }
  0x68   : > { %4065 = vmatprep.subr.mxu1 %v914_v31  ;;  %3998 = vmatpush3.msra.mxu0 %v3514_v30  ;;  %v3507_v44 = vld [vmem:[%s5986_s3 + $0xb0] sm:$0xff]  ;;  %v3506_v46 = vld [vmem:[%s5986_s3 + $0xa8] sm:$0xff]  ;;  %v3505_v48 = vld [vmem:[%s5986_s3 + $0xa0] sm:$0xff] }
  0x69   : > { %4066 = vmatpush3.msra.mxu1 %v914_v31  ;;  %3999 = vmatprep.subr.mxu0 %v3513_v32  ;;  %v907_v45 = vld [vmem:[%s5986_s3 + $0x30] sm:$0xff]  ;;  %v906_v47 = vld [vmem:[%s5986_s3 + $0x28] sm:$0xff]  ;;  %v905_v49 = vld [vmem:[%s5986_s3 + $0x20] sm:$0xff] }
  0x6a   : > { %4067 = vmatprep.subr.mxu1 %v913_v33  ;;  %4000 = vmatpush3.msra.mxu0 %v3513_v32  ;;  %v3504_v50 = vld [vmem:[%s5986_s3 + $0x98] sm:$0xff]  ;;  %v3503_v52 = vld [vmem:[%s5986_s3 + $0x90] sm:$0xff]  ;;  %v3502_v54 = vld [vmem:[%s5986_s3 + $0x88] sm:$0xff] }
  0x6b   : > { %4068 = vmatpush3.msra.mxu1 %v913_v33  ;;  %4001 = vmatprep.subr.mxu0 %v3512_v34  ;;  %v904_v51 = vld [vmem:[%s5986_s3 + $0x18] sm:$0xff]  ;;  %v903_v53 = vld [vmem:[%s5986_s3 + $0x10] sm:$0xff]  ;;  %v902_v55 = vld [vmem:[%s5986_s3 + $0x8] sm:$0xff] }
  0x6c   : > { %4069 = vmatprep.subr.mxu1 %v912_v35  ;;  %4002 = vmatpush3.msra.mxu0 %v3512_v34  ;;  %v3501_v56 = vld [vmem:[%s5986_s3 + $0x80] sm:$0xff]  ;;  %v5089_v58 = vld [vmem:[#allocation2 + $0x70] sm:$0xff]  ;;  %v3532_v60 = vld [vmem:[%s5986_s3 + $0x178] sm:$0xff] }
  0x6d   : > { %4070 = vmatpush3.msra.mxu1 %v912_v35  ;;  %4003 = vmatprep.subr.mxu0 %v3511_v36  ;;  %v901_v57 = vld [vmem:[%s5986_s3] sm:$0xff]  ;;  %v5091_v59 = vld [vmem:[#allocation2 + $0x10] sm:$0xff]  ;;  %v3548_v63 = vld [vmem:[%s5986_s3 + $0x278] sm:$0xff] }
  0x6e   : > { %4071 = vmatprep.subr.mxu1 %v911_v37  ;;  %4004 = vmatpush3.msra.mxu0 %v3511_v36  ;;  %v5097_v61 = vld [vmem:[#allocation2 + $0xb0] sm:$0xff]  ;;  %v5109_v0 = vld [vmem:[#allocation2 + $0xc8] sm:$0xff]  ;;  %v5112_v1 = vld [vmem:[#allocation2 + $0x18] sm:$0xff] }
  0x6f   : > { %4072 = vmatpush3.msra.mxu1 %v911_v37  ;;  %4005 = vmatprep.subr.mxu0 %v3510_v38  ;;  %v3531_v62 = vld [vmem:[%s5986_s3 + $0x170] sm:$0xff]  ;;  %v3530_v2 = vld [vmem:[%s5986_s3 + $0x168] sm:$0xff]  ;;  %v5120_v5 = vld [vmem:[#allocation2 + $0xd8] sm:$0xff] }
  0x70   : > { %4073 = vmatprep.subr.mxu1 %v910_v39  ;;  %4006 = vmatpush3.msra.mxu0 %v3510_v38  ;;  %v3529_v6 = vld [vmem:[%s5986_s3 + $0x160] sm:$0xff]  ;;  %v5126_v7 = vld [vmem:[#allocation2 + $0x30] sm:$0xff]  ;;  %v3528_v10 = vld [vmem:[%s5986_s3 + $0x158] sm:$0xff] }
  0x71   : > { %4074 = vmatpush3.msra.mxu1 %v910_v39  ;;  %4007 = vmatprep.subr.mxu0 %v3509_v40  ;;  %v3547_v8 = vld [vmem:[%s5986_s3 + $0x270] sm:$0xff]  ;;  %v5137_v11 = vld [vmem:[#allocation2 + $0x68] sm:$0xff]  ;;  %v5143_v13 = vld [vmem:[#allocation2 + $0x80] sm:$0xff] }
  0x72   : > { %4075 = vmatprep.subr.mxu1 %v909_v41  ;;  %4008 = vmatpush3.msra.mxu0 %v3509_v40  ;;  %v3546_v12 = vld [vmem:[%s5986_s3 + $0x268] sm:$0xff]  ;;  %v3527_v14 = vld [vmem:[%s5986_s3 + $0x150] sm:$0xff]  ;;  %v3545_v17 = vld [vmem:[%s5986_s3 + $0x260] sm:$0xff] }
  0x73   : > { %4076 = vmatpush3.msra.mxu1 %v909_v41  ;;  %4009 = vmatprep.subr.mxu0 %v3508_v42  ;;  %v5150_v15 = vld [vmem:[#allocation2 + $0x48] sm:$0xff]  ;;  %v5161_v19 = vld [vmem:[#allocation2 + $0x60] sm:$0xff]  ;;  %v5164_v20 = vld [vmem:[#allocation2 + $0x98] sm:$0xff] }
  0x74   : > { %4077 = vmatprep.subr.mxu1 %v908_v43  ;;  %4010 = vmatpush3.msra.mxu0 %v3508_v42  ;;  %v3526_v18 = vld [vmem:[%s5986_s3 + $0x148] sm:$0xff]  ;;  %v3544_v21 = vld [vmem:[%s5986_s3 + $0x258] sm:$0xff]  ;;  %v3525_v22 = vld [vmem:[%s5986_s3 + $0x140] sm:$0xff] }
  0x75   : > { %4078 = vmatpush3.msra.mxu1 %v908_v43  ;;  %4011 = vmatprep.subr.mxu0 %v3507_v44  ;;  %v5176_v23 = vld [vmem:[#allocation2 + $0xa0] sm:$0xff]  ;;  %v3543_v24 = vld [vmem:[%s5986_s3 + $0x250] sm:$0xff]  ;;  %v5181_v25 = vld [vmem:[#allocation2 + $0xe8] sm:$0xff] }
  0x76   : > { %4079 = vmatprep.subr.mxu1 %v907_v45  ;;  %4012 = vmatpush3.msra.mxu0 %v3507_v44  ;;  %v3524_v26 = vld [vmem:[%s5986_s3 + $0x138] sm:$0xff]  ;;  %v3542_v27 = vld [vmem:[%s5986_s3 + $0x248] sm:$0xff]  ;;  %v5192_v28 = vld [vmem:[#allocation2 + $0xd0] sm:$0xff] }
  0x77   : > { %4080 = vmatpush3.msra.mxu1 %v907_v45  ;;  %4013 = vmatprep.subr.mxu0 %v3506_v46  ;;  %v3523_v3 = vld [vmem:[%s5986_s3 + $0x130] sm:$0xff]  ;;  %v5198_v4 = vld [vmem:[#allocation2 + $0x78] sm:$0xff]  ;;  %v3541_v9 = vld [vmem:[%s5986_s3 + $0x240] sm:$0xff] }
  0x78   : > { %4081 = vmatprep.subr.mxu1 %v906_v47  ;;  %4014 = vmatpush3.msra.mxu0 %v3506_v46  ;;  %v3522_v16 = vld [vmem:[%s5986_s3 + $0x128] sm:$0xff]  ;;  %v5209_v29 = vld [vmem:[#allocation2 + $0xc0] sm:$0xff]  ;;  %v3540_v31 = vld [vmem:[%s5986_s3 + $0x238] sm:$0xff] }
  0x79   : > { %4082 = vmatpush3.msra.mxu1 %v906_v47  ;;  %4015 = vmatprep.subr.mxu0 %v3505_v48  ;;  %v5212_v30 = vld [vmem:[#allocation2 + $0x88] sm:$0xff]  ;;  %v3521_v32 = vld [vmem:[%s5986_s3 + $0x120] sm:$0xff]  ;;  %v3539_v33 = vld [vmem:[%s5986_s3 + $0x230] sm:$0xff] }
  0x7a   : > { %4083 = vmatprep.subr.mxu1 %v905_v49  ;;  %4016 = vmatpush3.msra.mxu0 %v3505_v48  ;;  %v5227_v34 = vld [vmem:[#allocation2 + $0x58] sm:$0xff]  ;;  %v5229_v35 = vld [vmem:[#allocation2 + $0x20] sm:$0xff]  ;;  %v3538_v37 = vld [vmem:[%s5986_s3 + $0x228] sm:$0xff] }
  0x7b   : > { %4084 = vmatpush3.msra.mxu1 %v905_v49  ;;  %4017 = vmatprep.subr.mxu0 %v3504_v50  ;;  %v3520_v36 = vld [vmem:[%s5986_s3 + $0x118] sm:$0xff]  ;;  %v3537_v38 = vld [vmem:[%s5986_s3 + $0x220] sm:$0xff]  ;;  %v5244_v39 = vld [vmem:[#allocation2 + $0x90] sm:$0xff] }
  0x7c   : > { %4085 = vmatprep.subr.mxu1 %v904_v51  ;;  %4018 = vmatpush3.msra.mxu0 %v3504_v50  ;;  %v3519_v40 = vld [vmem:[%s5986_s3 + $0x110] sm:$0xff]  ;;  %v5249_v41 = vld [vmem:[#allocation2] sm:$0xff]  ;;  %v3536_v42 = vld [vmem:[%s5986_s3 + $0x218] sm:$0xff] }
  0x7d   : > { %4086 = vmatpush3.msra.mxu1 %v904_v51  ;;  %4019 = vmatprep.subr.mxu0 %v3503_v52  ;;  %v3518_v43 = vld [vmem:[%s5986_s3 + $0x108] sm:$0xff]  ;;  %v3535_v45 = vld [vmem:[%s5986_s3 + $0x210] sm:$0xff]  ;;  %v3517_v48 = vld [vmem:[%s5986_s3 + $0x100] sm:$0xff] }
  0x7e   : > { %4087 = vmatprep.subr.mxu1 %v903_v53  ;;  %4020 = vmatpush3.msra.mxu0 %v3503_v52  ;;  %v5260_v44 = vld [vmem:[#allocation2 + $0x28] sm:$0xff]  ;;  %v5267_v46 = vld [vmem:[#allocation2 + $0x50] sm:$0xff]  ;;  %v3533_v49 = vld [vmem:[%s5986_s3 + $0x200] sm:$0xff] }
  0x7f   : > { %4088 = vmatpush3.msra.mxu1 %v903_v53  ;;  %4021 = vmatprep.subr.mxu0 %v3502_v54  ;;  %v3534_v47 = vld [vmem:[%s5986_s3 + $0x208] sm:$0xff]  ;;  %v3564_v50 = vld [vmem:[%s5986_s3 + $0x1f8] sm:$0xff]  ;;  %v3563_v51 = vld [vmem:[%s5986_s3 + $0x1f0] sm:$0xff] }
  0x80   : > { %4089 = vmatprep.subr.mxu1 %v902_v55  ;;  %4022 = vmatpush3.msra.mxu0 %v3502_v54  ;;  %v3580_v52 = vld [vmem:[%s5986_s3 + $0x2f8] sm:$0xff]  ;;  %v3562_v53 = vld [vmem:[%s5986_s3 + $0x1e8] sm:$0xff]  ;;  %v3561_v54 = vld [vmem:[%s5986_s3 + $0x1e0] sm:$0xff] }
  0x81   : > { %4090 = vmatpush3.msra.mxu1 %v902_v55  ;;  %4023 = vmatprep.subr.mxu0 %v3501_v56  ;;  %v3579_v55 = vld [vmem:[%s5986_s3 + $0x2f0] sm:$0xff] }
  0x82   : > { %4091 = vmatprep.subr.mxu1 %v901_v57  ;;  %4024 = vmatpush3.msra.mxu0 %v3501_v56  ;;  %v3560_v56 = vld [vmem:[%s5986_s3 + $0x1d8] sm:$0xff] }
  0x83   : > { %4025 = vmatprep.mubr.f32.mxu0 %v5089_v58  ;;  %4092 = vmatpush3.msra.mxu1 %v901_v57  ;;  %v3578_v57 = vld [vmem:[%s5986_s3 + $0x2e8] sm:$0xff] }
  0x84   : > { %4093 = vmatprep.mubr.f32.mxu1 %v5089_v58  ;;  %4026 = vmatmul.mubr.f32.vlgmr.msra.gmra.mxu0 %v5091_v59 }
  0x85   : > { %4094 = vmatmul.mubr.f32.vlgmr.msra.gmra.mxu1 %v5091_v59  ;;  %4129 = vmatprep.subr.mxu0 %v3532_v60 }
  0x86   : > { %4028 = vmatprep.mubr.f32.mxu0 %v5097_v61  ;;  %4130 = vmatpush3.msra.mxu0 %v3532_v60  ;;  %v3558_v60 = vld [vmem:[%s5986_s3 + $0x1c8] sm:$0xff] }
  0x87   : > { %4096 = vmatprep.mubr.f32.mxu1 %v5097_v61  ;;  %4131 = vmatprep.subr.mxu0 %v3531_v62 }
  0x88   : > { %4197 = vmatprep.subr.mxu1 %v3548_v63  ;;  %4029 = vmatmul.mubr.f32.gmra.mxu0 %v5109_v0 }
  0x89   : > { %4097 = vmatmul.mubr.f32.gmra.mxu1 %v5109_v0  ;;  %4132 = vmatpush3.msra.mxu0 %v3531_v62  ;;  %v3557_v62 = vld [vmem:[%s5986_s3 + $0x1c0] sm:$0xff] }
  0x8a   : > { %4031 = vmatprep.mubr.f32.mxu0 %v5112_v1  ;;  %4133 = vmatprep.subr.mxu0 %v3530_v2 }
  0x8b   : > { %4099 = vmatprep.mubr.f32.mxu1 %v5112_v1  ;;  %4134 = vmatpush3.msra.mxu0 %v3530_v2  ;;  %v3556_v2 = vld [vmem:[%s5986_s3 + $0x1b8] sm:$0xff] }
  0x8c   : > { %4198 = vmatpush3.msra.mxu1 %v3548_v63  ;;  %4032 = vmatmul.mubr.f32.gmra.mxu0 %v5120_v5  ;;  %v3575_v63 = vld [vmem:[%s5986_s3 + $0x2d0] sm:$0xff] }
  0x8d   : > { %4100 = vmatmul.mubr.f32.gmra.mxu1 %v5120_v5  ;;  %4135 = vmatprep.subr.mxu0 %v3529_v6 }
  0x8e   : > { %4034 = vmatprep.mubr.f32.mxu0 %v5126_v7  ;;  %4136 = vmatpush3.msra.mxu0 %v3529_v6  ;;  %v3574_v6 = vld [vmem:[%s5986_s3 + $0x2c8] sm:$0xff] }
  0x8f   : > { %4102 = vmatprep.mubr.f32.mxu1 %v5126_v7  ;;  %4199 = vmatprep.subr.mxu1 %v3547_v8 }
  0x90   : > { %4137 = vmatprep.subr.mxu0 %v3528_v10  ;;  %4035 = vmatmul.mubr.f32.gmra.mxu0 %v5137_v11 }
  0x91   : > { %4103 = vmatmul.mubr.f32.gmra.mxu1 %v5137_v11  ;;  %4138 = vmatpush3.msra.mxu0 %v3528_v10  ;;  %v3573_v10 = vld [vmem:[%s5986_s3 + $0x2c0] sm:$0xff] }
  0x92   : > { %4200 = vmatpush3.msra.mxu1 %v3547_v8  ;;  %4037 = vmatprep.mubr.f32.mxu0 %v5143_v13  ;;  %v3555_v8 = vld [vmem:[%s5986_s3 + $0x1b0] sm:$0xff] }
  0x93   : > { %4201 = vmatprep.subr.mxu1 %v3546_v12  ;;  %4105 = vmatprep.mubr.f32.mxu1 %v5143_v13 }
  0x94   : > { %4139 = vmatprep.subr.mxu0 %v3527_v14  ;;  %4202 = vmatpush3.msra.mxu1 %v3546_v12  ;;  %v3554_v12 = vld [vmem:[%s5986_s3 + $0x1a8] sm:$0xff] }
  0x95   : > { %4038 = vmatmul.mubr.f32.gmra.mxu0 %v5150_v15  ;;  %4106 = vmatmul.mubr.f32.gmra.mxu1 %v5150_v15 }
  0x96   : > { %4140 = vmatpush3.msra.mxu0 %v3527_v14  ;;  %4203 = vmatprep.subr.mxu1 %v3545_v17  ;;  %v3572_v14 = vld [vmem:[%s5986_s3 + $0x2b8] sm:$0xff] }
  0x97   : > { %4141 = vmatprep.subr.mxu0 %v3526_v18  ;;  %4204 = vmatpush3.msra.mxu1 %v3545_v17  ;;  %v3553_v17 = vld [vmem:[%s5986_s3 + $0x1a0] sm:$0xff] }
  0x98   : > { %4040 = vmatprep.mubr.f32.mxu0 %v5161_v19  ;;  %4108 = vmatprep.mubr.f32.mxu1 %v5161_v19 }
  0x99   : > { %4142 = vmatpush3.msra.mxu0 %v3526_v18  ;;  %4109 = vmatmul.mubr.f32.gmra.mxu1 %v5164_v20  ;;  %v3571_v18 = vld [vmem:[%s5986_s3 + $0x2b0] sm:$0xff] }
  0x9a   : > { %4041 = vmatmul.mubr.f32.gmra.mxu0 %v5164_v20  ;;  %4205 = vmatprep.subr.mxu1 %v3544_v21 }
  0x9b   : > { %4143 = vmatprep.subr.mxu0 %v3525_v22  ;;  %4206 = vmatpush3.msra.mxu1 %v3544_v21  ;;  %v3552_v21 = vld [vmem:[%s5986_s3 + $0x198] sm:$0xff] }
  0x9c   : > { %4144 = vmatpush3.msra.mxu0 %v3525_v22  ;;  %4043 = vmatprep.mubr.f32.mxu0 %v5176_v23  ;;  %v3570_v22 = vld [vmem:[%s5986_s3 + $0x2a8] sm:$0xff] }
  0x9d   : > { %4111 = vmatprep.mubr.f32.mxu1 %v5176_v23  ;;  %4207 = vmatprep.subr.mxu1 %v3543_v24 }
  0x9e   : > { %4044 = vmatmul.mubr.f32.gmra.mxu0 %v5181_v25  ;;  %4112 = vmatmul.mubr.f32.gmra.mxu1 %v5181_v25 }
  0x9f   : > { %4145 = vmatprep.subr.mxu0 %v3524_v26  ;;  %4208 = vmatpush3.msra.mxu1 %v3543_v24  ;;  %v3569_v24 = vld [vmem:[%s5986_s3 + $0x2a0] sm:$0xff] }
  0xa0   : > { %4146 = vmatpush3.msra.mxu0 %v3524_v26  ;;  %4209 = vmatprep.subr.mxu1 %v3542_v27  ;;  %v3551_v26 = vld [vmem:[%s5986_s3 + $0x190] sm:$0xff] }
  0xa1   : > { %4046 = vmatprep.mubr.f32.mxu0 %v5192_v28  ;;  %4114 = vmatprep.mubr.f32.mxu1 %v5192_v28 }
  0xa2   : > { %4147 = vmatprep.subr.mxu0 %v3523_v3  ;;  %4210 = vmatpush3.msra.mxu1 %v3542_v27  ;;  %v5400_v27 = vld [vmem:[#allocation2 + $0x40] sm:$0xff] }
  0xa3   : > { %4047 = vmatmul.mubr.f32.gmra.mxu0 %v5198_v4  ;;  %4115 = vmatmul.mubr.f32.gmra.mxu1 %v5198_v4 }
  0xa4   : > { %4148 = vmatpush3.msra.mxu0 %v3523_v3  ;;  %4211 = vmatprep.subr.mxu1 %v3541_v9  ;;  %v3568_v3 = vld [vmem:[%s5986_s3 + $0x298] sm:$0xff] }
  0xa5   : > { %4149 = vmatprep.subr.mxu0 %v3522_v16  ;;  %4212 = vmatpush3.msra.mxu1 %v3541_v9  ;;  %v3550_v9 = vld [vmem:[%s5986_s3 + $0x188] sm:$0xff] }
  0xa6   : > { %4049 = vmatprep.mubr.f32.mxu0 %v5209_v29  ;;  %4117 = vmatprep.mubr.f32.mxu1 %v5209_v29 }
  0xa7   : > { %4150 = vmatpush3.msra.mxu0 %v3522_v16  ;;  %4118 = vmatmul.mubr.f32.gmra.mxu1 %v5212_v30  ;;  %v3567_v16 = vld [vmem:[%s5986_s3 + $0x290] sm:$0xff] }
  0xa8   : > { %4050 = vmatmul.mubr.f32.gmra.mxu0 %v5212_v30  ;;  %4213 = vmatprep.subr.mxu1 %v3540_v31 }
  0xa9   : > { %4151 = vmatprep.subr.mxu0 %v3521_v32  ;;  %4214 = vmatpush3.msra.mxu1 %v3540_v31  ;;  %v5414_v31 = vld [vmem:[#allocation2 + $0xa8] sm:$0xff] }
  0xaa   : > { %4152 = vmatpush3.msra.mxu0 %v3521_v32  ;;  %4215 = vmatprep.subr.mxu1 %v3539_v33  ;;  %v5417_v32 = vld [vmem:[#allocation2 + $0xb8] sm:$0xff] }
  0xab   : > { %4052 = vmatprep.mubr.f32.mxu0 %v5227_v34  ;;  %4120 = vmatprep.mubr.f32.mxu1 %v5227_v34 }
  0xac   : > { %4216 = vmatpush3.msra.mxu1 %v3539_v33  ;;  %4053 = vmatmul.mubr.f32.gmra.mxu0 %v5229_v35  ;;  %v3566_v33 = vld [vmem:[%s5986_s3 + $0x288] sm:$0xff] }
  0xad   : > { %4121 = vmatmul.mubr.f32.gmra.mxu1 %v5229_v35  ;;  %4153 = vmatprep.subr.mxu0 %v3520_v36 }
  0xae   : > { %4217 = vmatprep.subr.mxu1 %v3538_v37  ;;  %4154 = vmatpush3.msra.mxu0 %v3520_v36  ;;  %v3549_v36 = vld [vmem:[%s5986_s3 + $0x180] sm:$0xff] }
  0xaf   : > { %4218 = vmatpush3.msra.mxu1 %v3538_v37  ;;  %4055 = vmatprep.mubr.f32.mxu0 %v5244_v39  ;;  %v3565_v37 = vld [vmem:[%s5986_s3 + $0x280] sm:$0xff] }
  0xb0   : > { %4219 = vmatprep.subr.mxu1 %v3537_v38  ;;  %4123 = vmatprep.mubr.f32.mxu1 %v5244_v39 }
  0xb1   : > { %4155 = vmatprep.subr.mxu0 %v3519_v40  ;;  %4220 = vmatpush3.msra.mxu1 %v3537_v38  ;;  %v3596_v38 = vld [vmem:[%s5986_s3 + $0x3f8] sm:$0xff] }
  0xb2   : > { %4056 = vmatmul.mubr.f32.gmra.mxu0 %v5249_v41  ;;  %4124 = vmatmul.mubr.f32.gmra.mxu1 %v5249_v41 }
  0xb3   : > { %4156 = vmatpush3.msra.mxu0 %v3519_v40  ;;  %4221 = vmatprep.subr.mxu1 %v3536_v42  ;;  %v3595_v40 = vld [vmem:[%s5986_s3 + $0x3f0] sm:$0xff] }
  0xb4   : > { %4157 = vmatprep.subr.mxu0 %v3518_v43  ;;  %4222 = vmatpush3.msra.mxu1 %v3536_v42  ;;  %v3612_v42 = vld [vmem:[%s5986_s3 + $0x378] sm:$0xff] }
  0xb5   : > { %4058 = vmatprep.mubr.f32.mxu0 %v5260_v44  ;;  %4223 = vmatprep.subr.mxu1 %v3535_v45 }
  0xb6   : > { %4126 = vmatprep.mubr.f32.mxu1 %v5260_v44  ;;  %4158 = vmatpush3.msra.mxu0 %v3518_v43  ;;  %v3592_v43 = vld [vmem:[%s5986_s3 + $0x3d8] sm:$0xff] }
  0xb7   : > { %4224 = vmatpush3.msra.mxu1 %v3535_v45  ;;  %4059 = vmatmul.mubr.f32.gmra.mxu0 %v5267_v46  ;;  %v3610_v45 = vld [vmem:[%s5986_s3 + $0x368] sm:$0xff] }
  0xb8   : > { %4127 = vmatmul.mubr.f32.gmra.mxu1 %v5267_v46  ;;  %4225 = vmatprep.subr.mxu1 %v3534_v47 }
  0xb9   : > { %4159 = vmatprep.subr.mxu0 %v3517_v48  ;;  %4226 = vmatpush3.msra.mxu1 %v3534_v47  ;;  %v3591_v47 = vld [vmem:[%s5986_s3 + $0x3d0] sm:$0xff] }
  0xba   : > { %4160 = vmatpush3.msra.mxu0 %v3517_v48  ;;  %4227 = vmatprep.subr.mxu1 %v3533_v49  ;;  %v3609_v48 = vld [vmem:[%s5986_s3 + $0x360] sm:$0xff] }
  0xbb   : > { %4161 = vmatprep.mubr.f32.mxu0 %v5089_v58  ;;  %4228 = vmatpush3.msra.mxu1 %v3533_v49  ;;  %v3559_v58 = vld [vmem:[%s5986_s3 + $0x1d0] sm:$0xff]  ;;  %v3590_v49 = vld [vmem:[%s5986_s3 + $0x3c8] sm:$0xff] }
  0xbc   : > { %4229 = vmatprep.mubr.f32.mxu1 %v5109_v0  ;;  %4162 = vmatmul.mubr.f32.vlgmr.msra.gmra.mxu0 %v5091_v59  ;;  %v3577_v59 = vld [vmem:[%s5986_s3 + $0x2e0] sm:$0xff] }
  0xbd   : > { %4230 = vmatmul.mubr.f32.vlgmr.msra.gmra.mxu1 %v5112_v1  ;;  %4265 = vmatprep.subr.mxu0 %v3564_v50 }
  0xbe   : > { %4164 = vmatprep.mubr.f32.mxu0 %v5097_v61  ;;  %4266 = vmatpush3.msra.mxu0 %v3564_v50  ;;  %v3576_v61 = vld [vmem:[%s5986_s3 + $0x2d8] sm:$0xff] }
  0xbf   : > { %4232 = vmatprep.mubr.f32.mxu1 %v5120_v5  ;;  %4267 = vmatprep.subr.mxu0 %v3563_v51  ;;  %v3608_v50 = vld [vmem:[%s5986_s3 + $0x358] sm:$0xff] }
  0xc0   : > { %4333 = vmatprep.subr.mxu1 %v3580_v52  ;;  %4165 = vmatmul.mubr.f32.gmra.mxu0 %v5109_v0 }
  0xc1   : > { %4233 = vmatmul.mubr.f32.gmra.mxu1 %v5126_v7  ;;  %4268 = vmatpush3.msra.mxu0 %v3563_v51  ;;  %v3589_v51 = vld [vmem:[%s5986_s3 + $0x3c0] sm:$0xff] }
  0xc2   : > { %4167 = vmatprep.mubr.f32.mxu0 %v5112_v1  ;;  %4269 = vmatprep.subr.mxu0 %v3562_v53 }
  0xc3   : > { %4235 = vmatprep.mubr.f32.mxu1 %v5137_v11  ;;  %4270 = vmatpush3.msra.mxu0 %v3562_v53  ;;  %v3588_v53 = vld [vmem:[%s5986_s3 + $0x3b8] sm:$0xff] }
  0xc4   : > { %4334 = vmatpush3.msra.mxu1 %v3580_v52  ;;  %4168 = vmatmul.mubr.f32.gmra.mxu0 %v5120_v5  ;;  %v3607_v52 = vld [vmem:[%s5986_s3 + $0x350] sm:$0xff] }
  0xc5   : > { %4236 = vmatmul.mubr.f32.gmra.mxu1 %v5143_v13  ;;  %4271 = vmatprep.subr.mxu0 %v3561_v54 }
  0xc6   : > { %4170 = vmatprep.mubr.f32.mxu0 %v5126_v7  ;;  %4272 = vmatpush3.msra.mxu0 %v3561_v54  ;;  %v3606_v54 = vld [vmem:[%s5986_s3 + $0x348] sm:$0xff] }
  0xc7   : > { %4238 = vmatprep.mubr.f32.mxu1 %v5150_v15  ;;  %4335 = vmatprep.subr.mxu1 %v3579_v55 }
  0xc8   : > { %4273 = vmatprep.subr.mxu0 %v3560_v56  ;;  %4171 = vmatmul.mubr.f32.gmra.mxu0 %v5137_v11 }
  0xc9   : > { %4239 = vmatmul.mubr.f32.gmra.mxu1 %v5161_v19  ;;  %4274 = vmatpush3.msra.mxu0 %v3560_v56  ;;  %v3605_v56 = vld [vmem:[%s5986_s3 + $0x340] sm:$0xff] }
  0xca   : > { %4336 = vmatpush3.msra.mxu1 %v3579_v55  ;;  %4173 = vmatprep.mubr.f32.mxu0 %v5143_v13  ;;  %v3587_v55 = vld [vmem:[%s5986_s3 + $0x3b0] sm:$0xff] }
  0xcb   : > { %4337 = vmatprep.subr.mxu1 %v3578_v57  ;;  %4241 = vmatprep.mubr.f32.mxu1 %v5164_v20 }
  0xcc   : > { %4275 = vmatprep.subr.mxu0 %v3559_v58  ;;  %4338 = vmatpush3.msra.mxu1 %v3578_v57  ;;  %v3586_v57 = vld [vmem:[%s5986_s3 + $0x3a8] sm:$0xff] }
  0xcd   : > { %4174 = vmatmul.mubr.f32.gmra.mxu0 %v5150_v15  ;;  %4242 = vmatmul.mubr.f32.gmra.mxu1 %v5176_v23 }
  0xce   : > { %4276 = vmatpush3.msra.mxu0 %v3559_v58  ;;  %4339 = vmatprep.subr.mxu1 %v3577_v59  ;;  %v3604_v58 = vld [vmem:[%s5986_s3 + $0x338] sm:$0xff] }
  0xcf   : > { %4277 = vmatprep.subr.mxu0 %v3558_v60  ;;  %4340 = vmatpush3.msra.mxu1 %v3577_v59  ;;  %v3585_v59 = vld [vmem:[%s5986_s3 + $0x3a0] sm:$0xff] }
  0xd0   : > { %4176 = vmatprep.mubr.f32.mxu0 %v5161_v19  ;;  %4244 = vmatprep.mubr.f32.mxu1 %v5181_v25 }
  0xd1   : > { %4278 = vmatpush3.msra.mxu0 %v3558_v60  ;;  %4245 = vmatmul.mubr.f32.gmra.mxu1 %v5192_v28  ;;  %v3603_v60 = vld [vmem:[%s5986_s3 + $0x330] sm:$0xff] }
  0xd2   : > { %4177 = vmatmul.mubr.f32.gmra.mxu0 %v5164_v20  ;;  %4341 = vmatprep.subr.mxu1 %v3576_v61 }
  0xd3   : > { %4279 = vmatprep.subr.mxu0 %v3557_v62  ;;  %4342 = vmatpush3.msra.mxu1 %v3576_v61  ;;  %v3584_v61 = vld [vmem:[%s5986_s3 + $0x398] sm:$0xff] }
  0xd4   : > { %4280 = vmatpush3.msra.mxu0 %v3557_v62  ;;  %4179 = vmatprep.mubr.f32.mxu0 %v5176_v23  ;;  %v3602_v62 = vld [vmem:[%s5986_s3 + $0x328] sm:$0xff] }
  0xd5   : > { %4247 = vmatprep.mubr.f32.mxu1 %v5198_v4  ;;  %4343 = vmatprep.subr.mxu1 %v3575_v63 }
  0xd6   : > { %4180 = vmatmul.mubr.f32.gmra.mxu0 %v5181_v25  ;;  %4248 = vmatmul.mubr.f32.gmra.mxu1 %v5209_v29 }
  0xd7   : > { %4281 = vmatprep.subr.mxu0 %v3556_v2  ;;  %4344 = vmatpush3.msra.mxu1 %v3575_v63  ;;  %v3601_v63 = vld [vmem:[%s5986_s3 + $0x320] sm:$0xff] }
  0xd8   : > { %4282 = vmatpush3.msra.mxu0 %v3556_v2  ;;  %4345 = vmatprep.subr.mxu1 %v3574_v6  ;;  %v3583_v2 = vld [vmem:[%s5986_s3 + $0x390] sm:$0xff] }
  0xd9   : > { %4182 = vmatprep.mubr.f32.mxu0 %v5192_v28  ;;  %4250 = vmatprep.mubr.f32.mxu1 %v5212_v30 }
  0xda   : > { %4283 = vmatprep.subr.mxu0 %v3555_v8  ;;  %4346 = vmatpush3.msra.mxu1 %v3574_v6  ;;  %v3600_v6 = vld [vmem:[%s5986_s3 + $0x318] sm:$0xff] }
  0xdb   : > { %4183 = vmatmul.mubr.f32.gmra.mxu0 %v5198_v4  ;;  %4251 = vmatmul.mubr.f32.gmra.mxu1 %v5227_v34 }
  0xdc   : > { %4284 = vmatpush3.msra.mxu0 %v3555_v8  ;;  %4347 = vmatprep.subr.mxu1 %v3573_v10  ;;  %v3582_v8 = vld [vmem:[%s5986_s3 + $0x388] sm:$0xff] }
  0xdd   : > { %4285 = vmatprep.subr.mxu0 %v3554_v12  ;;  %4348 = vmatpush3.msra.mxu1 %v3573_v10  ;;  %v3599_v10 = vld [vmem:[%s5986_s3 + $0x310] sm:$0xff] }
  0xde   : > { %4185 = vmatprep.mubr.f32.mxu0 %v5209_v29  ;;  %4253 = vmatprep.mubr.f32.mxu1 %v5229_v35 }
  0xdf   : > { %4286 = vmatpush3.msra.mxu0 %v3554_v12  ;;  %4254 = vmatmul.mubr.f32.gmra.mxu1 %v5244_v39  ;;  %v3598_v12 = vld [vmem:[%s5986_s3 + $0x308] sm:$0xff] }
  0xe0   : > { %4186 = vmatmul.mubr.f32.gmra.mxu0 %v5212_v30  ;;  %4349 = vmatprep.subr.mxu1 %v3572_v14 }
  0xe1   : > { %4287 = vmatprep.subr.mxu0 %v3553_v17  ;;  %4350 = vmatpush3.msra.mxu1 %v3572_v14  ;;  %v3581_v14 = vld [vmem:[%s5986_s3 + $0x380] sm:$0xff] }
  0xe2   : > { %4288 = vmatpush3.msra.mxu0 %v3553_v17  ;;  %4351 = vmatprep.subr.mxu1 %v3571_v18  ;;  %v3597_v17 = vld [vmem:[%s5986_s3 + $0x300] sm:$0xff] }
  0xe3   : > { %4188 = vmatprep.mubr.f32.mxu0 %v5227_v34  ;;  %4256 = vmatprep.mubr.f32.mxu1 %v5249_v41 }
  0xe4   : > { %4352 = vmatpush3.msra.mxu1 %v3571_v18  ;;  %4189 = vmatmul.mubr.f32.gmra.mxu0 %v5229_v35  ;;  %v3628_v18 = vld [vmem:[%s5986_s3 + $0x478] sm:$0xff] }
  0xe5   : > { %4257 = vmatmul.mubr.f32.gmra.mxu1 %v5260_v44  ;;  %4289 = vmatprep.subr.mxu0 %v3552_v21 }
  0xe6   : > { %4353 = vmatprep.subr.mxu1 %v3570_v22  ;;  %4290 = vmatpush3.msra.mxu0 %v3552_v21  ;;  %v3627_v21 = vld [vmem:[%s5986_s3 + $0x470] sm:$0xff] }
  0xe7   : > { %4354 = vmatpush3.msra.mxu1 %v3570_v22  ;;  %4191 = vmatprep.mubr.f32.mxu0 %v5244_v39  ;;  %v3626_v22 = vld [vmem:[%s5986_s3 + $0x468] sm:$0xff] }
  0xe8   : > { %4355 = vmatprep.subr.mxu1 %v3569_v24  ;;  %4259 = vmatprep.mubr.f32.mxu1 %v5267_v46 }
  0xe9   : > { %4291 = vmatprep.subr.mxu0 %v3551_v26  ;;  %4356 = vmatpush3.msra.mxu1 %v3569_v24 }
  0xea   : > { %4192 = vmatmul.mubr.f32.gmra.mxu0 %v5249_v41  ;;  %4260 = vmatmul.mubr.f32.gmra.mxu1 %v5400_v27 }
  0xeb   : > { %4292 = vmatpush3.msra.mxu0 %v3551_v26  ;;  %4357 = vmatprep.subr.mxu1 %v3568_v3 }
  0xec   : > { %4293 = vmatprep.subr.mxu0 %v3550_v9  ;;  %4358 = vmatpush3.msra.mxu1 %v3568_v3 }
  0xed   : > { %4194 = vmatprep.mubr.f32.mxu0 %v5260_v44  ;;  %4359 = vmatprep.subr.mxu1 %v3567_v16 }
  0xee   : > { %4262 = vmatprep.mubr.f32.mxu1 %v5414_v31  ;;  %4294 = vmatpush3.msra.mxu0 %v3550_v9 }
  0xef   : > { %4360 = vmatpush3.msra.mxu1 %v3567_v16  ;;  %4195 = vmatmul.mubr.f32.gmra.mxu0 %v5267_v46 }
  0xf0   : > { %4263 = vmatmul.mubr.f32.gmra.mxu1 %v5417_v32  ;;  %4361 = vmatprep.subr.mxu1 %v3566_v33 }
  0xf1   : > { %4295 = vmatprep.subr.mxu0 %v3549_v36  ;;  %4362 = vmatpush3.msra.mxu1 %v3566_v33 }
  0xf2   : > { %4296 = vmatpush3.msra.mxu0 %v3549_v36  ;;  %4363 = vmatprep.subr.mxu1 %v3565_v37 }
  0xf3   : > { %4297 = vmatprep.mubr.f32.mxu0 %v5109_v0  ;;  %4364 = vmatpush3.msra.mxu1 %v3565_v37  ;;  %v3616_v37 = vld [vmem:[%s5986_s3 + $0x418] sm:$0xff] }
  0xf4   : > { %4365 = vmatprep.mubr.f32.mxu1 %v5109_v0  ;;  %4298 = vmatmul.mubr.f32.vlgmr.msra.gmra.mxu0 %v5112_v1  ;;  %v3594_v0 = vld [vmem:[%s5986_s3 + $0x3e8] sm:$0xff] }
  0xf5   : > { %4366 = vmatmul.mubr.f32.vlgmr.msra.gmra.mxu1 %v5112_v1  ;;  %4401 = vmatprep.subr.mxu0 %v3596_v38  ;;  %v3593_v1 = vld [vmem:[%s5986_s3 + $0x3e0] sm:$0xff] }
  0xf6   : > { %4300 = vmatprep.mubr.f32.mxu0 %v5120_v5  ;;  %4402 = vmatpush3.msra.mxu0 %v3596_v38 }
  0xf7   : > { %4368 = vmatprep.mubr.f32.mxu1 %v5120_v5  ;;  %4403 = vmatprep.subr.mxu0 %v3595_v40  ;;  %v3611_v5 = vld [vmem:[%s5986_s3 + $0x370] sm:$0xff] }
  0xf8   : > { %4469 = vmatprep.subr.mxu1 %v3612_v42  ;;  %4301 = vmatmul.mubr.f32.gmra.mxu0 %v5126_v7 }
  0xf9   : > { %4369 = vmatmul.mubr.f32.gmra.mxu1 %v5126_v7  ;;  %4404 = vmatpush3.msra.mxu0 %v3595_v40 }
  0xfa   : > { %4303 = vmatprep.mubr.f32.mxu0 %v5137_v11  ;;  %4405 = vmatprep.subr.mxu0 %v3594_v0 }
  0xfb   : > { %4371 = vmatprep.mubr.f32.mxu1 %v5137_v11  ;;  %4406 = vmatpush3.msra.mxu0 %v3594_v0 }
  0xfc   : > { %4470 = vmatpush3.msra.mxu1 %v3612_v42  ;;  %4304 = vmatmul.mubr.f32.gmra.mxu0 %v5143_v13 }
  0xfd   : > { %4372 = vmatmul.mubr.f32.gmra.mxu1 %v5143_v13  ;;  %4407 = vmatprep.subr.mxu0 %v3593_v1 }
  0xfe   : > { %4306 = vmatprep.mubr.f32.mxu0 %v5150_v15  ;;  %4408 = vmatpush3.msra.mxu0 %v3593_v1  ;;  %v3615_v1 = vld [vmem:[%s5986_s3 + $0x410] sm:$0xff] }
  0xff   : > { %4374 = vmatprep.mubr.f32.mxu1 %v5150_v15  ;;  %4471 = vmatprep.subr.mxu1 %v3611_v5 }
 0x100   : > { %4409 = vmatprep.subr.mxu0 %v3592_v43  ;;  %4307 = vmatmul.mubr.f32.gmra.mxu0 %v5161_v19 }
 0x101   : > { %4375 = vmatmul.mubr.f32.gmra.mxu1 %v5161_v19  ;;  %4410 = vmatpush3.msra.mxu0 %v3592_v43 }
 0x102   : > { %4472 = vmatpush3.msra.mxu1 %v3611_v5  ;;  %4309 = vmatprep.mubr.f32.mxu0 %v5164_v20  ;;  %v5671_v5 = vld [vmem:[#allocation2 + $0x8] sm:$0xff] }
 0x103   : > { %4473 = vmatprep.subr.mxu1 %v3610_v45  ;;  %4377 = vmatprep.mubr.f32.mxu1 %v5164_v20 }
 0x104   : > { %4411 = vmatprep.subr.mxu0 %v3591_v47  ;;  %4474 = vmatpush3.msra.mxu1 %v3610_v45 }
 0x105   : > { %4310 = vmatmul.mubr.f32.gmra.mxu0 %v5176_v23  ;;  %4378 = vmatmul.mubr.f32.gmra.mxu1 %v5176_v23 }
 0x106   : > { %4412 = vmatpush3.msra.mxu0 %v3591_v47  ;;  %4475 = vmatprep.subr.mxu1 %v3609_v48  ;;  %v3614_v47 = vld [vmem:[%s5986_s3 + $0x408] sm:$0xff] }
 0x107   : > { %4413 = vmatprep.subr.mxu0 %v3590_v49  ;;  %4476 = vmatpush3.msra.mxu1 %v3609_v48 }
 0x108   : > { %4312 = vmatprep.mubr.f32.mxu0 %v5181_v25  ;;  %4380 = vmatprep.mubr.f32.mxu1 %v5181_v25 }
 0x109   : > { %4414 = vmatpush3.msra.mxu0 %v3590_v49  ;;  %4381 = vmatmul.mubr.f32.gmra.mxu1 %v5192_v28 }
 0x10a   : > { %4313 = vmatmul.mubr.f32.gmra.mxu0 %v5192_v28  ;;  %4477 = vmatprep.subr.mxu1 %v3608_v50 }
 0x10b   : > { %4415 = vmatprep.subr.mxu0 %v3589_v51  ;;  %4478 = vmatpush3.msra.mxu1 %v3608_v50  ;;  %v5680_v50 = vld [vmem:[#allocation2 + $0xe0] sm:$0xff] }
 0x10c   : > { %4416 = vmatpush3.msra.mxu0 %v3589_v51  ;;  %4315 = vmatprep.mubr.f32.mxu0 %v5198_v4 }
 0x10d   : > { %4383 = vmatprep.mubr.f32.mxu1 %v5198_v4  ;;  %4479 = vmatprep.subr.mxu1 %v3607_v52 }
 0x10e   : > { %4316 = vmatmul.mubr.f32.gmra.mxu0 %v5209_v29  ;;  %4384 = vmatmul.mubr.f32.gmra.mxu1 %v5209_v29 }
 0x10f   : > { %4417 = vmatprep.subr.mxu0 %v3588_v53  ;;  %4480 = vmatpush3.msra.mxu1 %v3607_v52 }
 0x110   : > { %4418 = vmatpush3.msra.mxu0 %v3588_v53  ;;  %4481 = vmatprep.subr.mxu1 %v3606_v54  ;;  %v5684_v53 = vld [vmem:[#allocation2 + $0x38] sm:$0xff] }
 0x111   : > { %4318 = vmatprep.mubr.f32.mxu0 %v5212_v30  ;;  %4386 = vmatprep.mubr.f32.mxu1 %v5212_v30 }
 0x112   : > { %4419 = vmatprep.subr.mxu0 %v3587_v55  ;;  %4482 = vmatpush3.msra.mxu1 %v3606_v54  ;;  %v3613_v54 = vld [vmem:[%s5986_s3 + $0x400] sm:$0xff] }
 0x113   : > { %4319 = vmatmul.mubr.f32.gmra.mxu0 %v5227_v34  ;;  %4387 = vmatmul.mubr.f32.gmra.mxu1 %v5227_v34 }
 0x114   : > { %4420 = vmatpush3.msra.mxu0 %v3587_v55  ;;  %4483 = vmatprep.subr.mxu1 %v3605_v56 }
 0x115   : > { %4421 = vmatprep.subr.mxu0 %v3586_v57  ;;  %4484 = vmatpush3.msra.mxu1 %v3605_v56 }
 0x116   : > { %4321 = vmatprep.mubr.f32.mxu0 %v5229_v35  ;;  %4389 = vmatprep.mubr.f32.mxu1 %v5229_v35 }
 0x117   : > { %4422 = vmatpush3.msra.mxu0 %v3586_v57  ;;  %4390 = vmatmul.mubr.f32.gmra.mxu1 %v5244_v39 }
 0x118   : > { %4322 = vmatmul.mubr.f32.gmra.mxu0 %v5244_v39  ;;  %4485 = vmatprep.subr.mxu1 %v3604_v58 }
 0x119   : > { %4423 = vmatprep.subr.mxu0 %v3585_v59  ;;  %4486 = vmatpush3.msra.mxu1 %v3604_v58 }
 0x11a   : > { %4424 = vmatpush3.msra.mxu0 %v3585_v59  ;;  %4487 = vmatprep.subr.mxu1 %v3603_v60  ;;  %v4684_v59 = vld [vmem:[#allocation2 + $0x30] sm:$0xff] }
 0x11b   : > { %4324 = vmatprep.mubr.f32.mxu0 %v5249_v41  ;;  %4392 = vmatprep.mubr.f32.mxu1 %v5249_v41 }
 0x11c   : > { %4488 = vmatpush3.msra.mxu1 %v3603_v60  ;;  %4325 = vmatmul.mubr.f32.gmra.mxu0 %v5260_v44 }
 0x11d   : > { %4393 = vmatmul.mubr.f32.gmra.mxu1 %v5260_v44  ;;  %4425 = vmatprep.subr.mxu0 %v3584_v61 }
 0x11e   : > { %4489 = vmatprep.subr.mxu1 %v3602_v62  ;;  %4426 = vmatpush3.msra.mxu0 %v3584_v61  ;;  %v4685_v61 = vld [vmem:[#allocation2 + $0x58] sm:$0xff] }
 0x11f   : > { %4490 = vmatpush3.msra.mxu1 %v3602_v62  ;;  %4327 = vmatprep.mubr.f32.mxu0 %v5267_v46 }
 0x120   : > { %4491 = vmatprep.subr.mxu1 %v3601_v63  ;;  %4395 = vmatprep.mubr.f32.mxu1 %v5267_v46 }
 0x121   : > { %4427 = vmatprep.subr.mxu0 %v3583_v2  ;;  %4492 = vmatpush3.msra.mxu1 %v3601_v63  ;;  %v4686_v63 = vld [vmem:[#allocation2 + $0x68] sm:$0xff] }
 0x122   : > { %4328 = vmatmul.mubr.f32.gmra.mxu0 %v5400_v27  ;;  %4396 = vmatmul.mubr.f32.gmra.mxu1 %v5400_v27 }
 0x123   : > { %4428 = vmatpush3.msra.mxu0 %v3583_v2  ;;  %4493 = vmatprep.subr.mxu1 %v3600_v6  ;;  %v4687_v2 = vld [vmem:[#allocation2 + $0x20] sm:$0xff] }
 0x124   : > { %4429 = vmatprep.subr.mxu0 %v3582_v8  ;;  %4494 = vmatpush3.msra.mxu1 %v3600_v6 }
 0x125   : > { %4330 = vmatprep.mubr.f32.mxu0 %v5414_v31  ;;  %4495 = vmatprep.subr.mxu1 %v3599_v10 }
 0x126   : > { %4398 = vmatprep.mubr.f32.mxu1 %v5414_v31  ;;  %4430 = vmatpush3.msra.mxu0 %v3582_v8  ;;  %v4688_v8 = vld [vmem:[#allocation2 + $0x80] sm:$0xff] }
 0x127   : > { %4496 = vmatpush3.msra.mxu1 %v3599_v10  ;;  %4331 = vmatmul.mubr.f32.gmra.mxu0 %v5417_v32  ;;  %v4689_v10 = vld [vmem:[#allocation2 + $0x90] sm:$0xff] }
 0x128   : > { %4399 = vmatmul.mubr.f32.gmra.mxu1 %v5417_v32  ;;  %4497 = vmatprep.subr.mxu1 %v3598_v12 }
 0x129   : > { %4431 = vmatprep.subr.mxu0 %v3581_v14  ;;  %4498 = vmatpush3.msra.mxu1 %v3598_v12 }
 0x12a   : > { %4432 = vmatpush3.msra.mxu0 %v3581_v14  ;;  %4499 = vmatprep.subr.mxu1 %v3597_v17 }
 0x12b   : > { %4433 = vmatprep.mubr.f32.mxu0 %v5126_v7  ;;  %4500 = vmatpush3.msra.mxu1 %v3597_v17 }
 0x12c   : > { %4501 = vmatprep.mubr.f32.mxu1 %v5126_v7  ;;  %4434 = vmatmul.mubr.f32.vlgmr.msra.gmra.mxu0 %v5137_v11  ;;  %v3625_v7 = vld [vmem:[%s5986_s3 + $0x460] sm:$0xff] }
 0x12d   : > { %4502 = vmatmul.mubr.f32.vlgmr.msra.gmra.mxu1 %v5137_v11  ;;  %4537 = vmatprep.subr.mxu0 %v3628_v18  ;;  %v3624_v11 = vld [vmem:[%s5986_s3 + $0x458] sm:$0xff] }
 0x12e   : > { %4436 = vmatprep.mubr.f32.mxu0 %v5143_v13  ;;  %4538 = vmatpush3.msra.mxu0 %v3628_v18 }
 0x12f   : > { %4504 = vmatprep.mubr.f32.mxu1 %v5143_v13  ;;  %4539 = vmatprep.subr.mxu0 %v3627_v21  ;;  %v3623_v13 = vld [vmem:[%s5986_s3 + $0x450] sm:$0xff] }
 0x130   : > { %4605 = vmatprep.subr.mxu1 %v3628_v18  ;;  %4437 = vmatmul.mubr.f32.gmra.mxu0 %v5150_v15 }
 0x131   : > { %4505 = vmatmul.mubr.f32.gmra.mxu1 %v5150_v15  ;;  %4540 = vmatpush3.msra.mxu0 %v3627_v21  ;;  %v3622_v15 = vld [vmem:[%s5986_s3 + $0x448] sm:$0xff] }
 0x132   : > { %4439 = vmatprep.mubr.f32.mxu0 %v5161_v19  ;;  %4541 = vmatprep.subr.mxu0 %v3626_v22 }
 0x133   : > { %4507 = vmatprep.mubr.f32.mxu1 %v5161_v19  ;;  %4542 = vmatpush3.msra.mxu0 %v3626_v22  ;;  %v3621_v19 = vld [vmem:[%s5986_s3 + $0x440] sm:$0xff] }
 0x134   : > { %4621 = vmatpush3.msra.mxu1 %v3628_v18  ;;  %4440 = vmatmul.mubr.f32.gmra.mxu0 %v5164_v20  ;;  %v4690_v18 = vld [vmem:[#allocation2 + $0x48] sm:$0xff] }
 0x135   : > { %4508 = vmatmul.mubr.f32.gmra.mxu1 %v5164_v20  ;;  %4543 = vmatprep.subr.mxu0 %v3625_v7  ;;  %v3620_v20 = vld [vmem:[%s5986_s3 + $0x438] sm:$0xff] }
 0x136   : > { %4442 = vmatprep.mubr.f32.mxu0 %v5176_v23  ;;  %4544 = vmatpush3.msra.mxu0 %v3625_v7 }
 0x137   : > { %4510 = vmatprep.mubr.f32.mxu1 %v5176_v23  ;;  %4606 = vmatprep.subr.mxu1 %v3627_v21 }
 0x138   : > { %4545 = vmatprep.subr.mxu0 %v3624_v11  ;;  %4443 = vmatmul.mubr.f32.gmra.mxu0 %v5181_v25 }
 0x139   : > { %4511 = vmatmul.mubr.f32.gmra.mxu1 %v5181_v25  ;;  %4546 = vmatpush3.msra.mxu0 %v3624_v11 }
 0x13a   : > { %4622 = vmatpush3.msra.mxu1 %v3627_v21  ;;  %4445 = vmatprep.mubr.f32.mxu0 %v5192_v28  ;;  %v4691_v21 = vld [vmem:[#allocation2] sm:$0xff] }
 0x13b   : > { %4607 = vmatprep.subr.mxu1 %v3626_v22  ;;  %4513 = vmatprep.mubr.f32.mxu1 %v5192_v28 }
 0x13c   : > { %4623 = vmatpush3.msra.mxu1 %v3626_v22  ;;  %4547 = vmatprep.subr.mxu0 %v3623_v13  ;;  %v4692_v22 = vld [vmem:[#allocation2 + $0x60] sm:$0xff] }
 0x13d   : > { %4446 = vmatmul.mubr.f32.gmra.mxu0 %v5198_v4  ;;  %4514 = vmatmul.mubr.f32.gmra.mxu1 %v5198_v4 }
 0x13e   : > { %4548 = vmatpush3.msra.mxu0 %v3623_v13  ;;  %4608 = vmatprep.subr.mxu1 %v3625_v7 }
 0x13f   : > { %4549 = vmatprep.subr.mxu0 %v3622_v15  ;;  %4624 = vmatpush3.msra.mxu1 %v3625_v7 }
 0x140   : > { %4448 = vmatprep.mubr.f32.mxu0 %v5209_v29  ;;  %4516 = vmatprep.mubr.f32.mxu1 %v5209_v29  ;;  %v3619_v29 = vld [vmem:[%s5986_s3 + $0x430] sm:$0xff] }
 0x141   : > { %4550 = vmatpush3.msra.mxu0 %v3622_v15  ;;  %4517 = vmatmul.mubr.f32.gmra.mxu1 %v5212_v30 }
 0x142   : > { %4449 = vmatmul.mubr.f32.gmra.mxu0 %v5212_v30  ;;  %4609 = vmatprep.subr.mxu1 %v3624_v11 }
 0x143   : > { %4551 = vmatprep.subr.mxu0 %v3621_v19  ;;  %4625 = vmatpush3.msra.mxu1 %v3624_v11 }
 0x144   : > { %4552 = vmatpush3.msra.mxu0 %v3621_v19  ;;  %4451 = vmatprep.mubr.f32.mxu0 %v5227_v34  ;;  %v4027_v23 = vpop.f32.mrf.mxu0 }
 0x145   : > { %4519 = vmatprep.mubr.f32.mxu1 %v5227_v34  ;;  %v5628_v25 = vpop.f32.mrf.mxu1  ;;  %4610 = vmatprep.subr.mxu1 %v3623_v13  ;;  %1297 = vst [vmem:[#allocation3 + $0x8] sm:$0xff] %v4027_v23 }
 0x146   : > { %4452 = vmatmul.mubr.f32.gmra.mxu0 %v5229_v35  ;;  %4520 = vmatmul.mubr.f32.gmra.mxu1 %v5229_v35  ;;  %v782_v28 = vpop.f32.mrf.mxu0  ;;  %v3618_v35 = vld [vmem:[%s5986_s3 + $0x428] sm:$0xff] }
 0x147   : > { %4553 = vmatprep.subr.mxu0 %v3620_v20  ;;  %v5632_v4 = vpop.f32.mrf.mxu1  ;;  %4626 = vmatpush3.msra.mxu1 %v3623_v13  ;;  %1296 = vst [vmem:[#allocation3] sm:$0xff] %v782_v28  ;;  %v4693_v13 = vld [vmem:[#allocation2 + $0x98] sm:$0xff] }
 0x148   : > { %4554 = vmatpush3.msra.mxu0 %v3620_v20  ;;  %4611 = vmatprep.subr.mxu1 %v3622_v15  ;;  %v4030_v30 = vpop.f32.mrf.mxu0 }
 0x149   : > { %4454 = vmatprep.mubr.f32.mxu0 %v5244_v39  ;;  %v5638_v34 = vpop.f32.mrf.mxu1  ;;  %4522 = vmatprep.mubr.f32.mxu1 %v5244_v39  ;;  %1299 = vst [vmem:[#allocation3 + $0x18] sm:$0xff] %v4030_v30  ;;  %v3617_v39 = vld [vmem:[%s5986_s3 + $0x420] sm:$0xff] }
 0x14a   : > { %4627 = vmatpush3.msra.mxu1 %v3622_v15  ;;  %4555 = vmatprep.subr.mxu0 %v3619_v29  ;;  %v792_v24 = vpop.f32.mrf.mxu0 }
 0x14b   : > { %4455 = vmatmul.mubr.f32.gmra.mxu0 %v5249_v41  ;;  %v993_v26 = vpop.f32.mrf.mxu1  ;;  %4523 = vmatmul.mubr.f32.gmra.mxu1 %v5249_v41  ;;  %1298 = vst [vmem:[#allocation3 + $0x10] sm:$0xff] %v792_v24  ;;  %v4697_v24 = vld [vmem:[#allocation2 + $0x78] sm:$0xff] }
 0x14c   : > { %4556 = vmatpush3.msra.mxu0 %v3619_v29  ;;  %4612 = vmatprep.subr.mxu1 %v3621_v19  ;;  %v4033_v3 = vpop.f32.mrf.mxu0  ;;  %v4698_v26 = vld [vmem:[#allocation2 + $0xc0] sm:$0xff] }
 0x14d   : > { %4557 = vmatprep.subr.mxu0 %v3618_v35  ;;  %v4101_v9 = vpop.f32.mrf.mxu1  ;;  %4628 = vmatpush3.msra.mxu1 %v3621_v19  ;;  %1301 = vst [vmem:[#allocation3 + $0x28] sm:$0xff] %v4033_v3 }
 0x14e   : > { %4457 = vmatprep.mubr.f32.mxu0 %v5260_v44  ;;  %4525 = vmatprep.mubr.f32.mxu1 %v5260_v44  ;;  %v802_v16 = vpop.f32.mrf.mxu0  ;;  %v4699_v9 = vld [vmem:[#allocation2 + $0x88] sm:$0xff] }
 0x14f   : > { %4558 = vmatpush3.msra.mxu0 %v3618_v35  ;;  %v5651_v33 = vpop.f32.mrf.mxu1  ;;  %4526 = vmatmul.mubr.f32.gmra.mxu1 %v5267_v46  ;;  %1300 = vst [vmem:[#allocation3 + $0x20] sm:$0xff] %v802_v16 }
 0x150   : > { %4458 = vmatmul.mubr.f32.gmra.mxu0 %v5267_v46  ;;  %4613 = vmatprep.subr.mxu1 %v3620_v20  ;;  %v4036_v41 = vpop.f32.mrf.mxu0 }
 0x151   : > { %4559 = vmatprep.subr.mxu0 %v3617_v39  ;;  %v5655_v36 = vpop.f32.mrf.mxu1  ;;  %4629 = vmatpush3.msra.mxu1 %v3620_v20  ;;  %1303 = vst [vmem:[#allocation3 + $0x38] sm:$0xff] %v4036_v41  ;;  %v4694_v20 = vld [vmem:[#allocation2 + $0xa0] sm:$0xff] }
 0x152   : > { %4560 = vmatpush3.msra.mxu0 %v3617_v39  ;;  %4614 = vmatprep.subr.mxu1 %v3619_v29  ;;  %v812_v38 = vpop.f32.mrf.mxu0 }
 0x153   : > { %4460 = vmatprep.mubr.f32.mxu0 %v5400_v27  ;;  %v5661_v40 = vpop.f32.mrf.mxu1  ;;  %4528 = vmatprep.mubr.f32.mxu1 %v5400_v27  ;;  %1302 = vst [vmem:[#allocation3 + $0x30] sm:$0xff] %v812_v38 }
 0x154   : > { %4630 = vmatpush3.msra.mxu1 %v3619_v29  ;;  %4461 = vmatmul.mubr.f32.gmra.mxu0 %v5414_v31  ;;  %v4696_v29 = vld [vmem:[#allocation2 + $0xd0] sm:$0xff] }
 0x155   : > { %4529 = vmatmul.mubr.f32.gmra.mxu1 %v5414_v31  ;;  %v4039_v42 = vpop.f32.mrf.mxu0  ;;  %4615 = vmatprep.subr.mxu1 %v3618_v35  ;;  %v5666_v0 = vpop.f32.mrf.mxu1 }
 0x156   : > { %4561 = vmatprep.subr.mxu0 %v3616_v37  ;;  %1305 = vst [vmem:[#allocation3 + $0x48] sm:$0xff] %v4039_v42  ;;  %4631 = vmatpush3.msra.mxu1 %v3618_v35 }
 0x157   : > { %4562 = vmatpush3.msra.mxu0 %v3616_v37  ;;  %v822_v43 = vpop.f32.mrf.mxu0  ;;  %4616 = vmatprep.subr.mxu1 %v3617_v39  ;;  %v1021_v45 = vpop.f32.mrf.mxu1 }
 0x158   : > { %4463 = vmatprep.mubr.f32.mxu0 %v5417_v32  ;;  %1304 = vst [vmem:[#allocation3 + $0x40] sm:$0xff] %v822_v43  ;;  %4531 = vmatprep.mubr.f32.mxu1 %v5417_v32 }
 0x159   : > { %4632 = vmatpush3.msra.mxu1 %v3617_v39  ;;  %4563 = vmatprep.subr.mxu0 %v3615_v1  ;;  %v4110_v49 = vpop.f32.mrf.mxu1 }
 0x15a   : > { %4464 = vmatmul.mubr.f32.gmra.mxu0 %v5671_v5  ;;  %v4042_v48 = vpop.f32.mrf.mxu0  ;;  %4532 = vmatmul.mubr.f32.gmra.mxu1 %v5671_v5 }
 0x15b   : > { %4617 = vmatprep.subr.mxu1 %v3616_v37  ;;  %1307 = vst [vmem:[#allocation3 + $0x58] sm:$0xff] %v4042_v48  ;;  %4564 = vmatpush3.msra.mxu0 %v3615_v1  ;;  %v5682_v52 = vpop.f32.mrf.mxu1 }
 0x15c   : > { %4633 = vmatpush3.msra.mxu1 %v3616_v37  ;;  %v832_v51 = vpop.f32.mrf.mxu0  ;;  %4565 = vmatprep.subr.mxu0 %v3614_v47 }
 0x15d   : > { %4618 = vmatprep.subr.mxu1 %v3615_v1  ;;  %1306 = vst [vmem:[#allocation3 + $0x50] sm:$0xff] %v832_v51  ;;  %4466 = vmatprep.mubr.f32.mxu0 %v5680_v50 }
 0x15e   : > { %4534 = vmatprep.mubr.f32.mxu1 %v5680_v50  ;;  %v4045_v55 = vpop.f32.mrf.mxu0  ;;  %4634 = vmatpush3.msra.mxu1 %v3615_v1  ;;  %v5691_v56 = vpop.f32.mrf.mxu1 }
 0x15f   : > { %4566 = vmatpush3.msra.mxu0 %v3614_v47  ;;  %1309 = vst [vmem:[#allocation3 + $0x68] sm:$0xff] %v4045_v55  ;;  %4535 = vmatmul.mubr.f32.gmra.mxu1 %v5684_v53 }
 0x160   : > { %4467 = vmatmul.mubr.f32.gmra.mxu0 %v5684_v53  ;;  %v842_v57 = vpop.f32.mrf.mxu0  ;;  %4619 = vmatprep.subr.mxu1 %v3614_v47  ;;  %v5695_v58 = vpop.f32.mrf.mxu1 }
 0x161   : > { %4567 = vmatprep.subr.mxu0 %v3613_v54  ;;  %1308 = vst [vmem:[#allocation3 + $0x60] sm:$0xff] %v842_v57  ;;  %4635 = vmatpush3.msra.mxu1 %v3614_v47 }
 0x162   : > { %4568 = vmatpush3.msra.mxu0 %v3613_v54  ;;  %4620 = vmatprep.subr.mxu1 %v3613_v54 }
 0x163   : > { %4569 = vmatprep.mubr.f32.mxu0 %v4684_v59  ;;  %v4048_v60 = vpop.f32.mrf.mxu0  ;;  %4636 = vmatpush3.msra.mxu1 %v3613_v54  ;;  %v5697_v62 = vpop.f32.mrf.mxu1 }
 0x164   : > { %4587 = vmatprep.mubr.f32.mxu1 %v4685_v61  ;;  %1311 = vst [vmem:[#allocation3 + $0x78] sm:$0xff] %v4048_v60  ;;  %4570 = vmatmul.mubr.f32.vlgmr.msra.gmra.mxu0 %v4686_v63 }
 0x165   : > { %4588 = vmatmul.mubr.f32.vlgmr.msra.gmra.mxu1 %v4687_v2  ;;  %v852_v6 = vpop.f32.mrf.mxu0  ;;  %4572 = vmatprep.mubr.f32.mxu0 %v4688_v8  ;;  %v1049_v12 = vpop.f32.mrf.mxu1  ;;  %v1321_v2 = vld [vmem:[#allocation3 + $0x9] sm:$0xff] }
 0x166   : > { %4590 = vmatprep.mubr.f32.mxu1 %v4689_v10  ;;  %1310 = vst [vmem:[#allocation3 + $0x70] sm:$0xff] %v852_v6 }
 0x167   : > { %v4119_v17 = vpop.f32.mrf.mxu1 }
 0x168   : > { %v4051_v14 = vpop.f32.mrf.mxu0  ;;  %4573 = vmatmul.mubr.f32.gmra.mxu0 %v4690_v18 }
 0x169   : > { %4591 = vmatmul.mubr.f32.gmra.mxu1 %v4691_v21  ;;  %1313 = vst [vmem:[#allocation3 + $0x88] sm:$0xff] %v4051_v14  ;;  %4575 = vmatprep.mubr.f32.mxu0 %v4692_v22  ;;  %v5700_v11 = vpop.f32.mrf.mxu1 }
 0x16a   : > { %4593 = vmatprep.mubr.f32.mxu1 %v5260_v44  ;;  %v862_v7 = vpop.f32.mrf.mxu0  ;;  %v4695_v44 = vld [vmem:[#allocation2 + $0xe8] sm:$0xff] }
 0x16b   : > { %1312 = vst [vmem:[#allocation3 + $0x80] sm:$0xff] %v862_v7  ;;  %v1322_v7 = vld [vmem:[#allocation3 + $0x19] sm:$0xff] }
 0x16c   : > { %4576 = vmatmul.mubr.f32.gmra.mxu0 %v4693_v13  ;;  %v4054_v15 = vpop.f32.mrf.mxu0  ;;  %v1323_v13 = vld [vmem:[#allocation3 + $0x21] sm:$0xff] }
 0x16d   : > { %4594 = vmatmul.mubr.f32.gmra.mxu1 %v5267_v46  ;;  %v5703_v19 = vpop.f32.mrf.mxu1  ;;  %4578 = vmatprep.mubr.f32.mxu0 %v4694_v20  ;;  %1315 = vst [vmem:[#allocation3 + $0x98] sm:$0xff] %v4054_v15 }
 0x16e   : > { %4596 = vmatprep.mubr.f32.mxu1 %v5400_v27  ;;  %v872_v23 = vpop.f32.mrf.mxu0 }
 0x16f   : > { %v5706_v28 = vpop.f32.mrf.mxu1  ;;  %1314 = vst [vmem:[#allocation3 + $0x90] sm:$0xff] %v872_v23 }
 0x170   : > { %4579 = vmatmul.mubr.f32.gmra.mxu0 %v4695_v44 }
 0x171   : > { %4597 = vmatmul.mubr.f32.gmra.mxu1 %v5414_v31  ;;  %4581 = vmatprep.mubr.f32.mxu0 %v4696_v29 }
 0x172   : > { %4599 = vmatprep.mubr.f32.mxu1 %v5417_v32  ;;  %v4057_v46 = vpop.f32.mrf.mxu0  ;;  %v5710_v30 = vpop.f32.mrf.mxu1 }
 0x173   : > { %1317 = vst [vmem:[#allocation3 + $0xa8] sm:$0xff] %v4057_v46 }
 0x174   : > { %v882_v35 = vpop.f32.mrf.mxu0  ;;  %4582 = vmatmul.mubr.f32.gmra.mxu0 %v4697_v24  ;;  %v1077_v27 = vpop.f32.mrf.mxu1 }
 0x175   : > { %4600 = vmatmul.mubr.f32.gmra.mxu1 %v5671_v5  ;;  %1316 = vst [vmem:[#allocation3 + $0xa0] sm:$0xff] %v882_v35  ;;  %4584 = vmatprep.mubr.f32.mxu0 %v4698_v26  ;;  %v1324_v26 = vld [vmem:[#allocation3 + $0x31] sm:$0xff] }
 0x176   : > { %4602 = vmatprep.mubr.f32.mxu1 %v5680_v50  ;;  %v1320_v50 = vld [vmem:[#allocation3 + $0x1] sm:$0xff] }
 0x177   : > { %v4060_v31 = vpop.f32.mrf.mxu0 }
 0x178   : > { %v4128_v3 = vpop.f32.mrf.mxu1  ;;  %4585 = vmatmul.mubr.f32.gmra.mxu0 %v4699_v9  ;;  %1319 = vst [vmem:[#allocation3 + $0xb8] sm:$0xff] %v4060_v31 }
 0x179   : > { %4603 = vmatmul.mubr.f32.gmra.mxu1 %v5684_v53  ;;  %v892_v32 = vpop.f32.mrf.mxu0 }
 0x17a   : > { %v5715_v39 = vpop.f32.mrf.mxu1  ;;  %1318 = vst [vmem:[#allocation3 + $0xb0] sm:$0xff] %v892_v32 }
 0x17c   : > { %v4163_v16 = vpop.f32.mrf.mxu0 }
 0x17d   : > { %v4231_v41 = vpop.f32.mrf.mxu1  ;;  %v1362_v42 = vrot.slane %v4163_v16, 2 }
 0x17e   : > { %v1177_v37 = vpop.f32.mrf.mxu0 }
 0x17f   : > { %v1572_v38 = vpop.f32.mrf.mxu1  ;;  %v1361_v1 = vrot.slane %v1177_v37, 2 }
 0x180   : > { %v4166_v5 = vpop.f32.mrf.mxu0 }
 0x181   : > { %v5717_v43 = vpop.f32.mrf.mxu1  ;;  %v1363_v45 = vsel %vm1360_vm2, %v1361_v1, %v1362_v42  ;;  %v1366_v63 = vrot.slane %v4166_v5, 2 }
 0x182   : > { %v1417_v47 = vadd.f32 %v1363_v45, %v5632_v4  ;;  %v1187_v48 = vpop.f32.mrf.mxu0 }
 0x183   : > { %v1582_v49 = vpop.f32.mrf.mxu1  ;;  %v1364_v51 = vrot.slane %v1187_v48, 2 }
 0x184   : > { %v1433_v53 = vadd.f32 %v1417_v47, %v1320_v50  ;;  %v4169_v54 = vpop.f32.mrf.mxu0  ;;  %v1325_v47 = vld [vmem:[#allocation3 + $0x39] sm:$0xff] }
 0x185   : > { %v5721_v55 = vpop.f32.mrf.mxu1  ;;  %v1365_v57 = vsel %vm1360_vm2, %v1362_v42, %v1364_v51  ;;  %v1369_v6 = vrot.slane %v4169_v54, 2 }
 0x186   : > { %1449 = vst [vmem:[#allocation3 + $0x1] sm:$0xff] %v1433_v53  ;;  %v1418_v59 = vadd.f32 %v5628_v25, %v1365_v57  ;;  %v1197_v60 = vpop.f32.mrf.mxu0 }
 0x187   : > { %v1592_v61 = vpop.f32.mrf.mxu1  ;;  %v1367_v8 = vrot.slane %v1197_v60, 2 }
 0x188   : > { %v1434_v4 = vadd.f32 %v1418_v59, %v1321_v2  ;;  %v4172_v10 = vpop.f32.mrf.mxu0 }
 0x189   : > { %v5725_v12 = vpop.f32.mrf.mxu1  ;;  %v1368_v14 = vsel %vm1360_vm2, %v1366_v63, %v1367_v8  ;;  %v1370_v17 = vsel %vm1360_vm2, %v1367_v8, %v1369_v6  ;;  %v1372_v15 = vrot.slane %v4172_v10, 2 }
 0x18a   : > { %1450 = vst [vmem:[#allocation3 + $0x9] sm:$0xff] %v1434_v4  ;;  %v1419_v18 = vadd.f32 %v5638_v34, %v1368_v14  ;;  %v1420_v21 = vadd.f32 %v1370_v17, %v5651_v33  ;;  %v1207_v25 = vpop.f32.mrf.mxu0  ;;  %v1326_v14 = vld [vmem:[#allocation3 + $0x49] sm:$0xff] }
 0x18b   : > { %v5731_v22 = vpop.f32.mrf.mxu1  ;;  %v1371_v20 = vrot.slane %v1207_v25, 2 }
 0x18c   : > { %v1435_v23 = vadd.f32 %v1419_v18, %v1322_v7  ;;  %v1436_v44 = vadd.f32 %v1420_v21, %v1323_v13  ;;  %v1327_v21 = vld [vmem:[#allocation3 + $0x51] sm:$0xff] }
 0x18d   : > { %v4175_v29 = vpop.f32.mrf.mxu0  ;;  %v2087_v46 = vld [vmem:[#allocation3] sm:$0xff]  ;;  %v1373_v35 = vsel %vm1360_vm2, %v1371_v20, %v1372_v15  ;;  %v5734_v24 = vpop.f32.mrf.mxu1 }
 0x18e   : > { %v2111_v27 = vadd.f32 %v2087_v46, %v1572_v38  ;;  %1451 = vst [vmem:[#allocation3 + $0x19] sm:$0xff] %v1435_v23  ;;  %1452 = vst [vmem:[#allocation3 + $0x21] sm:$0xff] %v1436_v44  ;;  %v1421_v34 = vadd.f32 %v1373_v35, %v5661_v40  ;;  %v1376_v50 = vrot.slane %v4175_v29, 2 }
 0x18f   : > { %v1217_v33 = vpop.f32.mrf.mxu0  ;;  %v1612_v3 = vpop.f32.mrf.mxu1 }
 0x190   : > { %v1374_v31 = vrot.slane %v1217_v33, 2  ;;  %2135 = vst [vmem:[#allocation3] sm:$0xff] %v2111_v27  ;;  %v1437_v9 = vadd.f32 %v1421_v34, %v1324_v26 }
 0x191   : > { %v2088_v32 = vld [vmem:[#allocation3 + $0x8] sm:$0xff]  ;;  %v2089_v16 = vld [vmem:[#allocation3 + $0x10] sm:$0xff]  ;;  %v5738_v1 = vpop.f32.mrf.mxu1 }
 0x192   : > { %v1375_v37 = vsel %vm1360_vm2, %v1372_v15, %v1374_v31  ;;  %v4178_v42 = vpop.f32.mrf.mxu0  ;;  %v2112_v5 = vadd.f32 %v4231_v41, %v2088_v32  ;;  %v2113_v45 = vadd.f32 %v2089_v16, %v1582_v49  ;;  %1453 = vst [vmem:[#allocation3 + $0x31] sm:$0xff] %v1437_v9  ;;  %v1329_v32 = vld [vmem:[#allocation3 + $0x69] sm:$0xff] }
 0x193   : > { %v1422_v38 = vadd.f32 %v5655_v36, %v1375_v37  ;;  %v5741_v48 = vpop.f32.mrf.mxu1  ;;  %v1379_v60 = vrot.slane %v4178_v42, 2 }
 0x194   : > { %v1227_v40 = vpop.f32.mrf.mxu0  ;;  %2136 = vst [vmem:[#allocation3 + $0x8] sm:$0xff] %v2112_v5  ;;  %2137 = vst [vmem:[#allocation3 + $0x10] sm:$0xff] %v2113_v45 }
 0x195   : > { %v1438_v51 = vadd.f32 %v1422_v38, %v1325_v47  ;;  %v1377_v53 = vrot.slane %v1227_v40, 2  ;;  %v2090_v54 = vld [vmem:[#allocation3 + $0x18] sm:$0xff]  ;;  %v2092_v57 = vld [vmem:[#allocation3 + $0x28] sm:$0xff]  ;;  %v2091_v59 = vld [vmem:[#allocation3 + $0x20] sm:$0xff] }
 0x196   : > { %v4181_v63 = vpop.f32.mrf.mxu0  ;;  %v2114_v41 = vadd.f32 %v5717_v43, %v2090_v54  ;;  %v2116_v49 = vadd.f32 %v5721_v55, %v2092_v57  ;;  %v2115_v2 = vadd.f32 %v2091_v59, %v1592_v61  ;;  %v5746_v6 = vpop.f32.mrf.mxu1 }
 0x197   : > { %1454 = vst [vmem:[#allocation3 + $0x39] sm:$0xff] %v1438_v51  ;;  %v1378_v36 = vsel %vm1360_vm2, %v1376_v50, %v1377_v53  ;;  %v1380_v8 = vsel %vm1360_vm2, %v1377_v53, %v1379_v60  ;;  %v1382_v43 = vrot.slane %v4181_v63, 2  ;;  %v1330_v63 = vld [vmem:[#allocation3 + $0x79] sm:$0xff] }
 0x198   : > { %v1423_v4 = vadd.f32 %v5666_v0, %v1378_v36  ;;  %v1237_v10 = vpop.f32.mrf.mxu0  ;;  %2138 = vst [vmem:[#allocation3 + $0x18] sm:$0xff] %v2114_v41  ;;  %2140 = vst [vmem:[#allocation3 + $0x28] sm:$0xff] %v2116_v49  ;;  %v1424_v17 = vadd.f32 %v1380_v8, %v5682_v52  ;;  %v1632_v55 = vpop.f32.mrf.mxu1  ;;  %v1328_v52 = vld [vmem:[#allocation3 + $0x61] sm:$0xff] }
 0x199   : > { %2139 = vst [vmem:[#allocation3 + $0x20] sm:$0xff] %v2115_v2  ;;  %v1381_v18 = vrot.slane %v1237_v10, 2  ;;  %v2093_v61 = vld [vmem:[#allocation3 + $0x30] sm:$0xff] }
 0x19a   : > { %v1439_v25 = vadd.f32 %v1423_v4, %v1326_v14  ;;  %v2117_v7 = vadd.f32 %v2093_v61, %v5731_v22  ;;  %v1440_v13 = vadd.f32 %v1424_v17, %v1327_v21 }
 0x19b   : > { %v1383_v15 = vsel %vm1360_vm2, %v1381_v18, %v1382_v43  ;;  %v4184_v20 = vpop.f32.mrf.mxu0  ;;  %v5754_v23 = vpop.f32.mrf.mxu1  ;;  %v1332_v18 = vld [vmem:[#allocation3 + $0x91] sm:$0xff] }
 0x19c   : > { %1455 = vst [vmem:[#allocation3 + $0x49] sm:$0xff] %v1439_v25  ;;  %v1425_v0 = vadd.f32 %v1383_v15, %v5695_v58  ;;  %2141 = vst [vmem:[#allocation3 + $0x30] sm:$0xff] %v2117_v7  ;;  %v1386_v5 = vrot.slane %v4184_v20, 2  ;;  %v1333_v20 = vld [vmem:[#allocation3 + $0x99] sm:$0xff] }
 0x19d   : > { %1456 = vst [vmem:[#allocation3 + $0x51] sm:$0xff] %v1440_v13  ;;  %v1247_v44 = vpop.f32.mrf.mxu0  ;;  %v1642_v34 = vpop.f32.mrf.mxu1 }
 0x19e   : > { %v2094_v29 = vld [vmem:[#allocation3 + $0x38] sm:$0xff]  ;;  %v2095_v46 = vld [vmem:[#allocation3 + $0x40] sm:$0xff]  ;;  %v1441_v35 = vadd.f32 %v1425_v0, %v1328_v52  ;;  %v1384_v27 = vrot.slane %v1247_v44, 2 }
 0x19f   : > { %v2118_v22 = vadd.f32 %v5725_v12, %v2094_v29  ;;  %v2119_v33 = vadd.f32 %v2095_v46, %v1612_v3  ;;  %v5758_v9 = vpop.f32.mrf.mxu1 }
 0x1a0   : > { %1457 = vst [vmem:[#allocation3 + $0x61] sm:$0xff] %v1441_v35  ;;  %v1385_v26 = vsel %vm1360_vm2, %v1382_v43, %v1384_v27  ;;  %v4187_v31 = vpop.f32.mrf.mxu0 }
 0x1a1   : > { %2142 = vst [vmem:[#allocation3 + $0x38] sm:$0xff] %v2118_v22  ;;  %2143 = vst [vmem:[#allocation3 + $0x40] sm:$0xff] %v2119_v33  ;;  %v1426_v58 = vadd.f32 %v5691_v56, %v1385_v26  ;;  %v1652_v37 = vpop.f32.mrf.mxu1  ;;  %v1389_v38 = vrot.slane %v4187_v31, 2 }
 0x1a2   : > { %v1257_v16 = vpop.f32.mrf.mxu0 }
 0x1a3   : > { %v2096_v42 = vld [vmem:[#allocation3 + $0x48] sm:$0xff]  ;;  %v1442_v45 = vadd.f32 %v1426_v58, %v1329_v32  ;;  %v1387_v47 = vrot.slane %v1257_v16, 2 }
 0x1a4   : > { %v2098_v12 = vld [vmem:[#allocation3 + $0x58] sm:$0xff]  ;;  %v2120_v3 = vadd.f32 %v5734_v24, %v2096_v42  ;;  %v2097_v40 = vld [vmem:[#allocation3 + $0x50] sm:$0xff]  ;;  %v4190_v54 = vpop.f32.mrf.mxu0 }
 0x1a5   : > { %v2122_v50 = vadd.f32 %v5738_v1, %v2098_v12  ;;  %v2121_v51 = vadd.f32 %v2097_v40, %v5741_v48  ;;  %1458 = vst [vmem:[#allocation3 + $0x69] sm:$0xff] %v1442_v45  ;;  %v1388_v53 = vsel %vm1360_vm2, %v1386_v5, %v1387_v47  ;;  %v1390_v56 = vsel %vm1360_vm2, %v1387_v47, %v1389_v38  ;;  %v5766_v57 = vpop.f32.mrf.mxu1  ;;  %v1331_v1 = vld [vmem:[#allocation3 + $0x81] sm:$0xff]  ;;  %v1334_v38 = vld [vmem:[#allocation3 + $0xa9] sm:$0xff]  ;;  %v1335_v47 = vld [vmem:[#allocation3 + $0xb1] sm:$0xff] }
 0x1a6   : > { %2144 = vst [vmem:[#allocation3 + $0x48] sm:$0xff] %v2120_v3  ;;  %v1427_v59 = vadd.f32 %v5697_v62, %v1388_v53  ;;  %v1428_v60 = vadd.f32 %v1390_v56, %v5700_v11  ;;  %v1392_v41 = vrot.slane %v4190_v54, 2  ;;  %v1267_v48 = vpop.f32.mrf.mxu0 }
 0x1a7   : > { %2146 = vst [vmem:[#allocation3 + $0x58] sm:$0xff] %v2122_v50  ;;  %2145 = vst [vmem:[#allocation3 + $0x50] sm:$0xff] %v2121_v51  ;;  %v2099_v24 = vld [vmem:[#allocation3 + $0x60] sm:$0xff]  ;;  %v1662_v49 = vpop.f32.mrf.mxu1  ;;  %v1391_v4 = vrot.slane %v1267_v48, 2 }
 0x1a8   : > { %v2123_v2 = vadd.f32 %v2099_v24, %v1632_v55  ;;  %v1443_v36 = vadd.f32 %v1427_v59, %v1330_v63  ;;  %v1444_v8 = vadd.f32 %v1428_v60, %v1331_v1 }
 0x1a9   : > { %v1393_v10 = vsel %vm1360_vm2, %v1391_v4, %v1392_v41 }
 0x1aa   : > { %2147 = vst [vmem:[#allocation3 + $0x60] sm:$0xff] %v2123_v2  ;;  %1459 = vst [vmem:[#allocation3 + $0x79] sm:$0xff] %v1443_v36  ;;  %v4193_v62 = vpop.f32.mrf.mxu0  ;;  %v1429_v11 = vadd.f32 %v1393_v10, %v5706_v28  ;;  %v5772_v14 = vpop.f32.mrf.mxu1 }
 0x1ab   : > { %1460 = vst [vmem:[#allocation3 + $0x81] sm:$0xff] %v1444_v8  ;;  %v1396_v26 = vrot.slane %v4193_v62, 2 }
 0x1ac   : > { %v2100_v17 = vld [vmem:[#allocation3 + $0x68] sm:$0xff]  ;;  %v2101_v43 = vld [vmem:[#allocation3 + $0x70] sm:$0xff]  ;;  %v1277_v61 = vpop.f32.mrf.mxu0  ;;  %v1445_v25 = vadd.f32 %v1429_v11, %v1332_v18  ;;  %v1672_v13 = vpop.f32.mrf.mxu1 }
 0x1ad   : > { %v2124_v21 = vadd.f32 %v5746_v6, %v2100_v17  ;;  %v2125_v55 = vadd.f32 %v2101_v43, %v1642_v34  ;;  %v1394_v7 = vrot.slane %v1277_v61, 2  ;;  %v2160_v43 = vld [vmem:[#allocation3 + $0x9] sm:$0xff] }
 0x1ae   : > { %1461 = vst [vmem:[#allocation3 + $0x91] sm:$0xff] %v1445_v25 }
 0x1af   : > { %2148 = vst [vmem:[#allocation3 + $0x68] sm:$0xff] %v2124_v21  ;;  %2149 = vst [vmem:[#allocation3 + $0x70] sm:$0xff] %v2125_v55  ;;  %v1395_v15 = vsel %vm1360_vm2, %v1392_v41, %v1394_v7  ;;  %v4196_v0 = vpop.f32.mrf.mxu0  ;;  %v2159_v41 = vld [vmem:[#allocation3 + $0x1] sm:$0xff] }
 0x1b0   : > { %v1430_v28 = vadd.f32 %v5703_v19, %v1395_v15  ;;  %v5777_v52 = vpop.f32.mrf.mxu1  ;;  %v1399_v31 = vrot.slane %v4196_v0, 2 }
 0x1b1   : > { %v2102_v44 = vld [vmem:[#allocation3 + $0x78] sm:$0xff]  ;;  %v1287_v22 = vpop.f32.mrf.mxu0 }
 0x1b2   : > { %v2104_v29 = vld [vmem:[#allocation3 + $0x88] sm:$0xff]  ;;  %v2103_v46 = vld [vmem:[#allocation3 + $0x80] sm:$0xff]  ;;  %v2126_v6 = vadd.f32 %v5754_v23, %v2102_v44  ;;  %v1446_v34 = vadd.f32 %v1430_v28, %v1333_v20  ;;  %v1682_v33 = vpop.f32.mrf.mxu1  ;;  %v1397_v58 = vrot.slane %v1287_v22, 2 }
 0x1b3   : > { %v2128_v35 = vadd.f32 %v5758_v9, %v2104_v29  ;;  %v2127_v27 = vadd.f32 %v2103_v46, %v1652_v37  ;;  %v2162_v22 = vld [vmem:[#allocation3 + $0x21] sm:$0xff] }
 0x1b4   : > { %2150 = vst [vmem:[#allocation3 + $0x78] sm:$0xff] %v2126_v6  ;;  %1462 = vst [vmem:[#allocation3 + $0x99] sm:$0xff] %v1446_v34  ;;  %v1398_v19 = vsel %vm1360_vm2, %v1396_v26, %v1397_v58  ;;  %v1400_v32 = vsel %vm1360_vm2, %v1397_v58, %v1399_v31  ;;  %v4299_v16 = vpop.f32.mrf.mxu0 }
 0x1b5   : > { %2152 = vst [vmem:[#allocation3 + $0x88] sm:$0xff] %v2128_v35  ;;  %2151 = vst [vmem:[#allocation3 + $0x80] sm:$0xff] %v2127_v27  ;;  %v4367_v42 = vpop.f32.mrf.mxu1  ;;  %v2105_v23 = vld [vmem:[#allocation3 + $0x90] sm:$0xff]  ;;  %v1431_v9 = vadd.f32 %v5710_v30, %v1398_v19  ;;  %v1432_v37 = vadd.f32 %v1400_v32, %v5715_v39  ;;  %v2161_v35 = vld [vmem:[#allocation3 + $0x19] sm:$0xff] }
 0x1b6   : > { %v2200_v5 = vrot.slane %v4367_v42, 2  ;;  %v2129_v45 = vadd.f32 %v2105_v23, %v1662_v49  ;;  %v1774_v12 = vpop.f32.mrf.mxu0  ;;  %v2163_v32 = vld [vmem:[#allocation3 + $0x31] sm:$0xff] }
 0x1b7   : > { %v1968_v3 = vpop.f32.mrf.mxu1  ;;  %v1447_v40 = vadd.f32 %v1431_v9, %v1334_v38  ;;  %v1448_v50 = vadd.f32 %v1432_v37, %v1335_v47 }
 0x1b8   : > { %v2199_v51 = vrot.slane %v1968_v3, 2  ;;  %2153 = vst [vmem:[#allocation3 + $0x90] sm:$0xff] %v2129_v45  ;;  %v4302_v53 = vpop.f32.mrf.mxu0 }
 0x1b9   : > { %v4370_v56 = vpop.f32.mrf.mxu1  ;;  %1463 = vst [vmem:[#allocation3 + $0xa9] sm:$0xff] %v1447_v40  ;;  %1464 = vst [vmem:[#allocation3 + $0xb1] sm:$0xff] %v1448_v50  ;;  %v2164_v40 = vld [vmem:[#allocation3 + $0x39] sm:$0xff] }
 0x1ba   : > { %v2201_v54 = vsel %vm1360_vm2, %v2199_v51, %v2200_v5  ;;  %v1784_v39 = vpop.f32.mrf.mxu0  ;;  %v2204_v8 = vrot.slane %v4370_v56, 2 }
 0x1bb   : > { %v2106_v59 = vld [vmem:[#allocation3 + $0x98] sm:$0xff]  ;;  %v2107_v30 = vld [vmem:[#allocation3 + $0xa0] sm:$0xff]  ;;  %v2255_v60 = vadd.f32 %v2201_v54, %v1774_v12  ;;  %v1978_v24 = vpop.f32.mrf.mxu1 }
 0x1bc   : > { %v2130_v63 = vadd.f32 %v5766_v57, %v2106_v59  ;;  %v2131_v1 = vadd.f32 %v2107_v30, %v1672_v13  ;;  %v2202_v48 = vrot.slane %v1978_v24, 2  ;;  %v4305_v2 = vpop.f32.mrf.mxu0 }
 0x1bd   : > { %v2271_v49 = vadd.f32 %v2255_v60, %v2159_v41  ;;  %v4373_v36 = vpop.f32.mrf.mxu1 }
 0x1be   : > { %2154 = vst [vmem:[#allocation3 + $0x98] sm:$0xff] %v2130_v63  ;;  %2155 = vst [vmem:[#allocation3 + $0xa0] sm:$0xff] %v2131_v1  ;;  %v2203_v4 = vsel %vm1360_vm2, %v2200_v5, %v2202_v48  ;;  %v2207_v62 = vrot.slane %v4373_v36, 2  ;;  %v1793_v11 = vpop.f32.mrf.mxu0  ;;  %v2165_v63 = vld [vmem:[#allocation3 + $0x49] sm:$0xff]  ;;  %v2166_v1 = vld [vmem:[#allocation3 + $0x51] sm:$0xff] }
 0x1bf   : > { %2287 = vst [vmem:[#allocation3 + $0x1] sm:$0xff] %v2271_v49  ;;  %v2256_v10 = vadd.f32 %v4299_v16, %v2203_v4  ;;  %v1988_v17 = vpop.f32.mrf.mxu1 }
 0x1c0   : > { %v2205_v18 = vrot.slane %v1988_v17, 2  ;;  %v2108_v61 = vld [vmem:[#allocation3 + $0xa8] sm:$0xff]  ;;  %v2110_v57 = vld [vmem:[#allocation3 + $0xb8] sm:$0xff]  ;;  %v2109_v21 = vld [vmem:[#allocation3 + $0xb0] sm:$0xff]  ;;  %v4308_v25 = vpop.f32.mrf.mxu0 }
 0x1c1   : > { %v2272_v55 = vadd.f32 %v2256_v10, %v2160_v43  ;;  %v4376_v7 = vpop.f32.mrf.mxu1  ;;  %v2132_v13 = vadd.f32 %v5772_v14, %v2108_v61  ;;  %v2134_v15 = vadd.f32 %v5777_v52, %v2110_v57  ;;  %v2133_v20 = vadd.f32 %v2109_v21, %v1682_v33 }
 0x1c2   : > { %v2206_v28 = vsel %vm1360_vm2, %v2204_v8, %v2205_v18  ;;  %v2208_v0 = vsel %vm1360_vm2, %v2205_v18, %v2207_v62  ;;  %v2210_v29 = vrot.slane %v4376_v7, 2  ;;  %v1802_v46 = vpop.f32.mrf.mxu0 }
 0x1c3   : > { %2288 = vst [vmem:[#allocation3 + $0x9] sm:$0xff] %v2272_v55  ;;  %v2257_v44 = vadd.f32 %v4302_v53, %v2206_v28  ;;  %v1998_v6 = vpop.f32.mrf.mxu1  ;;  %2156 = vst [vmem:[#allocation3 + $0xa8] sm:$0xff] %v2132_v13  ;;  %v2258_v27 = vadd.f32 %v2208_v0, %v1793_v11  ;;  %v2167_v11 = vld [vmem:[#allocation3 + $0x61] sm:$0xff] }
 0x1c4   : > { %2158 = vst [vmem:[#allocation3 + $0xb8] sm:$0xff] %v2134_v15  ;;  %2157 = vst [vmem:[#allocation3 + $0xb0] sm:$0xff] %v2133_v20  ;;  %v2209_v34 = vrot.slane %v1998_v6, 2  ;;  %v2168_v20 = vld [vmem:[#allocation3 + $0x69] sm:$0xff] }
 0x1c5   : > { %v2273_v14 = vadd.f32 %v2257_v44, %v2161_v35  ;;  %v4311_v26 = vpop.f32.mrf.mxu0  ;;  %v2274_v52 = vadd.f32 %v2258_v27, %v2162_v22  ;;  %v4379_v31 = vpop.f32.mrf.mxu1  ;;  %v2169_v22 = vld [vmem:[#allocation3 + $0x79] sm:$0xff] }
 0x1c6   : > { %v2211_v33 = vsel %vm1360_vm2, %v2209_v34, %v2210_v29  ;;  %v2214_v5 = vrot.slane %v4379_v31, 2 }
 0x1c7   : > { %2289 = vst [vmem:[#allocation3 + $0x19] sm:$0xff] %v2273_v14  ;;  %v2259_v58 = vadd.f32 %v2211_v33, %v1802_v46  ;;  %v1812_v19 = vpop.f32.mrf.mxu0  ;;  %2290 = vst [vmem:[#allocation3 + $0x21] sm:$0xff] %v2274_v52  ;;  %v2008_v16 = vpop.f32.mrf.mxu1  ;;  %v2170_v14 = vld [vmem:[#allocation3 + $0x81] sm:$0xff] }
 0x1c8   : > { %v2212_v23 = vrot.slane %v2008_v16, 2 }
 0x1c9   : > { %v2275_v42 = vadd.f32 %v2259_v58, %v2163_v32  ;;  %v4382_v37 = vpop.f32.mrf.mxu1 }
 0x1ca   : > { %v4314_v9 = vpop.f32.mrf.mxu0  ;;  %v2213_v45 = vsel %vm1360_vm2, %v2210_v29, %v2212_v23  ;;  %v2217_v38 = vrot.slane %v4382_v37, 2  ;;  %v2171_v23 = vld [vmem:[#allocation3 + $0x91] sm:$0xff] }
 0x1cb   : > { %2291 = vst [vmem:[#allocation3 + $0x31] sm:$0xff] %v2275_v42  ;;  %v2260_v47 = vadd.f32 %v4308_v25, %v2213_v45  ;;  %v2018_v3 = vpop.f32.mrf.mxu1 }
 0x1cc   : > { %v1821_v12 = vpop.f32.mrf.mxu0  ;;  %v2215_v50 = vrot.slane %v2018_v3, 2 }
 0x1cd   : > { %v2276_v51 = vadd.f32 %v2260_v47, %v2164_v40 }
 0x1ce   : > { %v4317_v53 = vpop.f32.mrf.mxu0  ;;  %v2216_v56 = vsel %vm1360_vm2, %v2214_v5, %v2215_v50  ;;  %v2218_v54 = vsel %vm1360_vm2, %v2215_v50, %v2217_v38  ;;  %v4385_v59 = vpop.f32.mrf.mxu1 }
 0x1cf   : > { %2292 = vst [vmem:[#allocation3 + $0x39] sm:$0xff] %v2276_v51  ;;  %v2261_v30 = vadd.f32 %v4311_v26, %v2216_v56  ;;  %v2262_v60 = vadd.f32 %v2218_v54, %v1821_v12  ;;  %v2220_v39 = vrot.slane %v4385_v59, 2  ;;  %v2172_v51 = vld [vmem:[#allocation3 + $0x99] sm:$0xff] }
 0x1d0   : > { %v1830_v24 = vpop.f32.mrf.mxu0  ;;  %v2028_v41 = vpop.f32.mrf.mxu1 }
 0x1d1   : > { %v2277_v48 = vadd.f32 %v2261_v30, %v2165_v63  ;;  %v2278_v49 = vadd.f32 %v2262_v60, %v2166_v1  ;;  %v2219_v2 = vrot.slane %v2028_v41, 2 }
 0x1d3   : > { %v4320_v36 = vpop.f32.mrf.mxu0  ;;  %2293 = vst [vmem:[#allocation3 + $0x49] sm:$0xff] %v2277_v48  ;;  %2294 = vst [vmem:[#allocation3 + $0x51] sm:$0xff] %v2278_v49  ;;  %v2221_v8 = vsel %vm1360_vm2, %v2219_v2, %v2220_v39  ;;  %v4388_v4 = vpop.f32.mrf.mxu1  ;;  %v2173_v49 = vld [vmem:[#allocation3 + $0xa9] sm:$0xff]  ;;  %v2174_v2 = vld [vmem:[#allocation3 + $0xb1] sm:$0xff] }
 0x1d4   : > { %v2263_v10 = vadd.f32 %v2221_v8, %v1830_v24  ;;  %v2224_v21 = vrot.slane %v4388_v4, 2  ;;  %v2927_v24 = vld [vmem:[#allocation3 + $0x8] sm:$0xff]  ;;  %v2926_v8 = vld [vmem:[#allocation3] sm:$0xff] }
 0x1d5   : > { %v1840_v62 = vpop.f32.mrf.mxu0  ;;  %v2038_v17 = vpop.f32.mrf.mxu1 }
 0x1d6   : > { %v2279_v43 = vadd.f32 %v2263_v10, %v2167_v11  ;;  %v2222_v18 = vrot.slane %v2038_v17, 2 }
 0x1d7   : > { %v4391_v57 = vpop.f32.mrf.mxu1 }
 0x1d8   : > { %v4323_v61 = vpop.f32.mrf.mxu0  ;;  %2295 = vst [vmem:[#allocation3 + $0x61] sm:$0xff] %v2279_v43  ;;  %v2223_v55 = vsel %vm1360_vm2, %v2220_v39, %v2222_v18  ;;  %v2227_v25 = vrot.slane %v4391_v57, 2  ;;  %v2929_v43 = vld [vmem:[#allocation3 + $0x18] sm:$0xff] }
 0x1d9   : > { %v2264_v7 = vadd.f32 %v4317_v53, %v2223_v55  ;;  %v2048_v15 = vpop.f32.mrf.mxu1 }
 0x1da   : > { %v1849_v13 = vpop.f32.mrf.mxu0  ;;  %v2225_v28 = vrot.slane %v2048_v15, 2 }
 0x1db   : > { %v2280_v0 = vadd.f32 %v2264_v7, %v2168_v20 }
 0x1dc   : > { %v2226_v44 = vsel %vm1360_vm2, %v2224_v21, %v2225_v28  ;;  %v2228_v29 = vsel %vm1360_vm2, %v2225_v28, %v2227_v25  ;;  %v4326_v46 = vpop.f32.mrf.mxu0  ;;  %v2928_v21 = vld [vmem:[#allocation3 + $0x10] sm:$0xff] }
 0x1dd   : > { %v4394_v6 = vpop.f32.mrf.mxu1  ;;  %2296 = vst [vmem:[#allocation3 + $0x69] sm:$0xff] %v2280_v0  ;;  %v2265_v35 = vadd.f32 %v4320_v36, %v2226_v44  ;;  %v2266_v27 = vadd.f32 %v2228_v29, %v1849_v13  ;;  %v2931_v13 = vld [vmem:[#allocation3 + $0x28] sm:$0xff]  ;;  %v2930_v0 = vld [vmem:[#allocation3 + $0x20] sm:$0xff] }
 0x1de   : > { %v2230_v34 = vrot.slane %v4394_v6, 2  ;;  %v1858_v26 = vpop.f32.mrf.mxu0  ;;  %v2933_v6 = vld [vmem:[#allocation3 + $0x38] sm:$0xff] }
 0x1df   : > { %v2058_v52 = vpop.f32.mrf.mxu1  ;;  %v2281_v33 = vadd.f32 %v2265_v35, %v2169_v22  ;;  %v2282_v31 = vadd.f32 %v2266_v27, %v2170_v14  ;;  %v2932_v22 = vld [vmem:[#allocation3 + $0x30] sm:$0xff] }
 0x1e0   : > { %v2229_v58 = vrot.slane %v2058_v52, 2 }
 0x1e1   : > { %2297 = vst [vmem:[#allocation3 + $0x79] sm:$0xff] %v2281_v33  ;;  %2298 = vst [vmem:[#allocation3 + $0x81] sm:$0xff] %v2282_v31  ;;  %v2935_v33 = vld [vmem:[#allocation3 + $0x48] sm:$0xff] }
 0x1e2   : > { %v2231_v19 = vsel %vm1360_vm2, %v2229_v58, %v2230_v34  ;;  %v4329_v32 = vpop.f32.mrf.mxu0  ;;  %v4397_v42 = vpop.f32.mrf.mxu1 }
 0x1e3   : > { %v2267_v16 = vadd.f32 %v2231_v19, %v1858_v26  ;;  %v2234_v3 = vrot.slane %v4397_v42, 2 }
 0x1e4   : > { %v1868_v9 = vpop.f32.mrf.mxu0  ;;  %v2068_v5 = vpop.f32.mrf.mxu1 }
 0x1e5   : > { %v2283_v37 = vadd.f32 %v2267_v16, %v2171_v23  ;;  %v2232_v45 = vrot.slane %v2068_v5, 2  ;;  %v2937_v9 = vld [vmem:[#allocation3 + $0x58] sm:$0xff] }
 0x1e7   : > { %2299 = vst [vmem:[#allocation3 + $0x91] sm:$0xff] %v2283_v37  ;;  %v2233_v38 = vsel %vm1360_vm2, %v2230_v34, %v2232_v45  ;;  %v4332_v47 = vpop.f32.mrf.mxu0 }
 0x1e8   : > { %v4400_v12 = vpop.f32.mrf.mxu1  ;;  %v2268_v40 = vadd.f32 %v4326_v46, %v2233_v38  ;;  %v2936_v38 = vld [vmem:[#allocation3 + $0x50] sm:$0xff] }
 0x1e9   : > { %v2237_v50 = vrot.slane %v4400_v12, 2  ;;  %v1877_v53 = vpop.f32.mrf.mxu0 }
 0x1ea   : > { %v2078_v56 = vpop.f32.mrf.mxu1  ;;  %v2284_v54 = vadd.f32 %v2268_v40, %v2172_v51  ;;  %v2939_v40 = vld [vmem:[#allocation3 + $0x68] sm:$0xff] }
 0x1eb   : > { %v2235_v59 = vrot.slane %v2078_v56, 2  ;;  %v2938_v56 = vld [vmem:[#allocation3 + $0x60] sm:$0xff] }
 0x1ec   : > { %2300 = vst [vmem:[#allocation3 + $0x99] sm:$0xff] %v2284_v54  ;;  %v4435_v39 = vpop.f32.mrf.mxu0 }
 0x1ed   : > { %v2236_v30 = vsel %vm1360_vm2, %v2234_v3, %v2235_v59  ;;  %v2238_v60 = vsel %vm1360_vm2, %v2235_v59, %v2237_v50  ;;  %v5804_v63 = vpop.f32.mrf.mxu1  ;;  %v2951_v48 = vadd.f32 %v4435_v39, %v2927_v24 }
 0x1ee   : > { %v2269_v1 = vadd.f32 %v4329_v32, %v2236_v30  ;;  %v2270_v41 = vadd.f32 %v2238_v60, %v1877_v53  ;;  %v2411_v36 = vpop.f32.mrf.mxu0  ;;  %v2934_v32 = vld [vmem:[#allocation3 + $0x40] sm:$0xff]  ;;  %v2941_v60 = vld [vmem:[#allocation3 + $0x78] sm:$0xff] }
 0x1ef   : > { %v5806_v4 = vpop.f32.mrf.mxu1  ;;  %2975 = vst [vmem:[#allocation3 + $0x8] sm:$0xff] %v2951_v48  ;;  %v2950_v11 = vadd.f32 %v2926_v8, %v2411_v36  ;;  %v2943_v36 = vld [vmem:[#allocation3 + $0x88] sm:$0xff] }
 0x1f0   : > { %v2285_v10 = vadd.f32 %v2269_v1, %v2173_v49  ;;  %v2286_v62 = vadd.f32 %v2270_v41, %v2174_v2  ;;  %v4438_v17 = vpop.f32.mrf.mxu0  ;;  %v2940_v41 = vld [vmem:[#allocation3 + $0x70] sm:$0xff] }
 0x1f1   : > { %v5808_v18 = vpop.f32.mrf.mxu1  ;;  %2974 = vst [vmem:[#allocation3] sm:$0xff] %v2950_v11  ;;  %v2953_v61 = vadd.f32 %v4438_v17, %v2929_v43  ;;  %v2942_v11 = vld [vmem:[#allocation3 + $0x80] sm:$0xff] }
 0x1f2   : > { %2301 = vst [vmem:[#allocation3 + $0xa9] sm:$0xff] %v2285_v10  ;;  %2302 = vst [vmem:[#allocation3 + $0xb1] sm:$0xff] %v2286_v62  ;;  %v2421_v57 = vpop.f32.mrf.mxu0 }
 0x1f3   : > { %v2623_v55 = vpop.f32.mrf.mxu1  ;;  %2977 = vst [vmem:[#allocation3 + $0x18] sm:$0xff] %v2953_v61  ;;  %v2952_v25 = vadd.f32 %v2928_v21, %v2421_v57  ;;  %v2945_v57 = vld [vmem:[#allocation3 + $0x98] sm:$0xff] }
 0x1f4   : > { %v4441_v7 = vpop.f32.mrf.mxu0 }
 0x1f5   : > { %v4509_v15 = vpop.f32.mrf.mxu1  ;;  %2976 = vst [vmem:[#allocation3 + $0x10] sm:$0xff] %v2952_v25  ;;  %v2955_v20 = vadd.f32 %v4441_v7, %v2931_v13  ;;  %v2944_v7 = vld [vmem:[#allocation3 + $0x90] sm:$0xff] }
 0x1f6   : > { %v2431_v28 = vpop.f32.mrf.mxu0 }
 0x1f7   : > { %v5810_v44 = vpop.f32.mrf.mxu1  ;;  %2979 = vst [vmem:[#allocation3 + $0x28] sm:$0xff] %v2955_v20  ;;  %v2954_v29 = vadd.f32 %v2930_v0, %v2431_v28 }
 0x1f8   : > { %v4444_v46 = vpop.f32.mrf.mxu0 }
 0x1f9   : > { %v5812_v35 = vpop.f32.mrf.mxu1  ;;  %2978 = vst [vmem:[#allocation3 + $0x20] sm:$0xff] %v2954_v29  ;;  %v2957_v27 = vadd.f32 %v4444_v46, %v2933_v6  ;;  %v2947_v28 = vld [vmem:[#allocation3 + $0xa8] sm:$0xff]  ;;  %v2946_v6 = vld [vmem:[#allocation3 + $0xa0] sm:$0xff] }
 0x1fa   : > { %v2441_v34 = vpop.f32.mrf.mxu0 }
 0x1fb   : > { %v5814_v14 = vpop.f32.mrf.mxu1  ;;  %2981 = vst [vmem:[#allocation3 + $0x38] sm:$0xff] %v2957_v27  ;;  %v2956_v26 = vadd.f32 %v2932_v22, %v2441_v34 }
 0x1fd   : > { %v4447_v52 = vpop.f32.mrf.mxu0  ;;  %2980 = vst [vmem:[#allocation3 + $0x30] sm:$0xff] %v2956_v26  ;;  %v5816_v58 = vpop.f32.mrf.mxu1  ;;  %v2949_v26 = vld [vmem:[#allocation3 + $0xb8] sm:$0xff] }
 0x1fe   : > { %v2959_v31 = vadd.f32 %v4447_v52, %v2935_v33 }
 0x1ff   : > { %v2451_v19 = vpop.f32.mrf.mxu0  ;;  %v2651_v42 = vpop.f32.mrf.mxu1 }
 0x200   : > { %2983 = vst [vmem:[#allocation3 + $0x48] sm:$0xff] %v2959_v31  ;;  %v2958_v16 = vadd.f32 %v2934_v32, %v2451_v19  ;;  %v2948_v19 = vld [vmem:[#allocation3 + $0xb0] sm:$0xff] }
 0x201   : > { %v4518_v37 = vpop.f32.mrf.mxu1 }
 0x202   : > { %2982 = vst [vmem:[#allocation3 + $0x40] sm:$0xff] %v2958_v16  ;;  %v4450_v23 = vpop.f32.mrf.mxu0 }
 0x203   : > { %v2961_v5 = vadd.f32 %v4450_v23, %v2937_v9  ;;  %v5818_v47 = vpop.f32.mrf.mxu1 }
 0x204   : > { %v2461_v45 = vpop.f32.mrf.mxu0 }
 0x205   : > { %2985 = vst [vmem:[#allocation3 + $0x58] sm:$0xff] %v2961_v5  ;;  %v2960_v12 = vadd.f32 %v2936_v38, %v2461_v45 }
 0x206   : > { %v4453_v3 = vpop.f32.mrf.mxu0  ;;  %v5820_v51 = vpop.f32.mrf.mxu1 }
 0x207   : > { %2984 = vst [vmem:[#allocation3 + $0x50] sm:$0xff] %v2960_v12  ;;  %v2963_v50 = vadd.f32 %v4453_v3, %v2939_v40 }
 0x208   : > { %v2471_v53 = vpop.f32.mrf.mxu0  ;;  %v5822_v59 = vpop.f32.mrf.mxu1 }
 0x209   : > { %2987 = vst [vmem:[#allocation3 + $0x68] sm:$0xff] %v2963_v50  ;;  %v2962_v54 = vadd.f32 %v2938_v56, %v2471_v53 }
 0x20b   : > { %2986 = vst [vmem:[#allocation3 + $0x60] sm:$0xff] %v2962_v54  ;;  %v4456_v30 = vpop.f32.mrf.mxu0  ;;  %v5824_v24 = vpop.f32.mrf.mxu1 }
 0x20c   : > { %v2965_v39 = vadd.f32 %v4456_v30, %v2941_v60 }
 0x20d   : > { %v2481_v1 = vpop.f32.mrf.mxu0  ;;  %v2679_v49 = vpop.f32.mrf.mxu1 }
 0x20e   : > { %2989 = vst [vmem:[#allocation3 + $0x78] sm:$0xff] %v2965_v39  ;;  %v2964_v48 = vadd.f32 %v2940_v41, %v2481_v1  ;;  %v2998_v39 = vld [vmem:[#allocation3 + $0x1] sm:$0xff] }
 0x20f   : > { %v4527_v8 = vpop.f32.mrf.mxu1 }
 0x210   : > { %2988 = vst [vmem:[#allocation3 + $0x70] sm:$0xff] %v2964_v48  ;;  %v4459_v2 = vpop.f32.mrf.mxu0 }
 0x211   : > { %v2967_v10 = vadd.f32 %v4459_v2, %v2943_v36  ;;  %v5826_v17 = vpop.f32.mrf.mxu1 }
 0x212   : > { %v2491_v62 = vpop.f32.mrf.mxu0  ;;  %v3006_v1 = vld [vmem:[#allocation3 + $0x61] sm:$0xff] }
 0x213   : > { %2991 = vst [vmem:[#allocation3 + $0x88] sm:$0xff] %v2967_v10  ;;  %v2966_v43 = vadd.f32 %v2942_v11, %v2491_v62 }
 0x214   : > { %v4462_v61 = vpop.f32.mrf.mxu0 }
 0x215   : > { %2990 = vst [vmem:[#allocation3 + $0x80] sm:$0xff] %v2966_v43  ;;  %v5828_v21 = vpop.f32.mrf.mxu1  ;;  %v2969_v55 = vadd.f32 %v4462_v61, %v2945_v57 }
 0x216   : > { %v2501_v25 = vpop.f32.mrf.mxu0 }
 0x217   : > { %v5830_v13 = vpop.f32.mrf.mxu1  ;;  %2993 = vst [vmem:[#allocation3 + $0x98] sm:$0xff] %v2969_v55  ;;  %v2968_v15 = vadd.f32 %v2944_v7, %v2501_v25  ;;  %v2999_v25 = vld [vmem:[#allocation3 + $0x9] sm:$0xff] }
 0x218   : > { %v3007_v7 = vld [vmem:[#allocation3 + $0x69] sm:$0xff] }
 0x219   : > { %2992 = vst [vmem:[#allocation3 + $0x90] sm:$0xff] %v2968_v15 }
 0x21a   : > { %v4465_v20 = vpop.f32.mrf.mxu0  ;;  %v5832_v29 = vpop.f32.mrf.mxu1 }
 0x21b   : > { %v2971_v0 = vadd.f32 %v4465_v20, %v2947_v28 }
 0x21c   : > { %v2511_v46 = vpop.f32.mrf.mxu0  ;;  %v2707_v34 = vpop.f32.mrf.mxu1 }
 0x21d   : > { %2995 = vst [vmem:[#allocation3 + $0xa8] sm:$0xff] %v2971_v0  ;;  %v2970_v27 = vadd.f32 %v2946_v6, %v2511_v46 }
 0x21f   : > { %2994 = vst [vmem:[#allocation3 + $0xa0] sm:$0xff] %v2970_v27  ;;  %v4536_v52 = vpop.f32.mrf.mxu1 }
 0x220   : > { %v4468_v22 = vpop.f32.mrf.mxu0  ;;  %v3001_v52 = vld [vmem:[#allocation3 + $0x21] sm:$0xff] }
 0x221   : > { %v2973_v33 = vadd.f32 %v4468_v22, %v2949_v26  ;;  %v5834_v32 = vpop.f32.mrf.mxu1  ;;  %v3000_v26 = vld [vmem:[#allocation3 + $0x19] sm:$0xff] }
 0x222   : > { %v2521_v31 = vpop.f32.mrf.mxu0 }
 0x223   : > { %2997 = vst [vmem:[#allocation3 + $0xb8] sm:$0xff] %v2973_v33  ;;  %v2972_v16 = vadd.f32 %v2948_v19, %v2521_v31 }
 0x224   : > { %v4571_v42 = vpop.f32.mrf.mxu0 }
 0x225   : > { %2996 = vst [vmem:[#allocation3 + $0xb0] sm:$0xff] %v2972_v16  ;;  %v4589_v23 = vpop.f32.mrf.mxu1  ;;  %v3039_v45 = vrot.slane %v4571_v42, 2 }
 0x226   : > { %v3059_v9 = vrot.slane %v4589_v23, 2  ;;  %v2807_v37 = vpop.f32.mrf.mxu0 }
 0x227   : > { %v2867_v5 = vpop.f32.mrf.mxu1  ;;  %v3038_v38 = vrot.slane %v2807_v37, 2  ;;  %v3009_v37 = vld [vmem:[#allocation3 + $0x81] sm:$0xff] }
 0x228   : > { %v3058_v12 = vrot.slane %v2867_v5, 2  ;;  %v4574_v3 = vpop.f32.mrf.mxu0 }
 0x229   : > { %v4592_v40 = vpop.f32.mrf.mxu1  ;;  %v3040_v50 = vsel %vm1360_vm2, %v3038_v38, %v3039_v45  ;;  %v3043_v55 = vrot.slane %v4574_v3, 2 }
 0x22a   : > { %v3060_v53 = vsel %vm1360_vm2, %v3058_v12, %v3059_v9  ;;  %v3094_v56 = vadd.f32 %v3040_v50, %v5806_v4  ;;  %v2817_v30 = vpop.f32.mrf.mxu0  ;;  %v3063_v10 = vrot.slane %v4592_v40, 2 }
 0x22b   : > { %v3102_v54 = vadd.f32 %v3060_v53, %v5822_v59  ;;  %v2877_v60 = vpop.f32.mrf.mxu1  ;;  %v3041_v41 = vrot.slane %v2817_v30, 2 }
 0x22c   : > { %v3061_v48 = vrot.slane %v2877_v60, 2  ;;  %v3110_v49 = vadd.f32 %v3094_v56, %v2998_v39  ;;  %v4577_v36 = vpop.f32.mrf.mxu0 }
 0x22d   : > { %v3118_v2 = vadd.f32 %v3102_v54, %v3006_v1  ;;  %v4595_v8 = vpop.f32.mrf.mxu1  ;;  %v3042_v62 = vsel %vm1360_vm2, %v3039_v45, %v3041_v41  ;;  %v3046_v15 = vrot.slane %v4577_v36, 2  ;;  %v3002_v41 = vld [vmem:[#allocation3 + $0x31] sm:$0xff] }
 0x22e   : > { %v3062_v11 = vsel %vm1360_vm2, %v3059_v9, %v3061_v48  ;;  %v3066_v43 = vrot.slane %v4595_v8, 2  ;;  %3126 = vst [vmem:[#allocation3 + $0x1] sm:$0xff] %v3110_v49  ;;  %v3095_v4 = vadd.f32 %v5804_v63, %v3042_v62  ;;  %v2827_v61 = vpop.f32.mrf.mxu0  ;;  %v3008_v9 = vld [vmem:[#allocation3 + $0x79] sm:$0xff]  ;;  %v3010_v48 = vld [vmem:[#allocation3 + $0x91] sm:$0xff] }
 0x22f   : > { %3134 = vst [vmem:[#allocation3 + $0x61] sm:$0xff] %v3118_v2  ;;  %v3103_v59 = vadd.f32 %v5820_v51, %v3062_v11  ;;  %v2887_v57 = vpop.f32.mrf.mxu1  ;;  %v3044_v20 = vrot.slane %v2827_v61, 2 }
 0x230   : > { %v3064_v28 = vrot.slane %v2887_v57, 2  ;;  %v3111_v0 = vadd.f32 %v3095_v4, %v2999_v25  ;;  %v4580_v6 = vpop.f32.mrf.mxu0 }
 0x231   : > { %v3119_v46 = vadd.f32 %v3103_v59, %v3007_v7  ;;  %v4598_v27 = vpop.f32.mrf.mxu1  ;;  %v3045_v34 = vsel %vm1360_vm2, %v3043_v55, %v3044_v20  ;;  %v3047_v22 = vsel %vm1360_vm2, %v3044_v20, %v3046_v15  ;;  %v3049_v5 = vrot.slane %v4580_v6, 2  ;;  %v3003_v15 = vld [vmem:[#allocation3 + $0x39] sm:$0xff] }
 0x232   : > { %v3065_v63 = vsel %vm1360_vm2, %v3063_v10, %v3064_v28  ;;  %v3067_v51 = vsel %vm1360_vm2, %v3064_v28, %v3066_v43  ;;  %3127 = vst [vmem:[#allocation3 + $0x9] sm:$0xff] %v3111_v0  ;;  %v3096_v33 = vadd.f32 %v5808_v18, %v3045_v34  ;;  %v3097_v31 = vadd.f32 %v3047_v22, %v5810_v44  ;;  %v2837_v42 = vpop.f32.mrf.mxu0 }
 0x233   : > { %3135 = vst [vmem:[#allocation3 + $0x69] sm:$0xff] %v3119_v46  ;;  %v3104_v19 = vadd.f32 %v5824_v24, %v3065_v63  ;;  %v3105_v16 = vadd.f32 %v3067_v51, %v5826_v17  ;;  %v2897_v23 = vpop.f32.mrf.mxu1  ;;  %v3069_v45 = vrot.slane %v4598_v27, 2  ;;  %v3048_v38 = vrot.slane %v2837_v42, 2  ;;  %v3011_v27 = vld [vmem:[#allocation3 + $0x99] sm:$0xff] }
 0x234   : > { %v3068_v12 = vrot.slane %v2897_v23, 2  ;;  %v3112_v3 = vadd.f32 %v3096_v33, %v3000_v26  ;;  %v3113_v40 = vadd.f32 %v3097_v31, %v3001_v52  ;;  %v4583_v53 = vpop.f32.mrf.mxu0 }
 0x235   : > { %v3120_v50 = vadd.f32 %v3104_v19, %v3008_v9  ;;  %v3121_v18 = vadd.f32 %v3105_v16, %v3009_v37  ;;  %v5852_v44 = vpop.f32.mrf.mxu1  ;;  %v5854_v24 = vld [vmem:[#allocation3] sm:$0xff]  ;;  %v3050_v56 = vsel %vm1360_vm2, %v3048_v38, %v3049_v5  ;;  %v3053_v61 = vrot.slane %v4583_v53, 2  ;;  %v3004_v37 = vld [vmem:[#allocation3 + $0x49] sm:$0xff]  ;;  %v3005_v38 = vld [vmem:[#allocation3 + $0x51] sm:$0xff] }
 0x236   : > { %v5856_v17 = vld [vmem:[#allocation3 + $0x60] sm:$0xff]  ;;  %v3070_v54 = vsel %vm1360_vm2, %v3068_v12, %v3069_v45  ;;  %3166 = vst [vmem:[%s4848_s10] sm:$0xff] %v5854_v24  ;;  %3128 = vst [vmem:[#allocation3 + $0x19] sm:$0xff] %v3112_v3  ;;  %v3098_v30 = vadd.f32 %v3050_v56, %v5814_v14  ;;  %v2847_v39 = vpop.f32.mrf.mxu0  ;;  %v3073_v57 = vrot.slane %v5852_v44, 2  ;;  %v3012_v3 = vld [vmem:[#allocation3 + $0xa9] sm:$0xff] }
 0x237   : > { %3178 = vst [vmem:[%s4848_s10 + $0x60] sm:$0xff] %v5856_v17  ;;  %3129 = vst [vmem:[#allocation3 + $0x21] sm:$0xff] %v3113_v40  ;;  %v3106_v60 = vadd.f32 %v3070_v54, %v5830_v13  ;;  %v2907_v1 = vpop.f32.mrf.mxu1  ;;  %v3051_v49 = vrot.slane %v2847_v39, 2 }
 0x238   : > { %3136 = vst [vmem:[#allocation3 + $0x79] sm:$0xff] %v3120_v50  ;;  %3137 = vst [vmem:[#allocation3 + $0x81] sm:$0xff] %v3121_v18  ;;  %v3071_v2 = vrot.slane %v2907_v1, 2  ;;  %v3114_v36 = vadd.f32 %v3098_v30, %v3002_v41  ;;  %v4586_v10 = vpop.f32.mrf.mxu0  ;;  %v3013_v50 = vld [vmem:[#allocation3 + $0xb1] sm:$0xff] }
 0x239   : > { %v3122_v8 = vadd.f32 %v3106_v60, %v3010_v48  ;;  %v4604_v62 = vpop.f32.mrf.mxu1  ;;  %v5866_v11 = vld [vmem:[#allocation3 + $0x8] sm:$0xff]  ;;  %v5868_v43 = vld [vmem:[#allocation3 + $0x10] sm:$0xff]  ;;  %v3052_v13 = vsel %vm1360_vm2, %v3049_v5, %v3051_v49  ;;  %v3056_v28 = vrot.slane %v4586_v10, 2 }
 0x23a   : > { %v5870_v14 = vld [vmem:[#allocation3 + $0x68] sm:$0xff]  ;;  %v3072_v4 = vsel %vm1360_vm2, %v3069_v45, %v3071_v2  ;;  %3167 = vst [vmem:[%s4848_s10 + $0x8] sm:$0xff] %v5866_v11  ;;  %3168 = vst [vmem:[%s4848_s10 + $0x10] sm:$0xff] %v5868_v43  ;;  %v5878_v59 = vld [vmem:[#allocation3 + $0x70] sm:$0xff]  ;;  %v3099_v55 = vadd.f32 %v5812_v35, %v3052_v13  ;;  %v2857_v25 = vpop.f32.mrf.mxu0  ;;  %v3076_v51 = vrot.slane %v4604_v62, 2  ;;  %v3220_v39 = vmul.f32 %v5866_v11, %v5866_v11 }
 0x23b   : > { %3179 = vst [vmem:[%s4848_s10 + $0x68] sm:$0xff] %v5870_v14  ;;  %3130 = vst [vmem:[#allocation3 + $0x31] sm:$0xff] %v3114_v36  ;;  %v2917_v7 = vpop.f32.mrf.mxu1  ;;  %v3107_v20 = vadd.f32 %v5828_v21, %v3072_v4  ;;  %v3054_v0 = vrot.slane %v2857_v25, 2  ;;  %v3221_v41 = vmul.f32 %v5868_v43, %v5868_v43  ;;  %v3231_v36 = vmul.f32 %v5856_v17, %v5856_v17 }
 0x23c   : > { %3138 = vst [vmem:[#allocation3 + $0x91] sm:$0xff] %v3122_v8  ;;  %3180 = vst [vmem:[%s4848_s10 + $0x70] sm:$0xff] %v5878_v59  ;;  %v3074_v46 = vrot.slane %v2917_v7, 2  ;;  %v3115_v6 = vadd.f32 %v3099_v55, %v3003_v15  ;;  %v3232_v13 = vmul.f32 %v5870_v14, %v5870_v14 }
 0x23d   : > { %v3145_v34 = vld [vmem:[#allocation3 + $0x18] sm:$0xff]  ;;  %v3123_v63 = vadd.f32 %v3107_v20, %v3011_v27  ;;  %v3055_v26 = vsel %vm1360_vm2, %v3053_v61, %v3054_v0  ;;  %v3057_v52 = vsel %vm1360_vm2, %v3054_v0, %v3056_v28 }
 0x23e   : > { %v3146_v22 = vld [vmem:[#allocation3 + $0x20] sm:$0xff]  ;;  %v3147_v35 = vld [vmem:[#allocation3 + $0x28] sm:$0xff]  ;;  %3169 = vst [vmem:[%s4848_s10 + $0x18] sm:$0xff] %v3145_v34  ;;  %3131 = vst [vmem:[#allocation3 + $0x39] sm:$0xff] %v3115_v6  ;;  %v3075_v19 = vsel %vm1360_vm2, %v3073_v57, %v3074_v46  ;;  %v3100_v16 = vadd.f32 %v5816_v58, %v3055_v26  ;;  %v3101_v42 = vadd.f32 %v3057_v52, %v5818_v47 }
 0x23f   : > { %3170 = vst [vmem:[%s4848_s10 + $0x20] sm:$0xff] %v3146_v22  ;;  %3171 = vst [vmem:[%s4848_s10 + $0x28] sm:$0xff] %v3147_v35  ;;  %v5892_v21 = vld [vmem:[#allocation3 + $0x78] sm:$0xff]  ;;  %v5894_v33 = vld [vmem:[#allocation3 + $0x80] sm:$0xff]  ;;  %v3077_v5 = vsel %vm1360_vm2, %v3074_v46, %v3076_v51  ;;  %v3108_v45 = vadd.f32 %v5832_v29, %v3075_v19  ;;  %v3222_v18 = vmul.f32 %v3145_v34, %v3145_v34 }
 0x240   : > { %v5896_v31 = vld [vmem:[#allocation3 + $0x88] sm:$0xff]  ;;  %3181 = vst [vmem:[%s4848_s10 + $0x78] sm:$0xff] %v5892_v21  ;;  %3182 = vst [vmem:[%s4848_s10 + $0x80] sm:$0xff] %v5894_v33  ;;  %v3116_v12 = vadd.f32 %v3100_v16, %v3004_v37  ;;  %v3117_v40 = vadd.f32 %v3101_v42, %v3005_v38  ;;  %v3109_v58 = vadd.f32 %v3077_v5, %v5834_v32 }
 0x241   : > { %3183 = vst [vmem:[%s4848_s10 + $0x88] sm:$0xff] %v5896_v31  ;;  %3139 = vst [vmem:[#allocation3 + $0x99] sm:$0xff] %v3123_v63  ;;  %v3124_v47 = vadd.f32 %v3108_v45, %v3012_v3  ;;  %v3223_v56 = vmul.f32 %v3146_v22, %v3146_v22  ;;  %v3224_v54 = vmul.f32 %v3147_v35, %v3147_v35 }
 0x242   : > { %v3148_v23 = vld [vmem:[#allocation3 + $0x30] sm:$0xff]  ;;  %3132 = vst [vmem:[#allocation3 + $0x49] sm:$0xff] %v3116_v12  ;;  %3133 = vst [vmem:[#allocation3 + $0x51] sm:$0xff] %v3117_v40  ;;  %v3125_v29 = vadd.f32 %v3109_v58, %v3013_v50  ;;  %v3219_v32 = vmul.f32 %v5854_v24, %v5854_v24  ;;  %v3190_v48 = vadd.f32 %v3145_v34, %v5854_v24 }
 0x243   : > { %v5907_v9 = vld [vmem:[#allocation3 + $0x90] sm:$0xff]  ;;  %3172 = vst [vmem:[%s4848_s10 + $0x30] sm:$0xff] %v3148_v23  ;;  %3140 = vst [vmem:[#allocation3 + $0xa9] sm:$0xff] %v3124_v47  ;;  %v3225_v1 = vmul.f32 %v3148_v23, %v3148_v23  ;;  %v3197_v8 = vadd.f32 %v3146_v22, %v5866_v11  ;;  %v3204_v10 = vadd.f32 %v3147_v35, %v5868_v43 }
 0x244   : > { %3184 = vst [vmem:[%s4848_s10 + $0x90] sm:$0xff] %v5907_v9  ;;  %3141 = vst [vmem:[#allocation3 + $0xb1] sm:$0xff] %v3125_v29  ;;  %v3243_v62 = vadd.f32 %v3222_v18, %v3219_v32  ;;  %v3250_v4 = vadd.f32 %v3223_v56, %v3220_v39  ;;  %v3257_v61 = vadd.f32 %v3224_v54, %v3221_v41 }
 0x245   : > { %v3149_v53 = vld [vmem:[#allocation3 + $0x38] sm:$0xff]  ;;  %v3150_v44 = vld [vmem:[#allocation3 + $0x40] sm:$0xff]  ;;  %v3191_v57 = vadd.f32 %v3190_v48, %v3148_v23  ;;  %v3233_v24 = vmul.f32 %v5878_v59, %v5878_v59  ;;  %v3234_v63 = vmul.f32 %v5892_v21, %v5892_v21  ;;  %v3235_v51 = vmul.f32 %v5894_v33, %v5894_v33 }
 0x246   : > { %3173 = vst [vmem:[%s4848_s10 + $0x38] sm:$0xff] %v3149_v53  ;;  %3174 = vst [vmem:[%s4848_s10 + $0x40] sm:$0xff] %v3150_v44  ;;  %v3226_v49 = vmul.f32 %v3149_v53, %v3149_v53  ;;  %v3227_v2 = vmul.f32 %v3150_v44, %v3150_v44  ;;  %v3244_v55 = vadd.f32 %v3243_v62, %v3225_v1 }
 0x247   : > { %v3198_v25 = vadd.f32 %v3197_v8, %v3149_v53  ;;  %v3205_v7 = vadd.f32 %v3204_v10, %v3150_v44  ;;  %v3236_v45 = vmul.f32 %v5896_v31, %v5896_v31  ;;  %v3237_v38 = vmul.f32 %v5907_v9, %v5907_v9 }
 0x248   : > { %v5917_v30 = vld [vmem:[#allocation3 + $0x98] sm:$0xff]  ;;  %v5919_v60 = vld [vmem:[#allocation3 + $0xa0] sm:$0xff]  ;;  %v3251_v15 = vadd.f32 %v3250_v4, %v3226_v49  ;;  %v3258_v20 = vadd.f32 %v3257_v61, %v3227_v2 }
 0x249   : > { %3185 = vst [vmem:[%s4848_s10 + $0x98] sm:$0xff] %v5917_v30  ;;  %3186 = vst [vmem:[%s4848_s10 + $0xa0] sm:$0xff] %v5919_v60  ;;  %v3151_v11 = vld [vmem:[#allocation3 + $0x48] sm:$0xff]  ;;  %v3152_v43 = vld [vmem:[#allocation3 + $0x50] sm:$0xff]  ;;  %v3239_v47 = vmul.f32 %v5919_v60, %v5919_v60 }
 0x24a   : > { %v3153_v28 = vld [vmem:[#allocation3 + $0x58] sm:$0xff]  ;;  %3175 = vst [vmem:[%s4848_s10 + $0x48] sm:$0xff] %v3151_v11  ;;  %v3192_v0 = vadd.f32 %v3191_v57, %v3151_v11  ;;  %v3228_v46 = vmul.f32 %v3151_v11, %v3151_v11  ;;  %v3163_v6 = vld [vmem:[#allocation3 + $0xa8] sm:$0xff]  ;;  %3176 = vst [vmem:[%s4848_s10 + $0x50] sm:$0xff] %v3152_v43  ;;  %v3199_v27 = vadd.f32 %v3198_v25, %v3152_v43 }
 0x24b   : > { %3177 = vst [vmem:[%s4848_s10 + $0x58] sm:$0xff] %v3153_v28  ;;  %v3206_v34 = vadd.f32 %v3205_v7, %v3153_v28  ;;  %v3229_v22 = vmul.f32 %v3152_v43, %v3152_v43  ;;  %v3230_v35 = vmul.f32 %v3153_v28, %v3153_v28  ;;  %3187 = vst [vmem:[%s4848_s10 + $0xa8] sm:$0xff] %v3163_v6  ;;  %v3164_v19 = vld [vmem:[#allocation3 + $0xb0] sm:$0xff]  ;;  %v3165_v16 = vld [vmem:[#allocation3 + $0xb8] sm:$0xff] }
 0x24c   : > { %v3193_v26 = vadd.f32 %v3192_v0, %v5856_v17  ;;  %v3245_v52 = vadd.f32 %v3244_v55, %v3228_v46  ;;  %v3200_v42 = vadd.f32 %v3199_v27, %v5870_v14  ;;  %3188 = vst [vmem:[%s4848_s10 + $0xb0] sm:$0xff] %v3164_v19  ;;  %3189 = vst [vmem:[%s4848_s10 + $0xb8] sm:$0xff] %v3165_v16 }
 0x24d   : > { %v3207_v23 = vadd.f32 %v3206_v34, %v5878_v59  ;;  %v3252_v37 = vadd.f32 %v3251_v15, %v3229_v22  ;;  %v3259_v5 = vadd.f32 %v3258_v20, %v3230_v35  ;;  %v3238_v59 = vmul.f32 %v5917_v30, %v5917_v30 }
 0x24e   : > { %v3246_v12 = vadd.f32 %v3245_v52, %v3231_v36  ;;  %v3194_v17 = vadd.f32 %v3193_v26, %v5892_v21  ;;  %v3201_v58 = vadd.f32 %v3200_v42, %v5894_v33  ;;  %v3240_v54 = vmul.f32 %v3163_v6, %v3163_v6 }
 0x24f   : > { %v3253_v3 = vadd.f32 %v3252_v37, %v3232_v13  ;;  %v3260_v40 = vadd.f32 %v3259_v5, %v3233_v24  ;;  %v3208_v14 = vadd.f32 %v3207_v23, %v5896_v31  ;;  %v3241_v31 = vmul.f32 %v3164_v19, %v3164_v19 }
 0x250   : > { %v3195_v50 = vadd.f32 %v3194_v17, %v5907_v9  ;;  %v3247_v18 = vadd.f32 %v3246_v12, %v3234_v63  ;;  %v3202_v53 = vadd.f32 %v3201_v58, %v5917_v30  ;;  %v3242_v2 = vmul.f32 %v3165_v16, %v3165_v16 }
 0x251   : > { %v3209_v44 = vadd.f32 %v3208_v14, %v5919_v60  ;;  %v3254_v21 = vadd.f32 %v3253_v3, %v3235_v51  ;;  %v3261_v29 = vadd.f32 %v3260_v40, %v3236_v45 }
 0x252   : > { %v3196_v56 = vadd.f32 %v3195_v50, %v3163_v6  ;;  %v3248_v33 = vadd.f32 %v3247_v18, %v3237_v38  ;;  %v3203_v32 = vadd.f32 %v3202_v53, %v3164_v19 }
 0x253   : > { %v3255_v39 = vadd.f32 %v3254_v21, %v3238_v59  ;;  %v3262_v1 = vadd.f32 %v3261_v29, %v3239_v47  ;;  %v3210_v48 = vadd.f32 %v3209_v44, %v3165_v16 }
 0x254   : > { %v3249_v41 = vadd.f32 %v3248_v33, %v3240_v54  ;;  %v3211_v49 = vadd.f32 %v3203_v32, %v3196_v56 }
 0x255   : > { %v3256_v36 = vadd.f32 %v3255_v39, %v3241_v31  ;;  %v3263_v8 = vadd.f32 %v3262_v1, %v3242_v2 }
 0x256   : > { %v3212_v9 = vadd.f32 %v3211_v49, %v3210_v48 }
 0x257   : > { %v3264_v10 = vadd.f32 %v3256_v36, %v3249_v41 }
 0x258   : > { %v3213_v30 = vrot.slane %v3212_v9, 4 }
 0x259   : > { %v3265_v60 = vadd.f32 %v3264_v10, %v3263_v8 }
 0x25a   : > { %v3214_v62 = vadd.f32 %v3213_v30, %v3212_v9 }
 0x25b   : > { %v3266_v13 = vrot.slane %v3265_v60, 4 }
 0x25c   : > { %v3215_v4 = vrot.slane %v3214_v62, 2 }
 0x25d   : > { %v3267_v61 = vadd.f32 %v3266_v13, %v3265_v60 }
 0x25e   : > { %v3216_v57 = vadd.f32 %v3215_v4, %v3214_v62 }
 0x25f   : > { %v3268_v24 = vrot.slane %v3267_v61, 2 }
 0x260   : > { %v3217_v55 = vrot.slane %v3216_v57, 1 }
 0x261   : > { %v3269_v25 = vadd.f32 %v3268_v24, %v3267_v61 }
 0x262   : > { %v3218_v11 = vadd.f32 %v3217_v55, %v3216_v57 }
 0x263   : > { %v3270_v7 = vrot.slane %v3269_v25, 1 }
 0x265   : > { %v3271_v15 = vadd.f32 %v3270_v7, %v3269_v25 }
 0x267   : > { %v3273_v20 = vsel %vm3272_vm3, %v3218_v11, %v3271_v15 }
 0x268   : > { %3274 = vst [vmem:[%s4894_s20] sm:$0x3] %v3273_v20 }
 0x269 PF: > { %s17_s25 = sadd.s32 1, %s4738_s25   ;;  %s5992_s21 = smov %s4730_s23 }
 0x26a   : > { %p14_p1 = scmp.ge.s32.totalorder %s17_s25, 6   ;;  %s5993_s22 = smov %s4734_s24 }
 0x26b   : > { %s5994_s23 = smov %s5997_s26  ;;  %s5995_s24 = smov %s6001_s27 }
 0x26c   :  { %16 = sbr.rel (!%p14_p1) target bundleno = 3 (0x3), region = 116 }

</bundles_post_ra>
